<compile_context>
chip_gen: v6e
topology: v6e:2x2x1
jax: 0.10.0
libtpu: 0.0.40
codegen_flags: <defaults>
</compile_context>

<pallas_src>
import jax
import jax.numpy as jnp
from jax.experimental import pallas as pl
from jax.experimental.pallas import tpu as pltpu

TB = 8  # images per grid step == one sublane tile


# ----------------------------------------------------------------------------
# Fused forward kernel (one grid step == TB images).
# ----------------------------------------------------------------------------
def _fused_cnn_kernel(p1_ref, w1_ref, b1_ref, w2_ref, b2_ref, w3_ref, b3_ref,
                      w4_ref, b4_ref, wl_ref, bl_ref, out_ref):
    """Activations use layout (H, W, TB, C): batch on the sublane dim (one full
    8-row tile), channels on the lane dim.  Every reshape below touches leading
    dims only (layout-free), every MXU operand is a dense 2-D matrix, and the
    output store is a full (8, 128) tile."""

    def pad_hw(v):
        # 1-px zero border on the two leading (spatial) dims via concat.
        h, w, tb, c = v.shape
        zr = jnp.zeros((1, w, tb, c), v.dtype)
        v = jnp.concatenate([zr, v, zr], axis=0)
        zc = jnp.zeros((h + 2, 1, tb, c), v.dtype)
        return jnp.concatenate([zc, v, zc], axis=1)

    def conv3x3_s2(act, ho, wo, w_ref, b_ref):
        # act: (2*ho, 2*wo, TB, cin) f32 -> ReLU(conv) as (ho*wo*TB, cout) f32.
        cin = act.shape[-1]
        ap = pad_hw(act)                                    # (2ho+2, 2wo+2, TB, cin)
        aw = ap.reshape(2 * ho + 2, wo + 1, 2, TB, cin)     # split W: col = 2n + q
        taps = {}
        for kw in range(3):
            ws, wq = (1, 0) if kw == 2 else (0, kw)
            cols = aw[:, ws:ws + wo, wq]                    # (2ho+2, wo, TB, cin)
            rows = cols.reshape(ho + 1, 2, wo, TB, cin)     # split H: row = 2m + p
            taps[(0, kw)] = rows[0:ho, 0]                   # kh = 0 -> rows 2i
            taps[(1, kw)] = rows[0:ho, 1]                   # kh = 1 -> rows 2i+1
            taps[(2, kw)] = rows[1:ho + 1, 0]               # kh = 2 -> rows 2i+2
        # Feature order (kh, kw, cin) matches the packed weight layout.
        pat = jnp.concatenate(
            [taps[(kh, kw)] for kh in range(3) for kw in range(3)],
            axis=-1)                                        # (ho, wo, TB, 9*cin)
        pat = pat.reshape(ho * wo * TB, 9 * cin).astype(jnp.bfloat16)
        acc = jnp.dot(pat, w_ref[...], preferred_element_type=jnp.float32)
        return jnp.maximum(acc + b_ref[...], 0.0)           # (ho*wo*TB, cout)

    # conv1 (Cin=1): im2col precomputed in the wrapper, rows ordered (i, j, b).
    p1 = p1_ref[0].reshape(16 * 16 * TB, 9).astype(jnp.bfloat16)
    o1 = jnp.dot(p1, w1_ref[...], preferred_element_type=jnp.float32)
    o1 = jnp.maximum(o1 + b1_ref[...], 0.0)                 # (2048, 32)

    o2 = conv3x3_s2(o1.reshape(16, 16, TB, 32), 8, 8, w2_ref, b2_ref)  # (512, 64)
    o3 = conv3x3_s2(o2.reshape(8, 8, TB, 64), 4, 4, w3_ref, b3_ref)    # (128, 128)
    o4 = conv3x3_s2(o3.reshape(4, 4, TB, 128), 2, 2, w4_ref, b4_ref)   # (32, 256)

    # Linear: per-image feature index = (h*2 + w)*256 + c; the linear weight was
    # pre-permuted to this order and zero-padded to 128 output lanes.
    o4r = o4.reshape(2, 2, TB, 256)
    feat = jnp.concatenate([o4r[0, 0], o4r[0, 1], o4r[1, 0], o4r[1, 1]],
                           axis=-1).astype(jnp.bfloat16)    # (TB, 1024)
    out_ref[...] = (jnp.dot(feat, wl_ref[...],
                            preferred_element_type=jnp.float32) + bl_ref[...])


# ----------------------------------------------------------------------------
# XLA-side glue: conv1 im2col (input-only, tiny) and the fused pallas_call.
# ----------------------------------------------------------------------------
def _conv1_patches(x):
    """x: (B, 1, 32, 32) NCHW -> (B, 16, 16, 9) stride-2 3x3 patches, taps (kh, kw)."""
    B = x.shape[0]
    xp = jnp.pad(x.reshape(B, 32, 32), ((0, 0), (1, 1), (1, 1)))
    taps = [xp[:, kh:kh + 32:2, kw:kw + 32:2]
            for kh in range(3) for kw in range(3)]          # each (B, 16, 16)
    return jnp.stack(taps, axis=-1)                         # (B, 16, 16, 9)


def cnn_forward(packed, x):
    """x: (B, 1, 32, 32) NCHW float32 -> logits (B, 10) float32."""
    B = x.shape[0]
    nsteps = (B + TB - 1) // TB
    bpad = nsteps * TB
    p1 = _conv1_patches(x.astype(jnp.float32))
    if bpad != B:
        p1 = jnp.pad(p1, ((0, bpad - B), (0, 0), (0, 0), (0, 0)))
    # Rows ordered (i, j, b) within each batch group -> (nsteps, 256, TB, 9).
    p1 = p1.reshape(nsteps, TB, 16, 16, 9).transpose(0, 2, 3, 1, 4)
    p1 = p1.reshape(nsteps, 16 * 16, TB, 9)

    w1, b1 = packed["conv1"]
    w2, b2 = packed["conv2"]
    w3, b3 = packed["conv3"]
    w4, b4 = packed["conv4"]
    wl, bl = packed["linear"]

    c2 = lambda s: (0, 0)
    out = pl.pallas_call(
        _fused_cnn_kernel,
        grid=(nsteps,),
        in_specs=[
            pl.BlockSpec((1, 256, TB, 9), lambda s: (s, 0, 0, 0)),  # conv1 patches
            pl.BlockSpec((9, 32), c2),     pl.BlockSpec((1, 32), c2),
            pl.BlockSpec((288, 64), c2),   pl.BlockSpec((1, 64), c2),
            pl.BlockSpec((576, 128), c2),  pl.BlockSpec((1, 128), c2),
            pl.BlockSpec((1152, 256), c2), pl.BlockSpec((1, 256), c2),
            pl.BlockSpec((1024, 128), c2), pl.BlockSpec((1, 128), c2),
        ],
        out_specs=pl.BlockSpec((TB, 128), lambda s: (s, 0)),
        out_shape=jax.ShapeDtypeStruct((bpad, 128), jnp.float32),
        compiler_params=pltpu.CompilerParams(
            dimension_semantics=("parallel",)),
    )(p1, w1, b1, w2, b2, w3, b3, w4, b4, wl, bl)
    return out[:B, :10]


# ----------------------------------------------------------------------------
# Parameter init (PyTorch-style) and one-time packing into kernel layouts.
# ----------------------------------------------------------------------------
def init_params(key):
    def conv_p(key, cout, cin, k=3):
        k1, k2 = jax.random.split(key)
        bound = 1.0 / jnp.sqrt(cin * k * k)
        w = jax.random.uniform(k1, (cout, cin, k, k), jnp.float32, -bound, bound)
        b = jax.random.uniform(k2, (cout,), jnp.float32, -bound, bound)
        return w, b

    def lin_p(key, cout, cin):
        k1, k2 = jax.random.split(key)
        bound = 1.0 / jnp.sqrt(cin)
        w = jax.random.uniform(k1, (cout, cin), jnp.float32, -bound, bound)
        b = jax.random.uniform(k2, (cout,), jnp.float32, -bound, bound)
        return w, b

    keys = jax.random.split(key, 5)
    return {
        "conv1": conv_p(keys[0], 32, 1),
        "conv2": conv_p(keys[1], 64, 32),
        "conv3": conv_p(keys[2], 128, 64),
        "conv4": conv_p(keys[3], 256, 128),
        "linear": lin_p(keys[4], 10, 256 * 2 * 2),
    }


def pack_params(params):
    """Pre-transpose/reshape weights ONCE (outside the traced forward)."""
    packed = {}
    for name in ("conv1", "conv2", "conv3", "conv4"):
        w, b = params[name]
        cout, cin, k, _ = w.shape
        w_mat = w.transpose(2, 3, 1, 0).reshape(k * k * cin, cout)  # (kh,kw,cin)->cout
        packed[name] = (w_mat.astype(jnp.bfloat16),
                        b.reshape(1, cout).astype(jnp.float32))
    wl, bl = params["linear"]                        # (10, 1024), (10,)
    # torch flatten of NCHW (256,2,2): feature = c*4 + (h*2+w);
    # kernel flatten: feature = (h*2+w)*256 + c  ->  permute rows accordingly.
    wl_perm = wl.reshape(10, 256, 4).transpose(2, 1, 0).reshape(1024, 10)
    wl_pad = jnp.zeros((1024, 128), jnp.float32).at[:, :10].set(wl_perm)
    bl_pad = jnp.zeros((1, 128), jnp.float32).at[0, :10].set(bl)
    packed["linear"] = (wl_pad.astype(jnp.bfloat16), bl_pad)
    return packed


if __name__ == "__main__":
    key = jax.random.PRNGKey(0)
    pkey, xkey = jax.random.split(key)
    params = init_params(pkey)
    packed = pack_params(params)   # one-time layout packing (not per-forward)

    # 32x32 input so four stride-2 convs leave 2x2 (linear expects 256*2*2).
    x = jax.random.normal(xkey, (2, 1, 32, 32), dtype=jnp.float32)

    logits = jax.jit(cnn_forward)(packed, x)
    jax.block_until_ready(logits)
    assert logits.shape == (2, 10) and logits.dtype == jnp.float32
    assert bool(jnp.all(jnp.isfinite(logits)))
    print("KERNEL_OK")
</pallas_src>

<mosaic_0001>
module attributes {stable_mosaic.version = 11 : i64} {
  func.func @_fused_cnn_kernel(%arg0: i32, %arg1: memref<1x256x8x9xf32, #tpu.memory_space<vmem>>, %arg2: memref<9x32xbf16, #tpu.memory_space<vmem>>, %arg3: memref<1x32xf32, #tpu.memory_space<vmem>>, %arg4: memref<288x64xbf16, #tpu.memory_space<vmem>>, %arg5: memref<1x64xf32, #tpu.memory_space<vmem>>, %arg6: memref<576x128xbf16, #tpu.memory_space<vmem>>, %arg7: memref<1x128xf32, #tpu.memory_space<vmem>>, %arg8: memref<1152x256xbf16, #tpu.memory_space<vmem>>, %arg9: memref<1x256xf32, #tpu.memory_space<vmem>>, %arg10: memref<1024x128xbf16, #tpu.memory_space<vmem>>, %arg11: memref<1x128xf32, #tpu.memory_space<vmem>>, %arg12: memref<8x128xf32, #tpu.memory_space<vmem>>) attributes {dimension_semantics = [#tpu.dimension_semantics<parallel>], iteration_bounds = array<i64: 1>, scalar_prefetch = 0 : i64, scratch_operands = 0 : i64, tpu.core_type = #tpu.core_type<tc>, window_params = [{transform_indices = @transform_0, window_bounds = array<i64: 1, 256, 8, 9>}, {pipeline_mode = #tpu.pipeline_mode<synchronous>, transform_indices = @transform_1, window_bounds = array<i64: 9, 32>}, {pipeline_mode = #tpu.pipeline_mode<synchronous>, transform_indices = @transform_2, window_bounds = array<i64: 1, 32>}, {pipeline_mode = #tpu.pipeline_mode<synchronous>, transform_indices = @transform_3, window_bounds = array<i64: 288, 64>}, {pipeline_mode = #tpu.pipeline_mode<synchronous>, transform_indices = @transform_4, window_bounds = array<i64: 1, 64>}, {pipeline_mode = #tpu.pipeline_mode<synchronous>, transform_indices = @transform_5, window_bounds = array<i64: 576, 128>}, {pipeline_mode = #tpu.pipeline_mode<synchronous>, transform_indices = @transform_6, window_bounds = array<i64: 1, 128>}, {pipeline_mode = #tpu.pipeline_mode<synchronous>, transform_indices = @transform_7, window_bounds = array<i64: 1152, 256>}, {pipeline_mode = #tpu.pipeline_mode<synchronous>, transform_indices = @transform_8, window_bounds = array<i64: 1, 256>}, {pipeline_mode = #tpu.pipeline_mode<synchronous>, transform_indices = @transform_9, window_bounds = array<i64: 1024, 128>}, {pipeline_mode = #tpu.pipeline_mode<synchronous>, transform_indices = @transform_10, window_bounds = array<i64: 1, 128>}, {transform_indices = @transform_11, window_bounds = array<i64: 8, 128>}]} {
    %c0 = arith.constant 0 : index
    %c0_0 = arith.constant 0 : index
    %c0_1 = arith.constant 0 : index
    %c0_2 = arith.constant 0 : index
    %0 = vector.load %arg1[%c0, %c0_0, %c0_1, %c0_2] : memref<1x256x8x9xf32, #tpu.memory_space<vmem>>, vector<1x256x8x9xf32>
    %1 = vector.shape_cast %0 : vector<1x256x8x9xf32> to vector<256x8x9xf32>
    %2 = vector.shape_cast %1 : vector<256x8x9xf32> to vector<2048x9xf32>
    %3 = arith.truncf %2 : vector<2048x9xf32> to vector<2048x9xbf16>
    %c0_3 = arith.constant 0 : index
    %c0_4 = arith.constant 0 : index
    %4 = vector.load %arg2[%c0_3, %c0_4] : memref<9x32xbf16, #tpu.memory_space<vmem>>, vector<9x32xbf16>
    %cst = arith.constant dense<0.000000e+00> : vector<2048x32xf32>
    %5 = tpu.matmul %3, %4, %cst {dimension_numbers = #tpu.dot_dimension_numbers<[1], [0], [0], [1], [0, 0, 1, 1], [], []>} : vector<2048x9xbf16>, vector<9x32xbf16>, vector<2048x32xf32> -> vector<2048x32xf32>
    %c0_5 = arith.constant 0 : index
    %c0_6 = arith.constant 0 : index
    %6 = vector.load %arg3[%c0_5, %c0_6] : memref<1x32xf32, #tpu.memory_space<vmem>>, vector<1x32xf32>
    %7 = vector.broadcast %6 : vector<1x32xf32> to vector<2048x32xf32>
    %8 = arith.addf %5, %7 : vector<2048x32xf32>
    %cst_7 = arith.constant 0.000000e+00 : f32
    %9 = vector.broadcast %cst_7 : f32 to vector<2048x32xf32>
    %10 = arith.maximumf %8, %9 : vector<2048x32xf32>
    %11 = vector.shape_cast %10 : vector<2048x32xf32> to vector<16x16x8x32xf32>
    %cst_8 = arith.constant 0.000000e+00 : f32
    %12 = vector.broadcast %cst_8 : f32 to vector<1x16x8x32xf32>
    %13 = tpu.concatenate %12, %11, %12 in 0 : vector<1x16x8x32xf32>, vector<16x16x8x32xf32>, vector<1x16x8x32xf32> -> vector<18x16x8x32xf32>
    %cst_9 = arith.constant 0.000000e+00 : f32
    %14 = vector.broadcast %cst_9 : f32 to vector<18x1x8x32xf32>
    %15 = tpu.concatenate %14, %13, %14 in 1 : vector<18x1x8x32xf32>, vector<18x16x8x32xf32>, vector<18x1x8x32xf32> -> vector<18x18x8x32xf32>
    %16 = vector.shape_cast %15 : vector<18x18x8x32xf32> to vector<18x9x2x8x32xf32>
    %17 = vector.extract_strided_slice %16 {offsets = [0, 0, 0, 0, 0], sizes = [18, 8, 1, 8, 32], strides = [1, 1, 1, 1, 1]} : vector<18x9x2x8x32xf32> to vector<18x8x1x8x32xf32>
    %18 = vector.shape_cast %17 : vector<18x8x1x8x32xf32> to vector<18x8x8x32xf32>
    %19 = vector.shape_cast %18 : vector<18x8x8x32xf32> to vector<9x2x8x8x32xf32>
    %20 = vector.extract_strided_slice %19 {offsets = [0, 0, 0, 0, 0], sizes = [8, 1, 8, 8, 32], strides = [1, 1, 1, 1, 1]} : vector<9x2x8x8x32xf32> to vector<8x1x8x8x32xf32>
    %21 = vector.shape_cast %20 : vector<8x1x8x8x32xf32> to vector<8x8x8x32xf32>
    %22 = vector.extract_strided_slice %19 {offsets = [0, 1, 0, 0, 0], sizes = [8, 1, 8, 8, 32], strides = [1, 1, 1, 1, 1]} : vector<9x2x8x8x32xf32> to vector<8x1x8x8x32xf32>
    %23 = vector.shape_cast %22 : vector<8x1x8x8x32xf32> to vector<8x8x8x32xf32>
    %24 = vector.extract_strided_slice %19 {offsets = [1, 0, 0, 0, 0], sizes = [8, 1, 8, 8, 32], strides = [1, 1, 1, 1, 1]} : vector<9x2x8x8x32xf32> to vector<8x1x8x8x32xf32>
    %25 = vector.shape_cast %24 : vector<8x1x8x8x32xf32> to vector<8x8x8x32xf32>
    %26 = vector.extract_strided_slice %16 {offsets = [0, 0, 1, 0, 0], sizes = [18, 8, 1, 8, 32], strides = [1, 1, 1, 1, 1]} : vector<18x9x2x8x32xf32> to vector<18x8x1x8x32xf32>
    %27 = vector.shape_cast %26 : vector<18x8x1x8x32xf32> to vector<18x8x8x32xf32>
    %28 = vector.shape_cast %27 : vector<18x8x8x32xf32> to vector<9x2x8x8x32xf32>
    %29 = vector.extract_strided_slice %28 {offsets = [0, 0, 0, 0, 0], sizes = [8, 1, 8, 8, 32], strides = [1, 1, 1, 1, 1]} : vector<9x2x8x8x32xf32> to vector<8x1x8x8x32xf32>
    %30 = vector.shape_cast %29 : vector<8x1x8x8x32xf32> to vector<8x8x8x32xf32>
    %31 = vector.extract_strided_slice %28 {offsets = [0, 1, 0, 0, 0], sizes = [8, 1, 8, 8, 32], strides = [1, 1, 1, 1, 1]} : vector<9x2x8x8x32xf32> to vector<8x1x8x8x32xf32>
    %32 = vector.shape_cast %31 : vector<8x1x8x8x32xf32> to vector<8x8x8x32xf32>
    %33 = vector.extract_strided_slice %28 {offsets = [1, 0, 0, 0, 0], sizes = [8, 1, 8, 8, 32], strides = [1, 1, 1, 1, 1]} : vector<9x2x8x8x32xf32> to vector<8x1x8x8x32xf32>
    %34 = vector.shape_cast %33 : vector<8x1x8x8x32xf32> to vector<8x8x8x32xf32>
    %35 = vector.extract_strided_slice %16 {offsets = [0, 1, 0, 0, 0], sizes = [18, 8, 1, 8, 32], strides = [1, 1, 1, 1, 1]} : vector<18x9x2x8x32xf32> to vector<18x8x1x8x32xf32>
    %36 = vector.shape_cast %35 : vector<18x8x1x8x32xf32> to vector<18x8x8x32xf32>
    %37 = vector.shape_cast %36 : vector<18x8x8x32xf32> to vector<9x2x8x8x32xf32>
    %38 = vector.extract_strided_slice %37 {offsets = [0, 0, 0, 0, 0], sizes = [8, 1, 8, 8, 32], strides = [1, 1, 1, 1, 1]} : vector<9x2x8x8x32xf32> to vector<8x1x8x8x32xf32>
    %39 = vector.shape_cast %38 : vector<8x1x8x8x32xf32> to vector<8x8x8x32xf32>
    %40 = vector.extract_strided_slice %37 {offsets = [0, 1, 0, 0, 0], sizes = [8, 1, 8, 8, 32], strides = [1, 1, 1, 1, 1]} : vector<9x2x8x8x32xf32> to vector<8x1x8x8x32xf32>
    %41 = vector.shape_cast %40 : vector<8x1x8x8x32xf32> to vector<8x8x8x32xf32>
    %42 = vector.extract_strided_slice %37 {offsets = [1, 0, 0, 0, 0], sizes = [8, 1, 8, 8, 32], strides = [1, 1, 1, 1, 1]} : vector<9x2x8x8x32xf32> to vector<8x1x8x8x32xf32>
    %43 = vector.shape_cast %42 : vector<8x1x8x8x32xf32> to vector<8x8x8x32xf32>
    %44 = tpu.concatenate %21, %30, %39, %23, %32, %41, %25, %34, %43 in 3 : vector<8x8x8x32xf32>, vector<8x8x8x32xf32>, vector<8x8x8x32xf32>, vector<8x8x8x32xf32>, vector<8x8x8x32xf32>, vector<8x8x8x32xf32>, vector<8x8x8x32xf32>, vector<8x8x8x32xf32>, vector<8x8x8x32xf32> -> vector<8x8x8x288xf32>
    %45 = vector.shape_cast %44 : vector<8x8x8x288xf32> to vector<512x288xf32>
    %46 = arith.truncf %45 : vector<512x288xf32> to vector<512x288xbf16>
    %c0_10 = arith.constant 0 : index
    %c0_11 = arith.constant 0 : index
    %47 = vector.load %arg4[%c0_10, %c0_11] : memref<288x64xbf16, #tpu.memory_space<vmem>>, vector<288x64xbf16>
    %cst_12 = arith.constant dense<0.000000e+00> : vector<512x64xf32>
    %48 = tpu.matmul %46, %47, %cst_12 {dimension_numbers = #tpu.dot_dimension_numbers<[1], [0], [0], [1], [0, 0, 1, 1], [], []>} : vector<512x288xbf16>, vector<288x64xbf16>, vector<512x64xf32> -> vector<512x64xf32>
    %c0_13 = arith.constant 0 : index
    %c0_14 = arith.constant 0 : index
    %49 = vector.load %arg5[%c0_13, %c0_14] : memref<1x64xf32, #tpu.memory_space<vmem>>, vector<1x64xf32>
    %50 = vector.broadcast %49 : vector<1x64xf32> to vector<512x64xf32>
    %51 = arith.addf %48, %50 : vector<512x64xf32>
    %cst_15 = arith.constant 0.000000e+00 : f32
    %52 = vector.broadcast %cst_15 : f32 to vector<512x64xf32>
    %53 = arith.maximumf %51, %52 : vector<512x64xf32>
    %54 = vector.shape_cast %53 : vector<512x64xf32> to vector<8x8x8x64xf32>
    %cst_16 = arith.constant 0.000000e+00 : f32
    %55 = vector.broadcast %cst_16 : f32 to vector<1x8x8x64xf32>
    %56 = tpu.concatenate %55, %54, %55 in 0 : vector<1x8x8x64xf32>, vector<8x8x8x64xf32>, vector<1x8x8x64xf32> -> vector<10x8x8x64xf32>
    %cst_17 = arith.constant 0.000000e+00 : f32
    %57 = vector.broadcast %cst_17 : f32 to vector<10x1x8x64xf32>
    %58 = tpu.concatenate %57, %56, %57 in 1 : vector<10x1x8x64xf32>, vector<10x8x8x64xf32>, vector<10x1x8x64xf32> -> vector<10x10x8x64xf32>
    %59 = vector.shape_cast %58 : vector<10x10x8x64xf32> to vector<10x5x2x8x64xf32>
    %60 = vector.extract_strided_slice %59 {offsets = [0, 0, 0, 0, 0], sizes = [10, 4, 1, 8, 64], strides = [1, 1, 1, 1, 1]} : vector<10x5x2x8x64xf32> to vector<10x4x1x8x64xf32>
    %61 = vector.shape_cast %60 : vector<10x4x1x8x64xf32> to vector<10x4x8x64xf32>
    %62 = vector.shape_cast %61 : vector<10x4x8x64xf32> to vector<5x2x4x8x64xf32>
    %63 = vector.extract_strided_slice %62 {offsets = [0, 0, 0, 0, 0], sizes = [4, 1, 4, 8, 64], strides = [1, 1, 1, 1, 1]} : vector<5x2x4x8x64xf32> to vector<4x1x4x8x64xf32>
    %64 = vector.shape_cast %63 : vector<4x1x4x8x64xf32> to vector<4x4x8x64xf32>
    %65 = vector.extract_strided_slice %62 {offsets = [0, 1, 0, 0, 0], sizes = [4, 1, 4, 8, 64], strides = [1, 1, 1, 1, 1]} : vector<5x2x4x8x64xf32> to vector<4x1x4x8x64xf32>
    %66 = vector.shape_cast %65 : vector<4x1x4x8x64xf32> to vector<4x4x8x64xf32>
    %67 = vector.extract_strided_slice %62 {offsets = [1, 0, 0, 0, 0], sizes = [4, 1, 4, 8, 64], strides = [1, 1, 1, 1, 1]} : vector<5x2x4x8x64xf32> to vector<4x1x4x8x64xf32>
    %68 = vector.shape_cast %67 : vector<4x1x4x8x64xf32> to vector<4x4x8x64xf32>
    %69 = vector.extract_strided_slice %59 {offsets = [0, 0, 1, 0, 0], sizes = [10, 4, 1, 8, 64], strides = [1, 1, 1, 1, 1]} : vector<10x5x2x8x64xf32> to vector<10x4x1x8x64xf32>
    %70 = vector.shape_cast %69 : vector<10x4x1x8x64xf32> to vector<10x4x8x64xf32>
    %71 = vector.shape_cast %70 : vector<10x4x8x64xf32> to vector<5x2x4x8x64xf32>
    %72 = vector.extract_strided_slice %71 {offsets = [0, 0, 0, 0, 0], sizes = [4, 1, 4, 8, 64], strides = [1, 1, 1, 1, 1]} : vector<5x2x4x8x64xf32> to vector<4x1x4x8x64xf32>
    %73 = vector.shape_cast %72 : vector<4x1x4x8x64xf32> to vector<4x4x8x64xf32>
    %74 = vector.extract_strided_slice %71 {offsets = [0, 1, 0, 0, 0], sizes = [4, 1, 4, 8, 64], strides = [1, 1, 1, 1, 1]} : vector<5x2x4x8x64xf32> to vector<4x1x4x8x64xf32>
    %75 = vector.shape_cast %74 : vector<4x1x4x8x64xf32> to vector<4x4x8x64xf32>
    %76 = vector.extract_strided_slice %71 {offsets = [1, 0, 0, 0, 0], sizes = [4, 1, 4, 8, 64], strides = [1, 1, 1, 1, 1]} : vector<5x2x4x8x64xf32> to vector<4x1x4x8x64xf32>
    %77 = vector.shape_cast %76 : vector<4x1x4x8x64xf32> to vector<4x4x8x64xf32>
    %78 = vector.extract_strided_slice %59 {offsets = [0, 1, 0, 0, 0], sizes = [10, 4, 1, 8, 64], strides = [1, 1, 1, 1, 1]} : vector<10x5x2x8x64xf32> to vector<10x4x1x8x64xf32>
    %79 = vector.shape_cast %78 : vector<10x4x1x8x64xf32> to vector<10x4x8x64xf32>
    %80 = vector.shape_cast %79 : vector<10x4x8x64xf32> to vector<5x2x4x8x64xf32>
    %81 = vector.extract_strided_slice %80 {offsets = [0, 0, 0, 0, 0], sizes = [4, 1, 4, 8, 64], strides = [1, 1, 1, 1, 1]} : vector<5x2x4x8x64xf32> to vector<4x1x4x8x64xf32>
    %82 = vector.shape_cast %81 : vector<4x1x4x8x64xf32> to vector<4x4x8x64xf32>
    %83 = vector.extract_strided_slice %80 {offsets = [0, 1, 0, 0, 0], sizes = [4, 1, 4, 8, 64], strides = [1, 1, 1, 1, 1]} : vector<5x2x4x8x64xf32> to vector<4x1x4x8x64xf32>
    %84 = vector.shape_cast %83 : vector<4x1x4x8x64xf32> to vector<4x4x8x64xf32>
    %85 = vector.extract_strided_slice %80 {offsets = [1, 0, 0, 0, 0], sizes = [4, 1, 4, 8, 64], strides = [1, 1, 1, 1, 1]} : vector<5x2x4x8x64xf32> to vector<4x1x4x8x64xf32>
    %86 = vector.shape_cast %85 : vector<4x1x4x8x64xf32> to vector<4x4x8x64xf32>
    %87 = tpu.concatenate %64, %73, %82, %66, %75, %84, %68, %77, %86 in 3 : vector<4x4x8x64xf32>, vector<4x4x8x64xf32>, vector<4x4x8x64xf32>, vector<4x4x8x64xf32>, vector<4x4x8x64xf32>, vector<4x4x8x64xf32>, vector<4x4x8x64xf32>, vector<4x4x8x64xf32>, vector<4x4x8x64xf32> -> vector<4x4x8x576xf32>
    %88 = vector.shape_cast %87 : vector<4x4x8x576xf32> to vector<128x576xf32>
    %89 = arith.truncf %88 : vector<128x576xf32> to vector<128x576xbf16>
    %c0_18 = arith.constant 0 : index
    %c0_19 = arith.constant 0 : index
    %90 = vector.load %arg6[%c0_18, %c0_19] : memref<576x128xbf16, #tpu.memory_space<vmem>>, vector<576x128xbf16>
    %cst_20 = arith.constant dense<0.000000e+00> : vector<128x128xf32>
    %91 = tpu.matmul %89, %90, %cst_20 {dimension_numbers = #tpu.dot_dimension_numbers<[1], [0], [0], [1], [0, 0, 1, 1], [], []>} : vector<128x576xbf16>, vector<576x128xbf16>, vector<128x128xf32> -> vector<128x128xf32>
    %c0_21 = arith.constant 0 : index
    %c0_22 = arith.constant 0 : index
    %92 = vector.load %arg7[%c0_21, %c0_22] : memref<1x128xf32, #tpu.memory_space<vmem>>, vector<1x128xf32>
    %93 = vector.broadcast %92 : vector<1x128xf32> to vector<128x128xf32>
    %94 = arith.addf %91, %93 : vector<128x128xf32>
    %cst_23 = arith.constant 0.000000e+00 : f32
    %95 = vector.broadcast %cst_23 : f32 to vector<128x128xf32>
    %96 = arith.maximumf %94, %95 : vector<128x128xf32>
    %97 = vector.shape_cast %96 : vector<128x128xf32> to vector<4x4x8x128xf32>
    %cst_24 = arith.constant 0.000000e+00 : f32
    %98 = vector.broadcast %cst_24 : f32 to vector<1x4x8x128xf32>
    %99 = tpu.concatenate %98, %97, %98 in 0 : vector<1x4x8x128xf32>, vector<4x4x8x128xf32>, vector<1x4x8x128xf32> -> vector<6x4x8x128xf32>
    %cst_25 = arith.constant 0.000000e+00 : f32
    %100 = vector.broadcast %cst_25 : f32 to vector<6x1x8x128xf32>
    %101 = tpu.concatenate %100, %99, %100 in 1 : vector<6x1x8x128xf32>, vector<6x4x8x128xf32>, vector<6x1x8x128xf32> -> vector<6x6x8x128xf32>
    %102 = vector.shape_cast %101 : vector<6x6x8x128xf32> to vector<6x3x2x8x128xf32>
    %103 = vector.extract_strided_slice %102 {offsets = [0, 0, 0, 0, 0], sizes = [6, 2, 1, 8, 128], strides = [1, 1, 1, 1, 1]} : vector<6x3x2x8x128xf32> to vector<6x2x1x8x128xf32>
    %104 = vector.shape_cast %103 : vector<6x2x1x8x128xf32> to vector<6x2x8x128xf32>
    %105 = vector.shape_cast %104 : vector<6x2x8x128xf32> to vector<3x2x2x8x128xf32>
    %106 = vector.extract_strided_slice %105 {offsets = [0, 0, 0, 0, 0], sizes = [2, 1, 2, 8, 128], strides = [1, 1, 1, 1, 1]} : vector<3x2x2x8x128xf32> to vector<2x1x2x8x128xf32>
    %107 = vector.shape_cast %106 : vector<2x1x2x8x128xf32> to vector<2x2x8x128xf32>
    %108 = vector.extract_strided_slice %105 {offsets = [0, 1, 0, 0, 0], sizes = [2, 1, 2, 8, 128], strides = [1, 1, 1, 1, 1]} : vector<3x2x2x8x128xf32> to vector<2x1x2x8x128xf32>
    %109 = vector.shape_cast %108 : vector<2x1x2x8x128xf32> to vector<2x2x8x128xf32>
    %110 = vector.extract_strided_slice %105 {offsets = [1, 0, 0, 0, 0], sizes = [2, 1, 2, 8, 128], strides = [1, 1, 1, 1, 1]} : vector<3x2x2x8x128xf32> to vector<2x1x2x8x128xf32>
    %111 = vector.shape_cast %110 : vector<2x1x2x8x128xf32> to vector<2x2x8x128xf32>
    %112 = vector.extract_strided_slice %102 {offsets = [0, 0, 1, 0, 0], sizes = [6, 2, 1, 8, 128], strides = [1, 1, 1, 1, 1]} : vector<6x3x2x8x128xf32> to vector<6x2x1x8x128xf32>
    %113 = vector.shape_cast %112 : vector<6x2x1x8x128xf32> to vector<6x2x8x128xf32>
    %114 = vector.shape_cast %113 : vector<6x2x8x128xf32> to vector<3x2x2x8x128xf32>
    %115 = vector.extract_strided_slice %114 {offsets = [0, 0, 0, 0, 0], sizes = [2, 1, 2, 8, 128], strides = [1, 1, 1, 1, 1]} : vector<3x2x2x8x128xf32> to vector<2x1x2x8x128xf32>
    %116 = vector.shape_cast %115 : vector<2x1x2x8x128xf32> to vector<2x2x8x128xf32>
    %117 = vector.extract_strided_slice %114 {offsets = [0, 1, 0, 0, 0], sizes = [2, 1, 2, 8, 128], strides = [1, 1, 1, 1, 1]} : vector<3x2x2x8x128xf32> to vector<2x1x2x8x128xf32>
    %118 = vector.shape_cast %117 : vector<2x1x2x8x128xf32> to vector<2x2x8x128xf32>
    %119 = vector.extract_strided_slice %114 {offsets = [1, 0, 0, 0, 0], sizes = [2, 1, 2, 8, 128], strides = [1, 1, 1, 1, 1]} : vector<3x2x2x8x128xf32> to vector<2x1x2x8x128xf32>
    %120 = vector.shape_cast %119 : vector<2x1x2x8x128xf32> to vector<2x2x8x128xf32>
    %121 = vector.extract_strided_slice %102 {offsets = [0, 1, 0, 0, 0], sizes = [6, 2, 1, 8, 128], strides = [1, 1, 1, 1, 1]} : vector<6x3x2x8x128xf32> to vector<6x2x1x8x128xf32>
    %122 = vector.shape_cast %121 : vector<6x2x1x8x128xf32> to vector<6x2x8x128xf32>
    %123 = vector.shape_cast %122 : vector<6x2x8x128xf32> to vector<3x2x2x8x128xf32>
    %124 = vector.extract_strided_slice %123 {offsets = [0, 0, 0, 0, 0], sizes = [2, 1, 2, 8, 128], strides = [1, 1, 1, 1, 1]} : vector<3x2x2x8x128xf32> to vector<2x1x2x8x128xf32>
    %125 = vector.shape_cast %124 : vector<2x1x2x8x128xf32> to vector<2x2x8x128xf32>
    %126 = vector.extract_strided_slice %123 {offsets = [0, 1, 0, 0, 0], sizes = [2, 1, 2, 8, 128], strides = [1, 1, 1, 1, 1]} : vector<3x2x2x8x128xf32> to vector<2x1x2x8x128xf32>
    %127 = vector.shape_cast %126 : vector<2x1x2x8x128xf32> to vector<2x2x8x128xf32>
    %128 = vector.extract_strided_slice %123 {offsets = [1, 0, 0, 0, 0], sizes = [2, 1, 2, 8, 128], strides = [1, 1, 1, 1, 1]} : vector<3x2x2x8x128xf32> to vector<2x1x2x8x128xf32>
    %129 = vector.shape_cast %128 : vector<2x1x2x8x128xf32> to vector<2x2x8x128xf32>
    %130 = tpu.concatenate %107, %116, %125, %109, %118, %127, %111, %120, %129 in 3 : vector<2x2x8x128xf32>, vector<2x2x8x128xf32>, vector<2x2x8x128xf32>, vector<2x2x8x128xf32>, vector<2x2x8x128xf32>, vector<2x2x8x128xf32>, vector<2x2x8x128xf32>, vector<2x2x8x128xf32>, vector<2x2x8x128xf32> -> vector<2x2x8x1152xf32>
    %131 = vector.shape_cast %130 : vector<2x2x8x1152xf32> to vector<32x1152xf32>
    %132 = arith.truncf %131 : vector<32x1152xf32> to vector<32x1152xbf16>
    %c0_26 = arith.constant 0 : index
    %c0_27 = arith.constant 0 : index
    %133 = vector.load %arg8[%c0_26, %c0_27] : memref<1152x256xbf16, #tpu.memory_space<vmem>>, vector<1152x256xbf16>
    %cst_28 = arith.constant dense<0.000000e+00> : vector<32x256xf32>
    %134 = tpu.matmul %132, %133, %cst_28 {dimension_numbers = #tpu.dot_dimension_numbers<[1], [0], [0], [1], [0, 0, 1, 1], [], []>} : vector<32x1152xbf16>, vector<1152x256xbf16>, vector<32x256xf32> -> vector<32x256xf32>
    %c0_29 = arith.constant 0 : index
    %c0_30 = arith.constant 0 : index
    %135 = vector.load %arg9[%c0_29, %c0_30] : memref<1x256xf32, #tpu.memory_space<vmem>>, vector<1x256xf32>
    %136 = vector.broadcast %135 : vector<1x256xf32> to vector<32x256xf32>
    %137 = arith.addf %134, %136 : vector<32x256xf32>
    %cst_31 = arith.constant 0.000000e+00 : f32
    %138 = vector.broadcast %cst_31 : f32 to vector<32x256xf32>
    %139 = arith.maximumf %137, %138 : vector<32x256xf32>
    %140 = vector.shape_cast %139 : vector<32x256xf32> to vector<2x2x8x256xf32>
    %141 = vector.extract_strided_slice %140 {offsets = [0, 0, 0, 0], sizes = [1, 1, 8, 256], strides = [1, 1, 1, 1]} : vector<2x2x8x256xf32> to vector<1x1x8x256xf32>
    %142 = vector.shape_cast %141 : vector<1x1x8x256xf32> to vector<8x256xf32>
    %143 = vector.extract_strided_slice %140 {offsets = [0, 1, 0, 0], sizes = [1, 1, 8, 256], strides = [1, 1, 1, 1]} : vector<2x2x8x256xf32> to vector<1x1x8x256xf32>
    %144 = vector.shape_cast %143 : vector<1x1x8x256xf32> to vector<8x256xf32>
    %145 = vector.extract_strided_slice %140 {offsets = [1, 0, 0, 0], sizes = [1, 1, 8, 256], strides = [1, 1, 1, 1]} : vector<2x2x8x256xf32> to vector<1x1x8x256xf32>
    %146 = vector.shape_cast %145 : vector<1x1x8x256xf32> to vector<8x256xf32>
    %147 = vector.extract_strided_slice %140 {offsets = [1, 1, 0, 0], sizes = [1, 1, 8, 256], strides = [1, 1, 1, 1]} : vector<2x2x8x256xf32> to vector<1x1x8x256xf32>
    %148 = vector.shape_cast %147 : vector<1x1x8x256xf32> to vector<8x256xf32>
    %149 = tpu.concatenate %142, %144, %146, %148 in 1 : vector<8x256xf32>, vector<8x256xf32>, vector<8x256xf32>, vector<8x256xf32> -> vector<8x1024xf32>
    %150 = arith.truncf %149 : vector<8x1024xf32> to vector<8x1024xbf16>
    %c0_32 = arith.constant 0 : index
    %c0_33 = arith.constant 0 : index
    %151 = vector.load %arg10[%c0_32, %c0_33] : memref<1024x128xbf16, #tpu.memory_space<vmem>>, vector<1024x128xbf16>
    %cst_34 = arith.constant dense<0.000000e+00> : vector<8x128xf32>
    %152 = tpu.matmul %150, %151, %cst_34 {dimension_numbers = #tpu.dot_dimension_numbers<[1], [0], [0], [1], [0, 0, 1, 1], [], []>} : vector<8x1024xbf16>, vector<1024x128xbf16>, vector<8x128xf32> -> vector<8x128xf32>
    %c0_35 = arith.constant 0 : index
    %c0_36 = arith.constant 0 : index
    %153 = vector.load %arg11[%c0_35, %c0_36] : memref<1x128xf32, #tpu.memory_space<vmem>>, vector<1x128xf32>
    %154 = vector.broadcast %153 : vector<1x128xf32> to vector<8x128xf32>
    %155 = arith.addf %152, %154 : vector<8x128xf32>
    %c0_37 = arith.constant 0 : index
    %c0_38 = arith.constant 0 : index
    %156 = vector.load %arg12[%c0_37, %c0_38] : memref<8x128xf32, #tpu.memory_space<vmem>>, vector<8x128xf32>
    tpu.vector_store %arg12[%c0_37, %c0_38], %155 {strides = array<i32>} : memref<8x128xf32, #tpu.memory_space<vmem>>, vector<8x128xf32>,
    return
  }
  func.func @transform_0(%arg0: i32) -> (i32, i32, i32, i32) {
    %c0_i32 = arith.constant 0 : i32
    %c0_i32_0 = arith.constant 0 : i32
    %c0_i32_1 = arith.constant 0 : i32
    %c0_i32_2 = arith.constant 0 : i32
    return %arg0, %c0_i32, %c0_i32_0, %c0_i32_1 : i32, i32, i32, i32
  }
  func.func @transform_1(%arg0: i32) -> (i32, i32) {
    %c0_i32 = arith.constant 0 : i32
    %c0_i32_0 = arith.constant 0 : i32
    %c0_i32_1 = arith.constant 0 : i32
    return %c0_i32, %c0_i32_0 : i32, i32
  }
  func.func @transform_2(%arg0: i32) -> (i32, i32) {
    %c0_i32 = arith.constant 0 : i32
    %c0_i32_0 = arith.constant 0 : i32
    %c0_i32_1 = arith.constant 0 : i32
    return %c0_i32, %c0_i32_0 : i32, i32
  }
  func.func @transform_3(%arg0: i32) -> (i32, i32) {
    %c0_i32 = arith.constant 0 : i32
    %c0_i32_0 = arith.constant 0 : i32
    %c0_i32_1 = arith.constant 0 : i32
    return %c0_i32, %c0_i32_0 : i32, i32
  }
  func.func @transform_4(%arg0: i32) -> (i32, i32) {
    %c0_i32 = arith.constant 0 : i32
    %c0_i32_0 = arith.constant 0 : i32
    %c0_i32_1 = arith.constant 0 : i32
    return %c0_i32, %c0_i32_0 : i32, i32
  }
  func.func @transform_5(%arg0: i32) -> (i32, i32) {
    %c0_i32 = arith.constant 0 : i32
    %c0_i32_0 = arith.constant 0 : i32
    %c0_i32_1 = arith.constant 0 : i32
    return %c0_i32, %c0_i32_0 : i32, i32
  }
  func.func @transform_6(%arg0: i32) -> (i32, i32) {
    %c0_i32 = arith.constant 0 : i32
    %c0_i32_0 = arith.constant 0 : i32
    %c0_i32_1 = arith.constant 0 : i32
    return %c0_i32, %c0_i32_0 : i32, i32
  }
  func.func @transform_7(%arg0: i32) -> (i32, i32) {
    %c0_i32 = arith.constant 0 : i32
    %c0_i32_0 = arith.constant 0 : i32
    %c0_i32_1 = arith.constant 0 : i32
    return %c0_i32, %c0_i32_0 : i32, i32
  }
  func.func @transform_8(%arg0: i32) -> (i32, i32) {
    %c0_i32 = arith.constant 0 : i32
    %c0_i32_0 = arith.constant 0 : i32
    %c0_i32_1 = arith.constant 0 : i32
    return %c0_i32, %c0_i32_0 : i32, i32
  }
  func.func @transform_9(%arg0: i32) -> (i32, i32) {
    %c0_i32 = arith.constant 0 : i32
    %c0_i32_0 = arith.constant 0 : i32
    %c0_i32_1 = arith.constant 0 : i32
    return %c0_i32, %c0_i32_0 : i32, i32
  }
  func.func @transform_10(%arg0: i32) -> (i32, i32) {
    %c0_i32 = arith.constant 0 : i32
    %c0_i32_0 = arith.constant 0 : i32
    %c0_i32_1 = arith.constant 0 : i32
    return %c0_i32, %c0_i32_0 : i32, i32
  }
  func.func @transform_11(%arg0: i32) -> (i32, i32) {
    %c0_i32 = arith.constant 0 : i32
    %c0_i32_0 = arith.constant 0 : i32
    return %arg0, %c0_i32 : i32, i32
  }
}

</mosaic_0001>

<bundles_post_ra>
// kernel: cnn_forward.1
= control target key start
LH: loop header
LB: loop body
LE: loop exit
PB: predicated region body
PF: predicated region fallthrough
CT: control target
= control target key end

     0   :  { %vm822_vm0 = vcmask 1043456   ;;  %vm823_vm1 = vcmask 1044480   ;;  %v9690_v1 = vmov 65535   ;;  %vm437_vm2 = vcmask 72704   ;;  %s9692_s21 = smov 32   ;;  %s9694_s24 = smov 96   ;;  %s15205_s1 = inlined_call_operand.vmem [shape: bf16[9,32], index: 1, kind: input, shape index: {}]   ;;  %s15206_s0 = inlined_call_operand.vmem [shape: f32[1,256,8,9], index: 0, kind: input, shape index: {}]   ;;  %s15207_s3 = inlined_call_operand.vmem [shape: bf16[288,64], index: 3, kind: input, shape index: {}]   ;;  %s15208_s2 = inlined_call_operand.vmem [shape: f32[1,32], index: 2, kind: input, shape index: {}]   ;;  %s15209_s5 = inlined_call_operand.vmem [shape: bf16[576,128], index: 5, kind: input, shape index: {}]   ;;  %s15210_s4 = inlined_call_operand.vmem [shape: f32[1,64], index: 4, kind: input, shape index: {}]   ;;  %s15211_s7 = inlined_call_operand.vmem [shape: bf16[1152,256], index: 7, kind: input, shape index: {}]   ;;  %s15212_s6 = inlined_call_operand.vmem [shape: f32[1,128], index: 6, kind: input, shape index: {}]   ;;  %s15213_s9 = inlined_call_operand.vmem [shape: bf16[1024,128], index: 9, kind: input, shape index: {}]   ;;  %s15214_s8 = inlined_call_operand.vmem [shape: f32[1,256], index: 8, kind: input, shape index: {}]   ;;  %s15215_s10 = inlined_call_operand.vmem [shape: f32[1,128], index: 10, kind: input, shape index: {}]   ;;  %s15216_s11 = inlined_call_operand.vmem [shape: f32[8,128], index: 11, kind: output, shape index: {}]  }
   0x1   :  { %v9351_v0 = vld [vmem:[%s15205_s1] sm:$0x1f]   ;;  %v824_v2 = vsel %vm822_vm0, 4294967295, %v9690_v1  ;;  %v40_v4 = vld [vmem:[%s15206_s0 + $0x8] sm:$0xff]  ;;  %v41_v7 = vld [vmem:[%s15206_s0 + $0x10] sm:$0xff]  ;;  %s9695_s30 = smov 64  }
   0x2   :  { %v39_v3 = vld [vmem:[%s15206_s0] sm:$0xff]  ;;  %v825_v5 = vsel %vm823_vm1, %v824_v2, 0  ;;  %v42_v8 = vld [vmem:[%s15206_s0 + $0x18] sm:$0xff]  ;;  %v44_v11 = vld [vmem:[%s15206_s0 + $0x28] sm:$0xff]  ;;  %vm3252_vm3 = vcmask 261120   ;;  %vm3310_vm4 = vcmask 523264  }
   0x3   :  { %v295_v6 = vpack.c.bf16 %v40_v4, %v39_v3  ;;  %v827_v9 = vand.u32 %v9351_v0, %v825_v5  ;;  %v43_v10 = vld [vmem:[%s15206_s0 + $0x20] sm:$0xff]  ;;  %v296_v12 = vpack.c.bf16 %v42_v8, %v41_v7  ;;  %v45_v14 = vld [vmem:[%s15206_s0 + $0x30] sm:$0xff]  ;;  %v46_v15 = vld [vmem:[%s15206_s0 + $0x38] sm:$0xff]  ;;  %vm3368_vm5 = vcmask 785408  }
   0x4   :  { %v297_v13 = vpack.c.bf16 %v44_v11, %v43_v10  ;;  %v47_v16 = vld [vmem:[%s15206_s0 + $0x40] sm:$0xff]  ;;  %v48_v17 = vld [vmem:[%s15206_s0 + $0x48] sm:$0xff]  ;;  %v298_v18 = vpack.c.bf16 %v46_v15, %v45_v14  ;;  %v49_v20 = vld [vmem:[%s15206_s0 + $0x50] sm:$0xff]  ;;  %vm9696_vm8 = vmmov 1  }
   0x5   :  { %8175 = vmatprep.mubr.msk.bf16.mxu0 %vm437_vm2, %v295_v6  ;;  %8173 = vmatprep.subr.bf16.mxu0 %v827_v9  ;;  %v299_v19 = vpack.c.bf16 %v48_v17, %v47_v16  ;;  %v50_v21 = vld [vmem:[%s15206_s0 + $0x58] sm:$0xff]  ;;  %v51_v22 = vld [vmem:[%s15206_s0 + $0x60] sm:$0xff]  ;;  %v52_v23 = vld [vmem:[%s15206_s0 + $0x68] sm:$0xff] }
   0x6   :  { %8174 = vmatpush3.bf16.msra.mxu0 %v827_v9  ;;  %v300_v24 = vpack.c.bf16 %v50_v21, %v49_v20  ;;  %v301_v25 = vpack.c.bf16 %v52_v23, %v51_v22  ;;  %v53_v26 = vld [vmem:[%s15206_s0 + $0x70] sm:$0xff]  ;;  %v54_v27 = vld [vmem:[%s15206_s0 + $0x78] sm:$0xff]  ;;  %v55_v28 = vld [vmem:[%s15206_s0 + $0x80] sm:$0xff] }
   0x7   :  { %v56_v29 = vld [vmem:[%s15206_s0 + $0x88] sm:$0xff]  ;;  %v302_v30 = vpack.c.bf16 %v54_v27, %v53_v26  ;;  %v57_v32 = vld [vmem:[%s15206_s0 + $0x90] sm:$0xff]  ;;  %v58_v33 = vld [vmem:[%s15206_s0 + $0x98] sm:$0xff] }
   0x8   :  { %v303_v31 = vpack.c.bf16 %v56_v29, %v55_v28  ;;  %v59_v34 = vld [vmem:[%s15206_s0 + $0xa0] sm:$0xff]  ;;  %v60_v35 = vld [vmem:[%s15206_s0 + $0xa8] sm:$0xff]  ;;  %v304_v36 = vpack.c.bf16 %v58_v33, %v57_v32  ;;  %v61_v38 = vld [vmem:[%s15206_s0 + $0xb0] sm:$0xff] }
   0x9   :  { %8176 = vmatmul.mubr.msk.bf16.vlgmr.msra.gmra.mxu0 %vm437_vm2, %v296_v12  ;;  %v305_v37 = vpack.c.bf16 %v60_v35, %v59_v34  ;;  %v62_v39 = vld [vmem:[%s15206_s0 + $0xb8] sm:$0xff]  ;;  %v63_v40 = vld [vmem:[%s15206_s0 + $0xc0] sm:$0xff]  ;;  %v64_v41 = vld [vmem:[%s15206_s0 + $0xc8] sm:$0xff] }
   0xa   :  { %8179 = vmatprep.mubr.msk.bf16.mxu0 %vm437_vm2, %v297_v13  ;;  %v306_v42 = vpack.c.bf16 %v62_v39, %v61_v38  ;;  %v307_v43 = vpack.c.bf16 %v64_v41, %v63_v40  ;;  %v65_v44 = vld [vmem:[%s15206_s0 + $0xd0] sm:$0xff]  ;;  %v66_v45 = vld [vmem:[%s15206_s0 + $0xd8] sm:$0xff]  ;;  %v67_v46 = vld [vmem:[%s15206_s0 + $0xe0] sm:$0xff] }
   0xb   :  { %v68_v47 = vld [vmem:[%s15206_s0 + $0xe8] sm:$0xff]  ;;  %v308_v48 = vpack.c.bf16 %v66_v45, %v65_v44  ;;  %v69_v50 = vld [vmem:[%s15206_s0 + $0xf0] sm:$0xff]  ;;  %v70_v51 = vld [vmem:[%s15206_s0 + $0xf8] sm:$0xff] }
   0xc   :  { %v309_v49 = vpack.c.bf16 %v68_v47, %v67_v46  ;;  %v71_v52 = vld [vmem:[%s15206_s0 + $0x100] sm:$0xff]  ;;  %v72_v53 = vld [vmem:[%s15206_s0 + $0x108] sm:$0xff]  ;;  %v310_v54 = vpack.c.bf16 %v70_v51, %v69_v50  ;;  %v73_v56 = vld [vmem:[%s15206_s0 + $0x110] sm:$0xff] }
   0xd   :  { %v311_v55 = vpack.c.bf16 %v72_v53, %v71_v52  ;;  %v74_v57 = vld [vmem:[%s15206_s0 + $0x118] sm:$0xff]  ;;  %v75_v58 = vld [vmem:[%s15206_s0 + $0x120] sm:$0xff]  ;;  %v76_v59 = vld [vmem:[%s15206_s0 + $0x128] sm:$0xff] }
   0xe   :  { %v312_v60 = vpack.c.bf16 %v74_v57, %v73_v56  ;;  %v313_v61 = vpack.c.bf16 %v76_v59, %v75_v58  ;;  %v77_v62 = vld [vmem:[%s15206_s0 + $0x130] sm:$0xff]  ;;  %v78_v63 = vld [vmem:[%s15206_s0 + $0x138] sm:$0xff]  ;;  %v79_v0 = vld [vmem:[%s15206_s0 + $0x140] sm:$0xff] }
   0xf   :  { %v80_v1 = vld [vmem:[%s15206_s0 + $0x148] sm:$0xff]  ;;  %v314_v2 = vpack.c.bf16 %v78_v63, %v77_v62  ;;  %v81_v4 = vld [vmem:[%s15206_s0 + $0x150] sm:$0xff]  ;;  %v82_v5 = vld [vmem:[%s15206_s0 + $0x158] sm:$0xff] }
  0x10   :  { %v315_v3 = vpack.c.bf16 %v80_v1, %v79_v0  ;;  %v83_v6 = vld [vmem:[%s15206_s0 + $0x160] sm:$0xff]  ;;  %v84_v7 = vld [vmem:[%s15206_s0 + $0x168] sm:$0xff]  ;;  %v316_v8 = vpack.c.bf16 %v82_v5, %v81_v4  ;;  %v85_v10 = vld [vmem:[%s15206_s0 + $0x170] sm:$0xff] }
  0x11   :  { %8180 = vmatmul.mubr.msk.bf16.gmra.mxu0 %vm437_vm2, %v298_v18  ;;  %v317_v9 = vpack.c.bf16 %v84_v7, %v83_v6  ;;  %v86_v11 = vld [vmem:[%s15206_s0 + $0x178] sm:$0xff]  ;;  %v87_v12 = vld [vmem:[%s15206_s0 + $0x180] sm:$0xff]  ;;  %v88_v13 = vld [vmem:[%s15206_s0 + $0x188] sm:$0xff] }
  0x12   :  { %8183 = vmatprep.mubr.msk.bf16.mxu0 %vm437_vm2, %v299_v19  ;;  %v318_v14 = vpack.c.bf16 %v86_v11, %v85_v10  ;;  %v319_v15 = vpack.c.bf16 %v88_v13, %v87_v12  ;;  %v89_v16 = vld [vmem:[%s15206_s0 + $0x190] sm:$0xff]  ;;  %v90_v17 = vld [vmem:[%s15206_s0 + $0x198] sm:$0xff]  ;;  %v91_v18 = vld [vmem:[%s15206_s0 + $0x1a0] sm:$0xff] }
  0x13   :  { %v92_v19 = vld [vmem:[%s15206_s0 + $0x1a8] sm:$0xff]  ;;  %v320_v20 = vpack.c.bf16 %v90_v17, %v89_v16  ;;  %v93_v22 = vld [vmem:[%s15206_s0 + $0x1b0] sm:$0xff]  ;;  %v94_v23 = vld [vmem:[%s15206_s0 + $0x1b8] sm:$0xff] }
  0x14   :  { %v321_v21 = vpack.c.bf16 %v92_v19, %v91_v18  ;;  %v322_v26 = vpack.c.bf16 %v94_v23, %v93_v22  ;;  %v97_v28 = vld [vmem:[%s15206_s0 + $0x1d0] sm:$0xff]  ;;  %v98_v29 = vld [vmem:[%s15206_s0 + $0x1d8] sm:$0xff]  ;;  %v131_v16 = vld [vmem:[%s15206_s0 + $0x2e0] sm:$0xff] }
  0x15   :  { %v324_v32 = vpack.c.bf16 %v98_v29, %v97_v28  ;;  %v101_v34 = vld [vmem:[%s15206_s0 + $0x1f0] sm:$0xff]  ;;  %v102_v35 = vld [vmem:[%s15206_s0 + $0x1f8] sm:$0xff]  ;;  %v132_v17 = vld [vmem:[%s15206_s0 + $0x2e8] sm:$0xff] }
  0x16   :  { %v326_v38 = vpack.c.bf16 %v102_v35, %v101_v34  ;;  %v105_v40 = vld [vmem:[%s15206_s0 + $0x210] sm:$0xff]  ;;  %v106_v41 = vld [vmem:[%s15206_s0 + $0x218] sm:$0xff]  ;;  %vm14143_vm6 = vmneg %vm3310_vm4 }
  0x17   :  { %v328_v44 = vpack.c.bf16 %v106_v41, %v105_v40  ;;  %v109_v46 = vld [vmem:[%s15206_s0 + $0x230] sm:$0xff]  ;;  %v110_v47 = vld [vmem:[%s15206_s0 + $0x238] sm:$0xff]  ;;  %vm14161_vm7 = vmpackc.low %vm14143_vm6, %vm14143_vm6 }
  0x18   :  { %v330_v50 = vpack.c.bf16 %v110_v47, %v109_v46  ;;  %v113_v52 = vld [vmem:[%s15206_s0 + $0x250] sm:$0xff]  ;;  %v114_v53 = vld [vmem:[%s15206_s0 + $0x258] sm:$0xff]  ;;  %vm14259_vm9 = vmpackc.low %vm9696_vm8, %vm14143_vm6 }
  0x19   :  { %8184 = vmatmul.mubr.msk.bf16.gmra.mxu0 %vm437_vm2, %v300_v24  ;;  %v95_v24 = vld [vmem:[%s15206_s0 + $0x1c0] sm:$0xff]  ;;  %v332_v56 = vpack.c.bf16 %v114_v53, %v113_v52  ;;  %v117_v58 = vld [vmem:[%s15206_s0 + $0x270] sm:$0xff]  ;;  %v118_v59 = vld [vmem:[%s15206_s0 + $0x278] sm:$0xff] }
  0x1a   :  { %8187 = vmatprep.mubr.msk.bf16.mxu0 %vm437_vm2, %v301_v25  ;;  %v96_v25 = vld [vmem:[%s15206_s0 + $0x1c8] sm:$0xff]  ;;  %v334_v62 = vpack.c.bf16 %v118_v59, %v117_v58  ;;  %v121_v0 = vld [vmem:[%s15206_s0 + $0x290] sm:$0xff]  ;;  %v122_v1 = vld [vmem:[%s15206_s0 + $0x298] sm:$0xff] }
  0x1b   :  { %v323_v27 = vpack.c.bf16 %v96_v25, %v95_v24  ;;  %v336_v4 = vpack.c.bf16 %v122_v1, %v121_v0  ;;  %v125_v6 = vld [vmem:[%s15206_s0 + $0x2b0] sm:$0xff]  ;;  %v126_v7 = vld [vmem:[%s15206_s0 + $0x2b8] sm:$0xff]  ;;  %v135_v24 = vld [vmem:[%s15206_s0 + $0x300] sm:$0xff] }
  0x1c   :  { %v338_v10 = vpack.c.bf16 %v126_v7, %v125_v6  ;;  %v9352_v12 = vld [vmem:[%s15207_s3 + $0x38] sm:$0xff]   ;;  %v129_v13 = vld [vmem:[%s15206_s0 + $0x2d0] sm:$0xff]  ;;  %v136_v25 = vld [vmem:[%s15206_s0 + $0x308] sm:$0xff] }
  0x1d   :  { %v9353_v18 = vld [vmem:[%s15207_s3 + $0x30] sm:$0xff]   ;;  %v134_v23 = vld [vmem:[%s15206_s0 + $0x2f8] sm:$0xff]  ;;  %v343_v28 = vpack.c.bf16 %v136_v25, %v135_v24  ;;  %v147_v59 = vld [vmem:[%s15206_s0 + $0x360] sm:$0xff] }
  0x1e   :  { %v133_v22 = vld [vmem:[%s15206_s0 + $0x2f0] sm:$0xff]  ;;  %v9356_v29 = vld [vmem:[%s15207_s3 + $0x18] sm:$0xff]  }
  0x1f   :  { %v9357_v34 = vld [vmem:[%s15207_s3 + $0x10] sm:$0xff]   ;;  %v142_v40 = vld [vmem:[%s15206_s0 + $0x338] sm:$0xff] }
  0x21   :  { %8188 = vmatmul.mubr.msk.bf16.gmra.mxu0 %vm437_vm2, %v302_v30  ;;  %v99_v30 = vld [vmem:[%s15206_s0 + $0x1e0] sm:$0xff] }
  0x22   :  { %8191 = vmatprep.mubr.msk.bf16.mxu0 %vm437_vm2, %v303_v31  ;;  %v100_v31 = vld [vmem:[%s15206_s0 + $0x1e8] sm:$0xff] }
  0x23   :  { %v325_v33 = vpack.c.bf16 %v100_v31, %v99_v30  ;;  %v137_v30 = vld [vmem:[%s15206_s0 + $0x310] sm:$0xff]  ;;  %v138_v31 = vld [vmem:[%s15206_s0 + $0x318] sm:$0xff] }
  0x24   :  { %v344_v35 = vpack.c.bf16 %v138_v31, %v137_v30  ;;  %v155_v31 = vld [vmem:[%s15206_s0 + $0x3a0] sm:$0xff] }
  0x29   :  { %8192 = vmatmul.mubr.msk.bf16.gmra.mxu0 %vm437_vm2, %v304_v36  ;;  %v103_v36 = vld [vmem:[%s15206_s0 + $0x200] sm:$0xff] }
  0x2a   :  { %8195 = vmatprep.mubr.msk.bf16.mxu0 %vm437_vm2, %v305_v37  ;;  %v104_v37 = vld [vmem:[%s15206_s0 + $0x208] sm:$0xff] }
  0x2b   :  { %v327_v39 = vpack.c.bf16 %v104_v37, %v103_v36  ;;  %v9358_v37 = vld [vmem:[%s15207_s3 + $0x8] sm:$0xff]  }
  0x31   :  { %8196 = vmatmul.mubr.msk.bf16.gmra.mxu0 %vm437_vm2, %v306_v42  ;;  %v107_v42 = vld [vmem:[%s15206_s0 + $0x220] sm:$0xff] }
  0x32   :  { %8199 = vmatprep.mubr.msk.bf16.mxu0 %vm437_vm2, %v307_v43  ;;  %v108_v43 = vld [vmem:[%s15206_s0 + $0x228] sm:$0xff] }
  0x33   :  { %v329_v45 = vpack.c.bf16 %v108_v43, %v107_v42  ;;  %v143_v42 = vld [vmem:[%s15206_s0 + $0x340] sm:$0xff]  ;;  %v144_v43 = vld [vmem:[%s15206_s0 + $0x348] sm:$0xff] }
  0x39   :  { %8200 = vmatmul.mubr.msk.bf16.gmra.mxu0 %vm437_vm2, %v308_v48  ;;  %v111_v48 = vld [vmem:[%s15206_s0 + $0x240] sm:$0xff] }
  0x3a   :  { %8203 = vmatprep.mubr.msk.bf16.mxu0 %vm437_vm2, %v309_v49  ;;  %v112_v49 = vld [vmem:[%s15206_s0 + $0x248] sm:$0xff] }
  0x3b   :  { %v331_v51 = vpack.c.bf16 %v112_v49, %v111_v48  ;;  %v347_v49 = vpack.c.bf16 %v144_v43, %v143_v42  ;;  %v9366_v42 = vld [vmem:[%s15207_s3 + $0x48] sm:$0xff]  }
  0x41   :  { %8204 = vmatmul.mubr.msk.bf16.gmra.mxu0 %vm437_vm2, %v310_v54  ;;  %v115_v54 = vld [vmem:[%s15206_s0 + $0x260] sm:$0xff] }
  0x42   :  { %8207 = vmatprep.mubr.msk.bf16.mxu0 %vm437_vm2, %v311_v55  ;;  %v116_v55 = vld [vmem:[%s15206_s0 + $0x268] sm:$0xff] }
  0x43   :  { %v333_v57 = vpack.c.bf16 %v116_v55, %v115_v54 }
  0x49   :  { %8208 = vmatmul.mubr.msk.bf16.gmra.mxu0 %vm437_vm2, %v312_v60  ;;  %v119_v60 = vld [vmem:[%s15206_s0 + $0x280] sm:$0xff] }
  0x4a   :  { %8211 = vmatprep.mubr.msk.bf16.mxu0 %vm437_vm2, %v313_v61  ;;  %v120_v61 = vld [vmem:[%s15206_s0 + $0x288] sm:$0xff] }
  0x4b   :  { %v335_v63 = vpack.c.bf16 %v120_v61, %v119_v60  ;;  %v148_v60 = vld [vmem:[%s15206_s0 + $0x368] sm:$0xff]  ;;  %v9361_v61 = vld [vmem:[%s15207_s3 + $0x70] sm:$0xff]  }
  0x4c   :  { %v349_v1 = vpack.c.bf16 %v148_v60, %v147_v59 }
  0x51   :  { %8212 = vmatmul.mubr.msk.bf16.gmra.mxu0 %vm437_vm2, %v314_v2  ;;  %v123_v2 = vld [vmem:[%s15206_s0 + $0x2a0] sm:$0xff] }
  0x52   :  { %8215 = vmatprep.mubr.msk.bf16.mxu0 %vm437_vm2, %v315_v3  ;;  %v124_v3 = vld [vmem:[%s15206_s0 + $0x2a8] sm:$0xff] }
  0x53   :  { %v337_v5 = vpack.c.bf16 %v124_v3, %v123_v2  ;;  %v9362_v3 = vld [vmem:[%s15207_s3 + $0x68] sm:$0xff]  }
  0x59   :  { %8216 = vmatmul.mubr.msk.bf16.gmra.mxu0 %vm437_vm2, %v316_v8  ;;  %v127_v8 = vld [vmem:[%s15206_s0 + $0x2c0] sm:$0xff] }
  0x5a   :  { %8219 = vmatprep.mubr.msk.bf16.mxu0 %vm437_vm2, %v317_v9  ;;  %v128_v9 = vld [vmem:[%s15206_s0 + $0x2c8] sm:$0xff] }
  0x5b   :  { %v339_v11 = vpack.c.bf16 %v128_v9, %v127_v8  ;;  %v149_v9 = vld [vmem:[%s15206_s0 + $0x370] sm:$0xff] }
  0x61   :  { %8220 = vmatmul.mubr.msk.bf16.gmra.mxu0 %vm437_vm2, %v318_v14  ;;  %v130_v14 = vld [vmem:[%s15206_s0 + $0x2d8] sm:$0xff] }
  0x62   :  { %8223 = vmatprep.mubr.msk.bf16.mxu0 %vm437_vm2, %v319_v15  ;;  %v15217_v15 = vmov 0   ;;  %v340_v19 = vpack.c.bf16 %v130_v14, %v129_v13  ;;  %v152_v13 = vld [vmem:[%s15206_s0 + $0x388] sm:$0xff]  ;;  %v9363_v14 = vld [vmem:[%s15207_s3 + $0x60] sm:$0xff]  }
  0x63   :  { %3968 = vmatprep.subr.bf16.mxu1 %v15217_v15 }
  0x64   :  { %3969 = vmatpush1.bf16.msra.mxu1 %v9352_v12  ;;  %v151_v12 = vld [vmem:[%s15206_s0 + $0x380] sm:$0xff] }
  0x65   :  { %3970 = vmatprep.subr.bf16.mxu1 %v15217_v15 }
  0x68   :  { %3971 = vmatpush1.bf16.msra.mxu1 %v9353_v18 }
  0x69   :  { %8224 = vmatmul.mubr.msk.bf16.gmra.mxu0 %vm437_vm2, %v320_v20  ;;  %v341_v20 = vpack.c.bf16 %v132_v17, %v131_v16  ;;  %3972 = vmatprep.subr.bf16.mxu1 %v15217_v15 }
  0x6a   :  { %8227 = vmatprep.mubr.msk.bf16.mxu0 %vm437_vm2, %v321_v21  ;;  %v9354_v21 = vld [vmem:[%s15207_s3 + $0x28] sm:$0xff]  }
  0x6c   :  { %3973 = vmatpush1.bf16.msra.mxu1 %v9354_v21 }
  0x6d   :  { %3974 = vmatprep.subr.bf16.mxu1 %v15217_v15 }
  0x71   :  { %8228 = vmatmul.mubr.msk.bf16.gmra.mxu0 %vm437_vm2, %v322_v26  ;;  %v9355_v26 = vld [vmem:[%s15207_s3 + $0x20] sm:$0xff]  }
  0x72   :  { %8231 = vmatprep.mubr.msk.bf16.mxu0 %vm437_vm2, %v323_v27  ;;  %v342_v27 = vpack.c.bf16 %v134_v23, %v133_v22  ;;  %3975 = vmatpush1.bf16.msra.mxu1 %v9355_v26  ;;  %v9364_v22 = vld [vmem:[%s15207_s3 + $0x58] sm:$0xff]  }
  0x73   :  { %3976 = vmatprep.subr.bf16.mxu1 %v15217_v15 }
  0x76   :  { %3977 = vmatpush1.bf16.msra.mxu1 %v9356_v29  ;;  %v154_v29 = vld [vmem:[%s15206_s0 + $0x398] sm:$0xff] }
  0x77   :  { %3978 = vmatprep.subr.bf16.mxu1 %v15217_v15 }
  0x79   :  { %8232 = vmatmul.mubr.msk.bf16.gmra.mxu0 %vm437_vm2, %v324_v32  ;;  %v139_v32 = vld [vmem:[%s15206_s0 + $0x320] sm:$0xff] }
  0x7a   :  { %8235 = vmatprep.mubr.msk.bf16.mxu0 %vm437_vm2, %v325_v33  ;;  %v140_v33 = vld [vmem:[%s15206_s0 + $0x328] sm:$0xff]  ;;  %3979 = vmatpush1.bf16.msra.mxu1 %v9357_v34 }
  0x7b   :  { %v345_v36 = vpack.c.bf16 %v140_v33, %v139_v32  ;;  %3980 = vmatprep.subr.bf16.mxu1 %v15217_v15  ;;  %v156_v32 = vld [vmem:[%s15206_s0 + $0x3a8] sm:$0xff]  ;;  %v9365_v33 = vld [vmem:[%s15207_s3 + $0x50] sm:$0xff]  }
  0x7e   :  { %3981 = vmatpush1.bf16.msra.mxu1 %v9358_v37 }
  0x7f   :  { %3982 = vmatprep.subr.bf16.mxu1 %v15217_v15 }
  0x81   :  { %8236 = vmatmul.mubr.msk.bf16.gmra.mxu0 %vm437_vm2, %v326_v38 }
  0x82   :  { %8239 = vmatprep.mubr.msk.bf16.mxu0 %vm437_vm2, %v327_v39  ;;  %v141_v39 = vld [vmem:[%s15206_s0 + $0x330] sm:$0xff] }
  0x83   :  { %v346_v47 = vpack.c.bf16 %v142_v40, %v141_v39  ;;  %v353_v39 = vpack.c.bf16 %v156_v32, %v155_v31  ;;  %v165_v32 = vld [vmem:[%s15206_s0 + $0x3f0] sm:$0xff] }
  0x89   :  { %8240 = vmatmul.mubr.msk.bf16.gmra.mxu0 %vm437_vm2, %v328_v44  ;;  %v9359_v44 = vld [vmem:[%s15207_s3] sm:$0xff]  }
  0x8a   :  { %8243 = vmatprep.mubr.msk.bf16.mxu0 %vm437_vm2, %v329_v45  ;;  %v10169_v45 = vld [vmem:[%s15208_s2] ss:$0 sm:$0xff]  ;;  %3983 = vmatpush1.bf16.msra.mxu1 %v9359_v44 }
  0x8b   :  { %3984 = vmatprep.subr.bf16.mxu1 %v15217_v15 }
  0x91   :  { %8244 = vmatmul.mubr.msk.bf16.gmra.mxu0 %vm437_vm2, %v330_v50 }
  0x92   :  { %8247 = vmatprep.mubr.msk.bf16.mxu0 %vm437_vm2, %v331_v51  ;;  %v9360_v51 = vld [vmem:[%s15207_s3 + $0x78] sm:$0xff]  }
  0x93   :  { %3985 = vmatpush2.bf16.msra.mxu1 %v9360_v51 }
  0x94   :  { %3986 = vmatprep.subr.bf16.mxu1 %v15217_v15 }
  0x97   :  { %3987 = vmatpush2.bf16.msra.mxu1 %v9361_v61 }
  0x98   :  { %3988 = vmatprep.subr.bf16.mxu1 %v15217_v15 }
  0x99   :  { %8248 = vmatmul.mubr.msk.bf16.gmra.mxu0 %vm437_vm2, %v332_v56  ;;  %v145_v56 = vld [vmem:[%s15206_s0 + $0x350] sm:$0xff] }
  0x9a   :  { %8251 = vmatprep.mubr.msk.bf16.mxu0 %vm437_vm2, %v333_v57  ;;  %v146_v57 = vld [vmem:[%s15206_s0 + $0x358] sm:$0xff] }
  0x9b   :  { %v348_v0 = vpack.c.bf16 %v146_v57, %v145_v56  ;;  %3989 = vmatpush2.bf16.msra.mxu1 %v9362_v3 }
  0x9c   :  { %3990 = vmatprep.subr.bf16.mxu1 %v15217_v15 }
  0x9f   :  { %3991 = vmatpush2.bf16.msra.mxu1 %v9363_v14 }
  0xa0   :  { %3992 = vmatprep.subr.bf16.mxu1 %v15217_v15 }
  0xa1   :  { %8252 = vmatmul.mubr.msk.bf16.gmra.mxu0 %vm437_vm2, %v334_v62 }
  0xa2   :  { %8255 = vmatprep.mubr.msk.bf16.mxu0 %vm437_vm2, %v335_v63 }
  0xa3   :  { %3993 = vmatpush2.bf16.msra.mxu1 %v9364_v22 }
  0xa4   :  { %3994 = vmatprep.subr.bf16.mxu1 %v15217_v15 }
  0xa7   :  { %3995 = vmatpush2.bf16.msra.mxu1 %v9365_v33  ;;  %v166_v33 = vld [vmem:[%s15206_s0 + $0x3f8] sm:$0xff] }
  0xa8   :  { %3996 = vmatprep.subr.bf16.mxu1 %v15217_v15 }
  0xa9   :  { %8256 = vmatmul.mubr.msk.bf16.gmra.mxu0 %vm437_vm2, %v336_v4 }
  0xaa   :  { %8259 = vmatprep.mubr.msk.bf16.mxu0 %vm437_vm2, %v337_v5  ;;  %v15219_v5 = vmov 0.0  }
  0xab   :  { %3997 = vmatpush2.bf16.msra.mxu1 %v9366_v42 }
  0xac   :  { %3998 = vmatprep.subr.bf16.mxu1 %v15217_v15 }
  0xb1   :  { %8260 = vmatmul.mubr.msk.bf16.gmra.mxu0 %vm437_vm2, %v338_v10  ;;  %v150_v10 = vld [vmem:[%s15206_s0 + $0x378] sm:$0xff] }
  0xb2   :  { %8263 = vmatprep.mubr.msk.bf16.mxu0 %vm437_vm2, %v339_v11  ;;  %v350_v18 = vpack.c.bf16 %v150_v10, %v149_v9  ;;  %v162_v9 = vld [vmem:[%s15206_s0 + $0x3d8] sm:$0xff] }
  0xb9   :  { %8264 = vmatmul.mubr.msk.bf16.gmra.mxu0 %vm437_vm2, %v340_v19 }
  0xba   :  { %8267 = vmatprep.mubr.msk.bf16.mxu0 %vm437_vm2, %v341_v20  ;;  %v351_v20 = vpack.c.bf16 %v152_v13, %v151_v12  ;;  %v163_v12 = vld [vmem:[%s15206_s0 + $0x3e0] sm:$0xff]  ;;  %v164_v13 = vld [vmem:[%s15206_s0 + $0x3e8] sm:$0xff] }
  0xbb   :  { %v357_v22 = vpack.c.bf16 %v164_v13, %v163_v12 }
  0xc1   :  { %8268 = vmatmul.mubr.msk.bf16.gmra.mxu0 %vm437_vm2, %v342_v27 }
  0xc2   :  { %8271 = vmatprep.mubr.msk.bf16.mxu0 %vm437_vm2, %v343_v28  ;;  %v153_v28 = vld [vmem:[%s15206_s0 + $0x390] sm:$0xff] }
  0xc9   :  { %v10144_v38 = vpop.f32.mrf.mxu0  ;;  %8272 = vmatmul.mubr.msk.bf16.gmra.mxu0 %vm437_vm2, %v344_v35 }
  0xca   :  { %8275 = vmatprep.mubr.msk.bf16.mxu0 %vm437_vm2, %v345_v36  ;;  %v352_v36 = vpack.c.bf16 %v154_v29, %v153_v28 }
  0xcb   :  { %v10155_v41 = vpop.f32.mrf.mxu0 }
  0xcd   :  { %v8178_v46 = vpop.f32.mrf.mxu0 }
  0xce   :  { %v875_v48 = vadd.f32 %v8178_v46, %v10169_v45 }
  0xcf   :  { %v866_v50 = vpop.f32.mrf.mxu0 }
  0xd0   :  { %v867_v52 = vadd.f32 %v10169_v45, %v866_v50  ;;  %v1889_v54 = vmax.f32 %v875_v48, 0.0  ;;  %v158_v50 = vld [vmem:[%s15206_s0 + $0x3b8] sm:$0xff] }
  0xd1   :  { %v10177_v53 = vpop.f32.mrf.mxu0  ;;  %8276 = vmatmul.mubr.msk.bf16.gmra.mxu0 %vm437_vm2, %v346_v47 }
  0xd2   :  { %v1887_v55 = vmax.f32 %v867_v52, 0.0  ;;  %8279 = vmatprep.mubr.msk.bf16.mxu0 %vm437_vm2, %v347_v49  ;;  %v157_v49 = vld [vmem:[%s15206_s0 + $0x3b0] sm:$0xff]  ;;  %v159_v52 = vld [vmem:[%s15206_s0 + $0x3c0] sm:$0xff] }
  0xd3   :  { %v10188_v58 = vpop.f32.mrf.mxu0  ;;  %v354_v60 = vpack.c.bf16 %v158_v50, %v157_v49 }
  0xd4   :  { %v8531_v62 = vpack.i.bf16 %v1889_v54, %v1887_v55  ;;  %v8536_v6 = vpack.i.bf16 %v1887_v55, %v15219_v5  ;;  %v9367_v55 = vld [vmem:[%s15207_s3 + $0x40] sm:$0xff]  }
  0xd5   :  { %v8182_v63 = vpop.f32.mrf.mxu0  ;;  %3999 = vmatpush2.bf16.msra.mxu1 %v9367_v55 }
  0xd6   :  { %8532 = vrot.lane.b32.xlu0 %v8531_v62, %s9692_s21  ;;  %v891_v19 = vadd.f32 %v8182_v63, %v10169_v45 }
  0xd7   :  { %v882_v2 = vpop.f32.mrf.mxu0 }
  0xd8   :  { %v883_v4 = vadd.f32 %v10169_v45, %v882_v2  ;;  %v1893_v26 = vmax.f32 %v891_v19, 0.0 }
  0xd9   :  { %v10206_v7 = vpop.f32.mrf.mxu0  ;;  %8280 = vmatmul.mubr.msk.bf16.gmra.mxu0 %vm437_vm2, %v348_v0 }
  0xda   :  { %v1891_v8 = vmax.f32 %v883_v4, 0.0  ;;  %8537 = vrot.lane.b32.xlu0 %v8536_v6, %s9694_s24  ;;  %8283 = vmatprep.mubr.msk.bf16.mxu0 %vm437_vm2, %v349_v1 }
  0xdb   :  { %v10217_v11 = vpop.f32.mrf.mxu0 }
  0xdc   :  { %v8541_v16 = vpack.i.bf16 %v1891_v8, %v15219_v5  ;;  %v8546_v24 = vpack.i.bf16 %v1891_v8, %v1889_v54  ;;  %v160_v54 = vld [vmem:[%s15206_s0 + $0x3c8] sm:$0xff]  ;;  %v161_v8 = vld [vmem:[%s15206_s0 + $0x3d0] sm:$0xff] }
  0xdd   :  { %v8186_v17 = vpop.f32.mrf.mxu0  ;;  %v355_v63 = vpack.c.bf16 %v160_v54, %v159_v52 }
  0xde   :  { %8542 = vrot.lane.b32.xlu0 %v8541_v16, %s9692_s21  ;;  %v907_v37 = vadd.f32 %v8186_v17, %v10169_v45 }
  0xdf   :  { %v898_v21 = vpop.f32.mrf.mxu0 }
  0xe0   :  { %v899_v23 = vadd.f32 %v10169_v45, %v898_v21  ;;  %v1897_v46 = vmax.f32 %v907_v37, 0.0  ;;  %v168_v37 = vld [vmem:[%s15206_s0 + $0x408] sm:$0xff] }
  0xe1   :  { %v10237_v25 = vpop.f32.mrf.mxu0  ;;  %8284 = vmatmul.mubr.msk.bf16.gmra.mxu0 %vm437_vm2, %v350_v18  ;;  %v356_v18 = vpack.c.bf16 %v162_v9, %v161_v8 }
  0xe2   :  { %v1895_v27 = vmax.f32 %v899_v23, 0.0  ;;  %8547 = vrot.lane.b32.xlu0 %v8546_v24, %s9694_s24  ;;  %8287 = vmatprep.mubr.msk.bf16.mxu0 %vm437_vm2, %v351_v20 }
  0xe3   :  { %v10248_v30 = vpop.f32.mrf.mxu0 }
  0xe4   :  { %v8551_v34 = vpack.i.bf16 %v1895_v27, %v1893_v26 }
  0xe5   :  { %v10260_v35 = vpop.f32.mrf.mxu0 }
  0xe6   :  { %8552 = vrot.lane.b32.xlu1 %v8551_v34, %s9692_s21  ;;  %8557 = vrot.lane.b32.xlu0 %v8551_v34, %s9694_s24 }
  0xe7   :  { %v914_v40 = vpop.f32.mrf.mxu0 }
  0xe8   :  { %v915_v43 = vadd.f32 %v10169_v45, %v914_v40 }
  0xe9   :  { %v8193_v44 = vpop.f32.mrf.mxu0  ;;  %8288 = vmatmul.mubr.msk.bf16.gmra.mxu0 %vm437_vm2, %v352_v36  ;;  %v167_v36 = vld [vmem:[%s15206_s0 + $0x400] sm:$0xff] }
  0xea   :  { %v1899_v47 = vmax.f32 %v915_v43, 0.0  ;;  %v10272_v48 = vadd.f32 %v8193_v44, %v10169_v45  ;;  %8291 = vmatprep.mubr.msk.bf16.mxu0 %vm437_vm2, %v353_v39  ;;  %v358_v43 = vpack.c.bf16 %v166_v33, %v165_v32  ;;  %v359_v49 = vpack.c.bf16 %v168_v37, %v167_v36  ;;  %v174_v32 = vld [vmem:[%s15206_s0 + $0x438] sm:$0xff]  ;;  %v176_v36 = vld [vmem:[%s15206_s0 + $0x448] sm:$0xff] }
  0xeb   :  { %v927_v51 = vpop.f32.mrf.mxu0 }
  0xec   :  { %v10292_v56 = vadd.f32 %v10169_v45, %v927_v51  ;;  %v8561_v57 = vpack.i.bf16 %v1899_v47, %v1897_v46  ;;  %v1904_v61 = vmax.f32 %v10272_v48, 0.0 }
  0xed   :  { %v8194_v59 = vpop.f32.mrf.mxu0 }
  0xee   :  { %v1902_v62 = vmax.f32 %v10292_v56, 0.0  ;;  %8562 = vrot.lane.b32.xlu1 %v8561_v57, %s9692_s21  ;;  %8567 = vrot.lane.b32.xlu0 %v8561_v57, %s9694_s24  ;;  %v939_v19 = vadd.f32 %v8194_v59, %v10169_v45  ;;  %v180_v56 = vld [vmem:[%s15206_s0 + $0x468] sm:$0xff] }
  0xef   :  { %v930_v0 = vpop.f32.mrf.mxu0 }
  0xf0   :  { %v8571_v1 = vpack.i.bf16 %v1904_v61, %v1902_v62  ;;  %v931_v2 = vadd.f32 %v10169_v45, %v930_v0  ;;  %v10338_v28 = vmax.f32 %v939_v19, 0.0 }
  0xf1   :  { %v8197_v3 = vpop.f32.mrf.mxu0  ;;  %8292 = vmatmul.mubr.msk.bf16.gmra.mxu0 %vm437_vm2, %v354_v60  ;;  %v169_v60 = vld [vmem:[%s15206_s0 + $0x410] sm:$0xff] }
  0xf2   :  { %v10304_v4 = vmax.f32 %v931_v2, 0.0  ;;  %v10307_v6 = vadd.f32 %v8197_v3, %v10169_v45  ;;  %8572 = vrot.lane.b32.xlu1 %v8571_v1, %s9694_s24  ;;  %8295 = vmatprep.mubr.msk.bf16.mxu0 %vm437_vm2, %v355_v63  ;;  %15437 = vst [vmem:[#allocation3_spill] sm:$0xff] %v10338_v28  ;;  %v170_v63 = vld [vmem:[%s15206_s0 + $0x418] sm:$0xff]  ;;  %v171_v1 = vld [vmem:[%s15206_s0 + $0x420] sm:$0xff]  ;;  %v172_v2 = vld [vmem:[%s15206_s0 + $0x428] sm:$0xff] }
  0xf3   :  { %v943_v10 = vpop.f32.mrf.mxu0 }
  0xf4   :  { %15436 = vst [vmem:[#allocation2_spill] sm:$0xff] %v10304_v4  ;;  %v10324_v14 = vadd.f32 %v10169_v45, %v943_v10  ;;  %v8576_v16 = vpack.i.bf16 %v10304_v4, %v15219_v5  ;;  %v1908_v20 = vmax.f32 %v10307_v6, 0.0  ;;  %v360_v10 = vpack.c.bf16 %v170_v63, %v169_v60  ;;  %v189_v6 = vld [vmem:[%s15206_s0 + $0x4b0] sm:$0xff] }
  0xf5   :  { %v8198_v17 = vpop.f32.mrf.mxu0 }
  0xf6   :  { %v1906_v21 = vmax.f32 %v10324_v14, 0.0  ;;  %8577 = vrot.lane.b32.xlu1 %v8576_v16, %s9695_s30  ;;  %v955_v44 = vadd.f32 %v8198_v17, %v10169_v45  ;;  %v361_v17 = vpack.c.bf16 %v172_v2, %v171_v1  ;;  %v179_v2 = vld [vmem:[%s15206_s0 + $0x460] sm:$0xff]  ;;  %v184_v14 = vld [vmem:[%s15206_s0 + $0x488] sm:$0xff] }
  0xf7   :  { %v946_v23 = vpop.f32.mrf.mxu0 }
  0xf8   :  { %v8581_v24 = vpack.i.bf16 %v1908_v20, %v1906_v21  ;;  %v947_v26 = vadd.f32 %v10169_v45, %v946_v23  ;;  %v10374_v55 = vmax.f32 %v955_v44, 0.0 }
  0xf9   :  { %v8201_v27 = vpop.f32.mrf.mxu0  ;;  %8296 = vmatmul.mubr.msk.bf16.gmra.mxu0 %vm437_vm2, %v356_v18 }
  0xfa   :  { %v10340_v29 = vmax.f32 %v947_v26, 0.0  ;;  %v10343_v31 = vadd.f32 %v8201_v27, %v10169_v45  ;;  %8582 = vrot.lane.b32.xlu1 %v8581_v24, %s9694_s24  ;;  %8299 = vmatprep.mubr.msk.bf16.mxu0 %vm437_vm2, %v357_v22  ;;  %15439 = vst [vmem:[#allocation5_spill] sm:$0xff] %v10374_v55  ;;  %v173_v27 = vld [vmem:[%s15206_s0 + $0x430] sm:$0xff] }
  0xfb   :  { %v959_v34 = vpop.f32.mrf.mxu0 }
  0xfc   :  { %15438 = vst [vmem:[#allocation4_spill] sm:$0xff] %v10340_v29  ;;  %v10360_v39 = vadd.f32 %v10169_v45, %v959_v34  ;;  %v8586_v40 = vpack.i.bf16 %v10340_v29, %v10338_v28  ;;  %v1912_v46 = vmax.f32 %v10343_v31, 0.0  ;;  %v175_v34 = vld [vmem:[%s15206_s0 + $0x440] sm:$0xff] }
  0xfd   :  { %v8202_v42 = vpop.f32.mrf.mxu0  ;;  %v363_v44 = vpack.c.bf16 %v176_v36, %v175_v34 }
  0xfe   :  { %v1910_v47 = vmax.f32 %v10360_v39, 0.0  ;;  %8587 = vrot.lane.b32.xlu0 %v8586_v40, %s9695_s30  ;;  %v971_v12 = vadd.f32 %v8202_v42, %v10169_v45  ;;  %v362_v42 = vpack.c.bf16 %v174_v32, %v173_v27  ;;  %v188_v39 = vld [vmem:[%s15206_s0 + $0x4a8] sm:$0xff] }
  0xff   :  { %v962_v50 = vpop.f32.mrf.mxu0 }
 0x100   :  { %v8591_v51 = vpack.i.bf16 %v1912_v46, %v1910_v47  ;;  %v963_v52 = vadd.f32 %v10169_v45, %v962_v50  ;;  %v10414_v24 = vmax.f32 %v971_v12, 0.0  ;;  %v923_v50 = vadd.f32 %v10260_v35, %v10169_v45  ;;  %v177_v35 = vld [vmem:[%s15206_s0 + $0x450] sm:$0xff] }
 0x101   :  { %v8205_v54 = vpop.f32.mrf.mxu0  ;;  %8300 = vmatmul.mubr.msk.bf16.gmra.mxu0 %vm437_vm2, %v358_v43 }
 0x102   :  { %v10376_v57 = vmax.f32 %v963_v52, 0.0  ;;  %v10379_v59 = vadd.f32 %v8205_v54, %v10169_v45  ;;  %8592 = vrot.lane.b32.xlu1 %v8591_v51, %s9694_s24  ;;  %8303 = vmatprep.mubr.msk.bf16.mxu0 %vm437_vm2, %v359_v49  ;;  %15441 = vst [vmem:[#allocation7_spill] sm:$0xff] %v10414_v24 }
 0x103   :  { %v975_v0 = vpop.f32.mrf.mxu0 }
 0x104   :  { %15440 = vst [vmem:[#allocation6_spill] sm:$0xff] %v10376_v57  ;;  %v10396_v3 = vadd.f32 %v10169_v45, %v975_v0  ;;  %v8596_v8 = vpack.i.bf16 %v10376_v57, %v10374_v55  ;;  %v1916_v13 = vmax.f32 %v10379_v59, 0.0  ;;  %v178_v0 = vld [vmem:[%s15206_s0 + $0x458] sm:$0xff] }
 0x105   :  { %v10400_v9 = vpop.f32.mrf.mxu0 }
 0x106   :  { %v1914_v16 = vmax.f32 %v10396_v3, 0.0  ;;  %8597 = vrot.lane.b32.xlu0 %v8596_v8, %s9695_s30  ;;  %v192_v3 = vld [vmem:[%s15206_s0 + $0x4c8] sm:$0xff] }
 0x107   :  { %v978_v18 = vpop.f32.mrf.mxu0 }
 0x108   :  { %v8601_v19 = vpack.i.bf16 %v1916_v13, %v1914_v16  ;;  %v979_v22 = vadd.f32 %v10169_v45, %v978_v18  ;;  %v365_v18 = vpack.c.bf16 %v180_v56, %v179_v2 }
 0x109   :  { %v10411_v23 = vpop.f32.mrf.mxu0  ;;  %8304 = vmatmul.mubr.msk.bf16.gmra.mxu0 %vm437_vm2, %v360_v10  ;;  %v364_v10 = vpack.c.bf16 %v178_v0, %v177_v35 }
 0x10a   :  { %v10416_v26 = vmax.f32 %v979_v22, 0.0  ;;  %8602 = vrot.lane.b32.xlu1 %v8601_v19, %s9694_s24  ;;  %8307 = vmatprep.mubr.msk.bf16.mxu0 %vm437_vm2, %v361_v17 }
 0x10b   :  { %v10426_v33 = vpop.f32.mrf.mxu0 }
 0x10c   :  { %15442 = vst [vmem:[#allocation8_spill] sm:$0xff] %v10416_v26  ;;  %v8606_v37 = vpack.i.bf16 %v10416_v26, %v10414_v24 }
 0x10d   :  { %v8210_v40 = vpop.f32.mrf.mxu0 }
 0x10e   :  { %v10437_v43 = vadd.f32 %v8210_v40, %v10169_v45  ;;  %8607 = vrot.lane.b32.xlu0 %v8606_v37, %s9695_s30  ;;  %v181_v37 = vld [vmem:[%s15206_s0 + $0x470] sm:$0xff]  ;;  %v182_v40 = vld [vmem:[%s15206_s0 + $0x478] sm:$0xff] }
 0x10f   :  { %v994_v49 = vpop.f32.mrf.mxu0 }
 0x110   :  { %v1921_v51 = vmax.f32 %v10437_v43, 0.0  ;;  %v10444_v52 = vadd.f32 %v10169_v45, %v994_v49  ;;  %v366_v49 = vpack.c.bf16 %v182_v40, %v181_v37  ;;  %v197_v43 = vld [vmem:[%s15206_s0 + $0x4f0] sm:$0xff] }
 0x111   :  { %v10446_v54 = vpop.f32.mrf.mxu0  ;;  %8308 = vmatmul.mubr.msk.bf16.gmra.mxu0 %vm437_vm2, %v362_v42 }
 0x112   :  { %v8611_v60 = vpack.i.bf16 %v1902_v62, %v1921_v51  ;;  %v1919_v63 = vmax.f32 %v10444_v52, 0.0  ;;  %8311 = vmatprep.mubr.msk.bf16.mxu0 %vm437_vm2, %v363_v44  ;;  %v1901_v62 = vmax.f32 %v923_v50, 0.0  ;;  %v183_v44 = vld [vmem:[%s15206_s0 + $0x480] sm:$0xff] }
 0x113   :  { %v10461_v1 = vpop.f32.mrf.mxu0  ;;  %v367_v35 = vpack.c.bf16 %v184_v14, %v183_v44 }
 0x114   :  { %8612 = vrot.lane.b32.xlu1 %v8611_v60, %s9692_s21  ;;  %v8616_v17 = vpack.i.bf16 %v1919_v63, %v1901_v62 }
 0x115   :  { %v8214_v8 = vpop.f32.mrf.mxu0 }
 0x116   :  { %v10471_v12 = vadd.f32 %v8214_v8, %v10169_v45  ;;  %v185_v8 = vld [vmem:[%s15206_s0 + $0x490] sm:$0xff] }
 0x117   :  { %v1010_v19 = vpop.f32.mrf.mxu0 }
 0x118   :  { %v1925_v22 = vmax.f32 %v10471_v12, 0.0  ;;  %v10477_v27 = vadd.f32 %v10169_v45, %v1010_v19  ;;  %8617 = vrot.lane.b32.xlu1 %v8616_v17, %s9692_s21  ;;  %v201_v12 = vld [vmem:[%s15206_s0 + $0x510] sm:$0xff] }
 0x119   :  { %v10480_v32 = vpop.f32.mrf.mxu0  ;;  %8312 = vmatmul.mubr.msk.bf16.gmra.mxu0 %vm437_vm2, %v364_v10  ;;  %v186_v10 = vld [vmem:[%s15206_s0 + $0x498] sm:$0xff] }
 0x11a   :  { %v8621_v34 = vpack.i.bf16 %v1906_v21, %v1925_v22  ;;  %v1923_v36 = vmax.f32 %v10477_v27, 0.0  ;;  %8315 = vmatprep.mubr.msk.bf16.mxu0 %vm437_vm2, %v365_v18  ;;  %v187_v18 = vld [vmem:[%s15206_s0 + $0x4a0] sm:$0xff]  ;;  %v368_v19 = vpack.c.bf16 %v186_v10, %v185_v8 }
 0x11b   :  { %v10495_v42 = vpop.f32.mrf.mxu0  ;;  %v369_v40 = vpack.c.bf16 %v188_v39, %v187_v18 }
 0x11c   :  { %8622 = vrot.lane.b32.xlu0 %v8621_v34, %s9692_s21  ;;  %v8626_v60 = vpack.i.bf16 %v1923_v36, %v1904_v61 }
 0x11d   :  { %v8218_v21 = vpop.f32.mrf.mxu0 }
 0x11e   :  { %v10505_v50 = vadd.f32 %v8218_v21, %v10169_v45 }
 0x11f   :  { %v1026_v0 = vpop.f32.mrf.mxu0 }
 0x120   :  { %v1929_v2 = vmax.f32 %v10505_v50, 0.0  ;;  %v10513_v56 = vadd.f32 %v10169_v45, %v1026_v0  ;;  %8627 = vrot.lane.b32.xlu0 %v8626_v60, %s9692_s21  ;;  %v205_v50 = vld [vmem:[%s15206_s0 + $0x530] sm:$0xff] }
 0x121   :  { %v10516_v62 = vpop.f32.mrf.mxu0  ;;  %8316 = vmatmul.mubr.msk.bf16.gmra.mxu0 %vm437_vm2, %v366_v49 }
 0x122   :  { %v8631_v48 = vpack.i.bf16 %v1910_v47, %v1929_v2  ;;  %v1927_v61 = vmax.f32 %v10513_v56, 0.0  ;;  %8319 = vmatprep.mubr.msk.bf16.mxu0 %vm437_vm2, %v367_v35 }
 0x123   :  { %v10531_v17 = vpop.f32.mrf.mxu0 }
 0x124   :  { %8632 = vrot.lane.b32.xlu1 %v8631_v48, %s9692_s21  ;;  %v8636_v37 = vpack.i.bf16 %v1927_v61, %v1908_v20  ;;  %v190_v20 = vld [vmem:[%s15206_s0 + $0x4b8] sm:$0xff]  ;;  %v191_v48 = vld [vmem:[%s15206_s0 + $0x4c0] sm:$0xff] }
 0x125   :  { %v8222_v47 = vpop.f32.mrf.mxu0  ;;  %v370_v18 = vpack.c.bf16 %v190_v20, %v189_v6  ;;  %v193_v6 = vld [vmem:[%s15206_s0 + $0x4d0] sm:$0xff]  ;;  %v194_v20 = vld [vmem:[%s15206_s0 + $0x4d8] sm:$0xff] }
 0x126   :  { %v1051_v34 = vadd.f32 %v8222_v47, %v10169_v45 }
 0x127   :  { %v1042_v44 = vpop.f32.mrf.mxu0 }
 0x128   :  { %v1933_v14 = vmax.f32 %v1051_v34, 0.0  ;;  %v10546_v21 = vadd.f32 %v10169_v45, %v1042_v44  ;;  %8637 = vrot.lane.b32.xlu1 %v8636_v37, %s9692_s21  ;;  %v371_v34 = vpack.c.bf16 %v192_v3, %v191_v48  ;;  %v195_v48 = vld [vmem:[%s15206_s0 + $0x4e0] sm:$0xff]  ;;  %v196_v3 = vld [vmem:[%s15206_s0 + $0x4e8] sm:$0xff] }
 0x129   :  { %v8225_v49 = vpop.f32.mrf.mxu0  ;;  %8320 = vmatmul.mubr.msk.bf16.gmra.mxu0 %vm437_vm2, %v368_v19 }
 0x12a   :  { %v8641_v60 = vpack.i.bf16 %v1914_v16, %v1933_v14  ;;  %v15221_v35 = vmax.f32 %v10546_v21, 0.0  ;;  %8323 = vmatprep.mubr.msk.bf16.mxu0 %vm437_vm2, %v369_v40  ;;  %v10567_v16 = vadd.f32 %v8225_v49, %v10169_v45 }
 0x12b   :  { %v1055_v0 = vpop.f32.mrf.mxu0 }
 0x12c   :  { %v10570_v8 = vadd.f32 %v10169_v45, %v1055_v0  ;;  %8642 = vrot.lane.b32.xlu0 %v8641_v60, %s9692_s21  ;;  %v8646_v19 = vpack.i.bf16 %v15221_v35, %v1912_v46  ;;  %v15223_v40 = vmax.f32 %v10567_v16, 0.0 }
 0x12d   :  { %v8226_v10 = vpop.f32.mrf.mxu0 }
 0x12e   :  { %v1934_v39 = vmax.f32 %v10570_v8, 0.0  ;;  %v1067_v47 = vadd.f32 %v8226_v10, %v10169_v45  ;;  %v212_v8 = vld [vmem:[%s15206_s0 + $0x568] sm:$0xff] }
 0x12f   :  { %v1058_v37 = vpop.f32.mrf.mxu0 }
 0x130   :  { %v1059_v44 = vadd.f32 %v10169_v45, %v1058_v37  ;;  %8647 = vrot.lane.b32.xlu0 %v8646_v19, %s9692_s21  ;;  %v8651_v49 = vpack.i.bf16 %v15223_v40, %v1934_v39  ;;  %v10587_v31 = vmax.f32 %v1067_v47, 0.0 }
 0x131   :  { %v8229_v14 = vpop.f32.mrf.mxu0  ;;  %8324 = vmatmul.mubr.msk.bf16.gmra.mxu0 %vm437_vm2, %v370_v18 }
 0x132   :  { %15443 = vst [vmem:[#allocation9_spill] sm:$0xff] %v10587_v31  ;;  %v10589_v60 = vmax.f32 %v1059_v44, 0.0  ;;  %v10592_v46 = vadd.f32 %v8229_v14, %v10169_v45  ;;  %8327 = vmatprep.mubr.msk.bf16.mxu0 %vm437_vm2, %v371_v34  ;;  %v372_v34 = vpack.c.bf16 %v194_v20, %v193_v6  ;;  %v373_v44 = vpack.c.bf16 %v196_v3, %v195_v48  ;;  %v199_v3 = vld [vmem:[%s15206_s0 + $0x500] sm:$0xff] }
 0x133   :  { %v1071_v0 = vpop.f32.mrf.mxu0 }
 0x134   :  { %15444 = vst [vmem:[#allocation10_spill] sm:$0xff] %v10589_v60  ;;  %v15222_v10 = vmax.f32 %v10592_v46, 0.0  ;;  %v10609_v18 = vadd.f32 %v10169_v45, %v1071_v0  ;;  %8652 = vrot.lane.b32.xlu0 %v8651_v49, %s9694_s24  ;;  %v8656_v47 = vpack.i.bf16 %v10587_v31, %v10589_v60  ;;  %v15462_v60 = vmax.f32 %v10592_v46, 0.0 }
 0x135   :  { %v8230_v19 = vpop.f32.mrf.mxu0 }
 0x136   :  { %v1083_v37 = vadd.f32 %v8230_v19, %v10169_v45  ;;  %8657 = vrot.lane.b32.xlu1 %v8656_v47, %s9695_s30  ;;  %v8661_v15 = vpack.i.bf16 %v1921_v51, %v15222_v10  ;;  %v15227_v0 = vmax.f32 %v10609_v18, 0.0  ;;  %v198_v51 = vld [vmem:[%s15206_s0 + $0x4f8] sm:$0xff] }
 0x137   :  { %v1074_v14 = vpop.f32.mrf.mxu0 }
 0x138   :  { %v1075_v49 = vadd.f32 %v10169_v45, %v1074_v14  ;;  %v10623_v35 = vmax.f32 %v1083_v37, 0.0 }
 0x139   :  { %v8233_v5 = vpop.f32.mrf.mxu0  ;;  %8328 = vmatmul.mubr.msk.bf16.gmra.mxu0 %vm437_vm2, %v372_v34 }
 0x13a   :  { %15445 = vst [vmem:[#allocation11_spill] sm:$0xff] %v10623_v35  ;;  %v10625_v6 = vmax.f32 %v1075_v49, 0.0  ;;  %v10628_v20 = vadd.f32 %v8233_v5, %v10169_v45  ;;  %8662 = vrot.lane.b32.xlu1 %v8661_v15, %s9694_s24  ;;  %8331 = vmatprep.mubr.msk.bf16.mxu0 %vm437_vm2, %v373_v44  ;;  %v200_v5 = vld [vmem:[%s15206_s0 + $0x508] sm:$0xff]  ;;  %v8666_v15 = vpack.i.bf16 %v15227_v0, %v1919_v63 }
 0x13b   :  { %v1087_v48 = vpop.f32.mrf.mxu0  ;;  %v374_v44 = vpack.c.bf16 %v198_v51, %v197_v43  ;;  %v375_v52 = vpack.c.bf16 %v200_v5, %v199_v3 }
 0x13c   :  { %15446 = vst [vmem:[#allocation12_spill] sm:$0xff] %v10625_v6  ;;  %v15224_v47 = vmax.f32 %v10628_v20, 0.0  ;;  %v10650_v19 = vadd.f32 %v10169_v45, %v1087_v48  ;;  %v8671_v34 = vpack.i.bf16 %v10623_v35, %v10625_v6  ;;  %v864_v35 = vadd.f32 %v10169_v45, %v10155_v41 }
 0x13d   :  { %v8234_v37 = vpop.f32.mrf.mxu0 }
 0x13e   :  { %v1099_v14 = vadd.f32 %v8234_v37, %v10169_v45  ;;  %8667 = vrot.lane.b32.xlu1 %v8666_v15, %s9694_s24  ;;  %8672 = vrot.lane.b32.xlu0 %v8671_v34, %s9695_s30  ;;  %v8676_v63 = vpack.i.bf16 %v1925_v22, %v15224_v47  ;;  %v15226_v48 = vmax.f32 %v10650_v19, 0.0  ;;  %v202_v22 = vld [vmem:[%s15206_s0 + $0x518] sm:$0xff] }
 0x13f   :  { %v1090_v49 = vpop.f32.mrf.mxu0 }
 0x140   :  { %v1091_v10 = vadd.f32 %v10169_v45, %v1090_v49  ;;  %v10664_v43 = vmax.f32 %v1099_v14, 0.0  ;;  %v8681_v5 = vpack.i.bf16 %v15226_v48, %v1923_v36  ;;  %v10699_v49 = vadd.f32 %v10400_v9, %v10169_v45 }
 0x141   :  { %v8237_v40 = vpop.f32.mrf.mxu0  ;;  %8332 = vmatmul.mubr.msk.bf16.gmra.mxu0 %vm437_vm2, %v374_v44 }
 0x142   :  { %15447 = vst [vmem:[#allocation13_spill] sm:$0xff] %v10664_v43  ;;  %v10666_v51 = vmax.f32 %v1091_v10, 0.0  ;;  %v10669_v15 = vadd.f32 %v8237_v40, %v10169_v45  ;;  %8677 = vrot.lane.b32.xlu0 %v8676_v63, %s9694_s24  ;;  %8335 = vmatprep.mubr.msk.bf16.mxu0 %vm437_vm2, %v375_v52  ;;  %v203_v10 = vld [vmem:[%s15206_s0 + $0x520] sm:$0xff]  ;;  %v204_v40 = vld [vmem:[%s15206_s0 + $0x528] sm:$0xff]  ;;  %v376_v52 = vpack.c.bf16 %v202_v22, %v201_v12  ;;  %15449 = vst [vmem:[#allocation15_spill] sm:$0xff] %v10699_v49 }
 0x143   :  { %v1103_v3 = vpop.f32.mrf.mxu0  ;;  %v377_v27 = vpack.c.bf16 %v204_v40, %v203_v10  ;;  %v15228_v9 = vmax.f32 %v10699_v49, 0.0  ;;  %v207_v40 = vld [vmem:[%s15206_s0 + $0x540] sm:$0xff] }
 0x144   :  { %15448 = vst [vmem:[#allocation14_spill] sm:$0xff] %v10666_v51  ;;  %v15225_v34 = vmax.f32 %v10669_v15, 0.0  ;;  %v10691_v37 = vadd.f32 %v10169_v45, %v1103_v3  ;;  %v8686_v44 = vpack.i.bf16 %v10664_v43, %v10666_v51  ;;  %v872_v43 = vadd.f32 %v10144_v38, %v10169_v45 }
 0x145   :  { %v10695_v14 = vpop.f32.mrf.mxu0 }
 0x146   :  { %8687 = vrot.lane.b32.xlu1 %v8686_v44, %s9695_s30  ;;  %8682 = vrot.lane.b32.xlu0 %v8681_v5, %s9694_s24  ;;  %v8691_v63 = vpack.i.bf16 %v1929_v2, %v15225_v34  ;;  %v15229_v3 = vmax.f32 %v10691_v37, 0.0  ;;  %v206_v2 = vld [vmem:[%s15206_s0 + $0x538] sm:$0xff] }
 0x147   :  { %v1106_v36 = vpop.f32.mrf.mxu0 }
 0x148   :  { %v1107_v47 = vadd.f32 %v10169_v45, %v1106_v36  ;;  %v8696_v5 = vpack.i.bf16 %v15229_v3, %v1927_v61  ;;  %v10741_v48 = vpop.permute.xlu0 %8532 }
 0x149   :  { %v10709_v12 = vpop.f32.mrf.mxu0  ;;  %8336 = vmatmul.mubr.msk.bf16.gmra.mxu0 %vm437_vm2, %v376_v52 }
 0x14a   :  { %15450 = vst [vmem:[#allocation16_spill] sm:$0xff] %v10709_v12  ;;  %v10713_v22 = vmax.f32 %v1107_v47, 0.0  ;;  %8692 = vrot.lane.b32.xlu1 %v8691_v63, %s9694_s24  ;;  %8339 = vmatprep.mubr.msk.bf16.mxu0 %vm437_vm2, %v377_v27  ;;  %v208_v47 = vld [vmem:[%s15206_s0 + $0x548] sm:$0xff]  ;;  %v378_v27 = vpack.c.bf16 %v206_v2, %v205_v50 }
 0x14b   :  { %v10723_v10 = vpop.f32.mrf.mxu0  ;;  %v379_v63 = vpack.c.bf16 %v208_v47, %v207_v40  ;;  %v209_v40 = vld [vmem:[%s15206_s0 + $0x550] sm:$0xff] }
 0x14c   :  { %15451 = vst [vmem:[#allocation17_spill] sm:$0xff] %v10713_v22  ;;  %15452 = vst [vmem:[#allocation18_spill] sm:$0xff] %v10723_v10  ;;  %v8701_v44 = vpack.i.bf16 %v15228_v9, %v10713_v22 }
 0x14d   :  { %v8242_v52 = vpop.f32.mrf.mxu0 }
 0x14e   :  { %v1131_v36 = vadd.f32 %v8242_v52, %v10169_v45  ;;  %8697 = vrot.lane.b32.xlu1 %v8696_v5, %s9694_s24  ;;  %8702 = vrot.lane.b32.xlu0 %v8701_v44, %s9695_s30  ;;  %v211_v5 = vld [vmem:[%s15206_s0 + $0x560] sm:$0xff]  ;;  %v10768_v52 = vpop.permute.xlu0 %8537 }
 0x14f   :  { %v1122_v34 = vpop.f32.mrf.mxu0 }
 0x150   :  { %v1953_v56 = vmax.f32 %v1131_v36, 0.0  ;;  %v10744_v0 = vadd.f32 %v10169_v45, %v1122_v34  ;;  %v210_v34 = vld [vmem:[%s15206_s0 + $0x558] sm:$0xff] }
 0x151   :  { %v10746_v61 = vpop.f32.mrf.mxu0  ;;  %8340 = vmatmul.mubr.msk.bf16.gmra.mxu0 %vm437_vm2, %v378_v27  ;;  %v380_v44 = vpack.c.bf16 %v210_v34, %v209_v40  ;;  %v15456_v40 = vmax.f32 %v10609_v18, 0.0  ;;  %v216_v18 = vld [vmem:[%s15206_s0 + $0x588] sm:$0xff] }
 0x152   :  { %15453 = vst [vmem:[#allocation19_spill] sm:$0xff] %v10746_v61  ;;  %v8706_v50 = vpack.i.bf16 %v1934_v39, %v1953_v56  ;;  %v15231_v2 = vmax.f32 %v10744_v0, 0.0  ;;  %8343 = vmatprep.mubr.msk.bf16.mxu0 %vm437_vm2, %v379_v63  ;;  %v381_v63 = vpack.c.bf16 %v212_v8, %v211_v5  ;;  %v215_v8 = vld [vmem:[%s15206_s0 + $0x580] sm:$0xff] }
 0x153   :  { %v10759_v47 = vpop.f32.mrf.mxu0  ;;  %v383_v22 = vpack.c.bf16 %v216_v18, %v215_v8  ;;  %v8535_v8 = vunpack.i.h.bf16 %v10741_v48  ;;  %v8534_v18 = vunpack.i.l.bf16 %v10741_v48  ;;  %v10862_v48 = vld [vmem:[%s15206_s0 + $0x5b0] sm:$0xff] }
 0x154   :  { %15454 = vst [vmem:[#allocation20_spill] sm:$0xff] %v10759_v47  ;;  %8707 = vrot.lane.b32.xlu1 %v8706_v50, %s9692_s21  ;;  %v8711_v36 = vpack.i.bf16 %v15231_v2, %v1916_v13  ;;  %v213_v13 = vld [vmem:[%s15206_s0 + $0x570] sm:$0xff] }
 0x155   :  { %v8246_v39 = vpop.f32.mrf.mxu0 }
 0x156   :  { %v10771_v27 = vadd.f32 %v8246_v39, %v10169_v45 }
 0x157   :  { %v1138_v9 = vpop.f32.mrf.mxu0 }
 0x158   :  { %v15232_v3 = vmax.f32 %v10771_v27, 0.0  ;;  %v1139_v49 = vadd.f32 %v10169_v45, %v1138_v9  ;;  %8712 = vrot.lane.b32.xlu1 %v8711_v36, %s9692_s21  ;;  %v214_v9 = vld [vmem:[%s15206_s0 + $0x578] sm:$0xff]  ;;  %v10804_v39 = vpop.permute.xlu1 %8552 }
 0x159   :  { %v10780_v50 = vpop.f32.mrf.mxu0  ;;  %8344 = vmatmul.mubr.msk.bf16.gmra.mxu0 %vm437_vm2, %v380_v44  ;;  %v15458_v44 = vmax.f32 %v10567_v16, 0.0  ;;  %v10819_v16 = vadd.f32 %v10177_v53, %v10169_v45  ;;  %v15460_v53 = vmax.f32 %v10650_v19, 0.0  ;;  %v219_v19 = vld [vmem:[%s15206_s0 + $0x5a0] sm:$0xff] }
 0x15a   :  { %15455 = vst [vmem:[#allocation21_spill] sm:$0xff] %v10780_v50  ;;  %v8716_v59 = vpack.i.bf16 %v15456_v40, %v15232_v3  ;;  %v1955_v34 = vmax.f32 %v1139_v49, 0.0  ;;  %8347 = vmatprep.mubr.msk.bf16.mxu0 %vm437_vm2, %v381_v63  ;;  %v10802_v49 = vpop.permute.xlu0 %8542  ;;  %v382_v40 = vpack.c.bf16 %v214_v9, %v213_v13 }
 0x15b   :  { %v10794_v5 = vpop.f32.mrf.mxu0 }
 0x15c   :  { %15457 = vst [vmem:[#allocation22_spill] sm:$0xff] %v10794_v5  ;;  %8717 = vrot.lane.b32.xlu1 %v8716_v59, %s9692_s21  ;;  %v8721_v36 = vpack.i.bf16 %v1955_v34, %v15458_v44  ;;  %v8726_v3 = vpack.i.bf16 %v1955_v34, %v1953_v56  ;;  %v10828_v56 = vadd.f32 %v10169_v45, %v10188_v58  ;;  %v218_v58 = vld [vmem:[%s15206_s0 + $0x598] sm:$0xff] }
 0x15d   :  { %v8250_v63 = vpop.f32.mrf.mxu0 }
 0x15e   :  { %v10810_v2 = vadd.f32 %v8250_v63, %v10169_v45  ;;  %8722 = vrot.lane.b32.xlu0 %v8721_v36, %s9692_s21  ;;  %v10833_v41 = vpop.permute.xlu0 %8547  ;;  %v1888_v36 = vmax.f32 %v872_v43, 0.0  ;;  %v1886_v63 = vmax.f32 %v864_v35, 0.0  ;;  %v1890_v43 = vmax.f32 %v10828_v56, 0.0 }
 0x15f   :  { %v1154_v51 = vpop.f32.mrf.mxu0  ;;  %v10872_v35 = vadd.f32 %v10206_v7, %v10169_v45 }
 0x160   :  { %v15241_v59 = vmax.f32 %v10810_v2, 0.0  ;;  %v1155_v13 = vadd.f32 %v10169_v45, %v1154_v51  ;;  %8727 = vrot.lane.b32.xlu1 %v8726_v3, %s9694_s24  ;;  %v10824_v9 = vpop.permute.xlu1 %8562  ;;  %v217_v3 = vld [vmem:[%s15206_s0 + $0x590] sm:$0xff]  ;;  %v3433_v56 = vsel %vm3252_vm3, %v1886_v63, %v8534_v18  ;;  %v3434_v7 = vsel %vm3252_vm3, %v1888_v36, %v8535_v8  ;;  %v223_v8 = vld [vmem:[%s15206_s0 + $0x5c0] sm:$0xff] }
 0x161   :  { %v10830_v38 = vpop.f32.mrf.mxu0  ;;  %8348 = vmatmul.mubr.msk.bf16.gmra.mxu0 %vm437_vm2, %v382_v40  ;;  %v10876_v40 = vadd.f32 %v10169_v45, %v10217_v11  ;;  %v10886_v11 = vunpack.i.l.bf16 %v10768_v52  ;;  %v15465_v63 = vmax.f32 %v10771_v27, 0.0  ;;  %v224_v27 = vld [vmem:[%s15206_s0 + $0x5c8] sm:$0xff] }
 0x162   :  { %15459 = vst [vmem:[#allocation23_spill] sm:$0xff] %v10830_v38  ;;  %v8731_v34 = vpack.i.bf16 %v15460_v53, %v15241_v59  ;;  %v1959_v51 = vmax.f32 %v1155_v13, 0.0  ;;  %8351 = vmatprep.mubr.msk.bf16.mxu0 %vm437_vm2, %v383_v22  ;;  %v220_v22 = vld [vmem:[%s15206_s0 + $0x5a8] sm:$0xff]  ;;  %v8544_v13 = vunpack.i.l.bf16 %v10802_v49  ;;  %v10867_v59 = vld [vmem:[%s15206_s0 + $0x5b8] sm:$0xff] }
 0x163   :  { %v10848_v44 = vpop.f32.mrf.mxu0  ;;  %v385_v26 = vpack.c.bf16 %v220_v22, %v219_v19  ;;  %15463 = vst [vmem:[#allocation25_spill] sm:$0xff] %v10886_v11 }
 0x164   :  { %15461 = vst [vmem:[#allocation24_spill] sm:$0xff] %v10848_v44  ;;  %v8573_v53 = vpop.permute.xlu1 %8572  ;;  %8732 = vrot.lane.b32.xlu0 %v8731_v34, %s9692_s21  ;;  %v384_v44 = vpack.c.bf16 %v218_v58, %v217_v3  ;;  %v8736_v31 = vpack.i.bf16 %v1959_v51, %v15462_v60  ;;  %v3253_v3 = vsel %vm3252_vm3, 0.0, %v8544_v13  ;;  %v10889_v58 = vpop.permute.xlu0 %8557  ;;  %v8741_v13 = vpack.i.bf16 %v1959_v51, %v15465_v63 }
 0x165   :  { %v8254_v34 = vpop.f32.mrf.mxu0  ;;  %v8575_v18 = vunpack.i.h.bf16 %v8573_v53  ;;  %v8545_v51 = vunpack.i.h.bf16 %v10802_v49 }
 0x166   :  { %v1179_v6 = vadd.f32 %v8254_v34, %v10169_v45 }
 0x167   :  { %v1170_v24 = vpop.f32.mrf.mxu0  ;;  %v3435_v50 = vsel %vm3252_vm3, %v1890_v43, %v8545_v51 }
 0x168   :  { %v1965_v46 = vmax.f32 %v1179_v6, 0.0  ;;  %v10892_v60 = vadd.f32 %v10169_v45, %v1170_v24  ;;  %v10894_v19 = vpop.permute.xlu1 %8577  ;;  %8737 = vrot.lane.b32.xlu0 %v8736_v31, %s9692_s21  ;;  %v8574_v6 = vunpack.i.l.bf16 %v8573_v53  ;;  %v15466_v24 = vmax.f32 %v10691_v37, 0.0 }
 0x169   :  { %v10899_v22 = vunpack.i.l.bf16 %v10894_v19  ;;  %v8257_v36 = vpop.f32.mrf.mxu0  ;;  %8352 = vmatmul.mubr.msk.bf16.gmra.mxu0 %vm437_vm2, %v384_v44  ;;  %v15467_v53 = vunpack.i.h.bf16 %v10894_v19 }
 0x16a   :  { %v8746_v34 = vpack.i.bf16 %v15466_v24, %v1965_v46  ;;  %v1963_v38 = vmax.f32 %v10892_v60, 0.0  ;;  %v10908_v31 = vadd.f32 %v8257_v36, %v10169_v45  ;;  %8355 = vmatprep.mubr.msk.bf16.mxu0 %vm437_vm2, %v385_v26  ;;  %v10927_v60 = vpop.permute.xlu0 %8567  ;;  %v8554_v24 = vunpack.i.l.bf16 %v10804_v39 }
 0x16b   :  { %15464 = vst [vmem:[#allocation26_spill] sm:$0xff] %v10899_v22  ;;  %v1183_v44 = vpop.f32.mrf.mxu0  ;;  %v3497_v37 = vsel %vm3310_vm4, %v3433_v56, %v10899_v22  ;;  %v3498_v46 = vsel %vm3310_vm4, %v3434_v7, %v15467_v53  ;;  %v10925_v26 = vsel %vm3310_vm4, %v3253_v3, %v10899_v22  ;;  %v10940_v7 = vld [vmem:[%s15206_s0 + $0x5d0] sm:$0xff]  ;;  %v10945_v3 = vld [vmem:[%s15206_s0 + $0x5d8] sm:$0xff] }
 0x16c   :  { %v15252_v36 = vmax.f32 %v10908_v31, 0.0  ;;  %v10931_v63 = vadd.f32 %v10169_v45, %v1183_v44  ;;  %8747 = vrot.lane.b32.xlu1 %v8746_v34, %s9692_s21  ;;  %8742 = vrot.lane.b32.xlu0 %v8741_v13, %s9694_s24  ;;  %v3561_v49 = vsel %vm3368_vm5, %v3497_v37, %v8574_v6  ;;  %v3562_v56 = vsel %vm3368_vm5, %v3498_v46, %v8575_v18  ;;  %v8583_v53 = vpop.permute.xlu1 %8582 }
 0x16d   :  { %v8540_v45 = vunpack.i.h.bf16 %v10768_v52  ;;  %v8258_v34 = vpop.f32.mrf.mxu0  ;;  %v3626_v13 = vpack.c.bf16 %v3562_v56, %v3561_v49  ;;  %v387_v44 = vpack.c.bf16 %v224_v27, %v223_v8  ;;  %v15468_v18 = vmax.f32 %v10744_v0, 0.0 }
 0x16e   :  { %v15263_v37 = vmax.f32 %v10931_v63, 0.0  ;;  %v15469_v46 = vmax.f32 %v10628_v20, 0.0  ;;  %v3369_v52 = vsel %vm3368_vm5, %v10925_v26, %v10886_v11  ;;  %v8550_v49 = vunpack.i.h.bf16 %v10833_v41  ;;  %v10969_v20 = vld [vmem:[%s15208_s2] ss:$0 sm:$0xff] }
 0x16f   :  { %v8761_v6 = vpack.i.bf16 %v15468_v18, %v15252_v36  ;;  %v1186_v8 = vpop.f32.mrf.mxu0  ;;  %4000 = vmatprep.mubr.bf16.mxu1 %v3626_v13  ;;  %v3370_v0 = vsel %vm3368_vm5, %v10925_v26, %v8540_v45  ;;  %v388_v27 = vpack.c.bf16 %v10945_v3, %v10940_v7  ;;  %v8549_v56 = vunpack.i.l.bf16 %v10833_v41 }
 0x170   :  { %v8751_v5 = vpack.i.bf16 %v1963_v38, %v15469_v46  ;;  %v1195_v18 = vadd.f32 %v10969_v20, %v8258_v34  ;;  %v1187_v43 = vadd.f32 %v10969_v20, %v1186_v8  ;;  %v10975_v51 = vpop.permute.xlu0 %8587  ;;  %v3625_v45 = vpack.c.bf16 %v3370_v0, %v3369_v52 }
 0x171   :  { %8762 = vrot.lane.b32.xlu0 %v8761_v6, %s9694_s24  ;;  %v15470_v7 = vmax.f32 %v10819_v16, 0.0  ;;  %v8584_v3 = vunpack.i.l.bf16 %v8583_v53  ;;  %v15256_v13 = vunpack.i.h.bf16 %v10975_v51  ;;  %v15253_v46 = vunpack.i.l.bf16 %v10975_v51  ;;  %v8261_v36 = vpop.f32.mrf.mxu0 }
 0x172   :  { %8752 = vrot.lane.b32.xlu1 %v8751_v5, %s9692_s21  ;;  %v15471_v34 = vpack.c.bf16 %v10867_v59, %v10862_v48  ;;  %v15472_v5 = vmax.f32 %v10546_v21, 0.0  ;;  %v10990_v52 = vmax.f32 %v1187_v43, 0.0  ;;  %4001 = vmatmul.mubr.bf16.vlgmr.msra.gmra.mxu1 %v3625_v45  ;;  %v10993_v16 = vadd.f32 %v10969_v20, %v8261_v36 }
 0x173   :  { %v3436_v41 = vsel %vm3252_vm3, %v15470_v7, %v8554_v24  ;;  %v15474_v24 = vmax.f32 %v10810_v2, 0.0  ;;  %v8555_v59 = vunpack.i.h.bf16 %v10804_v39  ;;  %v8585_v48 = vunpack.i.h.bf16 %v8583_v53  ;;  %v1199_v0 = vpop.f32.mrf.mxu0 }
 0x174   :  { %8356 = vmatmul.mubr.msk.bf16.gmra.mxu0 %vm437_vm2, %v15471_v34  ;;  %v8766_v6 = vpack.i.bf16 %v15263_v37, %v15472_v5  ;;  %15473 = vst [vmem:[#allocation27_spill] sm:$0xff] %v10990_v52  ;;  %v3499_v21 = vsel %vm3310_vm4, %v3435_v50, %v15253_v46  ;;  %v3500_v43 = vsel %vm3310_vm4, %v3436_v41, %v15256_v13  ;;  %v8564_v36 = vunpack.i.l.bf16 %v10824_v9  ;;  %v227_v50 = vld [vmem:[%s15206_s0 + $0x5e0] sm:$0xff] }
 0x175   :  { %v8756_v8 = vpack.i.bf16 %v1963_v38, %v15474_v24  ;;  %8359 = vmatprep.mubr.msk.bf16.mxu0 %vm437_vm2, %v387_v44  ;;  %v11006_v45 = vmax.f32 %v1195_v18, 0.0  ;;  %v11009_v2 = vadd.f32 %v10969_v20, %v1199_v0  ;;  %v3563_v39 = vsel %vm3368_vm5, %v3499_v21, %v8584_v3  ;;  %v228_v38 = vld [vmem:[%s15206_s0 + $0x5e8] sm:$0xff]  ;;  %v8262_v53 = vpop.f32.mrf.mxu0 }
 0x176   :  { %8767 = vrot.lane.b32.xlu0 %v8766_v6, %s9694_s24  ;;  %v15258_v44 = vmax.f32 %v10993_v16, 0.0  ;;  %v3564_v18 = vsel %vm3368_vm5, %v3500_v43, %v8585_v48  ;;  %v3371_v7 = vsel %vm3368_vm5, %v10925_v26, %v8549_v56  ;;  %v3372_v41 = vsel %vm3368_vm5, %v10925_v26, %v8550_v49  ;;  %v8593_v56 = vpop.permute.xlu1 %8592 }
 0x177   :  { %15475 = vst [vmem:[#allocation28_spill] sm:$0xff] %v11006_v45  ;;  %8757 = vrot.lane.b32.xlu1 %v8756_v8, %s9694_s24  ;;  %v15260_v3 = vmax.f32 %v11009_v2, 0.0  ;;  %v1211_v34 = vadd.f32 %v10969_v20, %v8262_v53  ;;  %v3629_v5 = vpack.c.bf16 %v3564_v18, %v3563_v39  ;;  %v8771_v6 = vpack.i.bf16 %v11006_v45, %v10990_v52  ;;  %v1202_v0 = vpop.f32.mrf.mxu0  ;;  %v11345_v45 = vld [vmem:[%s15206_s0 + $0x6b8] sm:$0xff] }
 0x178   :  { %v1896_v24 = vmax.f32 %v10872_v35, 0.0  ;;  %v1894_v8 = vmax.f32 %v10876_v40, 0.0  ;;  %v389_v48 = vpack.c.bf16 %v228_v38, %v227_v50  ;;  %v8560_v21 = vunpack.i.h.bf16 %v10889_v58  ;;  %v11039_v39 = vpop.permute.xlu0 %8597 }
 0x179   :  { %v8776_v49 = vpack.i.bf16 %v15258_v44, %v15260_v3  ;;  %v1203_v43 = vadd.f32 %v10969_v20, %v1202_v0  ;;  %4008 = vmatprep.mubr.bf16.mxu1 %v3629_v5  ;;  %v3628_v35 = vpack.c.bf16 %v3372_v41, %v3371_v7  ;;  %v8559_v50 = vunpack.i.l.bf16 %v10889_v58  ;;  %v8265_v18 = vpop.f32.mrf.mxu0  ;;  %v229_v5 = vld [vmem:[%s15206_s0 + $0x5f0] sm:$0xff] }
 0x17a   :  { %v3437_v40 = vsel %vm3252_vm3, %v1894_v8, %v8555_v59  ;;  %v15254_v38 = vunpack.i.h.bf16 %v11039_v39  ;;  %v15255_v53 = vunpack.i.l.bf16 %v11039_v39  ;;  %v3438_v7 = vsel %vm3252_vm3, %v1896_v24, %v8564_v36 }
 0x17b   :  { %8772 = vrot.lane.b32.xlu1 %v8771_v6, %s9695_s30  ;;  %v230_v6 = vld [vmem:[%s15206_s0 + $0x5f8] sm:$0xff]  ;;  %v11053_v59 = vmax.f32 %v1211_v34, 0.0  ;;  %v11055_v58 = vmax.f32 %v1203_v43, 0.0  ;;  %4009 = vmatmul.mubr.bf16.gmra.mxu1 %v3628_v35  ;;  %v11058_v41 = vadd.f32 %v10969_v20, %v8265_v18  ;;  %v8594_v8 = vunpack.i.l.bf16 %v8593_v56  ;;  %v1215_v0 = vpop.f32.mrf.mxu0  ;;  %v232_v43 = vld [vmem:[%s15206_s0 + $0x608] sm:$0xff] }
 0x17c   :  { %8360 = vmatmul.mubr.msk.bf16.gmra.mxu0 %vm437_vm2, %v388_v27  ;;  %8777 = vrot.lane.b32.xlu0 %v8776_v49, %s9694_s24  ;;  %v8595_v27 = vunpack.i.h.bf16 %v8593_v56  ;;  %v3501_v46 = vsel %vm3310_vm4, %v3437_v40, %v15255_v53  ;;  %v3502_v36 = vsel %vm3310_vm4, %v3438_v7, %v15254_v38  ;;  %v11069_v34 = vadd.f32 %v10969_v20, %v1215_v0  ;;  %v231_v56 = vld [vmem:[%s15206_s0 + $0x600] sm:$0xff] }
 0x17d   :  { %15476 = vst [vmem:[#allocation29_spill] sm:$0xff] %v11053_v59  ;;  %15477 = vst [vmem:[#allocation30_spill] sm:$0xff] %v11055_v58  ;;  %8363 = vmatprep.mubr.msk.bf16.mxu0 %vm437_vm2, %v389_v48  ;;  %v8781_v24 = vpack.i.bf16 %v11053_v59, %v11055_v58  ;;  %v390_v49 = vpack.c.bf16 %v230_v6, %v229_v5  ;;  %v8266_v35 = vpop.f32.mrf.mxu0  ;;  %v3565_v40 = vsel %vm3368_vm5, %v3501_v46, %v8594_v8  ;;  %v11095_v8 = vpop.permute.xlu1 %8602 }
 0x17e   :  { %v3566_v48 = vsel %vm3368_vm5, %v3502_v36, %v8595_v27  ;;  %v3373_v18 = vsel %vm3368_vm5, %v10925_v26, %v8559_v50  ;;  %v3374_v7 = vsel %vm3368_vm5, %v10925_v26, %v8560_v21  ;;  %v15257_v5 = vmax.f32 %v11058_v41, 0.0 }
 0x17f   :  { %v15259_v6 = vmax.f32 %v11069_v34, 0.0  ;;  %v1227_v0 = vadd.f32 %v10969_v20, %v8266_v35  ;;  %8782 = vrot.lane.b32.xlu1 %v8781_v24, %s9695_s30  ;;  %v3632_v38 = vpack.c.bf16 %v3566_v48, %v3565_v40  ;;  %v1218_v53 = vpop.f32.mrf.mxu0  ;;  %v391_v13 = vpack.c.bf16 %v232_v43, %v231_v56  ;;  %v235_v43 = vld [vmem:[%s15206_s0 + $0x620] sm:$0xff]  ;;  %v236_v35 = vld [vmem:[%s15206_s0 + $0x628] sm:$0xff] }
 0x180   :  { %v1219_v50 = vadd.f32 %v10969_v20, %v1218_v53  ;;  %v3631_v21 = vpack.c.bf16 %v3374_v7, %v3373_v18  ;;  %v234_v53 = vld [vmem:[%s15206_s0 + $0x618] sm:$0xff]  ;;  %v920_v18 = vadd.f32 %v10969_v20, %v10237_v25  ;;  %v11127_v7 = vpop.permute.xlu0 %8607  ;;  %v393_v25 = vpack.c.bf16 %v236_v35, %v235_v43 }
 0x181   :  { %v8786_v46 = vpack.i.bf16 %v15257_v5, %v15259_v6  ;;  %4016 = vmatprep.mubr.bf16.mxu1 %v3632_v38  ;;  %v8269_v27 = vpop.f32.mrf.mxu0  ;;  %v11097_v36 = vmax.f32 %v1227_v0, 0.0  ;;  %v233_v38 = vld [vmem:[%s15206_s0 + $0x610] sm:$0xff]  ;;  %v238_v43 = vld [vmem:[%s15206_s0 + $0x638] sm:$0xff] }
 0x182   :  { %v11099_v24 = vmax.f32 %v1219_v50, 0.0  ;;  %v11102_v56 = vadd.f32 %v10969_v20, %v8269_v27  ;;  %v11133_v50 = vadd.f32 %v10969_v20, %v10695_v14 }
 0x183   :  { %15478 = vst [vmem:[#allocation31_spill] sm:$0xff] %v11097_v36  ;;  %4017 = vmatmul.mubr.bf16.gmra.mxu1 %v3631_v21  ;;  %8787 = vrot.lane.b32.xlu1 %v8786_v46, %s9694_s24  ;;  %v392_v46 = vpack.c.bf16 %v234_v53, %v233_v38  ;;  %v237_v53 = vld [vmem:[%s15206_s0 + $0x630] sm:$0xff] }
 0x184   :  { %8364 = vmatmul.mubr.msk.bf16.gmra.mxu0 %vm437_vm2, %v390_v49  ;;  %15479 = vst [vmem:[#allocation32_spill] sm:$0xff] %v11099_v24  ;;  %15480 = vst [vmem:[#allocation33_spill] sm:$0xff] %v11102_v56  ;;  %v1231_v49 = vpop.f32.mrf.mxu0  ;;  %v8791_v48 = vpack.i.bf16 %v11097_v36, %v11099_v24  ;;  %v15261_v21 = vmax.f32 %v11102_v56, 0.0  ;;  %v15272_v6 = vmax.f32 %v11133_v50, 0.0  ;;  %v394_v37 = vpack.c.bf16 %v238_v43, %v237_v53 }
 0x185   :  { %8367 = vmatprep.mubr.msk.bf16.mxu0 %vm437_vm2, %v391_v13  ;;  %v11119_v40 = vadd.f32 %v10969_v20, %v1231_v49  ;;  %v912_v13 = vadd.f32 %v10969_v20, %v10248_v30  ;;  %15482 = vst [vmem:[#allocation35_spill] sm:$0xff] %v11133_v50  ;;  %v8565_v30 = vunpack.i.h.bf16 %v10824_v9  ;;  %v15486_v36 = vunpack.i.l.bf16 %v11127_v7 }
 0x186   :  { %v11129_v0 = vpop.f32.mrf.mxu0  ;;  %v11137_v49 = vpop.permute.xlu1 %8612  ;;  %8792 = vrot.lane.b32.xlu0 %v8791_v48, %s9695_s30  ;;  %v1900_v48 = vmax.f32 %v920_v18, 0.0 }
 0x187   :  { %15481 = vst [vmem:[#allocation34_spill] sm:$0xff] %v11129_v0  ;;  %v15262_v27 = vmax.f32 %v11119_v40, 0.0  ;;  %v1898_v35 = vmax.f32 %v912_v13, 0.0  ;;  %v240_v13 = vld [vmem:[%s15206_s0 + $0x648] sm:$0xff] }
 0x188   :  { %v1234_v5 = vpop.f32.mrf.mxu0 }
 0x189   :  { %v8796_v14 = vpack.i.bf16 %v15261_v21, %v15262_v27  ;;  %v1235_v38 = vadd.f32 %v10969_v20, %v1234_v5  ;;  %v239_v5 = vld [vmem:[%s15206_s0 + $0x640] sm:$0xff]  ;;  %v3439_v18 = vsel %vm3252_vm3, %v1898_v35, %v8565_v30  ;;  %v8605_v30 = vunpack.i.h.bf16 %v11095_v8 }
 0x18a   :  { %v11153_v9 = vpop.f32.mrf.mxu0  ;;  %v11159_v21 = vpop.permute.xlu1 %8617  ;;  %v3503_v24 = vsel %vm3310_vm4, %v3439_v18, %v15486_v36  ;;  %v8604_v35 = vunpack.i.l.bf16 %v11095_v8  ;;  %v395_v53 = vpack.c.bf16 %v240_v13, %v239_v5 }
 0x18b   :  { %15483 = vst [vmem:[#allocation36_spill] sm:$0xff] %v11153_v9  ;;  %v11157_v3 = vmax.f32 %v1235_v38, 0.0  ;;  %8797 = vrot.lane.b32.xlu0 %v8796_v14, %s9694_s24  ;;  %v8619_v38 = vunpack.i.l.bf16 %v11159_v21  ;;  %v8569_v14 = vunpack.i.l.bf16 %v10927_v60  ;;  %v8620_v50 = vunpack.i.h.bf16 %v11159_v21 }
 0x18c   :  { %8368 = vmatmul.mubr.msk.bf16.gmra.mxu0 %vm437_vm2, %v392_v46  ;;  %v8570_v46 = vunpack.i.h.bf16 %v10927_v60  ;;  %v11172_v27 = vpop.f32.mrf.mxu0 }
 0x18d   :  { %15484 = vst [vmem:[#allocation37_spill] sm:$0xff] %v11157_v3  ;;  %8371 = vmatprep.mubr.msk.bf16.mxu0 %vm437_vm2, %v393_v25  ;;  %15485 = vst [vmem:[#allocation38_spill] sm:$0xff] %v11172_v27  ;;  %v15273_v25 = vunpack.i.h.bf16 %v11127_v7  ;;  %v8801_v44 = vpack.i.bf16 %v15272_v6, %v11157_v3  ;;  %v3440_v59 = vsel %vm3252_vm3, %v1900_v48, %v8619_v38 }
 0x18e   :  { %v8274_v58 = vpop.f32.mrf.mxu0  ;;  %v3375_v36 = vsel %vm3368_vm5, %v10925_v26, %v8569_v14  ;;  %v3376_v18 = vsel %vm3368_vm5, %v10925_v26, %v8570_v46  ;;  %v3567_v48 = vsel %vm3368_vm5, %v3503_v24, %v8604_v35  ;;  %v15488_v26 = vmax.f32 %v10931_v63, 0.0  ;;  %v241_v14 = vld [vmem:[%s15206_s0 + $0x650] sm:$0xff]  ;;  %v243_v63 = vld [vmem:[%s15206_s0 + $0x660] sm:$0xff]  ;;  %v244_v35 = vld [vmem:[%s15206_s0 + $0x668] sm:$0xff] }
 0x18f   :  { %v11186_v60 = vadd.f32 %v10969_v20, %v8274_v58  ;;  %8802 = vrot.lane.b32.xlu1 %v8801_v44, %s9695_s30  ;;  %v3504_v43 = vsel %vm3310_vm4, %v3440_v59, %v15273_v25  ;;  %v3634_v59 = vpack.c.bf16 %v3376_v18, %v3375_v36 }
 0x190   :  { %v1250_v8 = vpop.f32.mrf.mxu0  ;;  %v3568_v5 = vsel %vm3368_vm5, %v3504_v43, %v8605_v30  ;;  %v242_v30 = vld [vmem:[%s15206_s0 + $0x658] sm:$0xff] }
 0x191   :  { %v15276_v58 = vmax.f32 %v11186_v60, 0.0  ;;  %v11200_v13 = vadd.f32 %v10969_v20, %v1250_v8  ;;  %v3635_v44 = vpack.c.bf16 %v3568_v5, %v3567_v48  ;;  %v396_v36 = vpack.c.bf16 %v242_v30, %v241_v14 }
 0x192   :  { %v11202_v38 = vpop.f32.mrf.mxu0  ;;  %v15490_v8 = vmax.f32 %v10669_v15, 0.0  ;;  %v397_v5 = vpack.c.bf16 %v244_v35, %v243_v63  ;;  %v15492_v15 = vmax.f32 %v11009_v2, 0.0  ;;  %v245_v35 = vld [vmem:[%s15206_s0 + $0x670] sm:$0xff]  ;;  %v248_v2 = vld [vmem:[%s15206_s0 + $0x688] sm:$0xff] }
 0x193   :  { %15487 = vst [vmem:[#allocation39_spill] sm:$0xff] %v11202_v38  ;;  %v8806_v46 = vpack.i.bf16 %v15488_v26, %v15276_v58  ;;  %v15275_v24 = vmax.f32 %v11200_v13, 0.0  ;;  %4024 = vmatprep.mubr.bf16.mxu1 %v3635_v44 }
 0x194   :  { %8372 = vmatmul.mubr.msk.bf16.gmra.mxu0 %vm437_vm2, %v394_v37  ;;  %v11217_v37 = vpop.f32.mrf.mxu0  ;;  %4025 = vmatmul.mubr.bf16.gmra.mxu1 %v3634_v59 }
 0x195   :  { %8375 = vmatprep.mubr.msk.bf16.mxu0 %vm437_vm2, %v395_v53  ;;  %15489 = vst [vmem:[#allocation40_spill] sm:$0xff] %v11217_v37  ;;  %v11225_v53 = vpop.permute.xlu0 %8622  ;;  %8807 = vrot.lane.b32.xlu0 %v8806_v46, %s9692_s21  ;;  %v8811_v48 = vpack.i.bf16 %v15275_v24, %v15490_v8  ;;  %v247_v8 = vld [vmem:[%s15206_s0 + $0x680] sm:$0xff]  ;;  %v15495_v24 = vmax.f32 %v10908_v31, 0.0  ;;  %v11387_v37 = vld [vmem:[%s15206_s0 + $0x6e8] sm:$0xff] }
 0x196   :  { %v8278_v43 = vpop.f32.mrf.mxu0  ;;  %v11272_v6 = vpop.permute.xlu1 %8632  ;;  %v399_v58 = vpack.c.bf16 %v248_v2, %v247_v8  ;;  %v8625_v61 = vunpack.i.h.bf16 %v11225_v53 }
 0x197   :  { %v11229_v18 = vadd.f32 %v10969_v20, %v8278_v43  ;;  %v246_v43 = vld [vmem:[%s15206_s0 + $0x678] sm:$0xff] }
 0x198   :  { %v1266_v44 = vpop.f32.mrf.mxu0 }
 0x199   :  { %v15274_v59 = vmax.f32 %v11229_v18, 0.0  ;;  %v11237_v26 = vadd.f32 %v10969_v20, %v1266_v44  ;;  %8812 = vrot.lane.b32.xlu0 %v8811_v48, %s9692_s21  ;;  %v11243_v14 = vpop.permute.xlu0 %8627  ;;  %v11268_v48 = vadd.f32 %v10969_v20, %v10411_v23  ;;  %v398_v44 = vpack.c.bf16 %v246_v43, %v245_v35 }
 0x19a   :  { %v11240_v46 = vpop.f32.mrf.mxu0  ;;  %v11285_v23 = vadd.f32 %v10969_v20, %v10446_v54  ;;  %v11293_v35 = vadd.f32 %v10969_v20, %v10480_v32  ;;  %v11297_v43 = vadd.f32 %v10969_v20, %v10495_v42  ;;  %v11305_v54 = vadd.f32 %v10969_v20, %v10531_v17  ;;  %v249_v32 = vld [vmem:[%s15206_s0 + $0x690] sm:$0xff]  ;;  %v250_v42 = vld [vmem:[%s15206_s0 + $0x698] sm:$0xff]  ;;  %v251_v17 = vld [vmem:[%s15206_s0 + $0x6a0] sm:$0xff] }
 0x19b   :  { %15491 = vst [vmem:[#allocation41_spill] sm:$0xff] %v11240_v46  ;;  %v8816_v30 = vpack.i.bf16 %v15492_v15, %v15274_v59  ;;  %v15277_v63 = vmax.f32 %v11237_v26, 0.0  ;;  %v992_v15 = vadd.f32 %v10969_v20, %v10426_v33  ;;  %v11289_v33 = vadd.f32 %v10969_v20, %v10461_v1  ;;  %v11376_v46 = vpop.permute.xlu1 %8637 }
 0x19c   :  { %8376 = vmatmul.mubr.msk.bf16.gmra.mxu0 %vm437_vm2, %v396_v36  ;;  %v11257_v36 = vpop.f32.mrf.mxu0  ;;  %v400_v21 = vpack.c.bf16 %v250_v42, %v249_v32  ;;  %v11397_v32 = vld [vmem:[%s15206_s0 + $0x6f0] sm:$0xff]  ;;  %v11402_v42 = vld [vmem:[%s15206_s0 + $0x6f8] sm:$0xff]  ;;  %v8629_v10 = vunpack.i.l.bf16 %v11243_v14 }
 0x19d   :  { %8379 = vmatprep.mubr.msk.bf16.mxu0 %vm437_vm2, %v397_v5  ;;  %15493 = vst [vmem:[#allocation42_spill] sm:$0xff] %v11257_v36  ;;  %8817 = vrot.lane.b32.xlu1 %v8816_v30, %s9692_s21  ;;  %v8821_v30 = vpack.i.bf16 %v15277_v63, %v15495_v24  ;;  %v11301_v24 = vadd.f32 %v10969_v20, %v10516_v62  ;;  %v1920_v62 = vmax.f32 %v11268_v48, 0.0  ;;  %v8615_v48 = vunpack.i.h.bf16 %v11137_v49  ;;  %v11371_v36 = vld [vmem:[%s15206_s0 + $0x6d8] sm:$0xff] }
 0x19e   :  { %v8282_v5 = vpop.f32.mrf.mxu0  ;;  %v11277_v59 = vpop.permute.xlu0 %8642 }
 0x19f   :  { %v11275_v25 = vadd.f32 %v10969_v20, %v8282_v5  ;;  %v252_v5 = vld [vmem:[%s15206_s0 + $0x6a8] sm:$0xff] }
 0x1a0   :  { %v1282_v31 = vpop.f32.mrf.mxu0  ;;  %v401_v38 = vpack.c.bf16 %v252_v5, %v251_v17 }
 0x1a1   :  { %15494 = vst [vmem:[#allocation43_spill] sm:$0xff] %v11275_v25  ;;  %v15283_v1 = vmax.f32 %v11275_v25, 0.0  ;;  %v11309_v8 = vadd.f32 %v10969_v20, %v1282_v31  ;;  %8822 = vrot.lane.b32.xlu1 %v8821_v30, %s9692_s21  ;;  %v11331_v30 = vld [vmem:[%s15206_s0 + $0x6b0] sm:$0xff]  ;;  %v1918_v31 = vmax.f32 %v992_v15, 0.0  ;;  %v11350_v15 = vld [vmem:[%s15206_s0 + $0x6c0] sm:$0xff] }
 0x1a2   :  { %v11319_v2 = vpop.f32.mrf.mxu0  ;;  %v11339_v3 = vpop.permute.xlu0 %8647 }
 0x1a3   :  { %15496 = vst [vmem:[#allocation44_spill] sm:$0xff] %v11309_v8  ;;  %15497 = vst [vmem:[#allocation45_spill] sm:$0xff] %v11319_v2  ;;  %v11366_v2 = vld [vmem:[%s15206_s0 + $0x6d0] sm:$0xff]  ;;  %v15501_v27 = vmax.f32 %v11309_v8, 0.0  ;;  %v3441_v47 = vsel %vm3252_vm3, %v1918_v31, %v8620_v50  ;;  %v406_v50 = vpack.c.bf16 %v11402_v42, %v11397_v32  ;;  %v8624_v31 = vunpack.i.l.bf16 %v11225_v53  ;;  %v266_v42 = vld [vmem:[%s15206_s0 + $0x718] sm:$0xff] }
 0x1a4   :  { %8380 = vmatmul.mubr.msk.bf16.gmra.mxu0 %vm437_vm2, %v398_v44  ;;  %v15498_v44 = vmax.f32 %v11069_v34, 0.0  ;;  %v11355_v34 = vld [vmem:[%s15206_s0 + $0x6c8] sm:$0xff]  ;;  %v11361_v52 = vpop.f32.mrf.mxu0  ;;  %v3256_v53 = vsel %vm3252_vm3, %v10338_v28, %v8625_v61  ;;  %v265_v32 = vld [vmem:[%s15206_s0 + $0x710] sm:$0xff] }
 0x1a5   :  { %8383 = vmatprep.mubr.msk.bf16.mxu0 %vm437_vm2, %v399_v58  ;;  %15499 = vst [vmem:[#allocation46_spill] sm:$0xff] %v11361_v52  ;;  %v11382_v52 = vld [vmem:[%s15206_s0 + $0x6e0] sm:$0xff]  ;;  %v15500_v58 = vmax.f32 %v10993_v16, 0.0 }
 0x1a6   :  { %v8826_v63 = vpack.i.bf16 %v15498_v44, %v15283_v1  ;;  %v1924_v44 = vmax.f32 %v11285_v23, 0.0  ;;  %v8614_v23 = vunpack.i.l.bf16 %v11137_v49  ;;  %v8286_v1 = vpop.f32.mrf.mxu0  ;;  %v3254_v49 = vsel %vm3252_vm3, 0.0, %v8615_v48  ;;  %v8653_v5 = vpop.permute.xlu0 %8652 }
 0x1a7   :  { %v1307_v17 = vadd.f32 %v10969_v20, %v8286_v1  ;;  %v8654_v56 = vunpack.i.l.bf16 %v8653_v5  ;;  %v15503_v48 = vmax.f32 %v11119_v40, 0.0 }
 0x1a8   :  { %8827 = vrot.lane.b32.xlu0 %v8826_v63, %s9692_s21  ;;  %v8831_v63 = vpack.i.bf16 %v15501_v27, %v15500_v58  ;;  %v1298_v12 = vpop.f32.mrf.mxu0  ;;  %v11420_v8 = vpop.permute.xlu1 %8657  ;;  %v3442_v27 = vsel %vm3252_vm3, %v1920_v62, %v8614_v23  ;;  %v3505_v62 = vsel %vm3310_vm4, %v3441_v47, %v10899_v22  ;;  %v8630_v23 = vunpack.i.h.bf16 %v11243_v14 }
 0x1a9   :  { %v1997_v1 = vmax.f32 %v1307_v17, 0.0  ;;  %v11418_v16 = vadd.f32 %v10969_v20, %v1298_v12  ;;  %v15303_v58 = vunpack.i.l.bf16 %v11420_v8  ;;  %v15502_v17 = vunpack.i.h.bf16 %v10894_v19 }
 0x1aa   :  { %v8289_v9 = vpop.f32.mrf.mxu0  ;;  %v3255_v19 = vsel %vm3252_vm3, %v10304_v4, %v8629_v10  ;;  %v3569_v61 = vsel %vm3368_vm5, %v3505_v62, %v8654_v56  ;;  %v3444_v10 = vsel %vm3252_vm3, %v1924_v44, %v8624_v31  ;;  %v15506_v31 = vmax.f32 %v11289_v33, 0.0  ;;  %v11881_v4 = vld [vmem:[%s15206_s0 + $0x7b8] sm:$0xff] }
 0x1ab   :  { %v3312_v12 = vsel %vm3310_vm4, %v3254_v49, %v15502_v17  ;;  %v8836_v25 = vpack.i.bf16 %v15503_v48, %v1997_v1  ;;  %v15289_v0 = vmax.f32 %v11418_v16, 0.0  ;;  %v3506_v40 = vsel %vm3310_vm4, %v3442_v27, %v15303_v58 }
 0x1ac   :  { %8832 = vrot.lane.b32.xlu0 %v8831_v63, %s9692_s21  ;;  %8384 = vmatmul.mubr.msk.bf16.gmra.mxu0 %vm437_vm2, %v400_v21  ;;  %v8655_v63 = vunpack.i.h.bf16 %v8653_v5  ;;  %v1311_v21 = vpop.f32.mrf.mxu0  ;;  %v11447_v49 = vadd.f32 %v10969_v20, %v8289_v9  ;;  %v15290_v5 = vunpack.i.h.bf16 %v11420_v8  ;;  %v3377_v9 = vsel %vm3368_vm5, %v3312_v12, %v10886_v11 }
 0x1ad   :  { %8387 = vmatprep.mubr.msk.bf16.mxu0 %vm437_vm2, %v401_v38  ;;  %v11450_v47 = vadd.f32 %v10969_v20, %v1311_v21  ;;  %8837 = vrot.lane.b32.xlu1 %v8836_v25, %s9692_s21  ;;  %v11453_v38 = vpop.permute.xlu1 %8662  ;;  %v15504_v25 = vmax.f32 %v11058_v41, 0.0  ;;  %v3443_v62 = vsel %vm3252_vm3, %v15506_v31, %v8630_v23  ;;  %v8635_v12 = vunpack.i.h.bf16 %v11272_v6 }
 0x1ae   :  { %v3570_v14 = vsel %vm3368_vm5, %v3506_v40, %v8655_v63  ;;  %v8290_v48 = vpop.f32.mrf.mxu0  ;;  %v15505_v63 = vunpack.i.h.bf16 %v10975_v51  ;;  %v8634_v21 = vunpack.i.l.bf16 %v11272_v6  ;;  %v15507_v41 = vunpack.i.l.bf16 %v10975_v51 }
 0x1af   :  { %v3638_v1 = vpack.c.bf16 %v3570_v14, %v3569_v61  ;;  %v1998_v27 = vmax.f32 %v11450_v47, 0.0  ;;  %v1323_v17 = vadd.f32 %v10969_v20, %v8290_v48  ;;  %v8841_v56 = vpack.i.bf16 %v15289_v0, %v15504_v25  ;;  %v275_v47 = vld [vmem:[%s15206_s0 + $0x760] sm:$0xff] }
 0x1b0   :  { %v11470_v44 = vsel %vm3310_vm4, %v3256_v53, %v15505_v63  ;;  %v1314_v40 = vpop.f32.mrf.mxu0  ;;  %v3313_v61 = vsel %vm3310_vm4, %v3255_v19, %v15507_v41  ;;  %v8640_v14 = vunpack.i.h.bf16 %v11376_v46  ;;  %v8639_v48 = vunpack.i.l.bf16 %v11376_v46  ;;  %v11485_v25 = vpop.permute.xlu0 %8672 }
 0x1b1   :  { %4032 = vmatprep.mubr.bf16.mxu1 %v3638_v1  ;;  %v2000_v53 = vmax.f32 %v11447_v49, 0.0  ;;  %v1315_v33 = vadd.f32 %v10969_v20, %v1314_v40  ;;  %8842 = vrot.lane.b32.xlu1 %v8841_v56, %s9692_s21  ;;  %v8668_v23 = vpop.permute.xlu1 %8667  ;;  %v15291_v1 = vunpack.i.l.bf16 %v11485_v25  ;;  %v15508_v19 = vpack.c.bf16 %v11345_v45, %v11331_v30 }
 0x1b2   :  { %v8670_v6 = vunpack.i.h.bf16 %v8668_v23  ;;  %v8669_v63 = vunpack.i.l.bf16 %v8668_v23  ;;  %v8293_v51 = vpop.f32.mrf.mxu0  ;;  %v3507_v46 = vsel %vm3310_vm4, %v3443_v62, %v15290_v5  ;;  %v11499_v31 = vmax.f32 %v1323_v17, 0.0 }
 0x1b3   :  { %v8846_v56 = vpack.i.bf16 %v2000_v53, %v1998_v27  ;;  %v11501_v40 = vmax.f32 %v1315_v33, 0.0  ;;  %v11504_v41 = vadd.f32 %v10969_v20, %v8293_v51  ;;  %v15511_v45 = vpack.c.bf16 %v11355_v34, %v11350_v15 }
 0x1b4   :  { %8388 = vmatmul.mubr.msk.bf16.gmra.mxu0 %vm437_vm2, %v15508_v19  ;;  %15509 = vst [vmem:[#allocation47_spill] sm:$0xff] %v11499_v31  ;;  %v8664_v30 = vunpack.i.l.bf16 %v11453_v38  ;;  %v1327_v62 = vpop.f32.mrf.mxu0  ;;  %v3378_v23 = vsel %vm3368_vm5, %v3313_v61, %v8669_v63  ;;  %v3508_v17 = vsel %vm3310_vm4, %v3444_v10, %v15291_v1  ;;  %v3571_v33 = vsel %vm3368_vm5, %v3507_v46, %v8670_v6  ;;  %v11523_v34 = vpop.permute.xlu0 %8677 }
 0x1b5   :  { %15510 = vst [vmem:[#allocation48_spill] sm:$0xff] %v11501_v40  ;;  %8391 = vmatprep.mubr.msk.bf16.mxu0 %vm437_vm2, %v15511_v45  ;;  %v3257_v51 = vsel %vm3252_vm3, %v10340_v29, %v8639_v48  ;;  %v15300_v19 = vmax.f32 %v11504_v41, 0.0  ;;  %v11520_v15 = vadd.f32 %v10969_v20, %v1327_v62  ;;  %8847 = vrot.lane.b32.xlu1 %v8846_v56, %s9694_s24  ;;  %v8665_v6 = vunpack.i.h.bf16 %v11453_v38  ;;  %v11840_v29 = vld [vmem:[%s15206_s0 + $0x790] sm:$0xff] }
 0x1b6   :  { %v8851_v61 = vpack.i.bf16 %v11499_v31, %v11501_v40  ;;  %v11529_v10 = vsel %vm3252_vm3, %v10374_v55, %v8635_v12  ;;  %v8294_v63 = vpop.f32.mrf.mxu0  ;;  %v3637_v48 = vpack.c.bf16 %v3378_v23, %v3377_v9  ;;  %v3572_v46 = vsel %vm3368_vm5, %v3508_v17, %v8664_v30  ;;  %v11920_v31 = vld [vmem:[%s15206_s0 + $0x7e0] sm:$0xff] }
 0x1b7   :  { %v15512_v45 = vmax.f32 %v11293_v35, 0.0  ;;  %v15297_v56 = vunpack.i.h.bf16 %v11485_v25  ;;  %v1339_v0 = vadd.f32 %v10969_v20, %v8294_v63  ;;  %v3641_v5 = vpack.c.bf16 %v3572_v46, %v3571_v33 }
 0x1b8   :  { %8852 = vrot.lane.b32.xlu0 %v8851_v61, %s9695_s30  ;;  %v15513_v12 = vmax.f32 %v11297_v43, 0.0  ;;  %v8644_v38 = vunpack.i.l.bf16 %v11277_v59  ;;  %v8650_v9 = vunpack.i.h.bf16 %v11339_v3  ;;  %4033 = vmatmul.mubr.bf16.gmra.mxu1 %v3637_v48  ;;  %v1330_v30 = vpop.f32.mrf.mxu0  ;;  %v15514_v35 = vunpack.i.l.bf16 %v11039_v39  ;;  %v11554_v61 = vpop.permute.xlu1 %8687 }
 0x1b9   :  { %v3446_v62 = vsel %vm3252_vm3, %v15512_v45, %v8634_v21  ;;  %v8649_v23 = vunpack.i.l.bf16 %v11339_v3  ;;  %v15515_v17 = vmax.f32 %v11186_v60, 0.0  ;;  %v2002_v43 = vmax.f32 %v11520_v15, 0.0  ;;  %4040 = vmatprep.mubr.bf16.mxu1 %v3641_v5  ;;  %v8683_v63 = vpop.permute.xlu0 %8682  ;;  %v11812_v15 = vld [vmem:[%s15208_s2] ss:$0 sm:$0xff] }
 0x1ba   :  { %v3445_v1 = vsel %vm3252_vm3, %v15513_v12, %v8640_v14  ;;  %v3315_v21 = vsel %vm3310_vm4, %v3257_v51, %v15514_v35  ;;  %v1331_v14 = vadd.f32 %v10969_v20, %v1330_v30  ;;  %v15292_v48 = vunpack.i.l.bf16 %v11554_v61  ;;  %v8297_v51 = vpop.f32.mrf.mxu0 }
 0x1bb   :  { %v8856_v33 = vpack.i.bf16 %v15515_v17, %v15300_v19  ;;  %v8685_v46 = vunpack.i.h.bf16 %v8683_v63  ;;  %v8684_v45 = vunpack.i.l.bf16 %v8683_v63  ;;  %v15516_v3 = vpack.c.bf16 %v11371_v36, %v11366_v2 }
 0x1bc   :  { %v3379_v60 = vsel %vm3368_vm5, %v11470_v44, %v8665_v6  ;;  %v11563_v12 = vmax.f32 %v1339_v0, 0.0  ;;  %v11565_v30 = vmax.f32 %v1331_v14, 0.0  ;;  %v11568_v5 = vadd.f32 %v10969_v20, %v8297_v51  ;;  %v1343_v0 = vpop.f32.mrf.mxu0 }
 0x1bd   :  { %8392 = vmatmul.mubr.msk.bf16.gmra.mxu0 %vm437_vm2, %v15516_v3  ;;  %8857 = vrot.lane.b32.xlu0 %v8856_v33, %s9694_s24  ;;  %v3509_v35 = vsel %vm3310_vm4, %v3445_v1, %v15297_v56  ;;  %v15519_v36 = vpack.c.bf16 %v11387_v37, %v11382_v52  ;;  %v8679_v2 = vunpack.i.l.bf16 %v11523_v34  ;;  %v3380_v44 = vsel %vm3368_vm5, %v3315_v21, %v8684_v45  ;;  %v263_v1 = vld [vmem:[%s15206_s0 + $0x700] sm:$0xff]  ;;  %v264_v52 = vld [vmem:[%s15206_s0 + $0x708] sm:$0xff] }
 0x1be   :  { %15517 = vst [vmem:[#allocation49_spill] sm:$0xff] %v11563_v12  ;;  %15518 = vst [vmem:[#allocation50_spill] sm:$0xff] %v11565_v30  ;;  %v3510_v6 = vsel %vm3310_vm4, %v3446_v62, %v15292_v48  ;;  %v3573_v17 = vsel %vm3368_vm5, %v3509_v35, %v8685_v46  ;;  %v15520_v37 = vmax.f32 %v11200_v13, 0.0  ;;  %v15298_v21 = vmax.f32 %v11568_v5, 0.0  ;;  %v11598_v62 = vpop.permute.xlu1 %8692  ;;  %v8298_v51 = vpop.f32.mrf.mxu0 }
 0x1bf   :  { %8395 = vmatprep.mubr.msk.bf16.mxu0 %vm437_vm2, %v15519_v36  ;;  %v11596_v14 = vadd.f32 %v10969_v20, %v1343_v0  ;;  %v8866_v63 = vpack.i.bf16 %v11563_v12, %v11565_v30  ;;  %v3259_v46 = vsel %vm3252_vm3, %v10376_v57, %v8649_v23  ;;  %v8680_v45 = vunpack.i.h.bf16 %v11523_v34 }
 0x1c0   :  { %v8861_v33 = vpack.i.bf16 %v2002_v43, %v15520_v37  ;;  %v3640_v13 = vpack.c.bf16 %v3380_v44, %v3379_v60  ;;  %v3574_v3 = vsel %vm3368_vm5, %v3510_v6, %v8679_v2  ;;  %v15296_v35 = vunpack.i.h.bf16 %v11554_v61  ;;  %v1346_v2 = vpop.f32.mrf.mxu0 }
 0x1c1   :  { %v1355_v36 = vadd.f32 %v10969_v20, %v8298_v51  ;;  %8867 = vrot.lane.b32.xlu1 %v8866_v63, %s9695_s30  ;;  %v3644_v0 = vpack.c.bf16 %v3574_v3, %v3573_v17  ;;  %v407_v37 = vpack.c.bf16 %v264_v52, %v263_v1  ;;  %v15521_v48 = vmax.f32 %v11301_v24, 0.0 }
 0x1c2   :  { %8862 = vrot.lane.b32.xlu0 %v8861_v33, %s9694_s24  ;;  %v15522_v34 = vmax.f32 %v11305_v54, 0.0  ;;  %4041 = vmatmul.mubr.bf16.gmra.mxu1 %v3640_v13  ;;  %v15523_v44 = vunpack.i.h.bf16 %v11039_v39  ;;  %v15524_v17 = vmax.f32 %v11229_v18, 0.0  ;;  %v15304_v24 = vmax.f32 %v11596_v14, 0.0  ;;  %v8698_v54 = vpop.permute.xlu1 %8697  ;;  %v8301_v63 = vpop.f32.mrf.mxu0 }
 0x1c3   :  { %v3448_v23 = vsel %vm3252_vm3, %v15521_v48, %v8644_v38  ;;  %v1347_v38 = vadd.f32 %v10969_v20, %v1346_v2  ;;  %4048 = vmatprep.mubr.bf16.mxu1 %v3644_v0  ;;  %v11626_v48 = vpop.permute.xlu0 %8702  ;;  %v8700_v52 = vunpack.i.h.bf16 %v8698_v54  ;;  %v8699_v33 = vunpack.i.l.bf16 %v8698_v54 }
 0x1c4   :  { %v3447_v60 = vsel %vm3252_vm3, %v15522_v34, %v8650_v9  ;;  %v3316_v6 = vsel %vm3310_vm4, %v11529_v10, %v15523_v44  ;;  %v8871_v1 = vpack.i.bf16 %v15524_v17, %v15298_v21  ;;  %v15525_v9 = vunpack.i.l.bf16 %v11127_v7 }
 0x1c5   :  { %v15295_v10 = vunpack.i.l.bf16 %v11626_v48  ;;  %8396 = vmatmul.mubr.msk.bf16.gmra.mxu0 %vm437_vm2, %v406_v50  ;;  %v3381_v18 = vsel %vm3368_vm5, %v3316_v6, %v8680_v45  ;;  %v11637_v51 = vmax.f32 %v1355_v36, 0.0  ;;  %v11639_v13 = vmax.f32 %v1347_v38, 0.0  ;;  %v1359_v45 = vpop.f32.mrf.mxu0 }
 0x1c6   :  { %v3317_v39 = vsel %vm3310_vm4, %v3259_v46, %v15525_v9  ;;  %v11642_v3 = vadd.f32 %v10969_v20, %v8301_v63  ;;  %8872 = vrot.lane.b32.xlu1 %v8871_v1, %s9694_s24  ;;  %v3511_v46 = vsel %vm3310_vm4, %v3447_v60, %v15296_v35  ;;  %8399 = vmatprep.mubr.msk.bf16.mxu0 %vm437_vm2, %v407_v37  ;;  %v8694_v50 = vunpack.i.l.bf16 %v11598_v62  ;;  %v267_v37 = vld [vmem:[%s15206_s0 + $0x720] sm:$0xff]  ;;  %v268_v60 = vld [vmem:[%s15206_s0 + $0x728] sm:$0xff] }
 0x1c7   :  { %15526 = vst [vmem:[#allocation51_spill] sm:$0xff] %v11637_v51  ;;  %15527 = vst [vmem:[#allocation52_spill] sm:$0xff] %v11639_v13  ;;  %v3382_v36 = vsel %vm3368_vm5, %v3317_v39, %v8699_v33  ;;  %v3512_v0 = vsel %vm3310_vm4, %v3448_v23, %v15295_v10  ;;  %v3575_v34 = vsel %vm3368_vm5, %v3511_v46, %v8700_v52  ;;  %v15528_v2 = vmax.f32 %v11237_v26, 0.0  ;;  %v11677_v1 = vpop.f32.mrf.mxu0  ;;  %v15529_v39 = vld [vmem:[#allocation34_spill] sm:$0xff]  ;;  %v15531_v46 = vld [vmem:[#allocation43_spill] sm:$0xff] }
 0x1c8   :  { %v15294_v6 = vmax.f32 %v11642_v3, 0.0  ;;  %v11673_v17 = vadd.f32 %v10969_v20, %v1359_v45  ;;  %v8881_v23 = vpack.i.bf16 %v11637_v51, %v11639_v13  ;;  %v3643_v38 = vpack.c.bf16 %v3382_v36, %v3381_v18  ;;  %v11896_v51 = vld [vmem:[%s15206_s0 + $0x7c8] sm:$0xff]  ;;  %v11901_v13 = vld [vmem:[%s15206_s0 + $0x7d0] sm:$0xff] }
 0x1c9   :  { %v8876_v44 = vpack.i.bf16 %v15304_v24, %v15528_v2  ;;  %v3576_v54 = vsel %vm3368_vm5, %v3512_v0, %v8694_v50  ;;  %v408_v9 = vpack.c.bf16 %v266_v42, %v265_v32  ;;  %v11682_v26 = vadd.f32 %v10969_v20, %v15529_v39  ;;  %v1362_v63 = vpop.f32.mrf.mxu0  ;;  %v11691_v32 = vpop.permute.xlu1 %8707 }
 0x1ca   :  { %8882 = vrot.lane.b32.xlu0 %v8881_v23, %s9695_s30  ;;  %v3647_v52 = vpack.c.bf16 %v3576_v54, %v3575_v34  ;;  %v409_v33 = vpack.c.bf16 %v268_v60, %v267_v37  ;;  %4049 = vmatmul.mubr.bf16.gmra.mxu1 %v3643_v38  ;;  %v15532_v45 = vmax.f32 %v15531_v46, 0.0  ;;  %v15299_v50 = vmax.f32 %v11673_v17, 0.0  ;;  %v269_v37 = vld [vmem:[%s15206_s0 + $0x730] sm:$0xff]  ;;  %v270_v60 = vld [vmem:[%s15206_s0 + $0x738] sm:$0xff]  ;;  %v272_v23 = vld [vmem:[%s15206_s0 + $0x748] sm:$0xff] }
 0x1cb   :  { %15530 = vst [vmem:[#allocation34_spill] sm:$0xff] %v11682_v26  ;;  %8877 = vrot.lane.b32.xlu1 %v8876_v44, %s9694_s24  ;;  %v1363_v42 = vadd.f32 %v10969_v20, %v1362_v63  ;;  %v11694_v36 = vpop.f32.mrf.mxu0  ;;  %v15293_v0 = vmax.f32 %v11682_v26, 0.0  ;;  %v271_v44 = vld [vmem:[%s15206_s0 + $0x740] sm:$0xff]  ;;  %v15536_v38 = vld [vmem:[#allocation44_spill] sm:$0xff]  ;;  %v8710_v58 = vunpack.i.h.bf16 %v11691_v32  ;;  %v8645_v26 = vunpack.i.h.bf16 %v11277_v59 }
 0x1cc   :  { %v8886_v18 = vpack.i.bf16 %v15532_v45, %v15294_v6  ;;  %4056 = vmatprep.mubr.bf16.mxu1 %v3647_v52  ;;  %15533 = vst [vmem:[#allocation43_spill] sm:$0xff] %v11694_v36  ;;  %v15537_v54 = vmax.f32 %v15536_v38, 0.0  ;;  %v411_v45 = vpack.c.bf16 %v272_v23, %v271_v44  ;;  %v273_v44 = vld [vmem:[%s15206_s0 + $0x750] sm:$0xff]  ;;  %v274_v23 = vld [vmem:[%s15206_s0 + $0x758] sm:$0xff] }
 0x1cd   :  { %8400 = vmatmul.mubr.msk.bf16.gmra.mxu0 %vm437_vm2, %v408_v9  ;;  %v11698_v34 = vmax.f32 %v1363_v42, 0.0  ;;  %v11708_v2 = vpop.f32.mrf.mxu0  ;;  %v11723_v63 = vpop.permute.xlu1 %8712  ;;  %v15540_v6 = vld [vmem:[#allocation33_spill] sm:$0xff] }
 0x1ce   :  { %8887 = vrot.lane.b32.xlu0 %v8886_v18, %s9694_s24  ;;  %8403 = vmatprep.mubr.msk.bf16.mxu0 %vm437_vm2, %v409_v33  ;;  %15535 = vst [vmem:[#allocation54_spill] sm:$0xff] %v11708_v2  ;;  %v8891_v9 = vpack.i.bf16 %v15299_v50, %v15537_v54  ;;  %v410_v33 = vpack.c.bf16 %v270_v60, %v269_v37  ;;  %v15541_v10 = vmax.f32 %v15540_v6, 0.0  ;;  %v8715_v12 = vunpack.i.h.bf16 %v11723_v63 }
 0x1cf   :  { %15534 = vst [vmem:[#allocation53_spill] sm:$0xff] %v11698_v34  ;;  %v8896_v39 = vpack.i.bf16 %v15293_v0, %v11698_v34  ;;  %v8306_v52 = vpop.f32.mrf.mxu0 }
 0x1d0   :  { %v11726_v46 = vadd.f32 %v10969_v20, %v8306_v52  ;;  %v11740_v52 = vpop.permute.xlu0 %8722 }
 0x1d1   :  { %8897 = vrot.lane.b32.xlu1 %v8896_v39, %s9695_s30  ;;  %v1378_v18 = vpop.f32.mrf.mxu0  ;;  %v11757_v39 = vpop.permute.xlu1 %8717 }
 0x1d2   :  { %8892 = vrot.lane.b32.xlu0 %v8891_v9, %s9694_s24  ;;  %v2017_v42 = vmax.f32 %v11726_v46, 0.0  ;;  %v11732_v38 = vadd.f32 %v10969_v20, %v1378_v18 }
 0x1d3   :  { %v11734_v54 = vpop.f32.mrf.mxu0 }
 0x1d4   :  { %15538 = vst [vmem:[#allocation44_spill] sm:$0xff] %v11734_v54  ;;  %v8901_v37 = vpack.i.bf16 %v1998_v27, %v2017_v42  ;;  %v15301_v60 = vmax.f32 %v11732_v38, 0.0  ;;  %v276_v27 = vld [vmem:[%s15206_s0 + $0x768] sm:$0xff] }
 0x1d5   :  { %8404 = vmatmul.mubr.msk.bf16.gmra.mxu0 %vm437_vm2, %v410_v33  ;;  %v11749_v9 = vpop.f32.mrf.mxu0  ;;  %v9368_v33 = vld [vmem:[%s15207_s3 + $0x88] sm:$0xff]   ;;  %v413_v56 = vpack.c.bf16 %v276_v27, %v275_v47  ;;  %v11790_v27 = vpop.permute.xlu1 %8727 }
 0x1d6   :  { %8407 = vmatprep.mubr.msk.bf16.mxu0 %vm437_vm2, %v411_v45  ;;  %15539 = vst [vmem:[#allocation55_spill] sm:$0xff] %v11749_v9  ;;  %8902 = vrot.lane.b32.xlu0 %v8901_v37, %s9692_s21  ;;  %v412_v45 = vpack.c.bf16 %v274_v23, %v273_v44  ;;  %v11766_v0 = vpop.permute.xlu0 %8732  ;;  %v8906_v35 = vpack.i.bf16 %v15301_v60, %v15541_v10  ;;  %v15542_v44 = vld [vmem:[#allocation16_spill] sm:$0xff]  ;;  %v15545_v10 = vld [vmem:[#allocation19_spill] sm:$0xff]  ;;  %v15556_v9 = vunpack.i.l.bf16 %v11420_v8 }
 0x1d7   :  { %v8310_v46 = vpop.f32.mrf.mxu0  ;;  %8431 = vmatprep.subr.bf16.mxu1 %v9368_v33  ;;  %v11777_v23 = vadd.f32 %v10969_v20, %v15542_v44  ;;  %v11788_v47 = vadd.f32 %v10969_v20, %v15545_v10  ;;  %v278_v44 = vld [vmem:[%s15206_s0 + $0x778] sm:$0xff] }
 0x1d8   :  { %v11764_v18 = vadd.f32 %v10969_v20, %v8310_v46  ;;  %8432 = vmatpush3.bf16.msra.mxu1 %v9368_v33  ;;  %v15543_v46 = vld [vmem:[#allocation18_spill] sm:$0xff] }
 0x1d9   :  { %v1394_v21 = vpop.f32.mrf.mxu0  ;;  %v11781_v6 = vadd.f32 %v10969_v20, %v15543_v46  ;;  %v15546_v46 = vld [vmem:[#allocation20_spill] sm:$0xff] }
 0x1da   :  { %v15302_v37 = vmax.f32 %v11764_v18, 0.0  ;;  %v1395_v50 = vadd.f32 %v10969_v20, %v1394_v21  ;;  %8907 = vrot.lane.b32.xlu0 %v8906_v35, %s9692_s21  ;;  %v11796_v33 = vpop.permute.xlu0 %8737  ;;  %v11807_v10 = vadd.f32 %v10969_v20, %v15546_v46  ;;  %v279_v20 = vld [vmem:[%s15206_s0 + $0x780] sm:$0xff]  ;;  %v280_v46 = vld [vmem:[%s15206_s0 + $0x788] sm:$0xff] }
 0x1db   :  { %v11783_v19 = vpop.f32.mrf.mxu0  ;;  %v1950_v24 = vmax.f32 %v11781_v6, 0.0  ;;  %v415_v59 = vpack.c.bf16 %v280_v46, %v279_v20  ;;  %v15550_v20 = vld [vmem:[#allocation23_spill] sm:$0xff] }
 0x1dc   :  { %15544 = vst [vmem:[#allocation33_spill] sm:$0xff] %v11783_v19  ;;  %v8911_v21 = vpack.i.bf16 %v2002_v43, %v15302_v37  ;;  %v2019_v35 = vmax.f32 %v1395_v50, 0.0  ;;  %v15547_v43 = vld [vmem:[#allocation21_spill] sm:$0xff]  ;;  %v15548_v50 = vld [vmem:[#allocation22_spill] sm:$0xff]  ;;  %v11871_v46 = vadd.f32 %v11812_v15, %v15550_v20  ;;  %v8714_v20 = vunpack.i.l.bf16 %v11723_v63 }
 0x1dd   :  { %8408 = vmatmul.mubr.msk.bf16.gmra.mxu0 %vm437_vm2, %v412_v45  ;;  %v277_v45 = vld [vmem:[%s15206_s0 + $0x770] sm:$0xff]  ;;  %v11820_v60 = vadd.f32 %v11812_v15, %v15548_v50  ;;  %v11822_v37 = vpop.f32.mrf.mxu0 }
 0x1de   :  { %8411 = vmatprep.mubr.msk.bf16.mxu0 %vm437_vm2, %v413_v56  ;;  %v11816_v56 = vadd.f32 %v11812_v15, %v15547_v43  ;;  %15549 = vst [vmem:[#allocation16_spill] sm:$0xff] %v11822_v37  ;;  %8912 = vrot.lane.b32.xlu0 %v8911_v21, %s9692_s21  ;;  %v8916_v43 = vpack.i.bf16 %v2019_v35, %v2000_v53  ;;  %v11847_v49 = vpop.permute.xlu1 %8747  ;;  %v11849_v53 = vpop.permute.xlu0 %8742  ;;  %v11876_v50 = vld [vmem:[%s15206_s0 + $0x7b0] sm:$0xff] }
 0x1df   :  { %v8314_v57 = vpop.f32.mrf.mxu0  ;;  %v414_v55 = vpack.c.bf16 %v278_v44, %v277_v45  ;;  %v8921_v6 = vpack.i.bf16 %v2019_v35, %v2017_v42  ;;  %v11854_v45 = vld [vmem:[%s15206_s0 + $0x798] sm:$0xff]  ;;  %v11859_v44 = vld [vmem:[%s15206_s0 + $0x7a0] sm:$0xff]  ;;  %v3262_v35 = vsel %vm3252_vm3, 0.0, %v8710_v58 }
 0x1e0   :  { %v11844_v21 = vadd.f32 %v11812_v15, %v8314_v57  ;;  %8917 = vrot.lane.b32.xlu1 %v8916_v43, %s9692_s21  ;;  %v11864_v57 = vld [vmem:[%s15206_s0 + $0x7a8] sm:$0xff]  ;;  %v11886_v42 = vld [vmem:[%s15206_s0 + $0x7c0] sm:$0xff]  ;;  %v11906_v58 = vld [vmem:[%s15206_s0 + $0x7d8] sm:$0xff]  ;;  %v416_v40 = vpack.c.bf16 %v11854_v45, %v11840_v29 }
 0x1e1   :  { %v1410_v28 = vpop.f32.mrf.mxu0  ;;  %v15551_v43 = vld [vmem:[#allocation7_spill] sm:$0xff]  ;;  %v417_v45 = vpack.c.bf16 %v11864_v57, %v11859_v44  ;;  %v8720_v44 = vunpack.i.h.bf16 %v11757_v39  ;;  %v15558_v57 = vunpack.i.h.bf16 %v11127_v7 }
 0x1e2   :  { %v1411_v34 = vadd.f32 %v11812_v15, %v1410_v28  ;;  %8922 = vrot.lane.b32.xlu0 %v8921_v6, %s9694_s24  ;;  %v3260_v28 = vsel %vm3252_vm3, %v15551_v43, %v8645_v26  ;;  %v8695_v6 = vunpack.i.h.bf16 %v11598_v62  ;;  %v11925_v26 = vld [vmem:[%s15206_s0 + $0x7e8] sm:$0xff]  ;;  %v8709_v62 = vunpack.i.l.bf16 %v11691_v32 }
 0x1e3   :  { %v11912_v30 = vpop.f32.mrf.mxu0  ;;  %v15553_v63 = vmax.f32 %v11844_v21, 0.0  ;;  %v15554_v43 = vmax.f32 %v11596_v14, 0.0  ;;  %v11934_v29 = vpop.permute.xlu0 %8762  ;;  %v3320_v14 = vsel %vm3310_vm4, %v3262_v35, %v15556_v9  ;;  %v3318_v32 = vsel %vm3310_vm4, %v3260_v28, %v15558_v57 }
 0x1e4   :  { %15552 = vst [vmem:[#allocation18_spill] sm:$0xff] %v11912_v30  ;;  %v2023_v30 = vmax.f32 %v1411_v34, 0.0  ;;  %v11932_v37 = vpop.permute.xlu1 %8752  ;;  %v8705_v35 = vunpack.i.h.bf16 %v11626_v48  ;;  %v3449_v34 = vsel %vm3252_vm3, %v1950_v24, %v8715_v12  ;;  %v15560_v57 = vmax.f32 %v11504_v41, 0.0 }
 0x1e5   :  { %8412 = vmatmul.mubr.msk.bf16.gmra.mxu0 %vm437_vm2, %v414_v55  ;;  %v8926_v55 = vpack.i.bf16 %v15554_v43, %v15553_v63  ;;  %v11939_v19 = vpop.f32.mrf.mxu0  ;;  %v15557_v63 = vld [vmem:[#allocation8_spill] sm:$0xff]  ;;  %v8719_v43 = vunpack.i.l.bf16 %v11757_v39  ;;  %v11973_v12 = vsel %vm3368_vm5, %v3320_v14, %v10886_v11  ;;  %v8725_v24 = vunpack.i.h.bf16 %v11740_v52 }
 0x1e6   :  { %8415 = vmatprep.mubr.msk.bf16.mxu0 %vm437_vm2, %v415_v59  ;;  %15555 = vst [vmem:[#allocation19_spill] sm:$0xff] %v11939_v19  ;;  %v3261_v59 = vsel %vm3252_vm3, %v15557_v63, %v8714_v20  ;;  %v3383_v20 = vsel %vm3368_vm5, %v3318_v32, %v8695_v6  ;;  %v15559_v63 = vmax.f32 %v11777_v23, 0.0  ;;  %v8931_v9 = vpack.i.bf16 %v2023_v30, %v15560_v57  ;;  %v15561_v32 = vld [vmem:[#allocation9_spill] sm:$0xff] }
 0x1e7   :  { %8927 = vrot.lane.b32.xlu1 %v8926_v55, %s9692_s21  ;;  %v8318_v19 = vpop.f32.mrf.mxu0  ;;  %v8724_v39 = vunpack.i.l.bf16 %v11740_v52  ;;  %v3513_v41 = vsel %vm3310_vm4, %v3449_v34, %v10899_v22  ;;  %v15562_v14 = vmax.f32 %v11788_v47, 0.0 }
 0x1e8   :  { %v3450_v55 = vsel %vm3252_vm3, %v15559_v63, %v8709_v62  ;;  %v1435_v7 = vadd.f32 %v11812_v15, %v8318_v19  ;;  %v8768_v28 = vpop.permute.xlu0 %8767  ;;  %v3319_v62 = vsel %vm3310_vm4, %v3261_v59, %v8705_v35  ;;  %v3264_v19 = vsel %vm3252_vm3, %v15561_v32, %v8720_v44 }
 0x1e9   :  { %v11967_v54 = vpop.permute.xlu1 %8757  ;;  %v8769_v6 = vunpack.i.l.bf16 %v8768_v28  ;;  %v1426_v23 = vpop.f32.mrf.mxu0  ;;  %v11987_v57 = vsel %vm3252_vm3, %v15562_v14, %v8719_v43  ;;  %v8770_v52 = vunpack.i.h.bf16 %v8768_v28  ;;  %v15563_v59 = vmax.f32 %v11764_v18, 0.0  ;;  %v15566_v18 = vld [vmem:[#allocation10_spill] sm:$0xff] }
 0x1ea   :  { %v2029_v63 = vmax.f32 %v1435_v7, 0.0  ;;  %v1427_v2 = vadd.f32 %v11812_v15, %v1426_v23  ;;  %v15564_v7 = vmax.f32 %v11673_v17, 0.0  ;;  %v15565_v28 = vmax.f32 %v11807_v10, 0.0 }
 0x1eb   :  { %8932 = vrot.lane.b32.xlu1 %v8931_v9, %s9692_s21  ;;  %v8321_v36 = vpop.f32.mrf.mxu0  ;;  %v8936_v44 = vpack.i.bf16 %v2023_v30, %v15563_v59  ;;  %v3384_v35 = vsel %vm3368_vm5, %v3319_v62, %v8769_v6  ;;  %v3263_v30 = vsel %vm3252_vm3, %v15566_v18, %v8724_v39  ;;  %v8765_v62 = vunpack.i.h.bf16 %v11934_v29 }
 0x1ec   :  { %v8941_v9 = vpack.i.bf16 %v15564_v7, %v2029_v63  ;;  %v2027_v23 = vmax.f32 %v1427_v2, 0.0  ;;  %v11996_v34 = vadd.f32 %v11812_v15, %v8321_v36  ;;  %v3646_v43 = vpack.c.bf16 %v3384_v35, %v3383_v20 }
 0x1ed   :  { %8416 = vmatmul.mubr.msk.bf16.gmra.mxu0 %vm437_vm2, %v416_v40  ;;  %v11998_v47 = vpop.permute.xlu1 %8772  ;;  %v3451_v40 = vsel %vm3252_vm3, %v15565_v28, %v8725_v24  ;;  %v1439_v17 = vpop.f32.mrf.mxu0  ;;  %v15567_v2 = vunpack.i.l.bf16 %v11485_v25  ;;  %v8764_v20 = vunpack.i.l.bf16 %v11934_v29  ;;  %v8739_v24 = vunpack.i.l.bf16 %v11796_v33 }
 0x1ee   :  { %8419 = vmatprep.mubr.msk.bf16.mxu0 %vm437_vm2, %v417_v45  ;;  %v15325_v6 = vunpack.i.l.bf16 %v11998_v47  ;;  %v2032_v45 = vmax.f32 %v11996_v34, 0.0  ;;  %v12016_v10 = vadd.f32 %v11812_v15, %v1439_v17  ;;  %8942 = vrot.lane.b32.xlu0 %v8941_v9, %s9692_s21  ;;  %v15337_v39 = vunpack.i.h.bf16 %v11998_v47  ;;  %v8778_v63 = vpop.permute.xlu0 %8777  ;;  %v15599_v34 = vld [vmem:[#allocation38_spill] sm:$0xff] }
 0x1ef   :  { %v12010_v36 = vsel %vm3310_vm4, %v3264_v19, %v15567_v2  ;;  %8937 = vrot.lane.b32.xlu1 %v8936_v44, %s9694_s24  ;;  %4057 = vmatmul.mubr.bf16.gmra.mxu1 %v3646_v43  ;;  %v8322_v19 = vpop.f32.mrf.mxu0  ;;  %v3577_v14 = vsel %vm3368_vm5, %v3513_v41, %v8770_v52  ;;  %v15568_v59 = vmax.f32 %v11732_v38, 0.0  ;;  %v15569_v7 = vmax.f32 %v11568_v5, 0.0 }
 0x1f0   :  { %v3514_v29 = vsel %vm3310_vm4, %v3450_v55, %v15325_v6  ;;  %v2030_v35 = vmax.f32 %v12016_v10, 0.0  ;;  %v8730_v43 = vunpack.i.h.bf16 %v11790_v27  ;;  %v8729_v17 = vunpack.i.l.bf16 %v11790_v27  ;;  %v15571_v27 = vld [vmem:[#allocation12_spill] sm:$0xff] }
 0x1f1   :  { %v8956_v44 = vpack.i.bf16 %v15568_v59, %v2032_v45  ;;  %v8946_v9 = vpack.i.bf16 %v2027_v23, %v15569_v7  ;;  %v3578_v28 = vsel %vm3368_vm5, %v3514_v29, %v8764_v20  ;;  %v1442_v2 = vpop.f32.mrf.mxu0  ;;  %v15570_v41 = vunpack.i.h.bf16 %v11420_v8  ;;  %v12042_v5 = vpop.permute.xlu1 %8782 }
 0x1f2   :  { %v3650_v55 = vpack.c.bf16 %v3578_v28, %v3577_v14  ;;  %v8779_v6 = vunpack.i.l.bf16 %v8778_v63  ;;  %v1451_v38 = vadd.f32 %v11812_v15, %v8322_v19  ;;  %v1443_v59 = vadd.f32 %v11812_v15, %v1442_v2 }
 0x1f3   :  { %v3321_v52 = vsel %vm3310_vm4, %v3263_v30, %v15570_v41  ;;  %8957 = vrot.lane.b32.xlu1 %v8956_v44, %s9694_s24  ;;  %8947 = vrot.lane.b32.xlu0 %v8946_v9, %s9692_s21  ;;  %v3265_v29 = vsel %vm3252_vm3, %v15571_v27, %v8739_v24  ;;  %v15336_v8 = vunpack.i.l.bf16 %v12042_v5  ;;  %v8325_v14 = vpop.f32.mrf.mxu0  ;;  %v15572_v30 = vpack.c.bf16 %v11881_v4, %v11876_v50 }
 0x1f4   :  { %v3386_v20 = vsel %vm3368_vm5, %v3321_v52, %v8765_v62  ;;  %4064 = vmatprep.mubr.bf16.mxu1 %v3650_v55  ;;  %v15573_v19 = vmax.f32 %v11844_v21, 0.0  ;;  %v3515_v7 = vsel %vm3310_vm4, %v3451_v40, %v15337_v39  ;;  %v15574_v62 = vmax.f32 %v11418_v16, 0.0  ;;  %v15603_v39 = vld [vmem:[#allocation42_spill] sm:$0xff] }
 0x1f5   :  { %8420 = vmatmul.mubr.msk.bf16.gmra.mxu0 %vm437_vm2, %v15572_v30  ;;  %v8780_v9 = vunpack.i.h.bf16 %v8778_v63  ;;  %v12062_v28 = vmax.f32 %v1443_v59, 0.0  ;;  %v12065_v4 = vadd.f32 %v11812_v15, %v8325_v14  ;;  %v15576_v50 = vpack.c.bf16 %v11896_v51, %v11886_v42  ;;  %v1455_v40 = vpop.f32.mrf.mxu0  ;;  %v12090_v42 = vld [vmem:[%s15206_s0 + $0x7f0] sm:$0xff]  ;;  %v8788_v30 = vpop.permute.xlu1 %8787 }
 0x1f6   :  { %v8951_v44 = vpack.i.bf16 %v2027_v23, %v15573_v19  ;;  %v8961_v24 = vpack.i.bf16 %v2030_v35, %v15574_v62  ;;  %v8735_v21 = vunpack.i.h.bf16 %v11766_v0  ;;  %v8734_v23 = vunpack.i.l.bf16 %v11766_v0  ;;  %v15580_v62 = vld [vmem:[#allocation11_spill] sm:$0xff] }
 0x1f7   :  { %15575 = vst [vmem:[#allocation20_spill] sm:$0xff] %v12062_v28  ;;  %8423 = vmatprep.mubr.msk.bf16.mxu0 %vm437_vm2, %v15576_v50  ;;  %v3649_v16 = vpack.c.bf16 %v3386_v20, %v11973_v12  ;;  %v3516_v63 = vsel %vm3310_vm4, %v11987_v57, %v15336_v8  ;;  %v12078_v2 = vmax.f32 %v1451_v38, 0.0  ;;  %v12081_v55 = vadd.f32 %v11812_v15, %v1455_v40  ;;  %v12095_v12 = vld [vmem:[%s15206_s0 + $0x7f8] sm:$0xff]  ;;  %v8326_v52 = vpop.f32.mrf.mxu0 }
 0x1f8   :  { %8962 = vrot.lane.b32.xlu1 %v8961_v24, %s9694_s24  ;;  %8952 = vrot.lane.b32.xlu0 %v8951_v44, %s9694_s24  ;;  %v3579_v51 = vsel %vm3368_vm5, %v3515_v7, %v8779_v6  ;;  %v3580_v0 = vsel %vm3368_vm5, %v3516_v63, %v8780_v9  ;;  %v8740_v57 = vunpack.i.h.bf16 %v11796_v33  ;;  %v8754_v41 = vunpack.i.l.bf16 %v11932_v37  ;;  %v15579_v33 = vld [vmem:[#allocation24_spill] sm:$0xff]  ;;  %v15602_v8 = vld [vmem:[#allocation41_spill] sm:$0xff] }
 0x1f9   :  { %15577 = vst [vmem:[#allocation21_spill] sm:$0xff] %v12078_v2  ;;  %4065 = vmatmul.mubr.bf16.gmra.mxu1 %v3649_v16  ;;  %v3653_v38 = vpack.c.bf16 %v3580_v0, %v3579_v51  ;;  %v15578_v6 = vunpack.i.h.bf16 %v11485_v25  ;;  %v15341_v20 = vmax.f32 %v12065_v4, 0.0  ;;  %v2034_v14 = vmax.f32 %v12081_v55, 0.0  ;;  %v1458_v25 = vpop.f32.mrf.mxu0 }
 0x1fa   :  { %v1467_v19 = vadd.f32 %v11812_v15, %v8326_v52  ;;  %v8966_v44 = vpack.i.bf16 %v12078_v2, %v12062_v28  ;;  %v12109_v7 = vadd.f32 %v11812_v15, %v15579_v33  ;;  %v3266_v24 = vsel %vm3252_vm3, %v15580_v62, %v8735_v21  ;;  %v12124_v21 = vpop.permute.xlu0 %8792 }
 0x1fb   :  { %v3323_v59 = vsel %vm3310_vm4, %v3265_v29, %v15578_v6  ;;  %4072 = vmatprep.mubr.bf16.mxu1 %v3653_v38  ;;  %v3387_v29 = vsel %vm3368_vm5, %v12010_v36, %v8729_v17  ;;  %v422_v9 = vpack.c.bf16 %v12095_v12, %v12090_v42  ;;  %v15334_v50 = vunpack.i.h.bf16 %v12042_v5  ;;  %v8329_v52 = vpop.f32.mrf.mxu0  ;;  %v15584_v6 = vld [vmem:[#allocation14_spill] sm:$0xff] }
 0x1fc   :  { %v8971_v40 = vpack.i.bf16 %v15341_v20, %v2034_v14  ;;  %v1459_v16 = vadd.f32 %v11812_v15, %v1458_v25  ;;  %8967 = vrot.lane.b32.xlu0 %v8966_v44, %s9695_s30  ;;  %v3388_v63 = vsel %vm3368_vm5, %v3323_v59, %v8730_v43  ;;  %v15581_v36 = vmax.f32 %v11816_v56, 0.0 }
 0x1fd   :  { %v15582_v51 = vmax.f32 %v11820_v60, 0.0  ;;  %v8789_v42 = vunpack.i.l.bf16 %v8788_v30  ;;  %v15330_v12 = vunpack.i.l.bf16 %v12124_v21  ;;  %v15583_v38 = vpack.c.bf16 %v11906_v58, %v11901_v13 }
 0x1fe   :  { %v3454_v17 = vsel %vm3252_vm3, %v15581_v36, %v8734_v23  ;;  %v3267_v43 = vsel %vm3252_vm3, %v15584_v6, %v8754_v41  ;;  %v12140_v59 = vmax.f32 %v1467_v19, 0.0  ;;  %v12142_v56 = vmax.f32 %v1459_v16, 0.0  ;;  %8972 = vrot.lane.b32.xlu1 %v8971_v40, %s9694_s24 }
 0x1ff   :  { %v3453_v0 = vsel %vm3252_vm3, %v15582_v51, %v8740_v57  ;;  %8424 = vmatmul.mubr.msk.bf16.gmra.mxu0 %vm437_vm2, %v15583_v38  ;;  %v12145_v60 = vadd.f32 %v11812_v15, %v8329_v52  ;;  %v15587_v23 = vpack.c.bf16 %v11925_v26, %v11920_v31  ;;  %v8749_v13 = vunpack.i.l.bf16 %v11847_v49  ;;  %v1471_v57 = vpop.f32.mrf.mxu0  ;;  %v8798_v51 = vpop.permute.xlu0 %8797 }
 0x200   :  { %15585 = vst [vmem:[#allocation22_spill] sm:$0xff] %v12140_v59  ;;  %15586 = vst [vmem:[#allocation23_spill] sm:$0xff] %v12142_v56  ;;  %v8790_v58 = vunpack.i.h.bf16 %v8788_v30  ;;  %v3652_v44 = vpack.c.bf16 %v3388_v63, %v3387_v29  ;;  %v3518_v41 = vsel %vm3310_vm4, %v3454_v17, %v15330_v12  ;;  %v8745_v19 = vunpack.i.h.bf16 %v11849_v53 }
 0x201   :  { %8427 = vmatprep.mubr.msk.bf16.mxu0 %vm437_vm2, %v15587_v23  ;;  %v12158_v33 = vadd.f32 %v11812_v15, %v1471_v57  ;;  %v8976_v25 = vpack.i.bf16 %v12140_v59, %v12142_v56  ;;  %v3517_v31 = vsel %vm3310_vm4, %v3453_v0, %v15334_v50  ;;  %v8744_v26 = vunpack.i.l.bf16 %v11849_v53  ;;  %v8330_v30 = vpop.f32.mrf.mxu0  ;;  %v15601_v50 = vld [vmem:[#allocation40_spill] sm:$0xff] }
 0x202   :  { %4073 = vmatmul.mubr.bf16.gmra.mxu1 %v3652_v44  ;;  %v3581_v29 = vsel %vm3368_vm5, %v3517_v31, %v8789_v42  ;;  %v3582_v40 = vsel %vm3368_vm5, %v3518_v41, %v8790_v58  ;;  %v15588_v16 = vunpack.i.h.bf16 %v11554_v61  ;;  %v15338_v36 = vmax.f32 %v12145_v60, 0.0  ;;  %v12184_v44 = vpop.permute.xlu1 %8802 }
 0x203   :  { %v2038_v17 = vmax.f32 %v12158_v33, 0.0  ;;  %v1483_v52 = vadd.f32 %v11812_v15, %v8330_v30  ;;  %8977 = vrot.lane.b32.xlu0 %v8976_v25, %s9695_s30  ;;  %v3656_v53 = vpack.c.bf16 %v3582_v40, %v3581_v29  ;;  %v1964_v0 = vmax.f32 %v11871_v46, 0.0  ;;  %v1474_v23 = vpop.f32.mrf.mxu0 }
 0x204   :  { %v3325_v63 = vsel %vm3310_vm4, %v3267_v43, %v15588_v16  ;;  %v1962_v42 = vmax.f32 %v12109_v7, 0.0  ;;  %v8755_v38 = vunpack.i.h.bf16 %v11932_v37  ;;  %v15329_v58 = vunpack.i.h.bf16 %v12124_v21 }
 0x205   :  { %v8981_v43 = vpack.i.bf16 %v15338_v36, %v2038_v17  ;;  %v1475_v57 = vadd.f32 %v11812_v15, %v1474_v23  ;;  %4080 = vmatprep.mubr.bf16.mxu1 %v3656_v53  ;;  %v3390_v41 = vsel %vm3368_vm5, %v3325_v63, %v8745_v19  ;;  %v3456_v46 = vsel %vm3252_vm3, %v1964_v0, %v8749_v13  ;;  %v8333_v25 = vpop.f32.mrf.mxu0  ;;  %v15604_v36 = vld [vmem:[#allocation45_spill] sm:$0xff] }
 0x206   :  { %v8799_v7 = vunpack.i.l.bf16 %v8798_v51  ;;  %v15326_v37 = vunpack.i.l.bf16 %v12184_v44  ;;  %v15589_v31 = vunpack.i.l.bf16 %v11554_v61  ;;  %v12193_v29 = vmax.f32 %v1483_v52, 0.0 }
 0x207   :  { %8428 = vmatmul.mubr.msk.bf16.gmra.mxu0 %vm437_vm2, %v422_v9  ;;  %v12195_v40 = vmax.f32 %v1475_v57, 0.0  ;;  %v12198_v16 = vadd.f32 %v11812_v15, %v8333_v25  ;;  %8982 = vrot.lane.b32.xlu0 %v8981_v43, %s9694_s24  ;;  %v3455_v19 = vsel %vm3252_vm3, %v1962_v42, %v8755_v38  ;;  %v8800_v63 = vunpack.i.h.bf16 %v8798_v51  ;;  %v1487_v53 = vpop.f32.mrf.mxu0  ;;  %v12225_v57 = vpop.permute.xlu0 %8807 }
 0x208   :  { %v3324_v30 = vsel %vm3310_vm4, %v3266_v24, %v15589_v31  ;;  %15590 = vst [vmem:[#allocation24_spill] sm:$0xff] %v12193_v29  ;;  %v3520_v61 = vsel %vm3310_vm4, %v3456_v46, %v15326_v37  ;;  %v12207_v24 = vadd.f32 %v11812_v15, %v1487_v53  ;;  %v3519_v0 = vsel %vm3310_vm4, %v3455_v19, %v15329_v58 }
 0x209   :  { %15591 = vst [vmem:[#allocation56_spill] sm:$0xff] %v12195_v40  ;;  %v3389_v13 = vsel %vm3368_vm5, %v3324_v30, %v8744_v26  ;;  %v8986_v52 = vpack.i.bf16 %v12193_v29, %v12195_v40  ;;  %v12214_v26 = vpop.f32.mrf.mxu0  ;;  %v3583_v51 = vsel %vm3368_vm5, %v3519_v0, %v8799_v7  ;;  %v3584_v42 = vsel %vm3368_vm5, %v3520_v61, %v8800_v63 }
 0x20a   :  { %v3655_v9 = vpack.c.bf16 %v3390_v41, %v3389_v13  ;;  %v12220_v38 = vadd.f32 %v11812_v15, %v11677_v1  ;;  %v15327_v23 = vmax.f32 %v12198_v16, 0.0  ;;  %v15339_v43 = vmax.f32 %v12207_v24, 0.0 }
 0x20b   :  { %8987 = vrot.lane.b32.xlu1 %v8986_v52, %s9695_s30  ;;  %v3659_v41 = vpack.c.bf16 %v3584_v42, %v3583_v51  ;;  %v8750_v46 = vunpack.i.h.bf16 %v11847_v49  ;;  %v1490_v25 = vpop.f32.mrf.mxu0  ;;  %v12239_v19 = vpop.permute.xlu0 %8812  ;;  %v15594_v49 = vld [vmem:[#allocation13_spill] sm:$0xff]  ;;  %v8759_v53 = vunpack.i.l.bf16 %v11967_v54  ;;  %v8805_v52 = vunpack.i.h.bf16 %v12184_v44 }
 0x20c   :  { %4081 = vmatmul.mubr.bf16.gmra.mxu1 %v3655_v9  ;;  %15592 = vst [vmem:[#allocation57_spill] sm:$0xff] %v12220_v38  ;;  %v8991_v7 = vpack.i.bf16 %v15327_v23, %v15339_v43  ;;  %v1491_v1 = vadd.f32 %v11812_v15, %v1490_v25  ;;  %v15328_v30 = vmax.f32 %v12220_v38, 0.0  ;;  %v8814_v9 = vunpack.i.l.bf16 %v12239_v19  ;;  %v15595_v42 = vld [vmem:[#allocation17_spill] sm:$0xff] }
 0x20d   :  { %4088 = vmatprep.mubr.bf16.mxu1 %v3659_v41  ;;  %v12233_v31 = vpop.f32.mrf.mxu0  ;;  %v3268_v63 = vsel %vm3252_vm3, %v15594_v49, %v8750_v46  ;;  %v8760_v51 = vunpack.i.h.bf16 %v11967_v54  ;;  %v8815_v33 = vunpack.i.h.bf16 %v12239_v19  ;;  %v8809_v20 = vunpack.i.l.bf16 %v12225_v57 }
 0x20e   :  { %v12236_v13 = vmax.f32 %v1491_v1, 0.0  ;;  %v3269_v41 = vsel %vm3252_vm3, %v15595_v42, %v8814_v9 }
 0x20f   :  { %8992 = vrot.lane.b32.xlu1 %v8991_v7, %s9694_s24  ;;  %v12245_v61 = vpop.f32.mrf.mxu0  ;;  %v15596_v7 = vunpack.i.l.bf16 %v11626_v48  ;;  %v3327_v37 = vsel %vm3310_vm4, %v3269_v41, %v8805_v52 }
 0x210   :  { %15593 = vst [vmem:[#allocation58_spill] sm:$0xff] %v12236_v13  ;;  %v8996_v0 = vpack.i.bf16 %v15328_v30, %v12236_v13  ;;  %v3392_v54 = vsel %vm3368_vm5, %v3327_v37, %v8760_v51  ;;  %v15608_v13 = vld [vmem:[#allocation27_spill] sm:$0xff] }
 0x211   :  { %v8338_v25 = vpop.f32.mrf.mxu0  ;;  %v3326_v1 = vsel %vm3310_vm4, %v3268_v63, %v15596_v7 }
 0x212   :  { %v12255_v46 = vadd.f32 %v11812_v15, %v8338_v25  ;;  %8997 = vrot.lane.b32.xlu0 %v8996_v0, %s9695_s30  ;;  %v3391_v30 = vsel %vm3368_vm5, %v3326_v1, %v8759_v53  ;;  %v12277_v53 = vpop.permute.xlu1 %8817 }
 0x213   :  { %v1506_v23 = vpop.f32.mrf.mxu0  ;;  %v3658_v25 = vpack.c.bf16 %v3392_v54, %v3391_v30  ;;  %v15597_v30 = vmax.f32 %v11642_v3, 0.0 }
 0x214   :  { %v15335_v58 = vmax.f32 %v12255_v46, 0.0  ;;  %v12266_v9 = vadd.f32 %v11812_v15, %v1506_v23 }
 0x215   :  { %v12268_v12 = vpop.f32.mrf.mxu0  ;;  %4089 = vmatmul.mubr.bf16.gmra.mxu1 %v3658_v25 }
 0x216   :  { %v9001_v48 = vpack.i.bf16 %v2030_v35, %v15335_v58  ;;  %v15332_v63 = vmax.f32 %v12266_v9, 0.0  ;;  %v12294_v7 = vpop.permute.xlu1 %8822  ;;  %v12330_v58 = vadd.f32 %v11812_v15, %v15601_v50  ;;  %v12349_v50 = vadd.f32 %v11812_v15, %v15604_v36 }
 0x217   :  { %v12275_v52 = vpop.f32.mrf.mxu0  ;;  %v15605_v36 = vmax.f32 %v12065_v4, 0.0 }
 0x218   :  { %9002 = vrot.lane.b32.xlu1 %v9001_v48, %s9692_s21  ;;  %v9006_v0 = vpack.i.bf16 %v15332_v63, %v15597_v30  ;;  %v1248_v63 = vadd.f32 %v11812_v15, %v15599_v34  ;;  %v12341_v34 = vadd.f32 %v11812_v15, %v15602_v8  ;;  %v8810_v8 = vunpack.i.h.bf16 %v12225_v57 }
 0x219   :  { %v8342_v37 = vpop.f32.mrf.mxu0  ;;  %v1986_v42 = vmax.f32 %v12330_v58, 0.0  ;;  %v8824_v57 = vunpack.i.l.bf16 %v12294_v7 }
 0x21a   :  { %v12281_v23 = vadd.f32 %v11812_v15, %v8342_v37  ;;  %v12304_v48 = vpop.permute.xlu0 %8827 }
 0x21b   :  { %v1522_v10 = vpop.f32.mrf.mxu0 }
 0x21c   :  { %v15331_v35 = vmax.f32 %v12281_v23, 0.0  ;;  %v12289_v51 = vadd.f32 %v11812_v15, %v1522_v10  ;;  %9007 = vrot.lane.b32.xlu1 %v9006_v0, %s9692_s21 }
 0x21d   :  { %v12292_v41 = vpop.f32.mrf.mxu0 }
 0x21e   :  { %v9011_v3 = vpack.i.bf16 %v2034_v14, %v15331_v35  ;;  %v15333_v1 = vmax.f32 %v12289_v51, 0.0 }
 0x21f   :  { %v12301_v54 = vpop.f32.mrf.mxu0  ;;  %v12313_v0 = vpop.permute.xlu1 %8837 }
 0x220   :  { %9012 = vrot.lane.b32.xlu0 %v9011_v3, %s9692_s21  ;;  %v9016_v37 = vpack.i.bf16 %v15333_v1, %v2032_v45  ;;  %v15598_v3 = vld [vmem:[#allocation36_spill] sm:$0xff] }
 0x221   :  { %v8346_v25 = vpop.f32.mrf.mxu0  ;;  %v1256_v35 = vadd.f32 %v11812_v15, %v15598_v3 }
 0x222   :  { %v12311_v30 = vadd.f32 %v11812_v15, %v8346_v25  ;;  %v15600_v25 = vld [vmem:[#allocation39_spill] sm:$0xff] }
 0x223   :  { %v1538_v55 = vpop.f32.mrf.mxu0  ;;  %v1272_v1 = vadd.f32 %v11812_v15, %v15600_v25  ;;  %v12337_v3 = vpop.permute.xlu1 %8842  ;;  %v12345_v25 = vadd.f32 %v11812_v15, %v15603_v39 }
 0x224   :  { %v15340_v14 = vmax.f32 %v12311_v30, 0.0  ;;  %v12317_v10 = vadd.f32 %v11812_v15, %v1538_v55  ;;  %9017 = vrot.lane.b32.xlu0 %v9016_v37, %s9692_s21  ;;  %v1982_v55 = vmax.f32 %v1248_v63, 0.0 }
 0x225   :  { %v12324_v45 = vpop.f32.mrf.mxu0  ;;  %v1988_v38 = vmax.f32 %v1272_v1, 0.0 }
 0x226   :  { %v9021_v37 = vpack.i.bf16 %v2038_v17, %v15340_v14  ;;  %v12354_v17 = vpop.permute.xlu0 %8832  ;;  %v1984_v14 = vmax.f32 %v1256_v35, 0.0  ;;  %v15606_v49 = vmax.f32 %v12317_v10, 0.0  ;;  %v3457_v1 = vsel %vm3252_vm3, %v1982_v55, %v8815_v33 }
 0x227   :  { %v12351_v43 = vpop.f32.mrf.mxu0  ;;  %v8848_v62 = vpop.permute.xlu1 %8847  ;;  %v8820_v35 = vunpack.i.h.bf16 %v12277_v53  ;;  %v8819_v55 = vunpack.i.l.bf16 %v12277_v53  ;;  %v15607_v33 = vmax.f32 %v12207_v24, 0.0 }
 0x228   :  { %9022 = vrot.lane.b32.xlu1 %v9021_v37, %s9692_s21  ;;  %v9026_v6 = vpack.i.bf16 %v15606_v49, %v15605_v36  ;;  %v8849_v32 = vunpack.i.l.bf16 %v8848_v62  ;;  %v3458_v36 = vsel %vm3252_vm3, %v1984_v14, %v8809_v20  ;;  %v3521_v20 = vsel %vm3310_vm4, %v3457_v1, %v10899_v22 }
 0x229   :  { %v8350_v39 = vpop.f32.mrf.mxu0  ;;  %v3460_v18 = vsel %vm3252_vm3, %v1988_v38, %v8819_v55 }
 0x22a   :  { %v1563_v19 = vadd.f32 %v11812_v15, %v8350_v39  ;;  %v12374_v49 = vpop.permute.xlu0 %8852  ;;  %v3270_v39 = vsel %vm3252_vm3, 0.0, %v8810_v8  ;;  %v3271_v8 = vsel %vm3252_vm3, %v15608_v13, %v8824_v57 }
 0x22b   :  { %v1554_v27 = vpop.f32.mrf.mxu0  ;;  %v15347_v63 = vunpack.i.l.bf16 %v12374_v49 }
 0x22c   :  { %v2061_v58 = vmax.f32 %v1563_v19, 0.0  ;;  %v12371_v4 = vadd.f32 %v11812_v15, %v1554_v27  ;;  %9027 = vrot.lane.b32.xlu1 %v9026_v6, %s9692_s21  ;;  %v8850_v27 = vunpack.i.h.bf16 %v8848_v62  ;;  %v8825_v6 = vunpack.i.h.bf16 %v12294_v7 }
 0x22d   :  { %v8353_v37 = vpop.f32.mrf.mxu0  ;;  %v3522_v14 = vsel %vm3310_vm4, %v3458_v36, %v15347_v63  ;;  %v3585_v7 = vsel %vm3368_vm5, %v3521_v20, %v8849_v32 }
 0x22e   :  { %v9031_v19 = vpack.i.bf16 %v15607_v33, %v2061_v58  ;;  %v12393_v53 = vadd.f32 %v11812_v15, %v8353_v37  ;;  %v3586_v57 = vsel %vm3368_vm5, %v3522_v14, %v8850_v27  ;;  %v15609_v58 = vld [vmem:[#allocation28_spill] sm:$0xff]  ;;  %v15348_v33 = vunpack.i.h.bf16 %v12374_v49 }
 0x22f   :  { %v1567_v40 = vpop.f32.mrf.mxu0  ;;  %v12399_v24 = vpop.permute.xlu0 %8857  ;;  %v3272_v1 = vsel %vm3252_vm3, %v15609_v58, %v8820_v35  ;;  %v3662_v63 = vpack.c.bf16 %v3586_v57, %v3585_v7  ;;  %v15610_v37 = vunpack.i.l.bf16 %v11998_v47  ;;  %v15612_v13 = vmax.f32 %v12371_v4, 0.0 }
 0x230   :  { %v12396_v62 = vadd.f32 %v11812_v15, %v1567_v40  ;;  %9032 = vrot.lane.b32.xlu0 %v9031_v19, %s9692_s21  ;;  %v15611_v19 = vmax.f32 %v12145_v60, 0.0  ;;  %v3459_v35 = vsel %vm3252_vm3, %v1986_v42, %v8825_v6  ;;  %v8830_v14 = vunpack.i.h.bf16 %v12304_v48 }
 0x231   :  { %v8354_v36 = vpop.f32.mrf.mxu0  ;;  %v3328_v40 = vsel %vm3310_vm4, %v3270_v39, %v15610_v37  ;;  %v8829_v7 = vunpack.i.l.bf16 %v12304_v48  ;;  %4096 = vmatprep.mubr.bf16.mxu1 %v3662_v63  ;;  %v15613_v39 = vunpack.i.h.bf16 %v11998_v47  ;;  %v8835_v60 = vunpack.i.h.bf16 %v12354_v17 }
 0x232   :  { %v9036_v32 = vpack.i.bf16 %v15612_v13, %v15611_v19  ;;  %v15350_v27 = vmax.f32 %v12396_v62, 0.0  ;;  %v1579_v20 = vadd.f32 %v11812_v15, %v8354_v36  ;;  %v8834_v13 = vunpack.i.l.bf16 %v12354_v17 }
 0x233   :  { %v1570_v57 = vpop.f32.mrf.mxu0  ;;  %v3329_v38 = vsel %vm3310_vm4, %v3271_v8, %v15613_v39  ;;  %v15349_v55 = vmax.f32 %v12393_v53, 0.0  ;;  %v12426_v37 = vpop.permute.xlu1 %8867  ;;  %v3523_v8 = vsel %vm3310_vm4, %v3459_v35, %v15348_v33 }
 0x234   :  { %v1571_v36 = vadd.f32 %v11812_v15, %v1570_v57  ;;  %9037 = vrot.lane.b32.xlu0 %v9036_v32, %s9692_s21  ;;  %v8863_v42 = vpop.permute.xlu0 %8862  ;;  %v12437_v19 = vmax.f32 %v1579_v20, 0.0  ;;  %v12441_v32 = vpop.f32.mrf.mxu1  ;;  %v15617_v35 = vunpack.i.l.bf16 %v12426_v37 }
 0x235   :  { %v8865_v63 = vunpack.i.h.bf16 %v8863_v42  ;;  %v8864_v6 = vunpack.i.l.bf16 %v8863_v42  ;;  %v8357_v47 = vpop.f32.mrf.mxu0  ;;  %v9041_v17 = vpack.i.bf16 %v15349_v55, %v15350_v27  ;;  %15616 = vst [vmem:[#allocation39_spill] sm:$0xff] %v12441_v32  ;;  %v8859_v42 = vunpack.i.l.bf16 %v12399_v24 }
 0x236   :  { %15614 = vst [vmem:[#allocation36_spill] sm:$0xff] %v12437_v19  ;;  %v12439_v57 = vmax.f32 %v1571_v36, 0.0  ;;  %v12444_v39 = vadd.f32 %v11812_v15, %v8357_v47  ;;  %v3524_v33 = vsel %vm3310_vm4, %v3460_v18, %v15617_v35  ;;  %v4004_v27 = vpop.f32.mrf.mxu1 }
 0x237   :  { %v1583_v48 = vpop.f32.mrf.mxu0  ;;  %v3394_v58 = vsel %vm3368_vm5, %v3329_v38, %v8864_v6  ;;  %v3587_v55 = vsel %vm3368_vm5, %v3523_v8, %v8865_v63  ;;  %v3393_v38 = vsel %vm3368_vm5, %v3328_v40, %v10886_v11  ;;  %v15618_v6 = vld [vmem:[#allocation46_spill] sm:$0xff]  ;;  %v3588_v27 = vsel %vm3368_vm5, %v3524_v33, %v8859_v42 }
 0x238   :  { %15615 = vst [vmem:[#allocation38_spill] sm:$0xff] %v12439_v57  ;;  %v9046_v20 = vpack.i.bf16 %v12437_v19, %v12439_v57  ;;  %v12456_v47 = vadd.f32 %v11812_v15, %v1583_v48  ;;  %v12458_v32 = vpop.permute.xlu1 %8872  ;;  %9042 = vrot.lane.b32.xlu0 %v9041_v17, %s9694_s24  ;;  %v12465_v18 = vadd.f32 %v11812_v15, %v15618_v6  ;;  %v15619_v63 = vld [vmem:[#allocation30_spill] sm:$0xff]  ;;  %v15620_v48 = vld [vmem:[#allocation29_spill] sm:$0xff]  ;;  %v12472_v57 = vpop.f32.mrf.mxu1  ;;  %v15622_v6 = vunpack.i.l.bf16 %v12042_v5 }
 0x239   :  { %v3273_v8 = vsel %vm3252_vm3, %v15619_v63, %v8834_v13  ;;  %v8358_v35 = vpop.f32.mrf.mxu0  ;;  %v3661_v36 = vpack.c.bf16 %v3394_v58, %v3393_v38  ;;  %v3274_v19 = vsel %vm3252_vm3, %v15620_v48, %v8830_v14  ;;  %15621 = vst [vmem:[#allocation40_spill] sm:$0xff] %v12472_v57  ;;  %v3665_v40 = vpack.c.bf16 %v3588_v27, %v3587_v55  ;;  %v15664_v48 = vld [vmem:[#allocation54_spill] sm:$0xff] }
 0x23a   :  { %v1595_v17 = vadd.f32 %v11812_v15, %v8358_v35  ;;  %9047 = vrot.lane.b32.xlu1 %v9046_v20, %s9695_s30  ;;  %v3330_v56 = vsel %vm3310_vm4, %v3272_v1, %v15622_v6  ;;  %v15623_v13 = vmax.f32 %v12341_v34, 0.0  ;;  %v15624_v33 = vmax.f32 %v12345_v25, 0.0  ;;  %v4007_v34 = vpop.f32.mrf.mxu1 }
 0x23b   :  { %v8860_v14 = vunpack.i.h.bf16 %v12399_v24  ;;  %4097 = vmatmul.mubr.bf16.gmra.mxu1 %v3661_v36  ;;  %v1586_v35 = vpop.f32.mrf.mxu0  ;;  %v15625_v55 = vmax.f32 %v12444_v39, 0.0  ;;  %v15626_v20 = vmax.f32 %v12255_v46, 0.0  ;;  %v15357_v1 = vmax.f32 %v12456_v47, 0.0 }
 0x23c   :  { %v3462_v58 = vsel %vm3252_vm3, %v15623_v13, %v8829_v7  ;;  %v3461_v42 = vsel %vm3252_vm3, %v15624_v33, %v8835_v60  ;;  %v1587_v7 = vadd.f32 %v11812_v15, %v1586_v35  ;;  %4104 = vmatprep.mubr.bf16.mxu1 %v3665_v40  ;;  %v15627_v60 = vunpack.i.h.bf16 %v12042_v5  ;;  %v12498_v38 = vpop.permute.xlu0 %8882  ;;  %v12505_v35 = vpop.f32.mrf.mxu1 }
 0x23d   :  { %v9051_v27 = vpack.i.bf16 %v15626_v20, %v15625_v55  ;;  %v8878_v25 = vpop.permute.xlu1 %8877  ;;  %v8839_v6 = vunpack.i.l.bf16 %v12313_v0  ;;  %v8845_v36 = vunpack.i.h.bf16 %v12337_v3  ;;  %v8361_v46 = vpop.f32.mrf.mxu0  ;;  %v12500_v55 = vmax.f32 %v1595_v17, 0.0  ;;  %15630 = vst [vmem:[#allocation45_spill] sm:$0xff] %v12505_v35 }
 0x23e   :  { %v3331_v24 = vsel %vm3310_vm4, %v3273_v8, %v15627_v60  ;;  %v8880_v13 = vunpack.i.h.bf16 %v8878_v25  ;;  %v8879_v33 = vunpack.i.l.bf16 %v8878_v25  ;;  %v12502_v20 = vmax.f32 %v1587_v7, 0.0 }
 0x23f   :  { %15628 = vst [vmem:[#allocation41_spill] sm:$0xff] %v12500_v55  ;;  %v12508_v5 = vadd.f32 %v11812_v15, %v8361_v46  ;;  %9052 = vrot.lane.b32.xlu1 %v9051_v27, %s9694_s24  ;;  %v8844_v8 = vunpack.i.l.bf16 %v12337_v3  ;;  %v1599_v34 = vpop.f32.mrf.mxu0  ;;  %v3395_v25 = vsel %vm3368_vm5, %v3330_v56, %v8860_v14  ;;  %v15631_v17 = vunpack.i.h.bf16 %v12426_v37  ;;  %v4012_v3 = vpop.f32.mrf.mxu1  ;;  %v15637_v27 = vld [vmem:[#allocation32_spill] sm:$0xff] }
 0x240   :  { %15629 = vst [vmem:[#allocation42_spill] sm:$0xff] %v12502_v20  ;;  %v3396_v60 = vsel %vm3368_vm5, %v3331_v24, %v8879_v33  ;;  %v15632_v40 = vmax.f32 %v12266_v9, 0.0  ;;  %v9061_v46 = vpack.i.bf16 %v12500_v55, %v12502_v20  ;;  %v12525_v35 = vadd.f32 %v11812_v15, %v1599_v34  ;;  %v12528_v14 = vpop.permute.xlu0 %8887 }
 0x241   :  { %v3525_v7 = vsel %vm3310_vm4, %v3461_v42, %v15631_v17  ;;  %v8874_v56 = vunpack.i.l.bf16 %v12458_v32  ;;  %v8362_v24 = vpop.f32.mrf.mxu0  ;;  %v3664_v42 = vpack.c.bf16 %v3396_v60, %v3395_v25  ;;  %v15633_v9 = vunpack.i.l.bf16 %v12498_v38  ;;  %v12538_v34 = vpop.f32.mrf.mxu1 }
 0x242   :  { %v9056_v57 = vpack.i.bf16 %v15357_v1, %v15632_v40  ;;  %v3589_v40 = vsel %vm3368_vm5, %v3525_v7, %v8880_v13  ;;  %v1994_v17 = vmax.f32 %v12465_v18, 0.0  ;;  %v15634_v1 = vmax.f32 %v12349_v50, 0.0  ;;  %15635 = vst [vmem:[#allocation46_spill] sm:$0xff] %v12538_v34  ;;  %9062 = vrot.lane.b32.xlu0 %v9061_v46, %s9695_s30 }
 0x243   :  { %v3526_v33 = vsel %vm3310_vm4, %v3462_v58, %v15633_v9  ;;  %v15636_v25 = vunpack.i.l.bf16 %v12124_v21  ;;  %v3275_v58 = vsel %vm3252_vm3, %v15637_v27, %v8844_v8  ;;  %v1611_v18 = vadd.f32 %v11812_v15, %v8362_v24  ;;  %4105 = vmatmul.mubr.bf16.gmra.mxu1 %v3664_v42  ;;  %v1602_v50 = vpop.f32.mrf.mxu0  ;;  %v4015_v9 = vpop.f32.mrf.mxu1 }
 0x244   :  { %v3464_v3 = vsel %vm3252_vm3, %v15634_v1, %v8839_v6  ;;  %9057 = vrot.lane.b32.xlu1 %v9056_v57, %s9694_s24  ;;  %v3590_v1 = vsel %vm3368_vm5, %v3526_v33, %v8874_v56  ;;  %v15638_v6 = vmax.f32 %v12508_v5, 0.0  ;;  %v15639_v57 = vmax.f32 %v12281_v23, 0.0  ;;  %v12556_v8 = vpop.permute.xlu1 %8897  ;;  %v8893_v33 = vpop.permute.xlu0 %8892 }
 0x245   :  { %v3332_v60 = vsel %vm3310_vm4, %v3274_v19, %v15636_v25  ;;  %v15359_v46 = vmax.f32 %v12525_v35, 0.0  ;;  %v1603_v19 = vadd.f32 %v11812_v15, %v1602_v50  ;;  %v3668_v25 = vpack.c.bf16 %v3590_v1, %v3589_v40  ;;  %v8365_v34 = vpop.f32.mrf.mxu0  ;;  %v12565_v9 = vpop.f32.mrf.mxu1 }
 0x246   :  { %v9066_v7 = vpack.i.bf16 %v15639_v57, %v15638_v6  ;;  %v3463_v13 = vsel %vm3252_vm3, %v1994_v17, %v8845_v36  ;;  %v8875_v24 = vunpack.i.h.bf16 %v12458_v32  ;;  %v12560_v42 = vmax.f32 %v1611_v18, 0.0  ;;  %15642 = vst [vmem:[#allocation61_spill] sm:$0xff] %v12565_v9 }
 0x247   :  { %v15358_v56 = vunpack.i.l.bf16 %v12556_v8  ;;  %v12563_v23 = vmax.f32 %v1603_v19, 0.0  ;;  %4112 = vmatprep.mubr.bf16.mxu1 %v3668_v25  ;;  %v8895_v6 = vunpack.i.h.bf16 %v8893_v33  ;;  %v8894_v57 = vunpack.i.l.bf16 %v8893_v33  ;;  %v1615_v36 = vpop.f32.mrf.mxu0  ;;  %v4020_v33 = vpop.f32.mrf.mxu1 }
 0x248   :  { %15640 = vst [vmem:[#allocation59_spill] sm:$0xff] %v12560_v42  ;;  %v12568_v40 = vadd.f32 %v11812_v15, %v8365_v34  ;;  %9067 = vrot.lane.b32.xlu0 %v9066_v7, %s9694_s24  ;;  %v8889_v32 = vunpack.i.l.bf16 %v12528_v14  ;;  %v15643_v17 = vunpack.i.h.bf16 %v12124_v21  ;;  %v15644_v50 = vunpack.i.h.bf16 %v12498_v38 }
 0x249   :  { %15641 = vst [vmem:[#allocation60_spill] sm:$0xff] %v12563_v23  ;;  %v3528_v19 = vsel %vm3310_vm4, %v3464_v3, %v15358_v56  ;;  %v15645_v34 = vmax.f32 %v12289_v51, 0.0  ;;  %v9076_v25 = vpack.i.bf16 %v12560_v42, %v12563_v23  ;;  %v12601_v56 = vpop.f32.mrf.mxu1  ;;  %v15663_v27 = vmax.f32 %v12393_v53, 0.0  ;;  %v15667_v42 = vld [vmem:[#allocation33_spill] sm:$0xff]  ;;  %v15668_v23 = vld [vmem:[#allocation16_spill] sm:$0xff] }
 0x24a   :  { %v3333_v18 = vsel %vm3310_vm4, %v3275_v58, %v15643_v17  ;;  %v3527_v1 = vsel %vm3310_vm4, %v3463_v13, %v15644_v50  ;;  %v15361_v21 = vmax.f32 %v12568_v40, 0.0  ;;  %v12589_v58 = vadd.f32 %v11812_v15, %v1615_v36  ;;  %v12591_v17 = vpop.f32.mrf.mxu0  ;;  %15647 = vst [vmem:[#allocation63_spill] sm:$0xff] %v12601_v56 }
 0x24b   :  { %v9071_v7 = vpack.i.bf16 %v15359_v46, %v15645_v34  ;;  %v3397_v13 = vsel %vm3368_vm5, %v3332_v60, %v8875_v24  ;;  %v3398_v3 = vsel %vm3368_vm5, %v3333_v18, %v8894_v57  ;;  %v3591_v51 = vsel %vm3368_vm5, %v3527_v1, %v8895_v6  ;;  %9077 = vrot.lane.b32.xlu1 %v9076_v25, %s9695_s30  ;;  %v12610_v57 = vpop.permute.xlu0 %8902 }
 0x24c   :  { %v3592_v50 = vsel %vm3368_vm5, %v3528_v19, %v8889_v32  ;;  %v12599_v34 = vadd.f32 %v11812_v15, %v12214_v26  ;;  %v3667_v36 = vpack.c.bf16 %v3398_v3, %v3397_v13  ;;  %v1618_v33 = vpop.f32.mrf.mxu0  ;;  %v15648_v60 = vmax.f32 %v12311_v30, 0.0  ;;  %v4023_v15 = vpop.f32.mrf.mxu1  ;;  %v12615_v26 = vld [vmem:[%s15208_s2] ss:$0 sm:$0xff] }
 0x24d   :  { %9072 = vrot.lane.b32.xlu0 %v9071_v7, %s9694_s24  ;;  %v3671_v46 = vpack.c.bf16 %v3592_v50, %v3591_v51  ;;  %v15362_v6 = vmax.f32 %v12589_v58, 0.0  ;;  %v1619_v32 = vadd.f32 %v12615_v26, %v1618_v33  ;;  %v15652_v7 = vmax.f32 %v12317_v10, 0.0 }
 0x24e   :  { %15646 = vst [vmem:[#allocation62_spill] sm:$0xff] %v12599_v34  ;;  %v9081_v24 = vpack.i.bf16 %v15648_v60, %v15361_v21  ;;  %4113 = vmatmul.mubr.bf16.gmra.mxu1 %v3667_v36  ;;  %v12618_v18 = vpop.f32.mrf.mxu0  ;;  %v15360_v1 = vmax.f32 %v12599_v34, 0.0  ;;  %v15654_v60 = vmax.f32 %v12396_v62, 0.0  ;;  %v15657_v62 = vmax.f32 %v12198_v16, 0.0 }
 0x24f   :  { %4120 = vmatprep.mubr.bf16.mxu1 %v3671_v46  ;;  %15649 = vst [vmem:[#allocation64_spill] sm:$0xff] %v12618_v18  ;;  %v12621_v30 = vmax.f32 %v1619_v32, 0.0  ;;  %v9086_v25 = vpack.i.bf16 %v15362_v6, %v15652_v7  ;;  %v12633_v3 = vpop.permute.xlu0 %8907  ;;  %v1376_v63 = vadd.f32 %v12615_v26, %v15664_v48  ;;  %v12708_v48 = vadd.f32 %v12615_v26, %v15667_v42 }
 0x250   :  { %9082 = vrot.lane.b32.xlu1 %v9081_v24, %s9694_s24  ;;  %v12624_v19 = vpop.f32.mrf.mxu0 }
 0x251   :  { %15650 = vst [vmem:[#allocation65_spill] sm:$0xff] %v12621_v30  ;;  %15651 = vst [vmem:[#allocation66_spill] sm:$0xff] %v12624_v19  ;;  %v9091_v13 = vpack.i.bf16 %v15360_v1, %v12621_v30  ;;  %v15665_v30 = vld [vmem:[#allocation44_spill] sm:$0xff]  ;;  %v15675_v19 = vmax.f32 %v12444_v39, 0.0 }
 0x252   :  { %v8370_v46 = vpop.f32.mrf.mxu0  ;;  %v12646_v32 = vpop.permute.xlu1 %8917  ;;  %v1400_v53 = vadd.f32 %v12615_v26, %v15665_v30  ;;  %v2014_v30 = vmax.f32 %v1376_v63, 0.0 }
 0x253   :  { %v1643_v51 = vadd.f32 %v12615_v26, %v8370_v46  ;;  %9092 = vrot.lane.b32.xlu0 %v9091_v13, %s9695_s30  ;;  %v9369_v13 = vld [vmem:[%s15207_s3 + $0x80] sm:$0xff]  }
 0x254   :  { %9087 = vrot.lane.b32.xlu1 %v9086_v25, %s9694_s24  ;;  %v1634_v50 = vpop.f32.mrf.mxu0  ;;  %v12650_v46 = vpop.f32.mrf.mxu1  ;;  %8433 = vmatprep.subr.bf16.mxu1 %v9369_v13 }
 0x255   :  { %v2081_v36 = vmax.f32 %v1643_v51, 0.0  ;;  %v12639_v10 = vadd.f32 %v12615_v26, %v1634_v50  ;;  %15656 = vst [vmem:[#allocation69_spill] sm:$0xff] %v12650_v46  ;;  %v12652_v25 = vpop.permute.xlu0 %8912  ;;  %8434 = vmatpush3.bf16.msra.mxu1 %v9369_v13 }
 0x256   :  { %v12641_v33 = vpop.f32.mrf.mxu0  ;;  %v4028_v50 = vpop.f32.mrf.mxu1  ;;  %v8915_v63 = vunpack.i.h.bf16 %v12652_v25  ;;  %v8914_v59 = vunpack.i.l.bf16 %v12652_v25 }
 0x257   :  { %15653 = vst [vmem:[#allocation67_spill] sm:$0xff] %v12641_v33  ;;  %v9096_v24 = vpack.i.bf16 %v15654_v60, %v2081_v36  ;;  %v15363_v15 = vmax.f32 %v12639_v10, 0.0  ;;  %v2020_v33 = vmax.f32 %v1400_v53, 0.0 }
 0x258   :  { %v12648_v7 = vpop.f32.mrf.mxu0  ;;  %v12667_v56 = vpop.f32.mrf.mxu1 }
 0x259   :  { %15655 = vst [vmem:[#allocation68_spill] sm:$0xff] %v12648_v7  ;;  %9097 = vrot.lane.b32.xlu1 %v9096_v24, %s9692_s21  ;;  %v9101_v60 = vpack.i.bf16 %v15363_v15, %v15657_v62  ;;  %v12665_v21 = vpop.permute.xlu1 %8927  ;;  %15658 = vst [vmem:[#allocation70_spill] sm:$0xff] %v12667_v56  ;;  %v12674_v62 = vpop.permute.xlu0 %8922  ;;  %v15662_v56 = vld [vmem:[#allocation43_spill] sm:$0xff] }
 0x25a   :  { %v8374_v51 = vpop.f32.mrf.mxu0  ;;  %v4031_v50 = vpop.f32.mrf.mxu1 }
 0x25b   :  { %v12663_v1 = vadd.f32 %v12615_v26, %v8374_v51  ;;  %v15660_v51 = vmax.f32 %v12456_v47, 0.0 }
 0x25c   :  { %v1650_v6 = vpop.f32.mrf.mxu0 }
 0x25d   :  { %v15365_v24 = vmax.f32 %v12663_v1, 0.0  ;;  %v1651_v9 = vadd.f32 %v12615_v26, %v1650_v6  ;;  %9102 = vrot.lane.b32.xlu1 %v9101_v60, %s9692_s21  ;;  %v12680_v34 = vpop.permute.xlu1 %8932  ;;  %v1384_v6 = vadd.f32 %v12615_v26, %v15662_v56  ;;  %v8905_v60 = vunpack.i.h.bf16 %v12610_v57 }
 0x25e   :  { %v12672_v16 = vpop.f32.mrf.mxu0  ;;  %v8934_v25 = vunpack.i.l.bf16 %v12680_v34 }
 0x25f   :  { %15659 = vst [vmem:[#allocation71_spill] sm:$0xff] %v12672_v16  ;;  %v9106_v15 = vpack.i.bf16 %v15660_v51, %v15365_v24  ;;  %v2083_v46 = vmax.f32 %v1651_v9, 0.0  ;;  %v8840_v9 = vunpack.i.h.bf16 %v12313_v0  ;;  %v2016_v0 = vmax.f32 %v1384_v6, 0.0  ;;  %v15669_v16 = vld [vmem:[#allocation18_spill] sm:$0xff] }
 0x260   :  { %v12682_v13 = vpop.f32.mrf.mxu0  ;;  %v12698_v56 = vpop.permute.xlu0 %8942  ;;  %v12722_v42 = vadd.f32 %v12615_v26, %v15669_v16  ;;  %v8910_v6 = vunpack.i.h.bf16 %v12633_v3 }
 0x261   :  { %15661 = vst [vmem:[#allocation72_spill] sm:$0xff] %v12682_v13  ;;  %v9111_v50 = vpack.i.bf16 %v2083_v46, %v15663_v27  ;;  %9107 = vrot.lane.b32.xlu1 %v9106_v15, %s9692_s21  ;;  %v9116_v51 = vpack.i.bf16 %v2083_v46, %v2081_v36  ;;  %v12695_v24 = vpop.permute.xlu1 %8937  ;;  %v15666_v27 = vld [vmem:[#allocation55_spill] sm:$0xff]  ;;  %v3278_v36 = vsel %vm3252_vm3, 0.0, %v8905_v60  ;;  %v8909_v46 = vunpack.i.l.bf16 %v12633_v3 }
 0x262   :  { %v12692_v47 = vpop.f32.mrf.mxu0  ;;  %v12704_v15 = vadd.f32 %v12615_v26, %v15666_v27  ;;  %v12718_v27 = vadd.f32 %v12615_v26, %v15668_v23  ;;  %v15671_v60 = vld [vmem:[#allocation31_spill] sm:$0xff]  ;;  %v8900_v3 = vunpack.i.h.bf16 %v12556_v8 }
 0x263   :  { %9112 = vrot.lane.b32.xlu0 %v9111_v50, %s9692_s21  ;;  %v3276_v13 = vsel %vm3252_vm3, %v15671_v60, %v8840_v9  ;;  %v8919_v60 = vunpack.i.l.bf16 %v12646_v32 }
 0x264   :  { %v1666_v55 = vpop.f32.mrf.mxu0  ;;  %v2018_v16 = vmax.f32 %v12704_v15, 0.0 }
 0x265   :  { %v12713_v50 = vadd.f32 %v12615_v26, %v1666_v55  ;;  %9117 = vrot.lane.b32.xlu1 %v9116_v51, %s9694_s24  ;;  %v8890_v55 = vunpack.i.h.bf16 %v12528_v14  ;;  %v8904_v51 = vunpack.i.l.bf16 %v12610_v57  ;;  %v12732_v7 = vpop.permute.xlu1 %8957  ;;  %v12734_v23 = vpop.permute.xlu0 %8947  ;;  %v15674_v14 = vld [vmem:[#allocation37_spill] sm:$0xff] }
 0x266   :  { %v12725_v20 = vpop.f32.mrf.mxu0  ;;  %v3277_v57 = vsel %vm3252_vm3, %v15674_v14, %v8909_v46 }
 0x267   :  { %15670 = vst [vmem:[#allocation43_spill] sm:$0xff] %v12725_v20  ;;  %v15673_v20 = vunpack.i.l.bf16 %v12374_v49  ;;  %v15676_v53 = vmax.f32 %v12713_v50, 0.0  ;;  %v3466_v39 = vsel %vm3252_vm3, %v2016_v0, %v8904_v51  ;;  %v15679_v51 = vld [vmem:[#allocation48_spill] sm:$0xff] }
 0x268   :  { %v12738_v18 = vpop.f32.mrf.mxu0 }
 0x269   :  { %15672 = vst [vmem:[#allocation54_spill] sm:$0xff] %v12738_v18  ;;  %v3336_v9 = vsel %vm3310_vm4, %v3278_v36, %v15673_v20  ;;  %v9121_v15 = vpack.i.bf16 %v15676_v53, %v15675_v19  ;;  %v3465_v18 = vsel %vm3252_vm3, %v2014_v30, %v8910_v6  ;;  %v15677_v20 = vunpack.i.l.bf16 %v12184_v44 }
 0x26a   :  { %v8382_v28 = vpop.f32.mrf.mxu0  ;;  %v8963_v2 = vpop.permute.xlu1 %8962  ;;  %v3335_v44 = vsel %vm3310_vm4, %v3277_v57, %v8900_v3  ;;  %v8960_v3 = vunpack.i.h.bf16 %v12732_v7 }
 0x26b   :  { %v3334_v36 = vsel %vm3310_vm4, %v3276_v13, %v15677_v20  ;;  %9122 = vrot.lane.b32.xlu0 %v9121_v15, %s9692_s21  ;;  %v12761_v19 = vpop.permute.xlu0 %8952  ;;  %v8964_v6 = vunpack.i.l.bf16 %v8963_v2  ;;  %v12768_v13 = vsel %vm3368_vm5, %v3336_v9, %v10886_v11  ;;  %v15678_v20 = vld [vmem:[#allocation47_spill] sm:$0xff]  ;;  %v3279_v15 = vsel %vm3252_vm3, %v15679_v51, %v8919_v60  ;;  %v15680_v11 = vld [vmem:[#allocation50_spill] sm:$0xff] }
 0x26c   :  { %v3399_v30 = vsel %vm3368_vm5, %v3334_v36, %v8890_v55  ;;  %v1682_v53 = vpop.f32.mrf.mxu0  ;;  %v12772_v0 = vsel %vm3252_vm3, %v15678_v20, %v8915_v63  ;;  %v3529_v55 = vsel %vm3310_vm4, %v3465_v18, %v10899_v22  ;;  %v3468_v36 = vsel %vm3252_vm3, %v2020_v33, %v8914_v59 }
 0x26d   :  { %v12777_v14 = vadd.f32 %v12615_v26, %v1682_v53  ;;  %v8965_v57 = vunpack.i.h.bf16 %v8963_v2  ;;  %v3400_v46 = vsel %vm3368_vm5, %v3335_v44, %v8964_v6  ;;  %v8920_v63 = vunpack.i.h.bf16 %v12646_v32 }
 0x26e   :  { %v8385_v9 = vpop.f32.mrf.mxu0  ;;  %v3670_v51 = vpack.c.bf16 %v3400_v46, %v3399_v30  ;;  %v3281_v18 = vsel %vm3252_vm3, %v15680_v11, %v8934_v25  ;;  %v12795_v59 = vadd.f32 %v12615_v26, %v12692_v47  ;;  %v15681_v32 = vunpack.i.h.bf16 %v12374_v49 }
 0x26f   :  { %v15384_v20 = vmax.f32 %v12777_v14, 0.0  ;;  %v12787_v60 = vadd.f32 %v12615_v26, %v8385_v9  ;;  %v12789_v53 = vpop.permute.xlu0 %8967  ;;  %v8959_v44 = vunpack.i.l.bf16 %v12732_v7  ;;  %v15682_v9 = vmax.f32 %v12508_v5, 0.0 }
 0x270   :  { %v15385_v2 = vunpack.i.l.bf16 %v12789_v53  ;;  %v1695_v33 = vpop.f32.mrf.mxu0  ;;  %v3337_v6 = vsel %vm3310_vm4, %v3279_v15, %v15681_v32  ;;  %4121 = vmatmul.mubr.bf16.gmra.mxu1 %v3670_v51  ;;  %v3593_v7 = vsel %vm3368_vm5, %v3529_v55, %v8965_v57  ;;  %v15683_v32 = vmax.f32 %v12639_v10, 0.0 }
 0x271   :  { %v9141_v46 = vpack.i.bf16 %v15384_v20, %v15682_v9  ;;  %v15386_v30 = vmax.f32 %v12787_v60, 0.0  ;;  %v12808_v25 = vadd.f32 %v12615_v26, %v1695_v33  ;;  %v3402_v5 = vsel %vm3368_vm5, %v3337_v6, %v8960_v3  ;;  %v8973_v20 = vpop.permute.xlu1 %8972 }
 0x272   :  { %v3530_v49 = vsel %vm3310_vm4, %v3466_v39, %v15385_v2  ;;  %v8386_v15 = vpop.f32.mrf.mxu0  ;;  %v3467_v39 = vsel %vm3252_vm3, %v2018_v16, %v8920_v63  ;;  %v8925_v55 = vunpack.i.h.bf16 %v12674_v62  ;;  %v8924_v3 = vunpack.i.l.bf16 %v12674_v62 }
 0x273   :  { %v9126_v9 = vpack.i.bf16 %v15683_v32, %v15386_v30  ;;  %v15388_v33 = vmax.f32 %v12808_v25, 0.0  ;;  %v1707_v51 = vadd.f32 %v12615_v26, %v8386_v15  ;;  %9142 = vrot.lane.b32.xlu1 %v9141_v46, %s9692_s21  ;;  %v3594_v47 = vsel %vm3368_vm5, %v3530_v49, %v8959_v44 }
 0x274   :  { %v1698_v57 = vpop.f32.mrf.mxu0  ;;  %v3674_v6 = vpack.c.bf16 %v3594_v47, %v3593_v7  ;;  %v8930_v10 = vunpack.i.h.bf16 %v12665_v21  ;;  %v1691_v32 = vadd.f32 %v12615_v26, %v8382_v28  ;;  %v15684_v44 = vunpack.i.h.bf16 %v12426_v37 }
 0x275   :  { %v1699_v2 = vadd.f32 %v12615_v26, %v1698_v57  ;;  %9127 = vrot.lane.b32.xlu0 %v9126_v9, %s9694_s24  ;;  %v12831_v15 = vpop.permute.xlu0 %8977  ;;  %v8974_v46 = vunpack.i.l.bf16 %v8973_v20  ;;  %v3673_v49 = vpack.c.bf16 %v3402_v5, %v12768_v13  ;;  %v15685_v28 = vunpack.i.h.bf16 %v12789_v53 }
 0x276   :  { %v3339_v16 = vsel %vm3310_vm4, %v3281_v18, %v15684_v44  ;;  %v15387_v62 = vunpack.i.l.bf16 %v12831_v15  ;;  %v8389_v47 = vpop.f32.mrf.mxu0  ;;  %4128 = vmatprep.mubr.bf16.mxu1 %v3674_v6  ;;  %v15686_v9 = vmax.f32 %v12371_v4, 0.0  ;;  %v12846_v30 = vmax.f32 %v1707_v51, 0.0 }
 0x277   :  { %v3531_v7 = vsel %vm3310_vm4, %v3467_v39, %v15685_v28  ;;  %v12848_v18 = vmax.f32 %v1699_v2, 0.0  ;;  %v8929_v44 = vunpack.i.l.bf16 %v12665_v21  ;;  %v8935_v63 = vunpack.i.h.bf16 %v12680_v34  ;;  %v15687_v39 = vld [vmem:[#allocation19_spill] sm:$0xff] }
 0x278   :  { %v9131_v57 = vpack.i.bf16 %v15388_v33, %v15686_v9  ;;  %v8975_v6 = vunpack.i.h.bf16 %v8973_v20  ;;  %v3532_v13 = vsel %vm3310_vm4, %v3468_v36, %v15387_v62  ;;  %v1711_v5 = vpop.f32.mrf.mxu0  ;;  %v12857_v4 = vadd.f32 %v12615_v26, %v15687_v39  ;;  %4129 = vmatmul.mubr.bf16.gmra.mxu1 %v3673_v49  ;;  %v15691_v33 = vld [vmem:[#allocation49_spill] sm:$0xff] }
 0x279   :  { %v2093_v28 = vmax.f32 %v1691_v32, 0.0  ;;  %v9151_v51 = vpack.i.bf16 %v12846_v30, %v12848_v18  ;;  %v15688_v21 = vunpack.i.l.bf16 %v12426_v37  ;;  %v8949_v20 = vunpack.i.l.bf16 %v12734_v23  ;;  %v8983_v37 = vpop.permute.xlu0 %8982 }
 0x27a   :  { %9132 = vrot.lane.b32.xlu0 %v9131_v57, %s9694_s24  ;;  %v8390_v36 = vpop.f32.mrf.mxu0  ;;  %v3595_v2 = vsel %vm3368_vm5, %v3531_v7, %v8974_v46  ;;  %v3596_v9 = vsel %vm3368_vm5, %v3532_v13, %v8975_v6  ;;  %v3404_v32 = vsel %vm3368_vm5, %v3339_v16, %v8925_v55  ;;  %v15689_v39 = vmax.f32 %v12795_v59, 0.0 }
 0x27b   :  { %v3338_v34 = vsel %vm3310_vm4, %v12772_v0, %v15688_v21  ;;  %v15690_v62 = vmax.f32 %v12525_v35, 0.0  ;;  %v12875_v49 = vadd.f32 %v12615_v26, %v1711_v5  ;;  %v1723_v0 = vadd.f32 %v12615_v26, %v8390_v36  ;;  %9152 = vrot.lane.b32.xlu1 %v9151_v51, %s9695_s30 }
 0x27c   :  { %v3677_v21 = vpack.c.bf16 %v3596_v9, %v3595_v2  ;;  %v3282_v46 = vsel %vm3252_vm3, %v15691_v33, %v8930_v10  ;;  %v15692_v7 = vmax.f32 %v12708_v48, 0.0  ;;  %v15693_v16 = vmax.f32 %v12718_v27, 0.0  ;;  %v1714_v6 = vpop.f32.mrf.mxu0  ;;  %v15696_v27 = vld [vmem:[#allocation52_spill] sm:$0xff]  ;;  %v15729_v33 = vld [vmem:[#allocation25_spill] sm:$0xff] }
 0x27d   :  { %v9136_v57 = vpack.i.bf16 %v15690_v62, %v15689_v39  ;;  %v12887_v62 = vpop.f32.mrf.mxu1  ;;  %v3403_v13 = vsel %vm3368_vm5, %v3338_v34, %v8924_v3  ;;  %v15695_v5 = vmax.f32 %v12589_v58, 0.0  ;;  %v15390_v36 = vunpack.i.h.bf16 %v12831_v15 }
 0x27e   :  { %v3470_v55 = vsel %vm3252_vm3, %v15692_v7, %v8929_v44  ;;  %v3469_v35 = vsel %vm3252_vm3, %v15693_v16, %v8935_v63  ;;  %15694 = vst [vmem:[#allocation44_spill] sm:$0xff] %v12887_v62  ;;  %v12894_v10 = vadd.f32 %v12615_v26, %v8389_v47  ;;  %v1715_v48 = vadd.f32 %v12615_v26, %v1714_v6  ;;  %v12897_v44 = vpop.permute.xlu1 %8987 }
 0x27f   :  { %v9156_v51 = vpack.i.bf16 %v15695_v5, %v2093_v28  ;;  %4136 = vmatprep.mubr.bf16.mxu1 %v3677_v21  ;;  %9137 = vrot.lane.b32.xlu0 %v9136_v57, %s9692_s21  ;;  %v3283_v63 = vsel %vm3252_vm3, %v15696_v27, %v8949_v20  ;;  %v8984_v2 = vunpack.i.l.bf16 %v8983_v37  ;;  %v15389_v3 = vunpack.i.l.bf16 %v12897_v44  ;;  %v4036_v58 = vpop.f32.mrf.mxu1  ;;  %v8393_v28 = vpop.f32.mrf.mxu0 }
 0x280   :  { %v3676_v34 = vpack.c.bf16 %v3404_v32, %v3403_v13  ;;  %v15697_v9 = vmax.f32 %v12663_v1, 0.0  ;;  %v15698_v47 = vmax.f32 %v12713_v50, 0.0  ;;  %v15398_v21 = vmax.f32 %v12875_v49, 0.0 }
 0x281   :  { %v12908_v7 = vmax.f32 %v1723_v0, 0.0  ;;  %v12910_v16 = vmax.f32 %v1715_v48, 0.0  ;;  %9157 = vrot.lane.b32.xlu1 %v9156_v51, %s9692_s21  ;;  %v8940_v20 = vunpack.i.h.bf16 %v12695_v24  ;;  %v8939_v57 = vunpack.i.l.bf16 %v12695_v24  ;;  %v12918_v32 = vpop.f32.mrf.mxu1  ;;  %v1727_v50 = vpop.f32.mrf.mxu0 }
 0x282   :  { %v9146_v39 = vpack.i.bf16 %v15698_v47, %v15697_v9  ;;  %v8985_v6 = vunpack.i.h.bf16 %v8983_v37  ;;  %v3534_v1 = vsel %vm3310_vm4, %v3470_v55, %v15389_v3  ;;  %15700 = vst [vmem:[#allocation33_spill] sm:$0xff] %v12918_v32  ;;  %v3533_v0 = vsel %vm3310_vm4, %v3469_v35, %v15390_v36  ;;  %4137 = vmatmul.mubr.bf16.gmra.mxu1 %v3676_v34 }
 0x283   :  { %15699 = vst [vmem:[#allocation55_spill] sm:$0xff] %v12908_v7  ;;  %v15396_v13 = vmax.f32 %v12894_v10, 0.0  ;;  %v9166_v5 = vpack.i.bf16 %v12908_v7, %v12910_v16  ;;  %v15701_v24 = vunpack.i.h.bf16 %v12498_v38  ;;  %v8944_v55 = vunpack.i.l.bf16 %v12698_v56  ;;  %v4039_v48 = vpop.f32.mrf.mxu1  ;;  %v8394_v58 = vpop.f32.mrf.mxu0 }
 0x284   :  { %9147 = vrot.lane.b32.xlu0 %v9146_v39, %s9694_s24  ;;  %v12932_v51 = vadd.f32 %v12615_v26, %v1727_v50  ;;  %v3597_v35 = vsel %vm3368_vm5, %v3533_v0, %v8984_v2  ;;  %v3598_v9 = vsel %vm3368_vm5, %v3534_v1, %v8985_v6  ;;  %v12941_v47 = vadd.f32 %v12615_v26, %v8393_v28 }
 0x285   :  { %v3341_v37 = vsel %vm3310_vm4, %v3283_v63, %v15701_v24  ;;  %v9161_v34 = vpack.i.bf16 %v15396_v13, %v15398_v21  ;;  %v8993_v63 = vpop.permute.xlu1 %8992  ;;  %v1739_v39 = vadd.f32 %v12615_v26, %v8394_v58  ;;  %9167 = vrot.lane.b32.xlu1 %v9166_v5, %s9695_s30  ;;  %v3680_v50 = vpack.c.bf16 %v3598_v9, %v3597_v35  ;;  %v12947_v0 = vpop.f32.mrf.mxu1 }
 0x286   :  { %v2026_v24 = vmax.f32 %v12857_v4, 0.0  ;;  %v8950_v2 = vunpack.i.h.bf16 %v12734_v23  ;;  %15702 = vst [vmem:[#allocation16_spill] sm:$0xff] %v12947_v0  ;;  %v1730_v6 = vpop.f32.mrf.mxu0  ;;  %v15703_v1 = vunpack.i.l.bf16 %v12498_v38  ;;  %v3406_v28 = vsel %vm3368_vm5, %v3341_v37, %v8940_v20  ;;  %v12961_v35 = vpop.permute.xlu0 %8997 }
 0x287   :  { %v15704_v3 = vmax.f32 %v12795_v59, 0.0  ;;  %v15705_v58 = vmax.f32 %v12777_v14, 0.0  ;;  %v15393_v5 = vunpack.i.h.bf16 %v12897_v44  ;;  %v15394_v4 = vmax.f32 %v12932_v51, 0.0  ;;  %4144 = vmatprep.mubr.bf16.mxu1 %v3680_v50  ;;  %v4044_v14 = vpop.f32.mrf.mxu1 }
 0x288   :  { %v3340_v48 = vsel %vm3310_vm4, %v3282_v46, %v15703_v1  ;;  %v1731_v23 = vadd.f32 %v12615_v26, %v1730_v6  ;;  %9162 = vrot.lane.b32.xlu0 %v9161_v34, %s9694_s24  ;;  %v15706_v38 = vmax.f32 %v12722_v42, 0.0  ;;  %v8994_v20 = vunpack.i.l.bf16 %v8993_v63 }
 0x289   :  { %v9171_v36 = vpack.i.bf16 %v15705_v58, %v15704_v3  ;;  %v15397_v59 = vunpack.i.l.bf16 %v12961_v35  ;;  %v8397_v3 = vpop.f32.mrf.mxu0  ;;  %v3405_v37 = vsel %vm3368_vm5, %v3340_v48, %v8939_v57  ;;  %v15395_v9 = vmax.f32 %v12941_v47, 0.0  ;;  %v12981_v57 = vpop.f32.mrf.mxu1 }
 0x28a   :  { %v3472_v46 = vsel %vm3252_vm3, %v15706_v38, %v8944_v55  ;;  %v12969_v1 = vmax.f32 %v1739_v39, 0.0  ;;  %v12971_v50 = vmax.f32 %v1731_v23, 0.0  ;;  %v3679_v34 = vpack.c.bf16 %v3406_v28, %v3405_v37  ;;  %15709 = vst [vmem:[#allocation73_spill] sm:$0xff] %v12981_v57  ;;  %v13004_v14 = vpop.permute.xlu1 %9002 }
 0x28b   :  { %9172 = vrot.lane.b32.xlu1 %v9171_v36, %s9694_s24  ;;  %v3471_v42 = vsel %vm3252_vm3, %v2026_v24, %v8950_v2  ;;  %v8995_v6 = vunpack.i.h.bf16 %v8993_v63  ;;  %v3536_v55 = vsel %vm3310_vm4, %v3472_v46, %v15397_v59  ;;  %v12979_v58 = vadd.f32 %v12615_v26, %v8397_v3  ;;  %v1743_v48 = vpop.f32.mrf.mxu0  ;;  %v4047_v2 = vpop.f32.mrf.mxu1 }
 0x28c   :  { %15707 = vst [vmem:[#allocation18_spill] sm:$0xff] %v12969_v1  ;;  %15708 = vst [vmem:[#allocation19_spill] sm:$0xff] %v12971_v50  ;;  %v3535_v39 = vsel %vm3310_vm4, %v3471_v42, %v15393_v5  ;;  %v9176_v36 = vpack.i.bf16 %v15395_v9, %v15394_v4  ;;  %v9181_v63 = vpack.i.bf16 %v12969_v1, %v12971_v50  ;;  %4145 = vmatmul.mubr.bf16.gmra.mxu1 %v3679_v34  ;;  %v15713_v2 = vld [vmem:[#allocation51_spill] sm:$0xff]  ;;  %v15715_v5 = vld [vmem:[#allocation53_spill] sm:$0xff] }
 0x28d   :  { %v12993_v24 = vadd.f32 %v12615_v26, %v1743_v48  ;;  %v12995_v28 = vpop.f32.mrf.mxu0  ;;  %v3599_v23 = vsel %vm3368_vm5, %v3535_v39, %v8994_v20  ;;  %v3600_v38 = vsel %vm3368_vm5, %v3536_v55, %v8995_v6  ;;  %v13001_v46 = vadd.f32 %v12615_v26, %v12591_v17  ;;  %v13010_v20 = vpop.f32.mrf.mxu1 }
 0x28e   :  { %9182 = vrot.lane.b32.xlu0 %v9181_v63, %s9695_s30  ;;  %v3683_v3 = vpack.c.bf16 %v3600_v38, %v3599_v23  ;;  %v8945_v37 = vunpack.i.h.bf16 %v12698_v56  ;;  %v15391_v34 = vmax.f32 %v12979_v58, 0.0  ;;  %15711 = vst [vmem:[#allocation75_spill] sm:$0xff] %v13010_v20  ;;  %v13022_v63 = vpop.permute.xlu1 %9007  ;;  %v8954_v38 = vunpack.i.l.bf16 %v12761_v19 }
 0x28f   :  { %15710 = vst [vmem:[#allocation74_spill] sm:$0xff] %v13001_v46  ;;  %9177 = vrot.lane.b32.xlu1 %v9176_v36, %s9694_s24  ;;  %v15392_v42 = vmax.f32 %v12993_v24, 0.0  ;;  %v1746_v6 = vpop.f32.mrf.mxu0  ;;  %v4052_v48 = vpop.f32.mrf.mxu1  ;;  %v15399_v56 = vmax.f32 %v13001_v46, 0.0  ;;  %v9010_v32 = vunpack.i.h.bf16 %v13022_v63  ;;  %v15726_v46 = vmax.f32 %v12894_v10, 0.0 }
 0x290   :  { %v1747_v55 = vadd.f32 %v12615_v26, %v1746_v6  ;;  %4152 = vmatprep.mubr.bf16.mxu1 %v3683_v3  ;;  %v3284_v23 = vsel %vm3252_vm3, %v15713_v2, %v8945_v37  ;;  %v9009_v3 = vunpack.i.l.bf16 %v13022_v63 }
 0x291   :  { %v9186_v17 = vpack.i.bf16 %v15391_v34, %v15392_v42  ;;  %v13017_v39 = vpop.f32.mrf.mxu0  ;;  %v13029_v6 = vpop.f32.mrf.mxu1  ;;  %v9000_v34 = vunpack.i.h.bf16 %v12961_v35  ;;  %v8955_v42 = vunpack.i.h.bf16 %v12761_v19 }
 0x292   :  { %v13020_v36 = vmax.f32 %v1747_v55, 0.0  ;;  %15714 = vst [vmem:[#allocation77_spill] sm:$0xff] %v13029_v6  ;;  %v3285_v37 = vsel %vm3252_vm3, %v15715_v5, %v9009_v3  ;;  %v15730_v5 = vld [vmem:[#allocation21_spill] sm:$0xff] }
 0x293   :  { %9187 = vrot.lane.b32.xlu0 %v9186_v17, %s9694_s24  ;;  %v13031_v48 = vpop.f32.mrf.mxu0  ;;  %v4055_v4 = vpop.f32.mrf.mxu1  ;;  %v15716_v17 = vunpack.i.l.bf16 %v12556_v8  ;;  %v3343_v21 = vsel %vm3310_vm4, %v3285_v37, %v9000_v34  ;;  %v15717_v34 = vmax.f32 %v12808_v25, 0.0 }
 0x294   :  { %15712 = vst [vmem:[#allocation76_spill] sm:$0xff] %v13020_v36  ;;  %v9191_v55 = vpack.i.bf16 %v15399_v56, %v13020_v36  ;;  %v3408_v19 = vsel %vm3368_vm5, %v3343_v21, %v8955_v42  ;;  %v9370_v4 = vld [vmem:[%s15209_s5 + $0x118] sm:$0xff]  }
 0x295   :  { %v8402_v9 = vpop.f32.mrf.mxu0  ;;  %v3342_v59 = vsel %vm3310_vm4, %v3284_v23, %v15716_v17  ;;  %8499 = vmatprep.subr.bf16.mxu0 %v9370_v4  ;;  %v13066_v23 = vpop.permute.xlu0 %9012 }
 0x296   :  { %v13041_v13 = vadd.f32 %v12615_v26, %v8402_v9  ;;  %9192 = vrot.lane.b32.xlu1 %v9191_v55, %s9695_s30  ;;  %v3407_v56 = vsel %vm3368_vm5, %v3342_v59, %v8954_v38  ;;  %8500 = vmatpush3.bf16.msra.mxu0 %v9370_v4 }
 0x297   :  { %v1762_v20 = vpop.f32.mrf.mxu0  ;;  %v3682_v55 = vpack.c.bf16 %v3408_v19, %v3407_v56  ;;  %v15718_v56 = vmax.f32 %v12568_v40, 0.0  ;;  %v1504_v40 = vadd.f32 %v12615_v26, %v12245_v61 }
 0x298   :  { %v15400_v9 = vmax.f32 %v13041_v13, 0.0  ;;  %v13055_v3 = vadd.f32 %v12615_v26, %v1762_v20 }
 0x299   :  { %v13057_v8 = vpop.f32.mrf.mxu0  ;;  %4153 = vmatmul.mubr.bf16.gmra.mxu1 %v3682_v55  ;;  %v1512_v55 = vadd.f32 %v12615_v26, %v12233_v31  ;;  %v13100_v31 = vadd.f32 %v12615_v26, %v12275_v52 }
 0x29a   :  { %v9196_v59 = vpack.i.bf16 %v15717_v34, %v15400_v9  ;;  %v15401_v21 = vmax.f32 %v13055_v3, 0.0  ;;  %v13087_v34 = vpop.permute.xlu0 %9017 }
 0x29b   :  { %v13064_v42 = vpop.f32.mrf.mxu0  ;;  %v2048_v9 = vmax.f32 %v1512_v55, 0.0  ;;  %v13118_v55 = vadd.f32 %v12615_v26, %v12292_v41 }
 0x29c   :  { %9197 = vrot.lane.b32.xlu0 %v9196_v59, %s9692_s21  ;;  %v9201_v38 = vpack.i.bf16 %v15401_v21, %v15718_v56  ;;  %v15720_v59 = vmax.f32 %v12875_v49, 0.0  ;;  %v2046_v21 = vmax.f32 %v1504_v40, 0.0  ;;  %v9005_v49 = vunpack.i.h.bf16 %v13004_v14 }
 0x29d   :  { %v8406_v20 = vpop.f32.mrf.mxu0  ;;  %v2056_v57 = vmax.f32 %v13118_v55, 0.0 }
 0x29e   :  { %v13074_v37 = vadd.f32 %v12615_v26, %v8406_v20  ;;  %v3286_v41 = vsel %vm3252_vm3, 0.0, %v9005_v49  ;;  %v9004_v49 = vunpack.i.l.bf16 %v13004_v14  ;;  %v9014_v14 = vunpack.i.l.bf16 %v13066_v23 }
 0x29f   :  { %v1778_v25 = vpop.f32.mrf.mxu0  ;;  %v3473_v2 = vsel %vm3252_vm3, %v2046_v21, %v9010_v32 }
 0x2a0   :  { %v15402_v17 = vmax.f32 %v13074_v37, 0.0  ;;  %v13078_v19 = vadd.f32 %v12615_v26, %v1778_v25  ;;  %9202 = vrot.lane.b32.xlu0 %v9201_v38, %s9692_s21  ;;  %v1528_v38 = vadd.f32 %v12615_v26, %v12268_v12 }
 0x2a1   :  { %v13081_v4 = vpop.f32.mrf.mxu0 }
 0x2a2   :  { %15719 = vst [vmem:[#allocation78_spill] sm:$0xff] %v13081_v4  ;;  %v9206_v20 = vpack.i.bf16 %v15720_v59, %v15402_v17  ;;  %v15403_v56 = vmax.f32 %v13078_v19, 0.0  ;;  %v13106_v59 = vpop.permute.xlu1 %9022  ;;  %v15722_v17 = vmax.f32 %v12787_v60, 0.0  ;;  %v13112_v12 = vpop.permute.xlu0 %9032  ;;  %v2052_v6 = vmax.f32 %v1528_v38, 0.0 }
 0x2a3   :  { %v13094_v25 = vpop.f32.mrf.mxu0  ;;  %v9035_v52 = vunpack.i.h.bf16 %v13112_v12  ;;  %v13126_v60 = vadd.f32 %v12615_v26, %v12301_v54  ;;  %v13134_v38 = vadd.f32 %v12615_v26, %v12324_v45  ;;  %v13151_v45 = vadd.f32 %v12615_v26, %v12351_v43 }
 0x2a4   :  { %15721 = vst [vmem:[#allocation79_spill] sm:$0xff] %v13094_v25  ;;  %9207 = vrot.lane.b32.xlu1 %v9206_v20, %s9692_s21  ;;  %v9211_v0 = vpack.i.bf16 %v15403_v56, %v15722_v17  ;;  %v9025_v36 = vunpack.i.h.bf16 %v13106_v59  ;;  %v15734_v4 = vmax.f32 %v13100_v31, 0.0 }
 0x2a5   :  { %v13103_v61 = vpop.f32.mrf.mxu0  ;;  %v3292_v17 = vsel %vm3252_vm3, %v12193_v29, %v9035_v52  ;;  %v9015_v29 = vunpack.i.h.bf16 %v13066_v23 }
 0x2a6   :  { %v13138_v20 = vpop.permute.xlu0 %9037 }
 0x2a7   :  { %v1794_v62 = vpop.f32.mrf.mxu0  ;;  %v3288_v23 = vsel %vm3252_vm3, %v15730_v5, %v9015_v29  ;;  %v9024_v29 = vunpack.i.l.bf16 %v13106_v59 }
 0x2a8   :  { %v13121_v40 = vadd.f32 %v12615_v26, %v1794_v62  ;;  %9212 = vrot.lane.b32.xlu1 %v9211_v0, %s9692_s21  ;;  %v15724_v0 = vunpack.i.l.bf16 %v12961_v35  ;;  %v13154_v62 = vpop.permute.xlu1 %9027 }
 0x2a9   :  { %v13130_v56 = vpop.f32.mrf.mxu0 }
 0x2aa   :  { %15723 = vst [vmem:[#allocation80_spill] sm:$0xff] %v13130_v56  ;;  %v13143_v54 = vsel %vm3310_vm4, %v3292_v17, %v15724_v0  ;;  %v15727_v35 = vmax.f32 %v13121_v40, 0.0  ;;  %v15728_v0 = vunpack.i.l.bf16 %v12789_v53  ;;  %v9043_v10 = vpop.permute.xlu0 %9042 }
 0x2ab   :  { %v13146_v52 = vpop.f32.mrf.mxu0  ;;  %v9045_v5 = vunpack.i.h.bf16 %v9043_v10 }
 0x2ac   :  { %15725 = vst [vmem:[#allocation81_spill] sm:$0xff] %v13146_v52  ;;  %v9216_v17 = vpack.i.bf16 %v15727_v35, %v15726_v46  ;;  %v3344_v63 = vsel %vm3310_vm4, %v3286_v41, %v15728_v0  ;;  %v3474_v41 = vsel %vm3252_vm3, %v2048_v9, %v9004_v49  ;;  %v9019_v0 = vunpack.i.l.bf16 %v13087_v34  ;;  %v13174_v27 = vpop.permute.xlu1 %9047  ;;  %v15731_v52 = vld [vmem:[#allocation20_spill] sm:$0xff] }
 0x2ad   :  { %v13164_v55 = vpop.f32.mrf.mxu0  ;;  %v13178_v43 = vsel %vm3368_vm5, %v3344_v63, %v15729_v33  ;;  %v15410_v32 = vunpack.i.l.bf16 %v13174_v27  ;;  %v3476_v9 = vsel %vm3252_vm3, %v2052_v6, %v9014_v14  ;;  %v9020_v49 = vunpack.i.h.bf16 %v13087_v34 }
 0x2ae   :  { %9217 = vrot.lane.b32.xlu0 %v9216_v17, %s9692_s21  ;;  %v9044_v17 = vunpack.i.l.bf16 %v9043_v10  ;;  %v3537_v63 = vsel %vm3310_vm4, %v3473_v2, %v10899_v22  ;;  %v3287_v6 = vsel %vm3252_vm3, %v15731_v52, %v9019_v0  ;;  %v9029_v34 = vunpack.i.l.bf16 %v13154_v62 }
 0x2af   :  { %v1810_v46 = vpop.f32.mrf.mxu0  ;;  %v15732_v2 = vunpack.i.l.bf16 %v12831_v15  ;;  %v13222_v10 = vsel %vm3252_vm3, %v2056_v57, %v9024_v29  ;;  %v13235_v57 = vadd.f32 %v12615_v26, %v13103_v61 }
 0x2b0   :  { %v13183_v11 = vadd.f32 %v12615_v26, %v1810_v46  ;;  %v3538_v46 = vsel %vm3310_vm4, %v3474_v41, %v15410_v32  ;;  %v13209_v41 = vpop.f32.mrf.mxu1  ;;  %v3601_v0 = vsel %vm3368_vm5, %v3537_v63, %v9044_v17 }
 0x2b1   :  { %v8417_v21 = vpop.f32.mrf.mxu0  ;;  %v13205_v56 = vsel %vm3310_vm4, %v3288_v23, %v15732_v2  ;;  %15733 = vst [vmem:[#allocation25_spill] sm:$0xff] %v13209_v41  ;;  %v3602_v52 = vsel %vm3368_vm5, %v3538_v46, %v9045_v5  ;;  %v3475_v23 = vsel %vm3252_vm3, %v15734_v4, %v9020_v49  ;;  %v15735_v2 = vld [vmem:[#allocation22_spill] sm:$0xff]  ;;  %v15736_v5 = vunpack.i.h.bf16 %v12789_v53 }
 0x2b2   :  { %v1832_v35 = vadd.f32 %v12615_v26, %v8417_v21  ;;  %v13200_v21 = vpop.permute.xlu1 %9052  ;;  %v3686_v25 = vpack.c.bf16 %v3602_v52, %v3601_v0  ;;  %v13219_v59 = vsel %vm3252_vm3, %v15735_v2, %v9025_v36  ;;  %v4060_v41 = vpop.f32.mrf.mxu1  ;;  %v15737_v52 = vld [vmem:[#allocation23_spill] sm:$0xff] }
 0x2b3   :  { %v1823_v1 = vpop.f32.mrf.mxu0  ;;  %v3289_v31 = vsel %vm3252_vm3, %v15737_v52, %v9029_v34  ;;  %v15739_v34 = vmax.f32 %v12941_v47, 0.0  ;;  %v9054_v61 = vunpack.i.l.bf16 %v13200_v21 }
 0x2b4   :  { %v1824_v14 = vadd.f32 %v12615_v26, %v1823_v1  ;;  %v2128_v7 = vmax.f32 %v1832_v35, 0.0  ;;  %v3345_v35 = vsel %vm3310_vm4, %v3287_v6, %v15736_v5  ;;  %4160 = vmatprep.mubr.bf16.mxu1 %v3686_v25  ;;  %v13231_v49 = vpop.permute.xlu0 %9062  ;;  %v13238_v6 = vpop.f32.mrf.mxu1  ;;  %v15741_v25 = vunpack.i.h.bf16 %v13174_v27 }
 0x2b5   :  { %v8418_v32 = vpop.f32.mrf.mxu0  ;;  %v15415_v46 = vunpack.i.l.bf16 %v13231_v49  ;;  %15738 = vst [vmem:[#allocation22_spill] sm:$0xff] %v13238_v6 }
 0x2b6   :  { %v2126_v1 = vmax.f32 %v1824_v14, 0.0  ;;  %v1835_v50 = vadd.f32 %v12615_v26, %v8418_v32  ;;  %v9030_v32 = vunpack.i.h.bf16 %v13154_v62  ;;  %v9058_v36 = vpop.permute.xlu1 %9057  ;;  %v3539_v41 = vsel %vm3310_vm4, %v3475_v23, %v15741_v25  ;;  %v4063_v47 = vpop.f32.mrf.mxu1 }
 0x2b7   :  { %v1826_v17 = vpop.f32.mrf.mxu0  ;;  %v9060_v29 = vunpack.i.h.bf16 %v9058_v36  ;;  %v9059_v53 = vunpack.i.l.bf16 %v9058_v36 }
 0x2b8   :  { %v9221_v63 = vpack.i.bf16 %v2128_v7, %v2126_v1  ;;  %v1827_v4 = vadd.f32 %v12615_v26, %v1826_v17  ;;  %v15740_v7 = vmax.f32 %v13183_v11, 0.0  ;;  %v2129_v0 = vmax.f32 %v1835_v50, 0.0  ;;  %v13259_v50 = vld [vmem:[%s15208_s2] ss:$0 sm:$0xff] }
 0x2b9   :  { %v8421_v62 = vpop.f32.mrf.mxu0  ;;  %v3540_v17 = vsel %vm3310_vm4, %v3476_v9, %v15415_v46  ;;  %v3603_v9 = vsel %vm3368_vm5, %v3539_v41, %v9060_v29  ;;  %v9034_v29 = vunpack.i.l.bf16 %v13112_v12 }
 0x2ba   :  { %v9246_v14 = vpack.i.bf16 %v15740_v7, %v15739_v34  ;;  %v2127_v1 = vmax.f32 %v1827_v4, 0.0  ;;  %9222 = vrot.lane.b32.xlu1 %v9221_v63, %s9694_s24  ;;  %v1848_v5 = vadd.f32 %v12615_v26, %v8421_v62  ;;  %v3410_v34 = vsel %vm3368_vm5, %v3345_v35, %v9059_v53  ;;  %v13262_v63 = vpop.permute.xlu0 %9067  ;;  %v13269_v53 = vpop.f32.mrf.mxu1 }
 0x2bb   :  { %v1839_v36 = vpop.f32.mrf.mxu0  ;;  %v15742_v26 = vmax.f32 %v13126_v60, 0.0  ;;  %v9055_v35 = vunpack.i.h.bf16 %v13200_v21  ;;  %v3685_v25 = vpack.c.bf16 %v3410_v34, %v13178_v43  ;;  %v15743_v60 = vunpack.i.h.bf16 %v12831_v15 }
 0x2bc   :  { %v9226_v7 = vpack.i.bf16 %v2129_v0, %v2127_v1  ;;  %v13254_v6 = vpack.c.bf16 %v2129_v0, %v2127_v1  ;;  %v1840_v23 = vadd.f32 %v13259_v50, %v1839_v36  ;;  %v3604_v0 = vsel %vm3368_vm5, %v3540_v17, %v9054_v61  ;;  %v4068_v41 = vpop.f32.mrf.mxu1 }
 0x2bd   :  { %v3477_v4 = vsel %vm3252_vm3, %v15742_v26, %v9030_v32  ;;  %v8422_v62 = vpop.f32.mrf.mxu0  ;;  %v9065_v1 = vunpack.i.h.bf16 %v13231_v49  ;;  %v3347_v21 = vsel %vm3310_vm4, %v3289_v31, %v15743_v60  ;;  %v2121_v32 = vmax.f32 %v13235_v57, 0.0  ;;  %4161 = vmatmul.mubr.bf16.gmra.mxu1 %v3685_v25  ;;  %v13287_v26 = vpop.permute.xlu1 %9077 }
 0x2be   :  { %v2130_v47 = vmax.f32 %v1840_v23, 0.0  ;;  %v1851_v36 = vadd.f32 %v13259_v50, %v8422_v62  ;;  %9247 = vrot.lane.b32.xlu1 %v9246_v14, %s9692_s21  ;;  %9227 = vrot.lane.b32.xlu0 %v9226_v7, %s9695_s30  ;;  %v2132_v43 = vmax.f32 %v1848_v5, 0.0  ;;  %v3689_v17 = vpack.c.bf16 %v3604_v0, %v3603_v9  ;;  %v13290_v25 = vpop.f32.mrf.mxu1 }
 0x2bf   :  { %v1842_v61 = vpop.f32.mrf.mxu0  ;;  %v9040_v34 = vunpack.i.h.bf16 %v13138_v20  ;;  %v9039_v23 = vunpack.i.l.bf16 %v13138_v20  ;;  %v15744_v14 = vmax.f32 %v13055_v3, 0.0  ;;  %v9073_v31 = vpop.permute.xlu0 %9072  ;;  %v15420_v12 = vunpack.i.l.bf16 %v13287_v26 }
 0x2c0   :  { %v1843_v15 = vadd.f32 %v13259_v50, %v1842_v61  ;;  %4168 = vmatprep.mubr.bf16.mxu1 %v3689_v17  ;;  %v9075_v5 = vunpack.i.h.bf16 %v9073_v31  ;;  %v9074_v62 = vunpack.i.l.bf16 %v9073_v31  ;;  %v3411_v0 = vsel %vm3368_vm5, %v13205_v56, %v9055_v35  ;;  %v4071_v35 = vpop.f32.mrf.mxu1 }
 0x2c1   :  { %v9231_v7 = vpack.i.bf16 %v2130_v47, %v15744_v14  ;;  %v8425_v9 = vpop.f32.mrf.mxu0  ;;  %v3541_v3 = vsel %vm3310_vm4, %v3477_v4, %v9065_v1  ;;  %v9069_v20 = vunpack.i.l.bf16 %v13262_v63  ;;  %v2133_v47 = vmax.f32 %v1851_v36, 0.0 }
 0x2c2   :  { %v2131_v60 = vmax.f32 %v1843_v15, 0.0  ;;  %v15745_v41 = vmax.f32 %v13041_v13, 0.0  ;;  %v3542_v17 = vsel %vm3310_vm4, %v13222_v10, %v15420_v12  ;;  %v1864_v56 = vadd.f32 %v13259_v50, %v8425_v9 }
 0x2c3   :  { %9232 = vrot.lane.b32.xlu0 %v9231_v7, %s9694_s24  ;;  %v1855_v14 = vpop.f32.mrf.mxu0  ;;  %v3412_v4 = vsel %vm3368_vm5, %v3347_v21, %v9074_v62  ;;  %v13310_v7 = vpop.permute.xlu1 %9082  ;;  %v3605_v13 = vsel %vm3368_vm5, %v3541_v3, %v9075_v5  ;;  %v3606_v35 = vsel %vm3368_vm5, %v3542_v17, %v9069_v20  ;;  %v15747_v21 = vunpack.i.l.bf16 %v12897_v44 }
 0x2c4   :  { %v9236_v61 = vpack.i.bf16 %v15745_v41, %v2132_v43  ;;  %v9251_v31 = vpack.i.bf16 %v2133_v47, %v2131_v60  ;;  %v13307_v46 = vpack.c.bf16 %v2133_v47, %v2131_v60  ;;  %v1856_v36 = vadd.f32 %v13259_v50, %v1855_v14  ;;  %v15746_v43 = vld [vmem:[#allocation56_spill] sm:$0xff]  ;;  %v13315_v41 = vpop.f32.mrf.mxu1 }
 0x2c5   :  { %v3291_v15 = vsel %vm3252_vm3, %v15746_v43, %v9039_v23  ;;  %v8426_v10 = vpop.f32.mrf.mxu0  ;;  %v3688_v9 = vpack.c.bf16 %v3412_v4, %v3411_v0  ;;  %v3348_v62 = vsel %vm3310_vm4, %v13219_v59, %v15747_v21  ;;  %v1819_v47 = vadd.f32 %v13259_v50, %v13164_v55 }
 0x2c6   :  { %v15418_v60 = vunpack.i.h.bf16 %v13287_v26  ;;  %v2134_v5 = vmax.f32 %v1856_v36, 0.0  ;;  %v1867_v3 = vadd.f32 %v13259_v50, %v8426_v10  ;;  %9252 = vrot.lane.b32.xlu1 %v9251_v31, %s9695_s30  ;;  %v15748_v23 = vmax.f32 %v12932_v51, 0.0  ;;  %v4076_v14 = vpop.f32.mrf.mxu1 }
 0x2c7   :  { %9237 = vrot.lane.b32.xlu0 %v9236_v61, %s9694_s24  ;;  %v15749_v20 = vmax.f32 %v13134_v38, 0.0  ;;  %v15750_v55 = vmax.f32 %v13151_v45, 0.0  ;;  %4169 = vmatmul.mubr.bf16.gmra.mxu1 %v3688_v9  ;;  %v1858_v4 = vpop.f32.mrf.mxu0  ;;  %v3692_v36 = vpack.c.bf16 %v3606_v35, %v3605_v13  ;;  %v9070_v31 = vunpack.i.h.bf16 %v13262_v63  ;;  %v13342_v38 = vpop.permute.xlu0 %9092 }
 0x2c8   :  { %v9241_v0 = vpack.i.bf16 %v15748_v23, %v2121_v32  ;;  %v2136_v61 = vmax.f32 %v1864_v56, 0.0  ;;  %v15751_v10 = vmax.f32 %v13078_v19, 0.0  ;;  %v1859_v51 = vadd.f32 %v13259_v50, %v1858_v4  ;;  %v9088_v23 = vpop.permute.xlu1 %9087 }
 0x2c9   :  { %v3480_v59 = vsel %vm3252_vm3, %v15749_v20, %v9034_v29  ;;  %v3479_v17 = vsel %vm3252_vm3, %v15750_v55, %v9040_v34  ;;  %4176 = vmatprep.mubr.bf16.mxu1 %v3692_v36  ;;  %v9090_v29 = vunpack.i.h.bf16 %v9088_v23  ;;  %v9089_v45 = vunpack.i.l.bf16 %v9088_v23  ;;  %v13345_v20 = vpop.f32.mrf.mxu1  ;;  %v8429_v9 = vpop.f32.mrf.mxu0 }
 0x2ca   :  { %v9256_v21 = vpack.i.bf16 %v2134_v5, %v15751_v10  ;;  %v15417_v34 = vunpack.i.l.bf16 %v13342_v38  ;;  %v15752_v13 = vunpack.i.h.bf16 %v12897_v44  ;;  %v2125_v56 = vmax.f32 %v1819_v47, 0.0 }
 0x2cb   :  { %v3543_v19 = vsel %vm3310_vm4, %v3479_v17, %v15418_v60  ;;  %v2137_v35 = vmax.f32 %v1867_v3, 0.0  ;;  %v2135_v5 = vmax.f32 %v1859_v51, 0.0  ;;  %9242 = vrot.lane.b32.xlu0 %v9241_v0, %s9692_s21  ;;  %v9084_v55 = vunpack.i.l.bf16 %v13310_v7  ;;  %v4079_v44 = vpop.f32.mrf.mxu1  ;;  %v1871_v4 = vpop.f32.mrf.mxu0  ;;  %v15761_v60 = vld [vmem:[#allocation38_spill] sm:$0xff] }
 0x2cc   :  { %v3349_v63 = vsel %vm3310_vm4, %v3291_v15, %v15752_v13  ;;  %9257 = vrot.lane.b32.xlu1 %v9256_v21, %s9694_s24  ;;  %v3544_v14 = vsel %vm3310_vm4, %v3480_v59, %v15417_v34  ;;  %v3607_v47 = vsel %vm3368_vm5, %v3543_v19, %v9090_v29  ;;  %v15753_v17 = vmax.f32 %v13074_v37, 0.0 }
 0x2cd   :  { %v3414_v15 = vsel %vm3368_vm5, %v3349_v63, %v9089_v45  ;;  %v9266_v36 = vpack.i.bf16 %v2137_v35, %v2135_v5  ;;  %v13363_v10 = vpack.c.bf16 %v2137_v35, %v2135_v5  ;;  %v3413_v0 = vsel %vm3368_vm5, %v3348_v62, %v9070_v31  ;;  %v13366_v21 = vpop.f32.mrf.mxu1  ;;  %v8430_v51 = vpop.f32.mrf.mxu0 }
 0x2ce   :  { %v9261_v3 = vpack.i.bf16 %v15753_v17, %v2136_v61  ;;  %v3691_v23 = vpack.c.bf16 %v3414_v15, %v3413_v0  ;;  %v3608_v59 = vsel %vm3368_vm5, %v3544_v14, %v9084_v55  ;;  %v13371_v13 = vadd.f32 %v13259_v50, %v12995_v28 }
 0x2cf   :  { %v1883_v29 = vadd.f32 %v13259_v50, %v8430_v51  ;;  %9267 = vrot.lane.b32.xlu0 %v9266_v36, %s9695_s30  ;;  %v3695_v37 = vpack.c.bf16 %v3608_v59, %v3607_v47  ;;  %v4084_v61 = vpop.f32.mrf.mxu1  ;;  %v1874_v62 = vpop.f32.mrf.mxu0  ;;  %v15754_v31 = vmax.f32 %v12993_v24, 0.0  ;;  %v1880_v63 = vadd.f32 %v13259_v50, %v8429_v9 }
 0x2d0   :  { %9262 = vrot.lane.b32.xlu1 %v9261_v3, %s9694_s24  ;;  %4177 = vmatmul.mubr.bf16.gmra.mxu1 %v3691_v23  ;;  %v1872_v19 = vadd.f32 %v13259_v50, %v1871_v4  ;;  %v1875_v28 = vadd.f32 %v13259_v50, %v1874_v62  ;;  %v15416_v5 = vmax.f32 %v13371_v13, 0.0  ;;  %v15755_v44 = vmax.f32 %v13121_v40, 0.0  ;;  %v9098_v47 = vpop.permute.xlu1 %9097  ;;  %v15758_v62 = vld [vmem:[#allocation66_spill] sm:$0xff] }
 0x2d1   :  { %v9271_v45 = vpack.i.bf16 %v15754_v31, %v2125_v56  ;;  %4184 = vmatprep.mubr.bf16.mxu1 %v3695_v37  ;;  %v13381_v35 = vpop.f32.mrf.mxu1  ;;  %v2141_v55 = vmax.f32 %v1883_v29, 0.0  ;;  %v2140_v56 = vmax.f32 %v1880_v63, 0.0  ;;  %v15756_v17 = vmax.f32 %v12979_v58, 0.0 }
 0x2d2   :  { %v2139_v14 = vmax.f32 %v1875_v28, 0.0  ;;  %v2138_v9 = vmax.f32 %v1872_v19, 0.0  ;;  %v15757_v40 = vmax.f32 %v13183_v11, 0.0  ;;  %v1632_v31 = vadd.f32 %v13259_v50, %v15758_v62 }
 0x2d3   :  { %2761 = vrot.lane.b32.xlu0 %v15755_v44, %s9694_s24  ;;  %v4087_v24 = vpop.f32.mrf.mxu1  ;;  %v9085_v19 = vunpack.i.h.bf16 %v13310_v7 }
 0x2d4   :  { %9272 = vrot.lane.b32.xlu1 %v9271_v45, %s9692_s21  ;;  %v9281_v4 = vpack.i.bf16 %v15416_v5, %v2139_v14  ;;  %v13390_v15 = vpack.c.bf16 %v2141_v55, %v2139_v14  ;;  %v9286_v3 = vpack.i.bf16 %v15757_v40, %v2121_v32  ;;  %v9276_v36 = vpack.i.bf16 %v2140_v56, %v2138_v9  ;;  %v9103_v51 = vpop.permute.xlu1 %9102  ;;  %v15759_v45 = vld [vmem:[#allocation64_spill] sm:$0xff]  ;;  %v15760_v14 = vld [vmem:[#allocation58_spill] sm:$0xff] }
 0x2d5   :  { %v13402_v0 = vpop.f32.mrf.mxu1  ;;  %v13408_v58 = vpop.permute.xlu0 %9112  ;;  %v9104_v32 = vunpack.i.l.bf16 %v9103_v51  ;;  %v1640_v63 = vadd.f32 %v13259_v50, %v15759_v45  ;;  %v9105_v55 = vunpack.i.h.bf16 %v9103_v51  ;;  %v9095_v24 = vunpack.i.h.bf16 %v13342_v38 }
 0x2d6   :  { %v9100_v56 = vunpack.i.h.bf16 %v9098_v47  ;;  %v9099_v9 = vunpack.i.l.bf16 %v9098_v47  ;;  %v9114_v40 = vunpack.i.l.bf16 %v13408_v58  ;;  %v3415_v51 = vsel %vm3368_vm5, %v13143_v54, %v9085_v19 }
 0x2d7   :  { %2311 = vrot.lane.b32.xlu0 %v15756_v17, %s9692_s21  ;;  %v4092_v23 = vpop.f32.mrf.mxu1  ;;  %v3293_v44 = vsel %vm3252_vm3, %v15760_v14, %v9104_v32  ;;  %v2078_v17 = vmax.f32 %v1632_v31, 0.0 }
 0x2d8   :  { %9282 = vrot.lane.b32.xlu1 %v9281_v4, %s9695_s30  ;;  %v13406_v37 = vpop.permute.xlu1 %9107  ;;  %v3351_v7 = vsel %vm3310_vm4, %v3293_v44, %v9095_v24  ;;  %v3294_v31 = vsel %vm3252_vm3, 0.0, %v9100_v56  ;;  %v3295_v44 = vsel %vm3252_vm3, %v15761_v60, %v9114_v40  ;;  %v15762_v24 = vld [vmem:[#allocation67_spill] sm:$0xff]  ;;  %v15763_v56 = vld [vmem:[#allocation68_spill] sm:$0xff] }
 0x2d9   :  { %v13404_v59 = vpop.f32.mrf.mxu1 }
 0x2db   :  { %9277 = vrot.lane.b32.xlu0 %v9276_v36, %s9694_s24  ;;  %v4095_v29 = vpop.f32.mrf.mxu1  ;;  %v2080_v36 = vmax.f32 %v1640_v63, 0.0 }
 0x2dc   :  { %9287 = vrot.lane.b32.xlu1 %v9286_v3, %s9694_s24  ;;  %v13412_v11 = vpop.permute.xlu1 %9117  ;;  %v3481_v29 = vsel %vm3252_vm3, %v2078_v17, %v9105_v55 }
 0x2dd   :  { %v13410_v57 = vpop.permute.xlu0 %9122  ;;  %v3482_v45 = vsel %vm3252_vm3, %v2080_v36, %v9099_v9  ;;  %v1648_v9 = vadd.f32 %v13259_v50, %v15763_v56  ;;  %v15764_v36 = vld [vmem:[#allocation72_spill] sm:$0xff] }
 0x2de   :  { %v9124_v54 = vunpack.i.l.bf16 %v13410_v57 }
 0x2e5   :  { %v13419_v28 = vpop.permute.xlu1 %9142 }
 0x2e7   :  { %v9128_v61 = vpop.permute.xlu0 %9127 }
 0x2e8   :  { %v9129_v5 = vunpack.i.l.bf16 %v9128_v61  ;;  %v9130_v19 = vunpack.i.h.bf16 %v9128_v61  ;;  %v1664_v61 = vadd.f32 %v13259_v50, %v15764_v36 }
 0x2ec   :  { %v9133_v4 = vpop.permute.xlu0 %9132 }
 0x2ed   :  { %v9134_v3 = vunpack.i.l.bf16 %v9133_v4  ;;  %v13425_v23 = vpop.permute.xlu1 %9152  ;;  %v9135_v32 = vunpack.i.h.bf16 %v9133_v4  ;;  %v1656_v4 = vadd.f32 %v13259_v50, %v15762_v24  ;;  %v9115_v24 = vunpack.i.h.bf16 %v13408_v58 }
 0x2ee   :  { %v15419_v62 = vunpack.i.l.bf16 %v13425_v23 }
 0x2ef   :  { %v3416_v47 = vsel %vm3368_vm5, %v3351_v7, %v9134_v3  ;;  %v3545_v3 = vsel %vm3310_vm4, %v3481_v29, %v10899_v22  ;;  %v15765_v7 = vunpack.i.l.bf16 %v13174_v27  ;;  %v15766_v29 = vunpack.i.h.bf16 %v13174_v27 }
 0x2f0   :  { %v3694_v34 = vpack.c.bf16 %v3416_v47, %v3415_v51  ;;  %v3546_v55 = vsel %vm3310_vm4, %v3482_v45, %v15419_v62  ;;  %v3609_v47 = vsel %vm3368_vm5, %v3545_v3, %v9135_v32  ;;  %v9109_v45 = vunpack.i.l.bf16 %v13406_v37 }
 0x2f1   :  { %v13435_v63 = vpop.permute.xlu0 %9137  ;;  %v3610_v40 = vsel %vm3368_vm5, %v3546_v55, %v9129_v5  ;;  %v3352_v51 = vsel %vm3310_vm4, %v3294_v31, %v15765_v7  ;;  %v3353_v5 = vsel %vm3310_vm4, %v3295_v44, %v15766_v29  ;;  %v15767_v55 = vld [vmem:[#allocation42_spill] sm:$0xff]  ;;  %v2084_v12 = vmax.f32 %v1656_v4, 0.0  ;;  %v15768_v7 = vld [vmem:[#allocation71_spill] sm:$0xff] }
 0x2f2   :  { %4185 = vmatmul.mubr.bf16.gmra.mxu1 %v3694_v34  ;;  %v3698_v34 = vpack.c.bf16 %v3610_v40, %v3609_v47  ;;  %v3297_v36 = vsel %vm3252_vm3, %v15767_v55, %v9124_v54  ;;  %v3418_v62 = vsel %vm3368_vm5, %v3353_v5, %v9130_v19  ;;  %v2082_v31 = vmax.f32 %v1648_v9, 0.0 }
 0x2f3   :  { %v13447_v17 = vpop.permute.xlu1 %9157  ;;  %v9110_v32 = vunpack.i.h.bf16 %v13406_v37  ;;  %v15422_v3 = vunpack.i.h.bf16 %v13425_v23  ;;  %v1672_v40 = vadd.f32 %v13259_v50, %v15768_v7  ;;  %v2086_v27 = vmax.f32 %v1664_v61, 0.0  ;;  %v15769_v7 = vld [vmem:[#allocation36_spill] sm:$0xff] }
 0x2f4   :  { %4192 = vmatprep.mubr.bf16.mxu1 %v3698_v34  ;;  %v3417_v54 = vsel %vm3368_vm5, %v3352_v51, %v15729_v33  ;;  %v3484_v19 = vsel %vm3252_vm3, %v2084_v12, %v9109_v45  ;;  %v3483_v4 = vsel %vm3252_vm3, %v2082_v31, %v9115_v24  ;;  %v3355_v47 = vsel %vm3310_vm4, %v3297_v36, %v9065_v1 }
 0x2f5   :  { %v3697_v37 = vpack.c.bf16 %v3418_v62, %v3417_v54  ;;  %v9120_v34 = vunpack.i.h.bf16 %v13412_v11  ;;  %v3296_v51 = vsel %vm3252_vm3, %v15769_v7, %v9110_v32  ;;  %v9119_v12 = vunpack.i.l.bf16 %v13412_v11 }
 0x2f6   :  { %v13460_v56 = vpop.permute.xlu0 %9147  ;;  %v9125_v45 = vunpack.i.h.bf16 %v13410_v57  ;;  %v3547_v62 = vsel %vm3310_vm4, %v3483_v4, %v15422_v3  ;;  %v9144_v24 = vunpack.i.l.bf16 %v13419_v28  ;;  %v9140_v32 = vunpack.i.h.bf16 %v13435_v63  ;;  %v15772_v3 = vld [vmem:[#allocation60_spill] sm:$0xff]  ;;  %v15773_v57 = vld [vmem:[#allocation41_spill] sm:$0xff] }
 0x2f7   :  { %v13470_v58 = vpop.permute.xlu1 %9167  ;;  %v3420_v54 = vsel %vm3368_vm5, %v3355_v47, %v9120_v34  ;;  %v9139_v11 = vunpack.i.l.bf16 %v13435_v63  ;;  %v15771_v4 = vunpack.i.l.bf16 %v13231_v49 }
 0x2f8   :  { %v15421_v44 = vunpack.i.l.bf16 %v13470_v58  ;;  %v3299_v49 = vsel %vm3252_vm3, %v15772_v3, %v9144_v24 }
 0x2fa   :  { %v9163_v9 = vpop.permute.xlu0 %9162  ;;  %v3548_v61 = vsel %vm3310_vm4, %v3484_v19, %v15421_v44  ;;  %4193 = vmatmul.mubr.bf16.gmra.mxu1 %v3697_v37  ;;  %v3354_v37 = vsel %vm3310_vm4, %v3296_v51, %v15771_v4  ;;  %v2088_v44 = vmax.f32 %v1672_v40, 0.0  ;;  %v3298_v40 = vsel %vm3252_vm3, %v15773_v57, %v9140_v32 }
 0x2fb   :  { %v9165_v29 = vunpack.i.h.bf16 %v9163_v9  ;;  %v9164_v5 = vunpack.i.l.bf16 %v9163_v9  ;;  %v13502_v9 = vpop.f32.mrf.mxu1  ;;  %v3419_v47 = vsel %vm3368_vm5, %v3354_v37, %v9119_v12  ;;  %v15774_v51 = vunpack.i.h.bf16 %v13470_v58  ;;  %v15775_v37 = vld [vmem:[#allocation43_spill] sm:$0xff] }
 0x2fc   :  { %15770 = vst [vmem:[#allocation23_spill] sm:$0xff] %v13502_v9  ;;  %v9150_v12 = vunpack.i.h.bf16 %v13460_v56  ;;  %v1688_v32 = vadd.f32 %v13259_v50, %v15775_v37 }
 0x2fd   :  { %v13493_v1 = vpop.permute.xlu1 %9172  ;;  %v3611_v36 = vsel %vm3368_vm5, %v3547_v62, %v9164_v5  ;;  %v3612_v31 = vsel %vm3368_vm5, %v3548_v61, %v9165_v29  ;;  %v3485_v5 = vsel %vm3252_vm3, %v2086_v27, %v9125_v45  ;;  %v3486_v27 = vsel %vm3252_vm3, %v2088_v44, %v9139_v11  ;;  %v15776_v44 = vld [vmem:[#allocation54_spill] sm:$0xff] }
 0x2fe   :  { %v3701_v19 = vpack.c.bf16 %v3612_v31, %v3611_v36  ;;  %v4100_v36 = vpop.f32.mrf.mxu1  ;;  %v3700_v31 = vpack.c.bf16 %v3420_v54, %v3419_v47  ;;  %v3549_v45 = vsel %vm3310_vm4, %v3485_v5, %v15774_v51  ;;  %v1680_v11 = vadd.f32 %v13259_v50, %v15776_v44 }
 0x2ff   :  { %v9145_v36 = vunpack.i.h.bf16 %v13419_v28  ;;  %v15777_v51 = vunpack.i.l.bf16 %v13287_v26  ;;  %v2092_v28 = vmax.f32 %v1688_v32, 0.0 }
 0x300   :  { %v13508_v61 = vpop.permute.xlu0 %9182  ;;  %4200 = vmatprep.mubr.bf16.mxu1 %v3701_v19  ;;  %v9149_v19 = vunpack.i.l.bf16 %v13460_v56  ;;  %v13525_v4 = vpop.f32.mrf.mxu1 }
 0x301   :  { %v9178_v62 = vpop.permute.xlu1 %9177  ;;  %v15423_v29 = vunpack.i.l.bf16 %v13508_v61  ;;  %v15425_v44 = vunpack.i.h.bf16 %v13508_v61 }
 0x302   :  { %v9180_v34 = vunpack.i.h.bf16 %v9178_v62  ;;  %v9179_v63 = vunpack.i.l.bf16 %v9178_v62  ;;  %4201 = vmatmul.mubr.bf16.gmra.mxu1 %v3700_v31  ;;  %v4103_v47 = vpop.f32.mrf.mxu1 }
 0x303   :  { %v3550_v54 = vsel %vm3310_vm4, %v3486_v27, %v15423_v29  ;;  %v9159_v27 = vunpack.i.l.bf16 %v13447_v17 }
 0x304   :  { %v3613_v24 = vsel %vm3368_vm5, %v3549_v45, %v9179_v63  ;;  %v3614_v5 = vsel %vm3368_vm5, %v3550_v54, %v9180_v34  ;;  %v3356_v63 = vsel %vm3310_vm4, %v3298_v40, %v15777_v51  ;;  %v15778_v45 = vunpack.i.h.bf16 %v13287_v26  ;;  %v13542_v31 = vpop.f32.mrf.mxu1 }
 0x305   :  { %v9188_v62 = vpop.permute.xlu0 %9187  ;;  %v3704_v56 = vpack.c.bf16 %v3614_v5, %v3613_v24  ;;  %15779 = vst [vmem:[#allocation56_spill] sm:$0xff] %v13542_v31  ;;  %v3421_v34 = vsel %vm3368_vm5, %v3356_v63, %v9149_v19  ;;  %v2090_v24 = vmax.f32 %v1680_v11, 0.0 }
 0x306   :  { %v3357_v37 = vsel %vm3310_vm4, %v3299_v49, %v15778_v45  ;;  %v9189_v5 = vunpack.i.l.bf16 %v9188_v62  ;;  %v4108_v51 = vpop.f32.mrf.mxu1  ;;  %v3488_v49 = vsel %vm3252_vm3, %v2092_v28, %v9159_v27  ;;  %v9190_v45 = vunpack.i.h.bf16 %v9188_v62  ;;  %v15781_v28 = vld [vmem:[#allocation59_spill] sm:$0xff] }
 0x307   :  { %4208 = vmatprep.mubr.bf16.mxu1 %v3704_v56  ;;  %v3422_v54 = vsel %vm3368_vm5, %v3357_v37, %v9150_v12  ;;  %v3487_v26 = vsel %vm3252_vm3, %v2090_v24, %v9145_v36  ;;  %v9160_v62 = vunpack.i.h.bf16 %v13447_v17  ;;  %v9174_v51 = vunpack.i.l.bf16 %v13493_v1 }
 0x308   :  { %v13546_v47 = vpop.permute.xlu1 %9192  ;;  %v3703_v29 = vpack.c.bf16 %v3422_v54, %v3421_v34  ;;  %v3551_v19 = vsel %vm3310_vm4, %v3487_v26, %v15425_v44  ;;  %v13557_v32 = vpop.f32.mrf.mxu1 }
 0x309   :  { %v15424_v40 = vunpack.i.l.bf16 %v13546_v47  ;;  %v3615_v11 = vsel %vm3368_vm5, %v3551_v19, %v9189_v5  ;;  %v3300_v24 = vsel %vm3252_vm3, %v15781_v28, %v9160_v62  ;;  %v9195_v5 = vunpack.i.h.bf16 %v13546_v47  ;;  %v9371_v19 = vld [vmem:[%s15209_s5 + $0x110] sm:$0xff]  }
 0x30a   :  { %4209 = vmatmul.mubr.bf16.gmra.mxu1 %v3703_v29  ;;  %v4111_v36 = vpop.f32.mrf.mxu1  ;;  %8501 = vmatprep.subr.bf16.mxu0 %v9371_v19 }
 0x30b   :  { %v3552_v12 = vsel %vm3310_vm4, %v3488_v49, %v15424_v40  ;;  %v9175_v49 = vunpack.i.h.bf16 %v13493_v1  ;;  %8502 = vmatpush3.bf16.msra.mxu0 %v9371_v19  ;;  %v1760_v40 = vadd.f32 %v13259_v50, %v13031_v48 }
 0x30c   :  { %v3616_v56 = vsel %vm3368_vm5, %v3552_v12, %v9190_v45  ;;  %v15783_v45 = vld [vmem:[#allocation65_spill] sm:$0xff] }
 0x30d   :  { %v3707_v63 = vpack.c.bf16 %v3616_v56, %v3615_v11  ;;  %v15784_v11 = vunpack.i.l.bf16 %v13342_v38  ;;  %v1768_v38 = vadd.f32 %v13259_v50, %v13017_v39 }
 0x30e   :  { %v9198_v27 = vpop.permute.xlu0 %9197  ;;  %v13562_v37 = vpop.f32.mrf.mxu1 }
 0x30f   :  { %4216 = vmatprep.mubr.bf16.mxu1 %v3707_v63  ;;  %15780 = vst [vmem:[#allocation66_spill] sm:$0xff] %v13562_v37  ;;  %v3358_v56 = vsel %vm3310_vm4, %v3300_v24, %v15784_v11  ;;  %v9199_v11 = vunpack.i.l.bf16 %v9198_v27 }
 0x310   :  { %v4116_v34 = vpop.f32.mrf.mxu1  ;;  %v3423_v63 = vsel %vm3368_vm5, %v3358_v56, %v9174_v51  ;;  %v2110_v51 = vmax.f32 %v1760_v40, 0.0  ;;  %v2112_v56 = vmax.f32 %v1768_v38, 0.0  ;;  %v1784_v38 = vadd.f32 %v13259_v50, %v13057_v8 }
 0x311   :  { %v15787_v8 = vunpack.i.h.bf16 %v13425_v23 }
 0x312   :  { %v9203_v54 = vpop.permute.xlu0 %9202  ;;  %v13568_v26 = vpop.f32.mrf.mxu1  ;;  %v3490_v48 = vsel %vm3252_vm3, %v2112_v56, %v9199_v11  ;;  %v1776_v56 = vadd.f32 %v13259_v50, %v13064_v42 }
 0x313   :  { %v9204_v29 = vunpack.i.l.bf16 %v9203_v54  ;;  %15782 = vst [vmem:[#allocation64_spill] sm:$0xff] %v13568_v26 }
 0x314   :  { %v4119_v12 = vpop.f32.mrf.mxu1 }
 0x315   :  { %v3301_v17 = vsel %vm3252_vm3, %v15783_v45, %v9204_v29  ;;  %v9205_v12 = vunpack.i.h.bf16 %v9203_v54 }
 0x316   :  { %v3359_v36 = vsel %vm3310_vm4, %v3301_v17, %v9195_v5  ;;  %v9208_v34 = vpop.permute.xlu1 %9207  ;;  %v9200_v5 = vunpack.i.h.bf16 %v9198_v27 }
 0x317   :  { %v3424_v62 = vsel %vm3368_vm5, %v3359_v36, %v9175_v49  ;;  %v3489_v19 = vsel %vm3252_vm3, %v2110_v51, %v9205_v12  ;;  %v15785_v12 = vunpack.i.l.bf16 %v13425_v23 }
 0x318   :  { %v3706_v1 = vpack.c.bf16 %v3424_v62, %v3423_v63  ;;  %v3302_v62 = vsel %vm3252_vm3, 0.0, %v9200_v5  ;;  %v3553_v27 = vsel %vm3310_vm4, %v3489_v19, %v10899_v22  ;;  %v9210_v19 = vunpack.i.h.bf16 %v9208_v34 }
 0x319   :  { %v3360_v5 = vsel %vm3310_vm4, %v3302_v62, %v15785_v12  ;;  %v9209_v22 = vunpack.i.l.bf16 %v9208_v34  ;;  %v2114_v34 = vmax.f32 %v1776_v56, 0.0 }
 0x31a   :  { %4217 = vmatmul.mubr.bf16.gmra.mxu1 %v3706_v1  ;;  %v9213_v29 = vpop.permute.xlu1 %9212 }
 0x31b   :  { %v9214_v49 = vunpack.i.l.bf16 %v9213_v29  ;;  %v9215_v62 = vunpack.i.h.bf16 %v9213_v29 }
 0x31d   :  { %v3303_v39 = vsel %vm3252_vm3, %v12848_v18, %v9214_v49 }
 0x31e   :  { %v3361_v37 = vsel %vm3310_vm4, %v3303_v39, %v15787_v8 }
 0x320   :  { %v13586_v24 = vpop.permute.xlu0 %9217 }
 0x321   :  { %v9219_v12 = vunpack.i.l.bf16 %v13586_v24 }
 0x32c   :  { %v9223_v17 = vpop.permute.xlu1 %9222 }
 0x32d   :  { %v9224_v36 = vunpack.i.l.bf16 %v9223_v17  ;;  %v9225_v44 = vunpack.i.h.bf16 %v9223_v17 }
 0x32f   :  { %v3617_v17 = vsel %vm3368_vm5, %v3553_v27, %v9224_v36  ;;  %v3425_v36 = vsel %vm3368_vm5, %v3360_v5, %v15729_v33  ;;  %v3491_v33 = vsel %vm3252_vm3, %v2114_v34, %v9215_v62  ;;  %v9220_v34 = vunpack.i.h.bf16 %v13586_v24 }
 0x330   :  { %v9228_v63 = vpop.permute.xlu0 %9227  ;;  %v13593_v54 = vpop.permute.xlu1 %9247 }
 0x331   :  { %v9229_v1 = vunpack.i.l.bf16 %v9228_v63  ;;  %v13603_v11 = vpop.f32.mrf.mxu1  ;;  %v9230_v42 = vunpack.i.h.bf16 %v9228_v63  ;;  %v9249_v62 = vunpack.i.l.bf16 %v13593_v54 }
 0x332   :  { %15786 = vst [vmem:[#allocation58_spill] sm:$0xff] %v13603_v11 }
 0x333   :  { %v3554_v40 = vsel %vm3310_vm4, %v3490_v48, %v9229_v1  ;;  %v4124_v31 = vpop.f32.mrf.mxu1 }
 0x334   :  { %v3618_v49 = vsel %vm3368_vm5, %v3554_v40, %v9225_v44  ;;  %v2116_v40 = vmax.f32 %v1784_v38, 0.0  ;;  %v3304_v31 = vsel %vm3252_vm3, %v12846_v30, %v9210_v19  ;;  %v3555_v19 = vsel %vm3310_vm4, %v3491_v33, %v9230_v42 }
 0x335   :  { %v9233_v51 = vpop.permute.xlu0 %9232  ;;  %v3710_v48 = vpack.c.bf16 %v3618_v49, %v3617_v17  ;;  %v13616_v39 = vpop.f32.mrf.mxu1 }
 0x336   :  { %v9234_v1 = vunpack.i.l.bf16 %v9233_v51  ;;  %v9235_v11 = vunpack.i.h.bf16 %v9233_v51  ;;  %15788 = vst [vmem:[#allocation38_spill] sm:$0xff] %v13616_v39  ;;  %v3492_v29 = vsel %vm3252_vm3, %v2116_v40, %v9209_v22  ;;  %v15789_v51 = vld [vmem:[#allocation78_spill] sm:$0xff] }
 0x337   :  { %4224 = vmatprep.mubr.bf16.mxu1 %v3710_v48  ;;  %v4127_v5 = vpop.f32.mrf.mxu1  ;;  %v1800_v56 = vadd.f32 %v13259_v50, %v15789_v51 }
 0x338   :  { %v3426_v44 = vsel %vm3368_vm5, %v3361_v37, %v9234_v1  ;;  %v9253_v17 = vpop.permute.xlu1 %9252  ;;  %v3305_v37 = vsel %vm3252_vm3, %v12910_v16, %v9219_v12  ;;  %v15790_v1 = vld [vmem:[#allocation79_spill] sm:$0xff]  ;;  %v15791_v12 = vunpack.i.l.bf16 %v13470_v58 }
 0x339   :  { %v3709_v27 = vpack.c.bf16 %v3426_v44, %v3425_v36  ;;  %v9238_v49 = vpop.permute.xlu0 %9237  ;;  %v9254_v23 = vunpack.i.l.bf16 %v9253_v17  ;;  %v1792_v48 = vadd.f32 %v13259_v50, %v15790_v1  ;;  %v2120_v1 = vmax.f32 %v1800_v56, 0.0 }
 0x33a   :  { %v9239_v9 = vunpack.i.l.bf16 %v9238_v49  ;;  %v9240_v38 = vunpack.i.h.bf16 %v9238_v49  ;;  %v3362_v44 = vsel %vm3310_vm4, %v3304_v31, %v15791_v12  ;;  %v3619_v49 = vsel %vm3368_vm5, %v3555_v19, %v9235_v11 }
 0x33b   :  { %4225 = vmatmul.mubr.bf16.gmra.mxu1 %v3709_v27  ;;  %v3556_v63 = vsel %vm3310_vm4, %v3492_v29, %v9254_v23  ;;  %v13635_v27 = vpop.f32.mrf.mxu1  ;;  %v15793_v23 = vunpack.i.h.bf16 %v13470_v58  ;;  %v2118_v12 = vmax.f32 %v1792_v48, 0.0  ;;  %v15795_v48 = vld [vmem:[#allocation55_spill] sm:$0xff] }
 0x33c   :  { %v3620_v36 = vsel %vm3368_vm5, %v3556_v63, %v9239_v9  ;;  %15792 = vst [vmem:[#allocation67_spill] sm:$0xff] %v13635_v27  ;;  %v9255_v9 = vunpack.i.h.bf16 %v9253_v17  ;;  %v3427_v63 = vsel %vm3368_vm5, %v3362_v44, %v9240_v38 }
 0x33d   :  { %v9243_v22 = vpop.permute.xlu0 %9242  ;;  %v3363_v42 = vsel %vm3310_vm4, %v3305_v37, %v15793_v23  ;;  %v3713_v33 = vpack.c.bf16 %v3620_v36, %v3619_v49  ;;  %v4132_v31 = vpop.f32.mrf.mxu1  ;;  %v15794_v37 = vld [vmem:[#allocation19_spill] sm:$0xff]  ;;  %v3493_v38 = vsel %vm3252_vm3, %v2118_v12, %v9220_v34 }
 0x33e   :  { %v9258_v8 = vpop.permute.xlu1 %9257  ;;  %v9244_v29 = vunpack.i.l.bf16 %v9243_v22  ;;  %v9245_v51 = vunpack.i.h.bf16 %v9243_v22  ;;  %v3307_v17 = vsel %vm3252_vm3, %v15794_v37, %v9249_v62  ;;  %v3557_v56 = vsel %vm3310_vm4, %v3493_v38, %v9255_v9 }
 0x33f   :  { %v9259_v40 = vunpack.i.l.bf16 %v9258_v8  ;;  %v9260_v27 = vunpack.i.h.bf16 %v9258_v8  ;;  %4232 = vmatprep.mubr.bf16.mxu1 %v3713_v33  ;;  %v13644_v39 = vpop.f32.mrf.mxu1 }
 0x340   :  { %v3494_v36 = vsel %vm3252_vm3, %v2120_v1, %v9244_v29  ;;  %v3306_v8 = vsel %vm3252_vm3, %v15795_v48, %v9245_v51  ;;  %v15798_v51 = vld [vmem:[#allocation81_spill] sm:$0xff]  ;;  %v15799_v1 = vunpack.i.l.bf16 %v13508_v61 }
 0x341   :  { %v3428_v5 = vsel %vm3368_vm5, %v3363_v42, %v9259_v40  ;;  %v9268_v24 = vpop.permute.xlu0 %9267  ;;  %v4135_v40 = vpop.f32.mrf.mxu1  ;;  %v15796_v42 = vunpack.i.h.bf16 %v13508_v61  ;;  %v3621_v34 = vsel %vm3368_vm5, %v3557_v56, %v9260_v27  ;;  %v1808_v31 = vadd.f32 %v13259_v50, %v15798_v51 }
 0x342   :  { %v3712_v26 = vpack.c.bf16 %v3428_v5, %v3427_v63  ;;  %v9263_v11 = vpop.permute.xlu1 %9262  ;;  %v9269_v58 = vunpack.i.l.bf16 %v9268_v24  ;;  %v3364_v12 = vsel %vm3310_vm4, %v3306_v8, %v15799_v1  ;;  %v15800_v8 = vld [vmem:[#allocation18_spill] sm:$0xff] }
 0x343   :  { %v9264_v19 = vunpack.i.l.bf16 %v9263_v11  ;;  %v9265_v22 = vunpack.i.h.bf16 %v9263_v11  ;;  %v3365_v62 = vsel %vm3310_vm4, %v3307_v17, %v15796_v42  ;;  %v13662_v63 = vpop.f32.mrf.mxu1 }
 0x344   :  { %4233 = vmatmul.mubr.bf16.gmra.mxu1 %v3712_v26  ;;  %v3558_v44 = vsel %vm3310_vm4, %v3494_v36, %v9269_v58  ;;  %v15797_v26 = vld [vmem:[#allocation80_spill] sm:$0xff] }
 0x345   :  { %v2762_v23 = vpop.permute.xlu0 %2761  ;;  %v3622_v29 = vsel %vm3368_vm5, %v3558_v44, %v9264_v19  ;;  %v1816_v33 = vadd.f32 %v13259_v50, %v15797_v26  ;;  %v3429_v27 = vsel %vm3368_vm5, %v3364_v12, %v9265_v22  ;;  %v4140_v58 = vpop.f32.mrf.mxu1  ;;  %v9250_v19 = vunpack.i.h.bf16 %v13593_v54  ;;  %v15801_v22 = vld [vmem:[#allocation76_spill] sm:$0xff] }
 0x346   :  { %v9273_v49 = vpop.permute.xlu1 %9272  ;;  %v3430_v9 = vsel %vm3368_vm5, %v3365_v62, %v2762_v23  ;;  %v3716_v5 = vpack.c.bf16 %v3622_v29, %v3621_v34  ;;  %v2122_v23 = vmax.f32 %v1808_v31, 0.0  ;;  %v9270_v50 = vunpack.i.h.bf16 %v9268_v24 }
 0x347   :  { %v9275_v11 = vunpack.i.h.bf16 %v9273_v49  ;;  %v9274_v17 = vunpack.i.l.bf16 %v9273_v49  ;;  %v3715_v38 = vpack.c.bf16 %v3430_v9, %v3429_v27  ;;  %v2124_v44 = vmax.f32 %v1816_v33, 0.0  ;;  %v13671_v40 = vpop.f32.mrf.mxu1 }
 0x348   :  { %4240 = vmatprep.mubr.bf16.mxu1 %v3716_v5  ;;  %v3495_v54 = vsel %vm3252_vm3, %v2122_v23, %v9250_v19  ;;  %v15802_v27 = vunpack.i.l.bf16 %v13546_v47 }
 0x349   :  { %v2312_v56 = vpop.permute.xlu0 %2311  ;;  %v3308_v62 = vsel %vm3252_vm3, %v15800_v8, %v9275_v11  ;;  %v4143_v29 = vpop.f32.mrf.mxu1  ;;  %v3496_v49 = vsel %vm3252_vm3, %v2124_v44, %v9274_v17  ;;  %v3559_v1 = vsel %vm3310_vm4, %v3495_v54, %v9270_v50 }
 0x34a   :  { %v9283_v36 = vpop.permute.xlu1 %9282  ;;  %v3309_v34 = vsel %vm3252_vm3, %v15801_v22, %v2312_v56  ;;  %v3366_v58 = vsel %vm3310_vm4, %v3308_v62, %v15802_v27  ;;  %v15804_v29 = vld [vmem:[#allocation3_spill] sm:$0xff]  ;;  %v15805_v62 = vld [vmem:[#allocation4_spill] sm:$0xff] }
 0x34b   :  { %v9285_v42 = vunpack.i.h.bf16 %v9283_v36  ;;  %v9284_v61 = vunpack.i.l.bf16 %v9283_v36 }
 0x34c   :  { %4241 = vmatmul.mubr.bf16.gmra.mxu1 %v3715_v38  ;;  %v13679_v31 = vpop.f32.mrf.mxu1 }
 0x34d   :  { %v9278_v33 = vpop.permute.xlu0 %9277  ;;  %v3560_v12 = vsel %vm3310_vm4, %v3496_v49, %v9284_v61  ;;  %v3367_v11 = vsel %vm3310_vm4, %v3309_v34, %v9285_v42  ;;  %v15803_v61 = vld [vmem:[#allocation2_spill] sm:$0xff]  ;;  %v15806_v34 = vld [vmem:[#allocation5_spill] sm:$0xff] }
 0x34e   :  { %v9288_v26 = vpop.permute.xlu1 %9287  ;;  %v9280_v51 = vunpack.i.h.bf16 %v9278_v33  ;;  %v9279_v24 = vunpack.i.l.bf16 %v9278_v33  ;;  %v4148_v38 = vpop.f32.mrf.mxu1  ;;  %v3627_v42 = vpack.c.bf16 %v15804_v29, %v15803_v61  ;;  %v3630_v54 = vpack.c.bf16 %v15806_v34, %v15805_v62  ;;  %v15807_v49 = vld [vmem:[#allocation6_spill] sm:$0xff]  ;;  %v15818_v29 = vld [vmem:[#allocation17_spill] sm:$0xff]  ;;  %v15821_v34 = vld [vmem:[#allocation27_spill] sm:$0xff] }
 0x34f   :  { %v9290_v9 = vunpack.i.h.bf16 %v9288_v26  ;;  %v9289_v5 = vunpack.i.l.bf16 %v9288_v26  ;;  %v15808_v26 = vld [vmem:[#allocation7_spill] sm:$0xff]  ;;  %v15814_v38 = vld [vmem:[#allocation12_spill] sm:$0xff] }
 0x350   :  { %v3623_v36 = vsel %vm3368_vm5, %v3559_v1, %v9279_v24  ;;  %v3624_v56 = vsel %vm3368_vm5, %v3560_v12, %v9280_v51  ;;  %v13691_v50 = vpop.f32.mrf.mxu1  ;;  %v3633_v33 = vpack.c.bf16 %v15808_v26, %v15807_v49  ;;  %v15809_v1 = vld [vmem:[#allocation8_spill] sm:$0xff]  ;;  %v15810_v12 = vld [vmem:[#allocation15_spill] sm:$0xff]  ;;  %v15823_v26 = vld [vmem:[#allocation30_spill] sm:$0xff] }
 0x351   :  { %v3431_v19 = vsel %vm3368_vm5, %v3366_v58, %v9289_v5  ;;  %v3432_v17 = vsel %vm3368_vm5, %v3367_v11, %v9290_v9  ;;  %v3719_v23 = vpack.c.bf16 %v3624_v56, %v3623_v36  ;;  %v15811_v11 = vmax.f32 %v15810_v12, 0.0  ;;  %v15812_v58 = vld [vmem:[#allocation10_spill] sm:$0xff]  ;;  %v15815_v36 = vld [vmem:[#allocation11_spill] sm:$0xff] }
 0x352   :  { %v3718_v44 = vpack.c.bf16 %v3432_v17, %v3431_v19  ;;  %v4151_v47 = vpop.f32.mrf.mxu1  ;;  %v15813_v19 = vld [vmem:[#allocation9_spill] sm:$0xff]  ;;  %v3642_v56 = vpack.c.bf16 %v15815_v36, %v15814_v38  ;;  %v15830_v36 = vld [vmem:[#allocation48_spill] sm:$0xff] }
 0x353   :  { %4248 = vmatprep.mubr.bf16.mxu1 %v3719_v23  ;;  %v3636_v27 = vpack.c.bf16 %v15811_v11, %v15809_v1  ;;  %v3639_v17 = vpack.c.bf16 %v15813_v19, %v15812_v58  ;;  %v15817_v23 = vld [vmem:[#allocation13_spill] sm:$0xff]  ;;  %v15826_v1 = vld [vmem:[#allocation31_spill] sm:$0xff]  ;;  %v15828_v58 = vld [vmem:[#allocation34_spill] sm:$0xff] }
 0x354   :  { %4249 = vmatmul.mubr.bf16.gmra.mxu1 %v3718_v44  ;;  %v15816_v44 = vld [vmem:[#allocation14_spill] sm:$0xff]  ;;  %v15829_v19 = vmax.f32 %v15828_v58, 0.0 }
 0x355   :  { %8435 = vmatprep.mubr.msk.bf16.mxu1 %vm3252_vm3, %v3627_v42  ;;  %v3645_v61 = vpack.c.bf16 %v15817_v23, %v15816_v44  ;;  %v15819_v42 = vld [vmem:[#allocation35_spill] sm:$0xff] }
 0x356   :  { %v15820_v47 = vmax.f32 %v15819_v42, 0.0  ;;  %v15832_v42 = vld [vmem:[#allocation50_spill] sm:$0xff] }
 0x358   :  { %v3648_v62 = vpack.c.bf16 %v15820_v47, %v15818_v29  ;;  %v15833_v47 = vld [vmem:[#allocation49_spill] sm:$0xff] }
 0x359   :  { %v13700_v9 = vpop.f32.mrf.mxu1 }
 0x35b   :  { %v4156_v5 = vpop.f32.mrf.mxu1 }
 0x35c   :  { %8436 = vmatmul.mubr.msk.bf16.vlgmr.msra.gmra.mxu1 %vm3252_vm3, %v3630_v54  ;;  %v15822_v54 = vld [vmem:[#allocation28_spill] sm:$0xff] }
 0x35d   :  { %8439 = vmatprep.mubr.msk.bf16.mxu1 %vm3252_vm3, %v3633_v33  ;;  %v13704_v51 = vpop.f32.mrf.mxu1  ;;  %v3651_v49 = vpack.c.bf16 %v15822_v54, %v15821_v34  ;;  %v15824_v33 = vld [vmem:[#allocation29_spill] sm:$0xff]  ;;  %v15834_v54 = vld [vmem:[#allocation52_spill] sm:$0xff] }
 0x35e   :  { %v3654_v5 = vpack.c.bf16 %v15824_v33, %v15823_v26 }
 0x35f   :  { %v4159_v24 = vpop.f32.mrf.mxu1 }
 0x360   :  { %v15825_v24 = vld [vmem:[#allocation32_spill] sm:$0xff] }
 0x361   :  { %v3657_v12 = vpack.c.bf16 %v15826_v1, %v15825_v24  ;;  %v15836_v1 = vld [vmem:[#allocation53_spill] sm:$0xff] }
 0x364   :  { %8440 = vmatmul.mubr.msk.bf16.gmra.mxu1 %vm3252_vm3, %v3636_v27  ;;  %v15827_v27 = vld [vmem:[#allocation37_spill] sm:$0xff] }
 0x365   :  { %8443 = vmatprep.mubr.msk.bf16.mxu1 %vm3252_vm3, %v3639_v17  ;;  %v3660_v17 = vpack.c.bf16 %v15829_v19, %v15827_v27 }
 0x36c   :  { %8444 = vmatmul.mubr.msk.bf16.gmra.mxu1 %vm3252_vm3, %v3642_v56  ;;  %v15831_v56 = vld [vmem:[#allocation47_spill] sm:$0xff] }
 0x36d   :  { %8447 = vmatprep.mubr.msk.bf16.mxu1 %vm3252_vm3, %v3645_v61  ;;  %v3663_v44 = vpack.c.bf16 %v15831_v56, %v15830_v36 }
 0x374   :  { %8448 = vmatmul.mubr.msk.bf16.gmra.mxu1 %vm3252_vm3, %v3648_v62  ;;  %v3666_v62 = vpack.c.bf16 %v15833_v47, %v15832_v42  ;;  %v3678_v42 = vpack.c.bf16 %v15735_v2, %v15737_v52  ;;  %v15841_v47 = vld [vmem:[#allocation24_spill] sm:$0xff]  ;;  %v3690_v2 = vpack.c.bf16 %v15773_v57, %v15767_v55  ;;  %v3693_v52 = vpack.c.bf16 %v15781_v28, %v15772_v3 }
 0x375   :  { %8451 = vmatprep.mubr.msk.bf16.mxu1 %vm3252_vm3, %v3651_v49  ;;  %v15835_v49 = vld [vmem:[#allocation51_spill] sm:$0xff]  ;;  %v3702_v3 = vpack.c.bf16 %v15795_v48, %v12910_v16  ;;  %v3705_v28 = vpack.c.bf16 %v15800_v8, %v15794_v37  ;;  %v15846_v16 = vmax.f32 %v13371_v13, 0.0 }
 0x376   :  { %v3669_v26 = vpack.c.bf16 %v15835_v49, %v15834_v54 }
 0x377   :  { %v3708_v48 = vpack.c.bf16 %v15846_v16, %v15801_v22  ;;  %v9384_v16 = vld [vmem:[%s15209_s5 + $0x50] sm:$0xff]  }
 0x37c   :  { %8452 = vmatmul.mubr.msk.bf16.gmra.mxu1 %vm3252_vm3, %v3654_v5 }
 0x37d   :  { %8455 = vmatprep.mubr.msk.bf16.mxu1 %vm3252_vm3, %v3657_v12  ;;  %v13732_v11 = vpop.f32.mrf.mxu1  ;;  %v15837_v12 = vld [vmem:[#allocation57_spill] sm:$0xff] }
 0x37e   :  { %v15838_v27 = vmax.f32 %v15837_v12, 0.0 }
 0x37f   :  { %v4164_v38 = vpop.f32.mrf.mxu1 }
 0x380   :  { %v3672_v58 = vpack.c.bf16 %v15838_v27, %v15836_v1  ;;  %v15840_v38 = vld [vmem:[#allocation21_spill] sm:$0xff] }
 0x381   :  { %v13739_v23 = vpop.f32.mrf.mxu1 }
 0x383   :  { %v4167_v61 = vpop.f32.mrf.mxu1 }
 0x384   :  { %8456 = vmatmul.mubr.msk.bf16.gmra.mxu1 %vm3252_vm3, %v3660_v17  ;;  %v15839_v17 = vld [vmem:[#allocation20_spill] sm:$0xff] }
 0x385   :  { %8459 = vmatprep.mubr.msk.bf16.mxu1 %vm3252_vm3, %v3663_v44  ;;  %v3675_v36 = vpack.c.bf16 %v15840_v38, %v15839_v17  ;;  %v9372_v44 = vld [vmem:[%s15209_s5 + $0x108] sm:$0xff]  }
 0x386   :  { %8503 = vmatprep.subr.bf16.mxu0 %v9372_v44 }
 0x387   :  { %v13743_v29 = vpop.f32.mrf.mxu1  ;;  %8504 = vmatpush3.bf16.msra.mxu0 %v9372_v44 }
 0x389   :  { %v4172_v34 = vpop.f32.mrf.mxu1 }
 0x38a   :  { %v15842_v34 = vld [vmem:[#allocation62_spill] sm:$0xff] }
 0x38b   :  { %v13749_v33 = vpop.f32.mrf.mxu1  ;;  %v15843_v54 = vmax.f32 %v15842_v34, 0.0 }
 0x38c   :  { %8460 = vmatmul.mubr.msk.bf16.gmra.mxu1 %vm3252_vm3, %v3666_v62  ;;  %v3681_v62 = vpack.c.bf16 %v15841_v47, %v15746_v43  ;;  %v15844_v43 = vld [vmem:[#allocation74_spill] sm:$0xff]  ;;  %v9378_v47 = vld [vmem:[%s15209_s5 + $0x68] sm:$0xff]  }
 0x38d   :  { %8463 = vmatprep.mubr.msk.bf16.mxu1 %vm3252_vm3, %v3669_v26  ;;  %v4175_v5 = vpop.f32.mrf.mxu1  ;;  %v3684_v49 = vpack.c.bf16 %v15843_v54, %v15760_v14  ;;  %v3687_v26 = vpack.c.bf16 %v15769_v7, %v15761_v60  ;;  %v15845_v14 = vmax.f32 %v15844_v43, 0.0  ;;  %v3699_v60 = vpack.c.bf16 %v12846_v30, %v12848_v18  ;;  %v9373_v18 = vld [vmem:[%s15209_s5 + $0x100] sm:$0xff]  }
 0x38e   :  { %8505 = vmatprep.subr.bf16.mxu0 %v9373_v18  ;;  %v9380_v43 = vld [vmem:[%s15209_s5 + $0x60] sm:$0xff]  }
 0x38f   :  { %v3696_v5 = vpack.c.bf16 %v15845_v14, %v15783_v45  ;;  %8506 = vmatpush3.bf16.msra.mxu0 %v9373_v18  ;;  %v9383_v18 = vld [vmem:[%s15209_s5 + $0x18] sm:$0xff]  }
 0x390   :  { %v13753_v24 = vpop.f32.mrf.mxu1 }
 0x392   :  { %v4180_v19 = vpop.f32.mrf.mxu1 }
 0x394   :  { %v13760_v56 = vpop.f32.mrf.mxu1  ;;  %8464 = vmatmul.mubr.msk.bf16.gmra.mxu1 %vm3252_vm3, %v3672_v58 }
 0x395   :  { %8467 = vmatprep.mubr.msk.bf16.mxu1 %vm3252_vm3, %v3675_v36 }
 0x396   :  { %v4183_v61 = vpop.f32.mrf.mxu1 }
 0x39c   :  { %8468 = vmatmul.mubr.msk.bf16.gmra.mxu1 %vm3252_vm3, %v3678_v42  ;;  %v9376_v42 = vld [vmem:[%s15209_s5 + $0x70] sm:$0xff]  }
 0x39d   :  { %8471 = vmatprep.mubr.msk.bf16.mxu1 %vm3252_vm3, %v3681_v62  ;;  %v9379_v62 = vld [vmem:[%s15209_s5 + $0x28] sm:$0xff]  }
 0x3a4   :  { %8472 = vmatmul.mubr.msk.bf16.gmra.mxu1 %vm3252_vm3, %v3684_v49 }
 0x3a5   :  { %8475 = vmatprep.mubr.msk.bf16.mxu1 %vm3252_vm3, %v3687_v26 }
 0x3ac   :  { %8476 = vmatmul.mubr.msk.bf16.gmra.mxu1 %vm3252_vm3, %v3690_v2 }
 0x3ad   :  { %8479 = vmatprep.mubr.msk.bf16.mxu1 %vm3252_vm3, %v3693_v52 }
 0x3b2   :  { %v13792_v7 = vpop.f32.mrf.mxu1 }
 0x3b4   :  { %8480 = vmatmul.mubr.msk.bf16.gmra.mxu1 %vm3252_vm3, %v3696_v5  ;;  %v4188_v55 = vpop.f32.mrf.mxu1  ;;  %v9381_v5 = vld [vmem:[%s15209_s5 + $0x20] sm:$0xff]  }
 0x3b5   :  { %8483 = vmatprep.mubr.msk.bf16.mxu1 %vm3252_vm3, %v3699_v60 }
 0x3b6   :  { %v13795_v57 = vpop.f32.mrf.mxu1 }
 0x3b8   :  { %v4191_v1 = vpop.f32.mrf.mxu1 }
 0x3b9   :  { %v9382_v1 = vld [vmem:[%s15209_s5 + $0x58] sm:$0xff]  }
 0x3ba   :  { %v13802_v45 = vpop.f32.mrf.mxu1 }
 0x3bc   :  { %8484 = vmatmul.mubr.msk.bf16.gmra.mxu1 %vm3252_vm3, %v3702_v3  ;;  %v4196_v30 = vpop.f32.mrf.mxu1 }
 0x3bd   :  { %8487 = vmatprep.mubr.msk.bf16.mxu1 %vm3252_vm3, %v3705_v28 }
 0x3be   :  { %v13808_v12 = vpop.f32.mrf.mxu1 }
 0x3c0   :  { %v4199_v37 = vpop.f32.mrf.mxu1 }
 0x3c2   :  { %v13814_v8 = vpop.f32.mrf.mxu1 }
 0x3c4   :  { %8488 = vmatmul.mubr.msk.bf16.gmra.mxu1 %vm3252_vm3, %v3708_v48  ;;  %v4204_v27 = vpop.f32.mrf.mxu1 }
 0x3c5   :  { %8491 = vmatprep.mubr.msk.bf16.mxu1 %vm3252_vm3, %v13254_v6  ;;  %v9374_v6 = vld [vmem:[%s15209_s5 + $0x78] sm:$0xff]   ;;  %v9385_v27 = vld [vmem:[%s15209_s5 + $0x10] sm:$0xff]  }
 0x3c6   :  { %v13818_v58 = vpop.f32.mrf.mxu1  ;;  %7945 = vmatprep.subr.bf16.mxu1 %v9374_v6 }
 0x3c8   :  { %v4207_v19 = vpop.f32.mrf.mxu1 }
 0x3c9   :  { %v9386_v19 = vld [vmem:[%s15209_s5 + $0x48] sm:$0xff]  }
 0x3ca   :  { %v13822_v17 = vpop.f32.mrf.mxu1 }
 0x3cc   :  { %8492 = vmatmul.mubr.msk.bf16.gmra.mxu1 %vm3252_vm3, %v13307_v46  ;;  %v4212_v13 = vpop.f32.mrf.mxu1  ;;  %v9375_v46 = vld [vmem:[%s15209_s5 + $0x38] sm:$0xff]  }
 0x3cd   :  { %8495 = vmatprep.mubr.msk.bf16.mxu1 %vm3252_vm3, %v13363_v10  ;;  %7946 = vmatpush3.bf16.msra.mxu1 %v9375_v46  ;;  %v15847_v46 = vld [vmem:[#allocation45_spill] sm:$0xff] }
 0x3ce   :  { %v13826_v22 = vpop.f32.mrf.mxu1  ;;  %7947 = vmatprep.subr.bf16.mxu1 %v9376_v42  ;;  %v9388_v42 = vld [vmem:[%s15209_s5 + $0x40] sm:$0xff]  }
 0x3d0   :  { %v4215_v38 = vpop.f32.mrf.mxu1 }
 0x3d1   :  { %v13892_v38 = vld [vmem:[%s15210_s4] ss:$0 sm:$0xff] }
 0x3d4   :  { %8496 = vmatmul.mubr.msk.bf16.gmra.mxu1 %vm3252_vm3, %v13390_v15  ;;  %v9377_v15 = vld [vmem:[%s15209_s5 + $0x30] sm:$0xff]  }
 0x3d5   :  { %7948 = vmatpush3.bf16.msra.mxu1 %v9377_v15 }
 0x3d6   :  { %7949 = vmatprep.subr.bf16.mxu1 %v9378_v47  ;;  %v15848_v47 = vld [vmem:[#allocation39_spill] sm:$0xff] }
 0x3d9   :  { %7950 = vmatpush3.bf16.msra.mxu1 %v9379_v62  ;;  %v4003_v62 = vadd.f32 %v13892_v38, %v15848_v47 }
 0x3da   :  { %v13836_v36 = vpop.f32.mrf.mxu1  ;;  %7951 = vmatprep.subr.bf16.mxu1 %v9380_v43  ;;  %v9389_v43 = vld [vmem:[%s15209_s5] sm:$0xff]  }
 0x3dc   :  { %v4220_v10 = vpop.f32.mrf.mxu1 }
 0x3dd   :  { %7952 = vmatpush3.bf16.msra.mxu1 %v9381_v5  ;;  %v4011_v10 = vadd.f32 %v13892_v38, %v15847_v46 }
 0x3de   :  { %v13838_v44 = vpop.f32.mrf.mxu1  ;;  %7953 = vmatprep.subr.bf16.mxu1 %v9382_v1 }
 0x3e0   :  { %v4223_v61 = vpop.f32.mrf.mxu1 }
 0x3e1   :  { %7954 = vmatpush3.bf16.msra.mxu1 %v9383_v18  ;;  %v9387_v61 = vld [vmem:[%s15209_s5 + $0x8] sm:$0xff]  }
 0x3e2   :  { %7955 = vmatprep.subr.bf16.mxu1 %v9384_v16 }
 0x3e5   :  { %7956 = vmatpush3.bf16.msra.mxu1 %v9385_v27  ;;  %v15852_v27 = vld [vmem:[#allocation61_spill] sm:$0xff] }
 0x3e6   :  { %7957 = vmatprep.subr.bf16.mxu1 %v9386_v19  ;;  %v4019_v19 = vadd.f32 %v13892_v38, %v15852_v27 }
 0x3e9   :  { %7958 = vmatpush3.bf16.msra.mxu1 %v9387_v61  ;;  %v15854_v61 = vld [vmem:[#allocation46_spill] sm:$0xff] }
 0x3ea   :  { %7959 = vmatprep.subr.bf16.mxu1 %v9388_v42  ;;  %v4014_v42 = vadd.f32 %v13892_v38, %v15854_v61 }
 0x3ed   :  { %7960 = vmatpush3.bf16.msra.mxu1 %v9389_v43  ;;  %v15857_v43 = vld [vmem:[#allocation63_spill] sm:$0xff] }
 0x3fb   :  { %v13852_v34 = vpop.f32.mrf.mxu1 }
 0x3fd   :  { %v4228_v54 = vpop.f32.mrf.mxu1 }
 0x3ff   :  { %v13854_v49 = vpop.f32.mrf.mxu1 }
 0x401   :  { %v4231_v26 = vpop.f32.mrf.mxu1 }
 0x404   :  { %v13856_v2 = vpop.f32.mrf.mxu1 }
 0x406   :  { %v4236_v52 = vpop.f32.mrf.mxu1 }
 0x408   :  { %v13861_v14 = vpop.f32.mrf.mxu1 }
 0x40a   :  { %v4239_v60 = vpop.f32.mrf.mxu1 }
 0x40b   :  { %v15850_v60 = vld [vmem:[#allocation40_spill] sm:$0xff] }
 0x40c   :  { %v13866_v55 = vpop.f32.mrf.mxu1 }
 0x40e   :  { %v4244_v3 = vpop.f32.mrf.mxu1 }
 0x40f   :  { %v4006_v3 = vadd.f32 %v13892_v38, %v15850_v60  ;;  %v4022_v60 = vadd.f32 %v13892_v38, %v15857_v43 }
 0x410   :  { %v13868_v28 = vpop.f32.mrf.mxu1 }
 0x412   :  { %v4247_v30 = vpop.f32.mrf.mxu1 }
 0x413   :  { %v15851_v30 = vld [vmem:[#allocation69_spill] sm:$0xff] }
 0x414   :  { %v13879_v48 = vpop.f32.mrf.mxu1  ;;  %v4027_v18 = vadd.f32 %v13892_v38, %v15851_v30 }
 0x416   :  { %v4252_v37 = vpop.f32.mrf.mxu1 }
 0x418   :  { %v13887_v13 = vpop.f32.mrf.mxu1 }
 0x41a   :  { %v4255_v6 = vpop.f32.mrf.mxu1 }
 0x41c   :  { %v8437_v15 = vpop.f32.mrf.mxu1 }
 0x41d   :  { %v13904_v54 = vadd.f32 %v8437_v15, %v4011_v10  ;;  %v15855_v15 = vld [vmem:[#allocation70_spill] sm:$0xff] }
 0x41e   :  { %v4291_v26 = vpop.f32.mrf.mxu1  ;;  %v4030_v47 = vadd.f32 %v13892_v38, %v15855_v15 }
 0x41f   :  { %15849 = vst [vmem:[#allocation68_spill] sm:$0xff] %v13904_v54  ;;  %v13906_v52 = vadd.f32 %v4291_v26, %v4003_v62 }
 0x420   :  { %v8438_v5 = vpop.f32.mrf.mxu1 }
 0x422   :  { %v4294_v1 = vpop.f32.mrf.mxu1 }
 0x423   :  { %v4295_v16 = vadd.f32 %v4294_v1, %v4006_v3  ;;  %v4303_v3 = vadd.f32 %v8438_v5, %v4014_v42 }
 0x424   :  { %v8441_v37 = vpop.f32.mrf.mxu1 }
 0x425   :  { %v4547_v6 = vmax.f32 %v4295_v16, 0.0  ;;  %v13917_v46 = vadd.f32 %v8441_v37, %v4027_v18  ;;  %v4549_v37 = vmax.f32 %v4303_v3, 0.0  ;;  %v15862_v3 = vld [vmem:[#allocation22_spill] sm:$0xff] }
 0x426   :  { %v4307_v10 = vpop.f32.mrf.mxu1 }
 0x427   :  { %15853 = vst [vmem:[#allocation72_spill] sm:$0xff] %v13917_v46  ;;  %v13923_v62 = vadd.f32 %v4307_v10, %v4019_v19  ;;  %4670 = vrot.lane.b32.xlu0 %v4547_v6, %s9695_s30  ;;  %v15858_v46 = vld [vmem:[#allocation73_spill] sm:$0xff] }
 0x428   :  { %v8442_v26 = vpop.f32.mrf.mxu1  ;;  %v4046_v15 = vadd.f32 %v13892_v38, %v15858_v46 }
 0x429   :  { %15856 = vst [vmem:[#allocation42_spill] sm:$0xff] %v13923_v62  ;;  %v13928_v1 = vadd.f32 %v8442_v26, %v4030_v47  ;;  %v15859_v62 = vld [vmem:[#allocation33_spill] sm:$0xff] }
 0x42a   :  { %v4310_v30 = vpop.f32.mrf.mxu1  ;;  %v4038_v6 = vadd.f32 %v13892_v38, %v15859_v62 }
 0x42b   :  { %v4311_v18 = vadd.f32 %v4310_v30, %v4022_v60  ;;  %v4062_v30 = vadd.f32 %v13892_v38, %v15862_v3 }
 0x42c   :  { %v8445_v16 = vpop.f32.mrf.mxu1 }
 0x42d   :  { %v4551_v27 = vmax.f32 %v4311_v18, 0.0 }
 0x42e   :  { %v4323_v61 = vpop.f32.mrf.mxu1 }
 0x42f   :  { %v9291_v19 = vpack.i.bf16 %v4551_v27, %v4549_v37  ;;  %v15863_v37 = vld [vmem:[#allocation77_spill] sm:$0xff] }
 0x430   :  { %v8446_v10 = vpop.f32.mrf.mxu1  ;;  %v4054_v62 = vadd.f32 %v13892_v38, %v15863_v37 }
 0x431   :  { %v4335_v54 = vadd.f32 %v8446_v10, %v4046_v15  ;;  %9292 = vrot.lane.b32.xlu1 %v9291_v19, %s9695_s30  ;;  %v15865_v10 = vld [vmem:[#allocation44_spill] sm:$0xff] }
 0x432   :  { %v4326_v5 = vpop.f32.mrf.mxu1 }
 0x433   :  { %v4327_v42 = vadd.f32 %v4326_v5, %v4038_v6  ;;  %v13935_v26 = vmax.f32 %v4335_v54, 0.0  ;;  %v4075_v54 = vadd.f32 %v13892_v38, %v13315_v41  ;;  %v4035_v6 = vadd.f32 %v13892_v38, %v15865_v10 }
 0x434   :  { %v8449_v47 = vpop.f32.mrf.mxu1  ;;  %v4078_v41 = vadd.f32 %v13892_v38, %v13345_v20  ;;  %v4091_v20 = vadd.f32 %v13892_v38, %v13402_v0  ;;  %v4094_v0 = vadd.f32 %v13892_v38, %v13404_v59  ;;  %v9390_v59 = vld [vmem:[%s15209_s5 + $0xf8] sm:$0xff]  }
 0x435   :  { %15860 = vst [vmem:[#allocation71_spill] sm:$0xff] %v13935_v26  ;;  %v13937_v43 = vmax.f32 %v4327_v42, 0.0  ;;  %v4067_v42 = vadd.f32 %v13892_v38, %v13269_v53  ;;  %8009 = vmatprep.subr.bf16.mxu1 %v9390_v59  ;;  %v4139_v59 = vadd.f32 %v13892_v38, %v13662_v63  ;;  %v4142_v63 = vadd.f32 %v13892_v38, %v13671_v40 }
 0x436   :  { %v4339_v60 = vpop.f32.mrf.mxu1  ;;  %v4155_v40 = vadd.f32 %v13892_v38, %v13700_v9 }
 0x437   :  { %15861 = vst [vmem:[#allocation36_spill] sm:$0xff] %v13937_v43  ;;  %v4790_v46 = vpack.c.bf16 %v13935_v26, %v13937_v43 }
 0x438   :  { %v8450_v18 = vpop.f32.mrf.mxu1 }
 0x439   :  { %v13945_v27 = vadd.f32 %v8450_v18, %v4062_v30  ;;  %8507 = vmatprep.mubr.msk.bf16.mxu0 %vm3310_vm4, %v4790_v46  ;;  %v15867_v18 = vld [vmem:[#allocation16_spill] sm:$0xff] }
 0x43a   :  { %v4342_v15 = vpop.f32.mrf.mxu1  ;;  %v4043_v46 = vadd.f32 %v13892_v38, %v15867_v18 }
 0x43b   :  { %15864 = vst [vmem:[#allocation60_spill] sm:$0xff] %v13945_v27  ;;  %v4343_v19 = vadd.f32 %v4342_v15, %v4054_v62  ;;  %v15432_v3 = vmax.f32 %v13945_v27, 0.0  ;;  %v4324_v62 = vadd.f32 %v4323_v61, %v4035_v6  ;;  %v15870_v27 = vld [vmem:[#allocation75_spill] sm:$0xff] }
 0x43c   :  { %v8453_v5 = vpop.f32.mrf.mxu1  ;;  %v4332_v53 = vadd.f32 %v8445_v16, %v4043_v46  ;;  %v4083_v16 = vadd.f32 %v13892_v38, %v13366_v21 }
 0x43d   :  { %v13955_v26 = vmax.f32 %v4343_v19, 0.0  ;;  %v13957_v30 = vadd.f32 %v8453_v5, %v4075_v54  ;;  %v4070_v54 = vadd.f32 %v13892_v38, %v13290_v25  ;;  %v15868_v5 = vld [vmem:[#allocation25_spill] sm:$0xff]  ;;  %v4554_v61 = vmax.f32 %v4324_v62, 0.0 }
 0x43e   :  { %v4355_v37 = vpop.f32.mrf.mxu1  ;;  %v4059_v18 = vadd.f32 %v13892_v38, %v15868_v5  ;;  %v4051_v5 = vadd.f32 %v13892_v38, %v15870_v27 }
 0x43f   :  { %15866 = vst [vmem:[#allocation41_spill] sm:$0xff] %v13957_v30  ;;  %v4794_v15 = vpack.c.bf16 %v15432_v3, %v13955_v26  ;;  %v13966_v10 = vadd.f32 %v4355_v37, %v4067_v42  ;;  %v4556_v42 = vmax.f32 %v4332_v53, 0.0 }
 0x440   :  { %v8454_v43 = vpop.f32.mrf.mxu1  ;;  %v4348_v37 = vadd.f32 %v8449_v47, %v4059_v18  ;;  %v4086_v47 = vadd.f32 %v13892_v38, %v13381_v35  ;;  %v4110_v35 = vadd.f32 %v13892_v38, %v13557_v32 }
 0x441   :  { %v4367_v19 = vadd.f32 %v8454_v43, %v4078_v41  ;;  %8508 = vmatmul.mubr.msk.bf16.vlgmr.msra.gmra.mxu0 %vm3310_vm4, %v4794_v15 }
 0x442   :  { %v4358_v30 = vpop.f32.mrf.mxu1 }
 0x443   :  { %v4565_v6 = vmax.f32 %v4367_v19, 0.0  ;;  %v4359_v3 = vadd.f32 %v4358_v30, %v4070_v54  ;;  %v4560_v30 = vmax.f32 %v4348_v37, 0.0 }
 0x444   :  { %v8457_v46 = vpop.f32.mrf.mxu1 }
 0x445   :  { %v9301_v25 = vpack.i.bf16 %v4565_v6, %v4554_v61  ;;  %v4563_v43 = vmax.f32 %v4359_v3, 0.0  ;;  %v13977_v41 = vadd.f32 %v8457_v46, %v4091_v20  ;;  %v4340_v3 = vadd.f32 %v4339_v60, %v4051_v5 }
 0x446   :  { %v4371_v15 = vpop.f32.mrf.mxu1 }
 0x447   :  { %15869 = vst [vmem:[#allocation43_spill] sm:$0xff] %v13977_v41  ;;  %v9296_v62 = vpack.i.bf16 %v4556_v42, %v4563_v43  ;;  %v13983_v19 = vadd.f32 %v4371_v15, %v4083_v16  ;;  %9302 = vrot.lane.b32.xlu1 %v9301_v25, %s9695_s30  ;;  %v4558_v20 = vmax.f32 %v4340_v3, 0.0  ;;  %v4102_v42 = vadd.f32 %v13892_v38, %v13525_v4 }
 0x448   :  { %v8458_v21 = vpop.f32.mrf.mxu1 }
 0x449   :  { %v13988_v53 = vadd.f32 %v8458_v21, %v4094_v0  ;;  %9297 = vrot.lane.b32.xlu0 %v9296_v62, %s9695_s30  ;;  %v15871_v62 = vld [vmem:[#allocation38_spill] sm:$0xff] }
 0x44a   :  { %v4374_v54 = vpop.f32.mrf.mxu1  ;;  %v4126_v21 = vadd.f32 %v13892_v38, %v15871_v62 }
 0x44b   :  { %v4375_v27 = vadd.f32 %v4374_v54, %v4086_v47  ;;  %4628 = vrot.lane.b32.xlu1 %v4560_v30, %s9695_s30  ;;  %v15872_v30 = vld [vmem:[#allocation64_spill] sm:$0xff] }
 0x44c   :  { %v8461_v18 = vpop.f32.mrf.mxu1  ;;  %v4118_v4 = vadd.f32 %v13892_v38, %v15872_v30 }
 0x44d   :  { %v4567_v61 = vmax.f32 %v4375_v27, 0.0 }
 0x44e   :  { %v4387_v6 = vpop.f32.mrf.mxu1 }
 0x44f   :  { %v9306_v60 = vpack.i.bf16 %v4558_v20, %v4567_v61  ;;  %v15874_v20 = vld [vmem:[#allocation23_spill] sm:$0xff] }
 0x450   :  { %v8462_v16 = vpop.f32.mrf.mxu1  ;;  %v4099_v61 = vadd.f32 %v13892_v38, %v15874_v20  ;;  %v15877_v20 = vld [vmem:[#allocation58_spill] sm:$0xff] }
 0x451   :  { %v4399_v46 = vadd.f32 %v8462_v16, %v4110_v35  ;;  %9307 = vrot.lane.b32.xlu0 %v9306_v60, %s9695_s30  ;;  %v15875_v60 = vld [vmem:[#allocation67_spill] sm:$0xff] }
 0x452   :  { %v4390_v37 = vpop.f32.mrf.mxu1  ;;  %v4131_v16 = vadd.f32 %v13892_v38, %v15875_v60 }
 0x453   :  { %v4391_v25 = vadd.f32 %v4390_v37, %v4102_v42  ;;  %v14000_v15 = vmax.f32 %v4399_v46, 0.0 }
 0x454   :  { %v8465_v43 = vpop.f32.mrf.mxu1 }
 0x455   :  { %v14002_v5 = vmax.f32 %v4391_v25, 0.0  ;;  %v15876_v25 = vld [vmem:[#allocation56_spill] sm:$0xff] }
 0x456   :  { %v4403_v0 = vpop.f32.mrf.mxu1  ;;  %v4107_v62 = vadd.f32 %v13892_v38, %v15876_v25 }
 0x457   :  { %v4798_v32 = vpack.c.bf16 %v14000_v15, %v14002_v5 }
 0x458   :  { %v8466_v47 = vpop.f32.mrf.mxu1 }
 0x459   :  { %v14010_v3 = vadd.f32 %v8466_v47, %v4126_v21  ;;  %8511 = vmatprep.mubr.msk.bf16.mxu0 %vm3310_vm4, %v4798_v32  ;;  %v4388_v32 = vadd.f32 %v4387_v6, %v4099_v61 }
 0x45a   :  { %v4406_v54 = vpop.f32.mrf.mxu1 }
 0x45b   :  { %15873 = vst [vmem:[#allocation54_spill] sm:$0xff] %v14010_v3  ;;  %v4407_v27 = vadd.f32 %v4406_v54, %v4118_v4  ;;  %v15434_v42 = vmax.f32 %v14010_v3, 0.0  ;;  %v4396_v4 = vadd.f32 %v8461_v18, %v4107_v62  ;;  %v4570_v6 = vmax.f32 %v4388_v32, 0.0 }
 0x45c   :  { %v8469_v35 = vpop.f32.mrf.mxu1  ;;  %v4147_v18 = vadd.f32 %v13892_v38, %v13679_v31  ;;  %v4150_v31 = vadd.f32 %v13892_v38, %v13691_v50  ;;  %v4166_v50 = vadd.f32 %v13892_v38, %v13739_v23  ;;  %v4182_v23 = vadd.f32 %v13892_v38, %v13760_v56 }
 0x45d   :  { %v14020_v46 = vmax.f32 %v4407_v27, 0.0  ;;  %v14022_v37 = vadd.f32 %v8469_v35, %v4139_v59  ;;  %v4134_v59 = vadd.f32 %v13892_v38, %v13644_v39  ;;  %v4123_v35 = vadd.f32 %v13892_v38, %v15877_v20 }
 0x45e   :  { %v4419_v21 = vpop.f32.mrf.mxu1 }
 0x45f   :  { %v4802_v47 = vpack.c.bf16 %v15434_v42, %v14020_v46  ;;  %v14031_v30 = vadd.f32 %v4419_v21, %v4131_v16  ;;  %v4572_v16 = vmax.f32 %v4396_v4, 0.0  ;;  %v4412_v21 = vadd.f32 %v8465_v43, %v4123_v35  ;;  %v15878_v42 = vld [vmem:[#allocation66_spill] sm:$0xff] }
 0x460   :  { %v8470_v54 = vpop.f32.mrf.mxu1  ;;  %v4115_v20 = vadd.f32 %v13892_v38, %v15878_v42 }
 0x461   :  { %v4431_v27 = vadd.f32 %v8470_v54, %v4142_v63  ;;  %8512 = vmatmul.mubr.msk.bf16.gmra.mxu0 %vm3310_vm4, %v4802_v47  ;;  %v4576_v32 = vmax.f32 %v4412_v21, 0.0 }
 0x462   :  { %v4422_v60 = vpop.f32.mrf.mxu1  ;;  %v4404_v43 = vadd.f32 %v4403_v0, %v4115_v20 }
 0x463   :  { %v4581_v61 = vmax.f32 %v4431_v27, 0.0  ;;  %v4423_v25 = vadd.f32 %v4422_v60, %v4134_v59 }
 0x464   :  { %v8473_v62 = vpop.f32.mrf.mxu1  ;;  %v4574_v42 = vmax.f32 %v4404_v43, 0.0  ;;  %v4163_v43 = vadd.f32 %v13892_v38, %v13732_v11 }
 0x465   :  { %v9316_v39 = vpack.i.bf16 %v4581_v61, %v4570_v6  ;;  %v4579_v63 = vmax.f32 %v4423_v25, 0.0  ;;  %v14042_v54 = vadd.f32 %v8473_v62, %v4155_v40  ;;  %v4174_v40 = vadd.f32 %v13892_v38, %v13749_v33 }
 0x466   :  { %v4435_v47 = vpop.f32.mrf.mxu1 }
 0x467   :  { %v9311_v41 = vpack.i.bf16 %v4572_v16, %v4579_v63  ;;  %v14046_v3 = vadd.f32 %v4435_v47, %v4147_v18  ;;  %9317 = vrot.lane.b32.xlu1 %v9316_v39, %s9695_s30  ;;  %v4190_v39 = vadd.f32 %v13892_v38, %v13795_v57 }
 0x468   :  { %v14049_v9 = vpop.f32.mrf.mxu1 }
 0x469   :  { %9312 = vrot.lane.b32.xlu0 %v9311_v41, %s9695_s30 }
 0x46a   :  { %v4438_v4 = vpop.f32.mrf.mxu1 }
 0x46b   :  { %v4439_v59 = vadd.f32 %v4438_v4, %v4150_v31  ;;  %4636 = vrot.lane.b32.xlu1 %v4576_v32, %s9695_s30  ;;  %v4203_v31 = vadd.f32 %v13892_v38, %v13814_v8  ;;  %v4195_v4 = vadd.f32 %v13892_v38, %v13802_v45  ;;  %v4206_v8 = vadd.f32 %v13892_v38, %v13818_v58 }
 0x46c   :  { %v8477_v27 = vpop.f32.mrf.mxu1  ;;  %v4219_v58 = vadd.f32 %v13892_v38, %v13836_v36 }
 0x46d   :  { %v4583_v35 = vmax.f32 %v4439_v59, 0.0 }
 0x46e   :  { %v4451_v60 = vpop.f32.mrf.mxu1 }
 0x46f   :  { %v9321_v6 = vpack.i.bf16 %v4574_v42, %v4583_v35  ;;  %v4171_v35 = vadd.f32 %v13892_v38, %v13743_v29  ;;  %v4187_v29 = vadd.f32 %v13892_v38, %v13792_v7  ;;  %v4179_v7 = vadd.f32 %v13892_v38, %v13753_v24 }
 0x470   :  { %v8478_v61 = vpop.f32.mrf.mxu1  ;;  %v4227_v24 = vadd.f32 %v13892_v38, %v13852_v34  ;;  %v4230_v34 = vadd.f32 %v13892_v38, %v13854_v49 }
 0x471   :  { %v4463_v25 = vadd.f32 %v8478_v61, %v4174_v40  ;;  %9322 = vrot.lane.b32.xlu0 %v9321_v6, %s9695_s30  ;;  %v4452_v6 = vadd.f32 %v4451_v60, %v4163_v43  ;;  %v4460_v45 = vadd.f32 %v8477_v27, %v4171_v35  ;;  %v4211_v27 = vadd.f32 %v13892_v38, %v13822_v17 }
 0x472   :  { %v4454_v41 = vpop.f32.mrf.mxu1  ;;  %v4214_v17 = vadd.f32 %v13892_v38, %v13826_v22 }
 0x473   :  { %v4455_v0 = vadd.f32 %v4454_v41, %v4166_v50  ;;  %v14060_v16 = vmax.f32 %v4463_v25, 0.0  ;;  %v4198_v25 = vadd.f32 %v13892_v38, %v13808_v12  ;;  %v4586_v60 = vmax.f32 %v4452_v6, 0.0 }
 0x474   :  { %v8481_v18 = vpop.f32.mrf.mxu1 }
 0x475   :  { %v14062_v62 = vmax.f32 %v4455_v0, 0.0 }
 0x476   :  { %v4467_v21 = vpop.f32.mrf.mxu1 }
 0x477   :  { %v4806_v33 = vpack.c.bf16 %v14060_v16, %v14062_v62 }
 0x478   :  { %v8482_v63 = vpop.f32.mrf.mxu1 }
 0x479   :  { %v14070_v47 = vadd.f32 %v8482_v63, %v4190_v39  ;;  %8515 = vmatprep.mubr.msk.bf16.mxu0 %vm3310_vm4, %v4806_v33  ;;  %v4588_v63 = vmax.f32 %v4460_v45, 0.0  ;;  %v4569_v45 = vmax.f32 %v13988_v53, 0.0 }
 0x47a   :  { %v4470_v20 = vpop.f32.mrf.mxu1 }
 0x47b   :  { %v4471_v32 = vadd.f32 %v4470_v20, %v4182_v23  ;;  %v4593_v59 = vmax.f32 %v14070_v47, 0.0  ;;  %v4476_v20 = vadd.f32 %v8481_v18, %v4187_v29 }
 0x47c   :  { %v8485_v57 = vpop.f32.mrf.mxu1 }
 0x47d   :  { %v14080_v42 = vmax.f32 %v4471_v32, 0.0  ;;  %v14082_v56 = vadd.f32 %v8485_v57, %v4203_v31  ;;  %v4592_v35 = vmax.f32 %v4476_v20, 0.0 }
 0x47e   :  { %v4483_v40 = vpop.f32.mrf.mxu1 }
 0x47f   :  { %v4810_v11 = vpack.c.bf16 %v4593_v59, %v14080_v42  ;;  %v14091_v61 = vadd.f32 %v4483_v40, %v4195_v4  ;;  %v4468_v40 = vadd.f32 %v4467_v21, %v4179_v7  ;;  %v4238_v21 = vadd.f32 %v13892_v38, %v13861_v14 }
 0x480   :  { %v8486_v50 = vpop.f32.mrf.mxu1  ;;  %v4158_v14 = vadd.f32 %v13892_v38, %v13704_v51 }
 0x481   :  { %v4495_v41 = vadd.f32 %v8486_v50, %v4206_v8  ;;  %8516 = vmatmul.mubr.msk.bf16.gmra.mxu0 %vm3310_vm4, %v4810_v11  ;;  %v4235_v8 = vadd.f32 %v13892_v38, %v13856_v2  ;;  %v4590_v50 = vmax.f32 %v4468_v40, 0.0  ;;  %v4222_v2 = vadd.f32 %v13892_v38, %v13838_v44 }
 0x482   :  { %v4486_v0 = vpop.f32.mrf.mxu1  ;;  %v4447_v49 = vadd.f32 %v14049_v9, %v4158_v14  ;;  %v4254_v9 = vadd.f32 %v13892_v38, %v13887_v13  ;;  %v9396_v14 = vld [vmem:[%s15209_s5 + $0xe0] sm:$0xff]  }
 0x483   :  { %v4597_v39 = vmax.f32 %v4495_v41, 0.0  ;;  %v4487_v33 = vadd.f32 %v4486_v0, %v4198_v25 }
 0x484   :  { %v8489_v23 = vpop.f32.mrf.mxu1 }
 0x485   :  { %v9331_v12 = vpack.i.bf16 %v4597_v39, %v4586_v60  ;;  %v4595_v31 = vmax.f32 %v4487_v33, 0.0  ;;  %v14102_v32 = vadd.f32 %v8489_v23, %v4219_v58  ;;  %v4251_v33 = vadd.f32 %v13892_v38, %v13879_v48 }
 0x486   :  { %v4499_v43 = vpop.f32.mrf.mxu1 }
 0x487   :  { %v9326_v57 = vpack.i.bf16 %v4588_v63, %v4595_v31  ;;  %v14106_v4 = vadd.f32 %v4499_v43, %v4211_v27  ;;  %9332 = vrot.lane.b32.xlu1 %v9331_v12, %s9695_s30  ;;  %v4553_v63 = vmax.f32 %v13928_v1, 0.0  ;;  %v4243_v31 = vadd.f32 %v13892_v38, %v13866_v55 }
 0x488   :  { %v8490_v36 = vpop.f32.mrf.mxu1 }
 0x489   :  { %9327 = vrot.lane.b32.xlu0 %v9326_v57, %s9695_s30  ;;  %v4511_v44 = vadd.f32 %v8490_v36, %v4222_v2  ;;  %v9393_v2 = vld [vmem:[%s15209_s5 + $0xb0] sm:$0xff]  }
 0x48a   :  { %v4502_v18 = vpop.f32.mrf.mxu1 }
 0x48b   :  { %v4503_v6 = vadd.f32 %v4502_v18, %v4214_v17  ;;  %4644 = vrot.lane.b32.xlu1 %v4592_v35, %s9695_s30  ;;  %v4601_v57 = vmax.f32 %v4511_v44, 0.0  ;;  %v4546_v17 = vmax.f32 %v13906_v52, 0.0  ;;  %v4585_v35 = vmax.f32 %v4447_v49, 0.0 }
 0x48c   :  { %v8493_v11 = vpop.f32.mrf.mxu1  ;;  %v4246_v18 = vadd.f32 %v13892_v38, %v13868_v28  ;;  %v15883_v28 = vld [vmem:[#allocation26_spill] sm:$0xff] }
 0x48d   :  { %v4599_v25 = vmax.f32 %v4503_v6, 0.0  ;;  %v4524_v22 = vadd.f32 %v8493_v11, %v4235_v8 }
 0x48e   :  { %v4515_v41 = vpop.f32.mrf.mxu1 }
 0x48f   :  { %v9336_v29 = vpack.i.bf16 %v4590_v50, %v4599_v25  ;;  %v4516_v0 = vadd.f32 %v4515_v41, %v4227_v24  ;;  %4712 = vrot.lane.b32.xlu1 %v4569_v45, %s9695_s30  ;;  %v4604_v60 = vmax.f32 %v4524_v22, 0.0  ;;  %v9391_v50 = vld [vmem:[%s15209_s5 + $0xb8] sm:$0xff]   ;;  %v7525_v41 = vpack.c.bf16 %v15883_v28, %v15883_v28 }
 0x490   :  { %v8494_v58 = vpop.f32.mrf.mxu1 }
 0x491   :  { %v4602_v53 = vmax.f32 %v4516_v0, 0.0  ;;  %v14125_v39 = vadd.f32 %v8494_v58, %v4238_v21  ;;  %9337 = vrot.lane.b32.xlu0 %v9336_v29, %s9695_s30  ;;  %v9392_v21 = vld [vmem:[%s15209_s5 + $0xf0] sm:$0xff]  }
 0x492   :  { %v4518_v27 = vpop.f32.mrf.mxu1 }
 0x493   :  { %v9341_v23 = vpack.i.bf16 %v4602_v53, %v4604_v60  ;;  %v14133_v20 = vadd.f32 %v4518_v27, %v4230_v34  ;;  %v4605_v43 = vmax.f32 %v14125_v39, 0.0  ;;  %v9394_v34 = vld [vmem:[%s15209_s5 + $0xe8] sm:$0xff]  }
 0x494   :  { %v8497_v12 = vpop.f32.mrf.mxu1  ;;  %v9395_v60 = vld [vmem:[%s15209_s5 + $0xa8] sm:$0xff]  }
 0x495   :  { %v4603_v51 = vmax.f32 %v14133_v20, 0.0  ;;  %v4540_v7 = vadd.f32 %v8497_v12, %v4251_v33  ;;  %9342 = vrot.lane.b32.xlu1 %v9341_v23, %s9695_s30  ;;  %4710 = vrot.lane.b32.xlu0 %v4553_v63, %s9695_s30  ;;  %v15884_v33 = vld [vmem:[#allocation68_spill] sm:$0xff]  ;;  %v15885_v63 = vld [vmem:[#allocation42_spill] sm:$0xff] }
 0x496   :  { %v4531_v48 = vpop.f32.mrf.mxu1  ;;  %v4548_v27 = vmax.f32 %v15884_v33, 0.0  ;;  %v4550_v44 = vmax.f32 %v15885_v63, 0.0  ;;  %v9475_v39 = vld [vmem:[%s15211_s7 + $0x100] ss:$8 sps:$4 sm:$0xff]  }
 0x497   :  { %v4814_v55 = vpack.c.bf16 %v4605_v43, %v4603_v51  ;;  %v4532_v36 = vadd.f32 %v4531_v48, %v4243_v31  ;;  %v4608_v8 = vmax.f32 %v4540_v7, 0.0  ;;  %v9397_v7 = vld [vmem:[%s15209_s5 + $0xa0] sm:$0xff]  }
 0x498   :  { %v8498_v40 = vpop.f32.mrf.mxu1 }
 0x499   :  { %v4606_v6 = vmax.f32 %v4532_v36, 0.0  ;;  %v4543_v24 = vadd.f32 %v8498_v40, %v4254_v9  ;;  %8519 = vmatprep.mubr.msk.bf16.mxu0 %vm3310_vm4, %v4814_v55  ;;  %4716 = vrot.lane.b32.xlu1 %v4601_v57, %s9695_s30  ;;  %v4671_v13 = vpop.permute.xlu0 %4670  ;;  %v9398_v57 = vld [vmem:[%s15209_s5 + $0xd8] sm:$0xff]   ;;  %v9400_v36 = vld [vmem:[%s15209_s5 + $0xd0] sm:$0xff]   ;;  %v9403_v40 = vld [vmem:[%s15209_s5 + $0x88] sm:$0xff]  }
 0x49a   :  { %4714 = vrot.lane.b32.xlu0 %v4585_v35, %s9695_s30  ;;  %v14167_v52 = vsel %vm3310_vm4, %v4546_v17, %v4671_v13  ;;  %v7520_v38 = vpack.c.bf16 %v4671_v13, %v15883_v28  ;;  %v4534_v45 = vpop.f32.mrf.mxu1  ;;  %v9399_v55 = vld [vmem:[%s15209_s5 + $0x98] sm:$0xff]   ;;  %v9401_v17 = vld [vmem:[%s15209_s5 + $0x90] sm:$0xff]   ;;  %v9402_v35 = vld [vmem:[%s15209_s5 + $0xc8] sm:$0xff]  }
 0x49b   :  { %v9346_v25 = vpack.i.bf16 %v4608_v8, %v4606_v6  ;;  %v14173_v22 = vadd.f32 %v4534_v45, %v4246_v18  ;;  %v4609_v29 = vmax.f32 %v4543_v24, 0.0  ;;  %v9404_v18 = vld [vmem:[%s15209_s5 + $0xc0] sm:$0xff]   ;;  %v15886_v24 = vld [vmem:[#allocation41_spill] sm:$0xff]  ;;  %v4562_v45 = vmax.f32 %v13966_v10, 0.0 }
 0x49c   :  { %7521 = vmatprep.mubr.msk.bf16.mxu1 %vm14161_vm7, %v7520_v38  ;;  %v9405_v8 = vld [vmem:[%s15209_s5 + $0x80] sm:$0xff]   ;;  %v4564_v13 = vmax.f32 %v15886_v24, 0.0  ;;  %v4578_v24 = vmax.f32 %v14031_v30, 0.0 }
 0x49d   :  { %v4607_v0 = vmax.f32 %v14173_v22, 0.0  ;;  %7526 = vmatmul.mubr.msk.bf16.vlgmr.msra.gmra.mxu1 %vm14161_vm7, %v7525_v41  ;;  %v9477_v10 = vld [vmem:[%s15211_s7 + $0x104] ss:$8 sps:$4 sm:$0xff]   ;;  %v9483_v22 = vld [vmem:[%s15211_s7 + $0x1f4] ss:$8 sps:$4 sm:$0xff]  }
 0x49e   :  { %9347 = vrot.lane.b32.xlu0 %v9346_v25, %s9695_s30  ;;  %8010 = vmatpush3.bf16.msra.mxu1 %v9391_v50 }
 0x49f   :  { %v4818_v58 = vpack.c.bf16 %v4609_v29, %v4607_v0  ;;  %8011 = vmatprep.subr.bf16.mxu1 %v9392_v21  ;;  %v15887_v29 = vld [vmem:[#allocation36_spill] sm:$0xff] }
 0x4a1   :  { %8520 = vmatmul.mubr.msk.bf16.gmra.mxu0 %vm3310_vm4, %v4818_v58 }
 0x4a2   :  { %8012 = vmatpush3.bf16.msra.mxu1 %v9393_v2 }
 0x4a3   :  { %v9293_v53 = vpop.permute.xlu1 %9292  ;;  %8013 = vmatprep.subr.bf16.mxu1 %v9394_v34  ;;  %v4754_v34 = vsel %vm3310_vm4, %v15887_v29, %v15883_v28 }
 0x4a4   :  { %v9295_v23 = vunpack.i.h.bf16 %v9293_v53  ;;  %v9294_v49 = vunpack.i.l.bf16 %v9293_v53 }
 0x4a6   :  { %v14204_v12 = vsel %vm3310_vm4, %v4548_v27, %v9294_v49  ;;  %v7530_v31 = vpack.c.bf16 %v9295_v23, %v9294_v49  ;;  %8014 = vmatpush3.bf16.msra.mxu1 %v9395_v60  ;;  %v14210_v48 = vsel %vm3310_vm4, %v4550_v44, %v9295_v23  ;;  %v15888_v60 = vld [vmem:[#allocation71_spill] sm:$0xff]  ;;  %v4566_v23 = vmax.f32 %v13983_v19, 0.0 }
 0x4a7   :  { %v4788_v9 = vpack.c.bf16 %v14204_v12, %v14167_v52  ;;  %8015 = vmatprep.subr.bf16.mxu1 %v9396_v14  ;;  %v9417_v52 = vld [vmem:[%s15211_s7 + $0x44] ss:$8 sps:$4 sm:$0xff]   ;;  %v9415_v12 = vld [vmem:[%s15211_s7 + $0x40] ss:$8 sps:$4 sm:$0xff]  }
 0x4a8   :  { %7531 = vmatprep.mubr.msk.bf16.mxu1 %vm14161_vm7, %v7530_v31 }
 0x4a9   :  { %7536 = vmatmul.mubr.msk.bf16.gmra.mxu1 %vm14161_vm7, %v7525_v41 }
 0x4aa   :  { %8016 = vmatpush3.bf16.msra.mxu1 %v9397_v7 }
 0x4ab   :  { %8017 = vmatprep.subr.bf16.mxu1 %v9398_v57 }
 0x4ae   :  { %8018 = vmatpush3.bf16.msra.mxu1 %v9399_v55  ;;  %v15891_v55 = vld [vmem:[#allocation60_spill] sm:$0xff] }
 0x4af   :  { %8019 = vmatprep.subr.bf16.mxu1 %v9400_v36  ;;  %v15892_v36 = vmax.f32 %v15891_v55, 0.0 }
 0x4b2   :  { %8020 = vmatpush3.bf16.msra.mxu1 %v9401_v17 }
 0x4b3   :  { %8021 = vmatprep.subr.bf16.mxu1 %v9402_v35 }
 0x4b6   :  { %8022 = vmatpush3.bf16.msra.mxu1 %v9403_v40 }
 0x4b7   :  { %8023 = vmatprep.subr.bf16.mxu1 %v9404_v18 }
 0x4b9   :  { %v9303_v6 = vpop.permute.xlu1 %9302 }
 0x4ba   :  { %v9305_v11 = vunpack.i.h.bf16 %v9303_v6  ;;  %8024 = vmatpush3.bf16.msra.mxu1 %v9405_v8  ;;  %v9304_v21 = vunpack.i.l.bf16 %v9303_v6  ;;  %v4580_v8 = vmax.f32 %v14022_v37, 0.0  ;;  %v4758_v37 = vsel %vm3310_vm4, %v14002_v5, %v15883_v28 }
 0x4bb   :  { %v9298_v38 = vpop.permute.xlu0 %9297 }
 0x4bc   :  { %v14245_v50 = vsel %vm3310_vm4, %v4564_v13, %v9305_v11  ;;  %v9300_v25 = vunpack.i.h.bf16 %v9298_v38  ;;  %v9299_v41 = vunpack.i.l.bf16 %v9298_v38  ;;  %v4756_v31 = vsel %vm3310_vm4, %v13955_v26, %v9305_v11 }
 0x4bd   :  { %v4629_v63 = vpop.permute.xlu1 %4628 }
 0x4be   :  { %v4740_v2 = vsel %vm3310_vm4, %v15887_v29, %v9300_v25  ;;  %v14250_v58 = vsel %vm3310_vm4, %v4562_v45, %v9299_v41  ;;  %v4755_v53 = vsel %vm3310_vm4, %v15888_v60, %v9299_v41  ;;  %v4742_v7 = vsel %vm3310_vm4, %v13955_v26, %v4629_v63 }
 0x4bf   :  { %v14263_v14 = vpack.c.bf16 %v4740_v2, %v9304_v21  ;;  %v4796_v33 = vpack.c.bf16 %v14245_v50, %v14250_v58  ;;  %v4795_v27 = vpack.c.bf16 %v4755_v53, %v4754_v34  ;;  %v4582_v53 = vmax.f32 %v14046_v3, 0.0  ;;  %v9438_v50 = vld [vmem:[%s15211_s7 + $0x174] ss:$8 sps:$4 sm:$0xff]   ;;  %v9424_v58 = vld [vmem:[%s15211_s7 + $0x10] ss:$8 sps:$4 sm:$0xff]  }
 0x4c0   :  { %6387 = vmatprep.subr.bf16.mxu0 %v9438_v50  ;;  %v9513_v50 = vld [vmem:[%s15211_s7 + $0x1a4] ss:$8 sps:$4 sm:$0xff]  }
 0x4c1   :  { %5186 = vmatprep.mubr.bf16.mxu1 %v4795_v27 }
 0x4c2   :  { %7540 = vmatmul.mubr.msk.bf16.gmra.mxu1 %vm14259_vm9, %v14263_v14 }
 0x4c3   :  { %v9308_v44 = vpop.permute.xlu0 %9307 }
 0x4c4   :  { %v9310_v1 = vunpack.i.h.bf16 %v9308_v44  ;;  %v9309_v49 = vunpack.i.l.bf16 %v9308_v44 }
 0x4c6   :  { %v4741_v57 = vsel %vm3310_vm4, %v15888_v60, %v9310_v1  ;;  %v4757_v17 = vsel %vm3310_vm4, %v15892_v36, %v9309_v49  ;;  %v14281_v35 = vsel %vm3310_vm4, %v4566_v23, %v9309_v49  ;;  %v15893_v1 = vld [vmem:[#allocation54_spill] sm:$0xff] }
 0x4c7   :  { %v14283_v40 = vpack.c.bf16 %v4742_v7, %v4741_v57  ;;  %v4799_v19 = vpack.c.bf16 %v4757_v17, %v4756_v31  ;;  %v15894_v49 = vmax.f32 %v15893_v1, 0.0  ;;  %v4596_v17 = vmax.f32 %v14082_v56, 0.0 }
 0x4c9   :  { %5194 = vmatprep.mubr.bf16.mxu1 %v4799_v19  ;;  %v4594_v19 = vmax.f32 %v14091_v61, 0.0 }
 0x4ca   :  { %5195 = vmatmul.mubr.bf16.gmra.mxu1 %v14283_v40 }
 0x4d9   :  { %v9318_v18 = vpop.permute.xlu1 %9317 }
 0x4da   :  { %v9320_v26 = vunpack.i.h.bf16 %v9318_v18  ;;  %v9319_v45 = vunpack.i.l.bf16 %v9318_v18 }
 0x4db   :  { %v9313_v6 = vpop.permute.xlu0 %9312 }
 0x4dc   :  { %v14289_v13 = vsel %vm3310_vm4, %v4580_v8, %v9320_v26  ;;  %v9315_v11 = vunpack.i.h.bf16 %v9313_v6  ;;  %v9314_v38 = vunpack.i.l.bf16 %v9313_v6  ;;  %v4760_v63 = vsel %vm3310_vm4, %v14020_v46, %v9320_v26 }
 0x4dd   :  { %v4637_v34 = vpop.permute.xlu1 %4636 }
 0x4de   :  { %v4744_v25 = vsel %vm3310_vm4, %v14002_v5, %v9315_v11  ;;  %v14294_v41 = vsel %vm3310_vm4, %v4578_v24, %v9314_v38  ;;  %v4759_v21 = vsel %vm3310_vm4, %v14000_v15, %v9314_v38  ;;  %v4746_v44 = vsel %vm3310_vm4, %v14020_v46, %v4637_v34  ;;  %v9408_v46 = vld [vmem:[%s15211_s7 + $0x74] ss:$8 sps:$4 sm:$0xff]  }
 0x4df   :  { %v14301_v30 = vpack.c.bf16 %v4744_v25, %v9319_v45  ;;  %v4804_v29 = vpack.c.bf16 %v14289_v13, %v14294_v41  ;;  %v4803_v2 = vpack.c.bf16 %v4759_v21, %v4758_v37  ;;  %6334 = vmatprep.subr.bf16.mxu1 %v9408_v46  ;;  %v4762_v24 = vsel %vm3310_vm4, %v14062_v62, %v15883_v28  ;;  %v15895_v21 = vld [vmem:[#allocation43_spill] sm:$0xff]  ;;  %v9462_v13 = vld [vmem:[%s15211_s7 + $0x134] ss:$8 sps:$4 sm:$0xff]  }
 0x4e0   :  { %v4568_v28 = vmax.f32 %v15895_v21, 0.0  ;;  %v9427_v21 = vld [vmem:[%s15211_s7] ss:$8 sps:$4 sm:$0xff]  }
 0x4e1   :  { %5202 = vmatprep.mubr.bf16.mxu1 %v4803_v2 }
 0x4e2   :  { %7544 = vmatmul.mubr.msk.bf16.gmra.mxu1 %vm14259_vm9, %v14301_v30 }
 0x4e3   :  { %v9323_v60 = vpop.permute.xlu0 %9322 }
 0x4e4   :  { %v9325_v27 = vunpack.i.h.bf16 %v9323_v60  ;;  %v9324_v5 = vunpack.i.l.bf16 %v9323_v60 }
 0x4e6   :  { %v4745_v23 = vsel %vm3310_vm4, %v14000_v15, %v9325_v27  ;;  %v4761_v31 = vsel %vm3310_vm4, %v15894_v49, %v9324_v5  ;;  %v14319_v7 = vsel %vm3310_vm4, %v4582_v53, %v9324_v5  ;;  %v4598_v53 = vmax.f32 %v14106_v4, 0.0 }
 0x4e7   :  { %v14321_v57 = vpack.c.bf16 %v4746_v44, %v4745_v23  ;;  %v4807_v3 = vpack.c.bf16 %v4761_v31, %v4760_v63  ;;  %v15896_v31 = vld [vmem:[#allocation72_spill] sm:$0xff] }
 0x4e8   :  { %v4552_v4 = vmax.f32 %v15896_v31, 0.0  ;;  %v9447_v31 = vld [vmem:[%s15211_s7 + $0xc4] ss:$8 sps:$4 sm:$0xff]  }
 0x4e9   :  { %5210 = vmatprep.mubr.bf16.mxu1 %v4807_v3 }
 0x4ea   :  { %5211 = vmatmul.mubr.bf16.gmra.mxu1 %v14321_v57 }
 0x4f9   :  { %v9333_v55 = vpop.permute.xlu1 %9332 }
 0x4fa   :  { %v9335_v15 = vunpack.i.h.bf16 %v9333_v55  ;;  %v9334_v26 = vunpack.i.l.bf16 %v9333_v55 }
 0x4fb   :  { %v9328_v36 = vpop.permute.xlu0 %9327 }
 0x4fc   :  { %v9330_v18 = vunpack.i.h.bf16 %v9328_v36  ;;  %v9329_v8 = vunpack.i.l.bf16 %v9328_v36  ;;  %v14333_v11 = vsel %vm3310_vm4, %v4596_v17, %v9335_v15  ;;  %v4764_v63 = vsel %vm3310_vm4, %v14080_v42, %v9335_v15 }
 0x4fd   :  { %v4645_v6 = vpop.permute.xlu1 %4644 }
 0x4fe   :  { %v4748_v38 = vsel %vm3310_vm4, %v14062_v62, %v9330_v18  ;;  %v14338_v45 = vsel %vm3310_vm4, %v4594_v19, %v9329_v8  ;;  %v4763_v56 = vsel %vm3310_vm4, %v14060_v16, %v9329_v8  ;;  %v4750_v44 = vsel %vm3310_vm4, %v14080_v42, %v4645_v6  ;;  %v9409_v8 = vld [vmem:[%s15211_s7 + $0x60] ss:$8 sps:$4 sm:$0xff]   ;;  %v9412_v6 = vld [vmem:[%s15211_s7 + $0x50] ss:$8 sps:$4 sm:$0xff]  }
 0x4ff   :  { %v14342_v61 = vpack.c.bf16 %v4748_v38, %v9334_v26  ;;  %v4812_v25 = vpack.c.bf16 %v14333_v11, %v14338_v45  ;;  %v4811_v37 = vpack.c.bf16 %v4763_v56, %v4762_v24  ;;  %v9414_v26 = vld [vmem:[%s15211_s7 + $0x54] ss:$8 sps:$4 sm:$0xff]   ;;  %v9423_v24 = vld [vmem:[%s15211_s7 + $0x24] ss:$8 sps:$4 sm:$0xff]   ;;  %v9436_v56 = vld [vmem:[%s15211_s7 + $0x170] ss:$8 sps:$4 sm:$0xff]  }
 0x500   :  { %v9426_v38 = vld [vmem:[%s15211_s7 + $0x14] ss:$8 sps:$4 sm:$0xff]   ;;  %6388 = vmatpush1.bf16.msra.mxu0 %v9436_v56  ;;  %v9481_v11 = vld [vmem:[%s15211_s7 + $0x1f0] ss:$8 sps:$4 sm:$0xff]   ;;  %v9511_v56 = vld [vmem:[%s15211_s7 + $0x1a0] ss:$8 sps:$4 sm:$0xff]  }
 0x501   :  { %v4713_v2 = vpop.permute.xlu1 %4712  ;;  %5218 = vmatprep.mubr.bf16.mxu1 %v4811_v37  ;;  %v9444_v37 = vld [vmem:[%s15211_s7 + $0x164] ss:$8 sps:$4 sm:$0xff]   ;;  %v9463_v45 = vld [vmem:[%s15211_s7 + $0x90] ss:$8 sps:$4 sm:$0xff]  }
 0x502   :  { %v14348_v34 = vsel %vm3310_vm4, %v4568_v28, %v4713_v2  ;;  %7548 = vmatmul.mubr.msk.bf16.gmra.mxu1 %vm14259_vm9, %v14342_v61  ;;  %6389 = vmatprep.subr.bf16.mxu0 %v9444_v37  ;;  %v9432_v28 = vld [vmem:[%s15211_s7 + $0xf4] ss:$8 sps:$4 sm:$0xff]   ;;  %v9448_v2 = vld [vmem:[%s15211_s7 + $0x150] ss:$8 sps:$4 sm:$0xff]  }
 0x503   :  { %v4800_v62 = vpack.c.bf16 %v14348_v34, %v14281_v35  ;;  %v9338_v60 = vpop.permute.xlu0 %9337  ;;  %v9450_v35 = vld [vmem:[%s15211_s7 + $0x154] ss:$8 sps:$4 sm:$0xff]   ;;  %v9435_v34 = vld [vmem:[%s15211_s7 + $0xe4] ss:$8 sps:$4 sm:$0xff]   ;;  %v9502_v37 = vld [vmem:[%s15211_s7 + $0x230] ss:$8 sps:$4 sm:$0xff]  }
 0x504   :  { %v9340_v27 = vunpack.i.h.bf16 %v9338_v60  ;;  %v9339_v5 = vunpack.i.l.bf16 %v9338_v60  ;;  %v9456_v60 = vld [vmem:[%s15211_s7 + $0x144] ss:$8 sps:$4 sm:$0xff]  }
 0x506   :  { %v4749_v23 = vsel %vm3310_vm4, %v14060_v16, %v9340_v27  ;;  %v4765_v1 = vsel %vm3310_vm4, %v4593_v59, %v9339_v5  ;;  %v14366_v49 = vsel %vm3310_vm4, %v4598_v53, %v9339_v5  ;;  %v4600_v16 = vmax.f32 %v14102_v32, 0.0  ;;  %v9433_v27 = vld [vmem:[%s15211_s7 + $0xe0] ss:$8 sps:$4 sm:$0xff]   ;;  %v9441_v5 = vld [vmem:[%s15211_s7 + $0xd4] ss:$8 sps:$4 sm:$0xff]  }
 0x507   :  { %v14369_v3 = vpack.c.bf16 %v4750_v44, %v4749_v23  ;;  %v14371_v46 = vpop.permute.xlu1 %9342  ;;  %v4815_v55 = vpack.c.bf16 %v4765_v1, %v4764_v63  ;;  %v4711_v15 = vpop.permute.xlu0 %4710  ;;  %v4584_v59 = vmax.f32 %v14042_v54, 0.0  ;;  %v9406_v54 = vld [vmem:[%s15211_s7 + $0x70] ss:$8 sps:$4 sm:$0xff]  }
 0x508   :  { %v4769_v42 = vsel %vm3310_vm4, %v4552_v4, %v4711_v15  ;;  %v9344_v53 = vunpack.i.l.bf16 %v14371_v46  ;;  %v9460_v63 = vld [vmem:[%s15211_s7 + $0x130] ss:$8 sps:$4 sm:$0xff]   ;;  %v9345_v41 = vunpack.i.h.bf16 %v14371_v46  ;;  %v9466_v4 = vld [vmem:[%s15211_s7 + $0x120] ss:$8 sps:$4 sm:$0xff]   ;;  %v9453_v15 = vld [vmem:[%s15211_s7 + $0xb4] ss:$8 sps:$4 sm:$0xff]  }
 0x509   :  { %5226 = vmatprep.mubr.bf16.mxu1 %v4815_v55  ;;  %v4792_v47 = vpack.c.bf16 %v4769_v42, %v14210_v48  ;;  %v9439_v1 = vld [vmem:[%s15211_s7 + $0xd0] ss:$8 sps:$4 sm:$0xff]   ;;  %v9445_v55 = vld [vmem:[%s15211_s7 + $0xc0] ss:$8 sps:$4 sm:$0xff]  }
 0x50a   :  { %5227 = vmatmul.mubr.bf16.gmra.mxu1 %v14369_v3  ;;  %v4783_v44 = vsel %vm3310_vm4, %v4603_v51, %v9344_v53  ;;  %v9474_v51 = vld [vmem:[%s15211_s7 + $0x114] ss:$8 sps:$4 sm:$0xff]   ;;  %v9472_v42 = vld [vmem:[%s15211_s7 + $0x110] ss:$8 sps:$4 sm:$0xff]   ;;  %v9525_v53 = vld [vmem:[%s15211_s7 + $0x184] ss:$8 sps:$4 sm:$0xff]  }
 0x50b   :  { %v4717_v36 = vpop.permute.xlu1 %4716  ;;  %7552 = vmatprep.mubr.msk.bf16.mxu1 %vm14259_vm9, %v14263_v14  ;;  %v9411_v14 = vld [vmem:[%s15211_s7 + $0x64] ss:$8 sps:$4 sm:$0xff]   ;;  %v7563_v20 = vpack.c.bf16 %v4783_v44, %v9345_v41  ;;  %v9520_v44 = vld [vmem:[%s15211_s7 + $0x200] ss:$8 sps:$4 sm:$0xff]  }
 0x50c   :  { %v14382_v17 = vsel %vm3310_vm4, %v4600_v16, %v4717_v36  ;;  %v4715_v19 = vpop.permute.xlu0 %4714  ;;  %v9465_v36 = vld [vmem:[%s15211_s7 + $0x94] ss:$8 sps:$4 sm:$0xff]  }
 0x50d   :  { %v4816_v18 = vpack.c.bf16 %v14382_v17, %v14366_v49  ;;  %v14387_v32 = vsel %vm3310_vm4, %v4584_v59, %v4715_v19  ;;  %v9459_v59 = vld [vmem:[%s15211_s7 + $0xa4] ss:$8 sps:$4 sm:$0xff]   ;;  %v9493_v49 = vld [vmem:[%s15211_s7 + $0x1d0] ss:$8 sps:$4 sm:$0xff]  }
 0x50e   :  { %v4808_v48 = vpack.c.bf16 %v14387_v32, %v14319_v7  ;;  %v9471_v19 = vld [vmem:[%s15211_s7 + $0x84] ss:$8 sps:$4 sm:$0xff]   ;;  %v9487_v32 = vld [vmem:[%s15211_s7 + $0x1e0] ss:$8 sps:$4 sm:$0xff]   ;;  %v9478_v17 = vld [vmem:[%s15211_s7 + $0x270] ss:$8 sps:$4 sm:$0xff]  }
 0x510   :  { %v9348_v23 = vpop.permute.xlu0 %9347 }
 0x511   :  { %v9349_v46 = vunpack.i.l.bf16 %v9348_v23 }
 0x512   :  { %5268 = vmatmul.mubr.bf16.vlgmr.msra.gmra.mxu1 %v4788_v9  ;;  %v9420_v9 = vld [vmem:[%s15211_s7 + $0x34] ss:$8 sps:$4 sm:$0xff]  }
 0x513   :  { %5275 = vmatprep.mubr.bf16.mxu1 %v14283_v40  ;;  %6335 = vmatpush1.bf16.msra.mxu1 %v9406_v54  ;;  %v9418_v40 = vld [vmem:[%s15211_s7 + $0x30] ss:$8 sps:$4 sm:$0xff]   ;;  %v4784_v7 = vsel %vm3310_vm4, %v4605_v43, %v9349_v46  ;;  %v9697_v54 = vmov 0.0|0.0   ;;  %v9529_v46 = vld [vmem:[%s15211_s7 + $0x2e0] ss:$8 sps:$4 sm:$0xff]  }
 0x514   :  { %6336 = vmatprep.subr.bf16.mxu1 %v9411_v14  ;;  %v9495_v14 = vld [vmem:[%s15211_s7 + $0x1d4] ss:$8 sps:$4 sm:$0xff]  }
 0x517   :  { %6337 = vmatpush1.bf16.msra.mxu1 %v9409_v8  ;;  %v9480_v8 = vld [vmem:[%s15211_s7 + $0x274] ss:$8 sps:$4 sm:$0xff]  }
 0x518   :  { %6338 = vmatprep.subr.bf16.mxu1 %v9414_v26  ;;  %v9486_v26 = vld [vmem:[%s15211_s7 + $0x264] ss:$8 sps:$4 sm:$0xff]  }
 0x51a   :  { %5276 = vmatmul.mubr.bf16.gmra.mxu1 %v4792_v47  ;;  %v9451_v47 = vld [vmem:[%s15211_s7 + $0xb0] ss:$8 sps:$4 sm:$0xff]  }
 0x51b   :  { %7556 = vmatprep.mubr.msk.bf16.mxu1 %vm14259_vm9, %v14301_v30  ;;  %6339 = vmatpush1.bf16.msra.mxu1 %v9412_v6  ;;  %v9421_v30 = vld [vmem:[%s15211_s7 + $0x20] ss:$8 sps:$4 sm:$0xff]  }
 0x51c   :  { %6340 = vmatprep.subr.bf16.mxu1 %v9417_v52  ;;  %v9499_v6 = vld [vmem:[%s15211_s7 + $0x1c0] ss:$8 sps:$4 sm:$0xff]  }
 0x51d   :  { %v9484_v52 = vld [vmem:[%s15211_s7 + $0x260] ss:$8 sps:$4 sm:$0xff]  }
 0x51f   :  { %6341 = vmatpush1.bf16.msra.mxu1 %v9415_v12  ;;  %v9507_v12 = vld [vmem:[%s15211_s7 + $0x1b4] ss:$8 sps:$4 sm:$0xff]  }
 0x520   :  { %6342 = vmatprep.subr.bf16.mxu1 %v9420_v9  ;;  %v9492_v9 = vld [vmem:[%s15211_s7 + $0x254] ss:$8 sps:$4 sm:$0xff]  }
 0x522   :  { %5284 = vmatmul.mubr.bf16.gmra.mxu1 %v4796_v33  ;;  %v9429_v33 = vld [vmem:[%s15211_s7 + $0x4] ss:$8 sps:$4 sm:$0xff]  }
 0x523   :  { %5291 = vmatprep.mubr.bf16.mxu1 %v14321_v57  ;;  %6343 = vmatpush1.bf16.msra.mxu1 %v9418_v40  ;;  %v9442_v57 = vld [vmem:[%s15211_s7 + $0x160] ss:$8 sps:$4 sm:$0xff]   ;;  %v9505_v40 = vld [vmem:[%s15211_s7 + $0x1b0] ss:$8 sps:$4 sm:$0xff]  }
 0x524   :  { %6344 = vmatprep.subr.bf16.mxu1 %v9423_v24  ;;  %6390 = vmatpush1.bf16.msra.mxu0 %v9442_v57  ;;  %v9490_v24 = vld [vmem:[%s15211_s7 + $0x250] ss:$8 sps:$4 sm:$0xff]  }
 0x525   :  { %6391 = vmatprep.subr.bf16.mxu0 %v9450_v35  ;;  %v9510_v35 = vld [vmem:[%s15211_s7 + $0x224] ss:$8 sps:$4 sm:$0xff]  }
 0x527   :  { %6345 = vmatpush1.bf16.msra.mxu1 %v9421_v30  ;;  %v9498_v30 = vld [vmem:[%s15211_s7 + $0x244] ss:$8 sps:$4 sm:$0xff]  }
 0x528   :  { %6346 = vmatprep.subr.bf16.mxu1 %v9426_v38  ;;  %6392 = vmatpush1.bf16.msra.mxu0 %v9448_v2  ;;  %v9496_v38 = vld [vmem:[%s15211_s7 + $0x240] ss:$8 sps:$4 sm:$0xff]  }
 0x529   :  { %6393 = vmatprep.subr.bf16.mxu0 %v9456_v60  ;;  %v9523_v60 = vld [vmem:[%s15211_s7 + $0x180] ss:$8 sps:$4 sm:$0xff]  }
 0x52a   :  { %5292 = vmatmul.mubr.bf16.gmra.mxu1 %v4800_v62  ;;  %v9454_v62 = vld [vmem:[%s15211_s7 + $0x140] ss:$8 sps:$4 sm:$0xff]  }
 0x52b   :  { %7560 = vmatprep.mubr.msk.bf16.mxu1 %vm14259_vm9, %v14342_v61  ;;  %6347 = vmatpush1.bf16.msra.mxu1 %v9424_v58  ;;  %v9430_v61 = vld [vmem:[%s15211_s7 + $0xf0] ss:$8 sps:$4 sm:$0xff]   ;;  %v9504_v58 = vld [vmem:[%s15211_s7 + $0x234] ss:$8 sps:$4 sm:$0xff]  }
 0x52c   :  { %6348 = vmatprep.subr.bf16.mxu1 %v9429_v33  ;;  %6394 = vmatpush1.bf16.msra.mxu0 %v9454_v62  ;;  %v9516_v62 = vld [vmem:[%s15211_s7 + $0x214] ss:$8 sps:$4 sm:$0xff]  }
 0x52d   :  { %6395 = vmatprep.subr.bf16.mxu0 %v9462_v13  ;;  %v9534_v13 = vld [vmem:[%s15211_s7 + $0x374] ss:$8 sps:$4 sm:$0xff]  }
 0x52f   :  { %6349 = vmatpush1.bf16.msra.mxu1 %v9427_v21  ;;  %v9517_v21 = vld [vmem:[%s15211_s7 + $0x190] ss:$8 sps:$4 sm:$0xff]  }
 0x530   :  { %6350 = vmatprep.subr.bf16.mxu1 %v9432_v28  ;;  %6396 = vmatpush1.bf16.msra.mxu0 %v9460_v63  ;;  %v9519_v28 = vld [vmem:[%s15211_s7 + $0x194] ss:$8 sps:$4 sm:$0xff]   ;;  %v9522_v63 = vld [vmem:[%s15211_s7 + $0x204] ss:$8 sps:$4 sm:$0xff]  }
 0x532   :  { %5300 = vmatmul.mubr.bf16.gmra.mxu1 %v4804_v29  ;;  %v9468_v29 = vld [vmem:[%s15211_s7 + $0x124] ss:$8 sps:$4 sm:$0xff]  }
 0x533   :  { %5307 = vmatprep.mubr.bf16.mxu1 %v14369_v3  ;;  %6351 = vmatpush2.bf16.msra.mxu1 %v9430_v61  ;;  %v9350_v3 = vunpack.i.h.bf16 %v9348_v23 }
 0x534   :  { %6352 = vmatprep.subr.bf16.mxu1 %v9435_v34  ;;  %6397 = vmatprep.subr.bf16.mxu0 %v9468_v29  ;;  %v9508_v34 = vld [vmem:[%s15211_s7 + $0x220] ss:$8 sps:$4 sm:$0xff]  }
 0x535   :  { %6398 = vmatpush1.bf16.msra.mxu0 %v9466_v4  ;;  %v4785_v16 = vsel %vm3310_vm4, %v4607_v0, %v9350_v3  ;;  %v9457_v0 = vld [vmem:[%s15211_s7 + $0xa0] ss:$8 sps:$4 sm:$0xff]   ;;  %v9531_v3 = vld [vmem:[%s15211_s7 + $0x2e4] ss:$8 sps:$4 sm:$0xff]  }
 0x536   :  { %6399 = vmatprep.subr.bf16.mxu0 %v9474_v51  ;;  %v4817_v43 = vpack.c.bf16 %v4785_v16, %v4784_v7  ;;  %v9549_v7 = vld [vmem:[%s15211_s7 + $0x2b4] ss:$8 sps:$4 sm:$0xff]   ;;  %v9547_v16 = vld [vmem:[%s15211_s7 + $0x2b0] ss:$8 sps:$4 sm:$0xff]  }
 0x537   :  { %6353 = vmatpush2.bf16.msra.mxu1 %v9433_v27 }
 0x538   :  { %6354 = vmatprep.subr.bf16.mxu1 %v9441_v5  ;;  %v9514_v5 = vld [vmem:[%s15211_s7 + $0x210] ss:$8 sps:$4 sm:$0xff]  }
 0x539   :  { %6400 = vmatpush1.bf16.msra.mxu0 %v9472_v42  ;;  %v9543_v42 = vld [vmem:[%s15211_s7 + $0x2c4] ss:$8 sps:$4 sm:$0xff]  }
 0x53a   :  { %5308 = vmatmul.mubr.bf16.gmra.mxu1 %v4808_v48  ;;  %6401 = vmatprep.subr.bf16.mxu0 %v9477_v10  ;;  %v9469_v48 = vld [vmem:[%s15211_s7 + $0x80] ss:$8 sps:$4 sm:$0xff]  }
 0x53b   :  { %7564 = vmatprep.mubr.msk.bf16.mxu1 %vm14259_vm9, %v7563_v20  ;;  %6355 = vmatpush2.bf16.msra.mxu1 %v9439_v1  ;;  %v9528_v1 = vld [vmem:[%s15211_s7 + $0x2f4] ss:$8 sps:$4 sm:$0xff]   ;;  %v9526_v20 = vld [vmem:[%s15211_s7 + $0x2f0] ss:$8 sps:$4 sm:$0xff]   ;;  %v9541_v10 = vld [vmem:[%s15211_s7 + $0x2c0] ss:$8 sps:$4 sm:$0xff]  }
 0x53c   :  { %6356 = vmatprep.subr.bf16.mxu1 %v9447_v31 }
 0x53d   :  { %6402 = vmatpush1.bf16.msra.mxu0 %v9475_v39  ;;  %v9553_v39 = vld [vmem:[%s15211_s7 + $0x2a0] ss:$8 sps:$4 sm:$0xff]  }
 0x53e   :  { %6403 = vmatprep.subr.bf16.mxu0 %v9483_v22  ;;  %v9561_v22 = vld [vmem:[%s15211_s7 + $0x294] ss:$8 sps:$4 sm:$0xff]  }
 0x53f   :  { %6357 = vmatpush2.bf16.msra.mxu1 %v9445_v55  ;;  %v9537_v55 = vld [vmem:[%s15211_s7 + $0x2d4] ss:$8 sps:$4 sm:$0xff]  }
 0x540   :  { %6358 = vmatprep.subr.bf16.mxu1 %v9453_v15  ;;  %v9535_v15 = vld [vmem:[%s15211_s7 + $0x2d0] ss:$8 sps:$4 sm:$0xff]  }
 0x541   :  { %6404 = vmatpush2.bf16.msra.mxu0 %v9481_v11  ;;  %v9559_v11 = vld [vmem:[%s15211_s7 + $0x290] ss:$8 sps:$4 sm:$0xff]  }
 0x542   :  { %5316 = vmatmul.mubr.bf16.gmra.mxu1 %v4812_v25  ;;  %v9489_v25 = vld [vmem:[%s15211_s7 + $0x1e4] ss:$8 sps:$4 sm:$0xff]  }
 0x543   :  { %5323 = vmatprep.mubr.bf16.mxu1 %v4817_v43  ;;  %6359 = vmatpush2.bf16.msra.mxu1 %v9451_v47  ;;  %v9555_v47 = vld [vmem:[%s15211_s7 + $0x2a4] ss:$8 sps:$4 sm:$0xff]  }
 0x544   :  { %6360 = vmatprep.subr.bf16.mxu1 %v9459_v59  ;;  %6405 = vmatprep.subr.bf16.mxu0 %v9489_v25  ;;  %v9567_v25 = vld [vmem:[%s15211_s7 + $0x284] ss:$8 sps:$4 sm:$0xff]  }
 0x545   :  { %6406 = vmatpush2.bf16.msra.mxu0 %v9487_v32 }
 0x546   :  { %6407 = vmatprep.subr.bf16.mxu0 %v9495_v14 }
 0x547   :  { %6361 = vmatpush2.bf16.msra.mxu1 %v9457_v0 }
 0x548   :  { %6362 = vmatprep.subr.bf16.mxu1 %v9465_v36 }
 0x549   :  { %6408 = vmatpush2.bf16.msra.mxu0 %v9493_v49 }
 0x54a   :  { %5324 = vmatmul.mubr.bf16.gmra.mxu1 %v4816_v18  ;;  %v9501_v18 = vld [vmem:[%s15211_s7 + $0x1c4] ss:$8 sps:$4 sm:$0xff]  }
 0x54b   :  { %6363 = vmatpush2.bf16.msra.mxu1 %v9463_v45  ;;  %6366 = vmatprep.mubr.bf16.mxu1 %v9697_v54 }
 0x54c   :  { %6364 = vmatprep.subr.bf16.mxu1 %v9471_v19  ;;  %6409 = vmatprep.subr.bf16.mxu0 %v9501_v18 }
 0x54d   :  { %6410 = vmatpush2.bf16.msra.mxu0 %v9499_v6 }
 0x54e   :  { %6411 = vmatprep.subr.bf16.mxu0 %v9507_v12 }
 0x54f   :  { %6365 = vmatpush2.bf16.msra.mxu1 %v9469_v48  ;;  %v9565_v48 = vld [vmem:[%s15211_s7 + $0x280] ss:$8 sps:$4 sm:$0xff]  }
 0x550   :  { %6440 = vmatprep.subr.bf16.mxu1 %v9480_v8  ;;  %v9576_v8 = vld [vmem:[%s15211_s7 + $0x474] ss:$8 sps:$4 sm:$0xff]  }
 0x551   :  { %6412 = vmatpush2.bf16.msra.mxu0 %v9505_v40 }
 0x552   :  { %6367 = vmatmul.mubr.bf16.vlgmr.msra.gmra.mxu1 %v9697_v54  ;;  %6413 = vmatprep.subr.bf16.mxu0 %v9513_v50 }
 0x553   :  { %6441 = vmatpush1.bf16.msra.mxu1 %v9478_v17 }
 0x554   :  { %6442 = vmatprep.subr.bf16.mxu1 %v9486_v26 }
 0x555   :  { %6414 = vmatpush2.bf16.msra.mxu0 %v9511_v56 }
 0x556   :  { %6415 = vmatprep.subr.bf16.mxu0 %v9519_v28 }
 0x557   :  { %6443 = vmatpush1.bf16.msra.mxu1 %v9484_v52 }
 0x558   :  { %6444 = vmatprep.subr.bf16.mxu1 %v9492_v9 }
 0x559   :  { %6416 = vmatpush2.bf16.msra.mxu0 %v9517_v21 }
 0x55a   :  { %6417 = vmatprep.subr.bf16.mxu0 %v9525_v53 }
 0x55b   :  { %6445 = vmatpush1.bf16.msra.mxu1 %v9490_v24 }
 0x55c   :  { %6446 = vmatprep.subr.bf16.mxu1 %v9498_v30 }
 0x55d   :  { %v7961_v33 = vpop.f32.mrf.mxu1  ;;  %6418 = vmatpush2.bf16.msra.mxu0 %v9523_v60  ;;  %v8509_v60 = vpop.f32.mrf.mxu0 }
 0x55e   :  { %6493 = vmatprep.subr.bf16.mxu0 %v9534_v13 }
 0x55f   :  { %v7962_v57 = vpop.f32.mrf.mxu1  ;;  %6447 = vmatpush1.bf16.msra.mxu1 %v9496_v38  ;;  %v5366_v13 = vpop.f32.mrf.mxu0 }
 0x560   :  { %v14649_v2 = vadd.f32 %v7962_v57, %v7961_v33  ;;  %6448 = vmatprep.subr.bf16.mxu1 %v9504_v58 }
 0x561   :  { %v14654_v61 = vpop.f32.mrf.mxu1 }
 0x563   :  { %6449 = vmatpush1.bf16.msra.mxu1 %v9502_v37  ;;  %v14668_v27 = vpop.f32.mrf.mxu1 }
 0x564   :  { %6450 = vmatprep.subr.bf16.mxu1 %v9510_v35 }
 0x567   :  { %6451 = vmatpush1.bf16.msra.mxu1 %v9508_v34 }
 0x568   :  { %6452 = vmatprep.subr.bf16.mxu1 %v9516_v62 }
 0x569   :  { %v7967_v41 = vpop.f32.mrf.mxu1 }
 0x56b   :  { %v7968_v29 = vpop.f32.mrf.mxu1  ;;  %6453 = vmatpush1.bf16.msra.mxu1 %v9514_v5 }
 0x56c   :  { %v14682_v23 = vadd.f32 %v7968_v29, %v7967_v41  ;;  %6454 = vmatprep.subr.bf16.mxu1 %v9522_v63  ;;  %v7966_v29 = vadd.f32 %v14668_v27, %v14654_v61 }
 0x56d   :  { %v7970_v31 = vpop.f32.mrf.mxu1 }
 0x56f   :  { %v7971_v4 = vpop.f32.mrf.mxu1  ;;  %6455 = vmatpush1.bf16.msra.mxu1 %v9520_v44  ;;  %v14772_v44 = vld [vmem:[%s15212_s6] ss:$0 sm:$0xff] }
 0x570   :  { %v14690_v51 = vadd.f32 %v7971_v4, %v7970_v31  ;;  %6456 = vmatprep.subr.bf16.mxu1 %v9528_v1  ;;  %v8510_v4 = vpop.f32.mrf.mxu0  ;;  %v5181_v27 = vadd.f32 %v14682_v23, %v14772_v44 }
 0x573   :  { %6457 = vmatpush2.bf16.msra.mxu1 %v9526_v20 }
 0x574   :  { %6458 = vmatprep.subr.bf16.mxu1 %v9531_v3  ;;  %v5173_v3 = vadd.f32 %v14649_v2, %v14772_v44  ;;  %v5184_v2 = vadd.f32 %v14690_v51, %v14772_v44 }
 0x577   :  { %6459 = vmatpush2.bf16.msra.mxu1 %v9529_v46  ;;  %v5176_v46 = vadd.f32 %v7966_v29, %v14772_v44  ;;  %v9544_v29 = vld [vmem:[%s15211_s7 + $0x350] ss:$8 sps:$4 sm:$0xff]  }
 0x578   :  { %6460 = vmatprep.subr.bf16.mxu1 %v9537_v55 }
 0x57b   :  { %6461 = vmatpush2.bf16.msra.mxu1 %v9535_v15 }
 0x57c   :  { %6462 = vmatprep.subr.bf16.mxu1 %v9543_v42 }
 0x57f   :  { %6463 = vmatpush2.bf16.msra.mxu1 %v9541_v10 }
 0x580   :  { %6464 = vmatprep.subr.bf16.mxu1 %v9549_v7  ;;  %v5369_v7 = vpop.f32.mrf.mxu0 }
 0x582   :  { %v7973_v59 = vpop.f32.mrf.mxu1 }
 0x583   :  { %6465 = vmatpush2.bf16.msra.mxu1 %v9547_v16 }
 0x584   :  { %v7974_v43 = vpop.f32.mrf.mxu1  ;;  %6466 = vmatprep.subr.bf16.mxu1 %v9555_v47 }
 0x585   :  { %v14725_v0 = vadd.f32 %v7974_v43, %v7973_v59 }
 0x586   :  { %v7976_v36 = vpop.f32.mrf.mxu1 }
 0x587   :  { %6467 = vmatpush2.bf16.msra.mxu1 %v9553_v39 }
 0x588   :  { %v7977_v45 = vpop.f32.mrf.mxu1  ;;  %6468 = vmatprep.subr.bf16.mxu1 %v9561_v22 }
 0x589   :  { %v14733_v19 = vadd.f32 %v7977_v45, %v7976_v36 }
 0x58a   :  { %v14735_v32 = vpop.f32.mrf.mxu1 }
 0x58b   :  { %6469 = vmatpush2.bf16.msra.mxu1 %v9559_v11  ;;  %v8513_v11 = vpop.f32.mrf.mxu0 }
 0x58c   :  { %v14740_v14 = vpop.f32.mrf.mxu1  ;;  %6470 = vmatprep.subr.bf16.mxu1 %v9567_v25 }
 0x58d   :  { %v5382_v51 = vpop.f32.mrf.mxu0 }
 0x58e   :  { %v7982_v49 = vpop.f32.mrf.mxu1 }
 0x58f   :  { %6471 = vmatpush2.bf16.msra.mxu1 %v9565_v48  ;;  %v15897_v48 = vmov 0.0  }
 0x590   :  { %v7983_v17 = vpop.f32.mrf.mxu1  ;;  %6546 = vmatprep.subr.bf16.mxu1 %v9576_v8 }
 0x591   :  { %v14745_v18 = vadd.f32 %v7983_v17, %v7982_v49  ;;  %v9532_v49 = vld [vmem:[%s15211_s7 + $0x370] ss:$8 sps:$4 sm:$0xff]   ;;  %v9540_v17 = vld [vmem:[%s15211_s7 + $0x364] ss:$8 sps:$4 sm:$0xff]  }
 0x5a2   :  { %v7985_v26 = vpop.f32.mrf.mxu1 }
 0x5a4   :  { %v7986_v6 = vpop.f32.mrf.mxu1 }
 0x5a5   :  { %v14747_v52 = vadd.f32 %v7986_v6, %v7985_v26 }
 0x5a6   :  { %v14749_v12 = vpop.f32.mrf.mxu1 }
 0x5a8   :  { %v14751_v9 = vpop.f32.mrf.mxu1 }
 0x5aa   :  { %v7991_v40 = vpop.f32.mrf.mxu1 }
 0x5ac   :  { %v7992_v24 = vpop.f32.mrf.mxu1 }
 0x5ad   :  { %v14753_v30 = vadd.f32 %v7992_v24, %v7991_v40 }
 0x5ae   :  { %v14755_v38 = vpop.f32.mrf.mxu1 }
 0x5b0   :  { %v14757_v56 = vpop.f32.mrf.mxu1 }
 0x5c2   :  { %v7997_v50 = vpop.f32.mrf.mxu1 }
 0x5c4   :  { %v7998_v58 = vpop.f32.mrf.mxu1 }
 0x5c5   :  { %v14759_v33 = vadd.f32 %v7998_v58, %v7997_v50 }
 0x5c6   :  { %v8000_v57 = vpop.f32.mrf.mxu1 }
 0x5c8   :  { %v8001_v37 = vpop.f32.mrf.mxu1 }
 0x5c9   :  { %v14761_v21 = vadd.f32 %v8001_v37, %v8000_v57  ;;  %v9538_v57 = vld [vmem:[%s15211_s7 + $0x360] ss:$8 sps:$4 sm:$0xff]  }
 0x5ca   :  { %v8003_v28 = vpop.f32.mrf.mxu1 }
 0x5cc   :  { %v8004_v35 = vpop.f32.mrf.mxu1 }
 0x5cd   :  { %v14763_v34 = vadd.f32 %v8004_v35, %v8003_v28  ;;  %v9546_v28 = vld [vmem:[%s15211_s7 + $0x354] ss:$8 sps:$4 sm:$0xff]  }
 0x5ce   :  { %v8006_v62 = vpop.f32.mrf.mxu1 }
 0x5d0   :  { %v8007_v53 = vpop.f32.mrf.mxu1 }
 0x5d1   :  { %v14765_v5 = vadd.f32 %v8007_v53, %v8006_v62  ;;  %v8514_v53 = vpop.f32.mrf.mxu0 }
 0x5d2   :  { %v8025_v63 = vpop.f32.mrf.mxu1 }
 0x5d4   :  { %v8026_v41 = vpop.f32.mrf.mxu1 }
 0x5d5   :  { %v8027_v31 = vadd.f32 %v8026_v41, %v8025_v63  ;;  %v5192_v63 = vadd.f32 %v14733_v19, %v14772_v44  ;;  %v5385_v19 = vpop.f32.mrf.mxu0 }
 0x5d6   :  { %v8028_v1 = vpop.f32.mrf.mxu1 }
 0x5d7   :  { %v5270_v42 = vadd.f32 %v8027_v31, %v5173_v3 }
 0x5d8   :  { %v8029_v20 = vpop.f32.mrf.mxu1 }
 0x5d9   :  { %v8030_v55 = vadd.f32 %v8029_v20, %v8028_v1  ;;  %v5367_v39 = vadd.f32 %v5366_v13, %v5270_v42  ;;  %v7981_v13 = vadd.f32 %v14740_v14, %v14735_v32  ;;  %v9550_v14 = vld [vmem:[%s15211_s7 + $0x340] ss:$8 sps:$4 sm:$0xff]   ;;  %v9558_v42 = vld [vmem:[%s15211_s7 + $0x334] ss:$8 sps:$4 sm:$0xff]  }
 0x5da   :  { %v8031_v15 = vpop.f32.mrf.mxu1 }
 0x5db   :  { %v5273_v10 = vadd.f32 %v8030_v55, %v5176_v46  ;;  %v5429_v26 = vmax.f32 %v5367_v39, 0.0  ;;  %v5197_v46 = vadd.f32 %v7981_v13, %v14772_v44  ;;  %v9556_v39 = vld [vmem:[%s15211_s7 + $0x330] ss:$8 sps:$4 sm:$0xff]  }
 0x5dc   :  { %v8032_v61 = vpop.f32.mrf.mxu1 }
 0x5dd   :  { %v5370_v16 = vadd.f32 %v5369_v7, %v5273_v10  ;;  %v8033_v47 = vadd.f32 %v8032_v61, %v8031_v15  ;;  %v8517_v61 = vpop.f32.mrf.mxu0 }
 0x5de   :  { %v8034_v59 = vpop.f32.mrf.mxu1 }
 0x5df   :  { %v5430_v43 = vmax.f32 %v5370_v16, 0.0  ;;  %v5278_v22 = vadd.f32 %v8033_v47, %v5181_v27  ;;  %v5200_v16 = vadd.f32 %v14745_v18, %v14772_v44  ;;  %v7990_v18 = vadd.f32 %v14751_v9, %v14749_v12 }
 0x5e0   :  { %v8035_v36 = vpop.f32.mrf.mxu1  ;;  %v5205_v9 = vadd.f32 %v14747_v52, %v14772_v44  ;;  %v9573_v52 = vld [vmem:[%s15211_s7 + $0x304] ss:$8 sps:$4 sm:$0xff]  }
 0x5e1   :  { %v5375_v45 = vadd.f32 %v8509_v60, %v5278_v22  ;;  %v8036_v25 = vadd.f32 %v8035_v36, %v8034_v59  ;;  %v5446_v8 = vpack.c.bf16 %v5430_v43, %v15897_v48  ;;  %v9564_v36 = vld [vmem:[%s15211_s7 + $0x324] ss:$8 sps:$4 sm:$0xff]  }
 0x5e2   :  { %v8037_v23 = vpop.f32.mrf.mxu1 }
 0x5e3   :  { %v5431_v6 = vmax.f32 %v5375_v45, 0.0  ;;  %v5281_v40 = vadd.f32 %v8036_v25, %v5184_v2  ;;  %6419 = vmatprep.mubr.bf16.mxu0 %v5446_v8  ;;  %v5398_v8 = vpop.f32.mrf.mxu0 }
 0x5e4   :  { %v8038_v24 = vpop.f32.mrf.mxu1  ;;  %6420 = vmatmul.mubr.bf16.vlgmr.msra.gmra.mxu0 %v9697_v54  ;;  %v5189_v54 = vadd.f32 %v14725_v0, %v14772_v44  ;;  %v9552_v0 = vld [vmem:[%s15211_s7 + $0x344] ss:$8 sps:$4 sm:$0xff]  }
 0x5e5   :  { %v14789_v50 = vpack.c.bf16 %v5431_v6, %v5429_v26  ;;  %v5378_v58 = vadd.f32 %v8510_v4, %v5281_v40  ;;  %6494 = vmatpush1.bf16.msra.mxu0 %v9532_v49  ;;  %v8039_v62 = vadd.f32 %v8038_v24, %v8037_v23  ;;  %v9570_v40 = vld [vmem:[%s15211_s7 + $0x314] ss:$8 sps:$4 sm:$0xff]   ;;  %v8518_v12 = vpop.f32.mrf.mxu0 }
 0x5e6   :  { %v8040_v37 = vpop.f32.mrf.mxu1  ;;  %6495 = vmatprep.subr.bf16.mxu0 %v9540_v17  ;;  %v9562_v17 = vld [vmem:[%s15211_s7 + $0x320] ss:$8 sps:$4 sm:$0xff]  }
 0x5e7   :  { %v5432_v35 = vmax.f32 %v5378_v58, 0.0  ;;  %v5286_v4 = vadd.f32 %v8039_v62, %v5189_v54 }
 0x5e8   :  { %v8041_v60 = vpop.f32.mrf.mxu1 }
 0x5e9   :  { %v8042_v41 = vadd.f32 %v8041_v60, %v8040_v37  ;;  %6496 = vmatpush1.bf16.msra.mxu0 %v9538_v57  ;;  %v5448_v1 = vpack.c.bf16 %v5432_v35, %v5430_v43  ;;  %v5383_v10 = vadd.f32 %v5382_v51, %v5286_v4  ;;  %v5208_v57 = vadd.f32 %v7990_v18, %v14772_v44  ;;  %v9568_v35 = vld [vmem:[%s15211_s7 + $0x310] ss:$8 sps:$4 sm:$0xff]  }
 0x5ea   :  { %v8043_v31 = vpop.f32.mrf.mxu1  ;;  %6497 = vmatprep.subr.bf16.mxu0 %v9546_v28 }
 0x5eb   :  { %v5289_v20 = vadd.f32 %v8042_v41, %v5192_v63  ;;  %v5433_v2 = vmax.f32 %v5383_v10, 0.0  ;;  %v7996_v63 = vadd.f32 %v14757_v56, %v14755_v38  ;;  %v5213_v41 = vadd.f32 %v14753_v30, %v14772_v44  ;;  %v9579_v38 = vld [vmem:[%s15211_s7 + $0x3f4] ss:$8 sps:$4 sm:$0xff]   ;;  %v9582_v30 = vld [vmem:[%s15211_s7 + $0x464] ss:$8 sps:$4 sm:$0xff]  }
 0x5ec   :  { %v8044_v3 = vpop.f32.mrf.mxu1 }
 0x5ed   :  { %v8045_v32 = vadd.f32 %v8044_v3, %v8043_v31  ;;  %6498 = vmatpush1.bf16.msra.mxu0 %v9544_v29  ;;  %v5386_v55 = vadd.f32 %v5385_v19, %v5289_v20  ;;  %v9571_v31 = vld [vmem:[%s15211_s7 + $0x300] ss:$8 sps:$4 sm:$0xff]   ;;  %v5216_v19 = vadd.f32 %v7996_v63, %v14772_v44 }
 0x5ee   :  { %v8046_v15 = vpop.f32.mrf.mxu1  ;;  %6499 = vmatprep.subr.bf16.mxu0 %v9552_v0  ;;  %v9574_v0 = vld [vmem:[%s15211_s7 + $0x470] ss:$8 sps:$4 sm:$0xff]  }
 0x5ef   :  { %v5294_v7 = vadd.f32 %v8045_v32, %v5197_v46  ;;  %v5434_v43 = vmax.f32 %v5386_v55, 0.0 }
 0x5f0   :  { %v8047_v27 = vpop.f32.mrf.mxu1 }
 0x5f1   :  { %v5391_v47 = vadd.f32 %v8513_v11, %v5294_v7  ;;  %v8048_v59 = vadd.f32 %v8047_v27, %v8046_v15  ;;  %6500 = vmatpush1.bf16.msra.mxu0 %v9550_v14  ;;  %v14832_v26 = vpack.c.bf16 %v5434_v43, %v15897_v48  ;;  %v9577_v15 = vld [vmem:[%s15211_s7 + $0x3f0] ss:$8 sps:$4 sm:$0xff]  }
 0x5f2   :  { %v8049_v22 = vpop.f32.mrf.mxu1  ;;  %6501 = vmatprep.subr.bf16.mxu0 %v9558_v42  ;;  %v9580_v42 = vld [vmem:[%s15211_s7 + $0x460] ss:$8 sps:$4 sm:$0xff]  }
 0x5f3   :  { %v5435_v45 = vmax.f32 %v5391_v47, 0.0  ;;  %v5297_v25 = vadd.f32 %v8048_v59, %v5200_v16  ;;  %v9588_v16 = vld [vmem:[%s15211_s7 + $0x454] ss:$8 sps:$4 sm:$0xff]  }
 0x5f4   :  { %v8050_v49 = vpop.f32.mrf.mxu1 }
 0x5f5   :  { %v5394_v11 = vadd.f32 %v8514_v53, %v5297_v25  ;;  %6502 = vmatpush1.bf16.msra.mxu0 %v9556_v39  ;;  %v14826_v23 = vpack.c.bf16 %v5435_v45, %v5433_v2  ;;  %v8051_v51 = vadd.f32 %v8050_v49, %v8049_v22  ;;  %v5401_v53 = vpop.f32.mrf.mxu0  ;;  %v9586_v22 = vld [vmem:[%s15211_s7 + $0x450] ss:$8 sps:$4 sm:$0xff]   ;;  %v9591_v45 = vld [vmem:[%s15211_s7 + $0x3d4] ss:$8 sps:$4 sm:$0xff]   ;;  %v9594_v25 = vld [vmem:[%s15211_s7 + $0x444] ss:$8 sps:$4 sm:$0xff]  }
 0x5f6   :  { %v8052_v6 = vpop.f32.mrf.mxu1  ;;  %6503 = vmatprep.subr.bf16.mxu0 %v9564_v36 }
 0x5f7   :  { %v5436_v24 = vmax.f32 %v5394_v11, 0.0  ;;  %6376 = vmatprep.mubr.bf16.mxu1 %v14826_v23  ;;  %v5302_v54 = vadd.f32 %v8051_v51, %v5205_v9  ;;  %v8521_v36 = vpop.f32.mrf.mxu0  ;;  %v5221_v11 = vadd.f32 %v14759_v33, %v14772_v44  ;;  %v9597_v51 = vld [vmem:[%s15211_s7 + $0x3c4] ss:$8 sps:$4 sm:$0xff]   ;;  %v9600_v33 = vld [vmem:[%s15211_s7 + $0x434] ss:$8 sps:$4 sm:$0xff]  }
 0x5f8   :  { %v8053_v58 = vpop.f32.mrf.mxu1  ;;  %6377 = vmatmul.mubr.bf16.gmra.mxu1 %v14832_v26 }
 0x5f9   :  { %v14842_v37 = vpack.c.bf16 %v5436_v24, %v5434_v43  ;;  %v8054_v28 = vadd.f32 %v8053_v58, %v8052_v6  ;;  %6504 = vmatpush1.bf16.msra.mxu0 %v9562_v17  ;;  %6472 = vmatprep.mubr.bf16.mxu1 %v5448_v1  ;;  %v5399_v56 = vadd.f32 %v5398_v8, %v5302_v54  ;;  %v9583_v43 = vld [vmem:[%s15211_s7 + $0x3e0] ss:$8 sps:$4 sm:$0xff]   ;;  %v9589_v17 = vld [vmem:[%s15211_s7 + $0x3d0] ss:$8 sps:$4 sm:$0xff]  }
 0x5fa   :  { %v8055_v62 = vpop.f32.mrf.mxu1  ;;  %6505 = vmatprep.subr.bf16.mxu0 %v9570_v40  ;;  %v9592_v6 = vld [vmem:[%s15211_s7 + $0x440] ss:$8 sps:$4 sm:$0xff]   ;;  %v5414_v40 = vpop.f32.mrf.mxu0 }
 0x5fb   :  { %v5305_v60 = vadd.f32 %v8054_v28, %v5208_v57  ;;  %v5437_v7 = vmax.f32 %v5399_v56, 0.0  ;;  %v5224_v57 = vadd.f32 %v14761_v21, %v14772_v44  ;;  %v5229_v28 = vadd.f32 %v14763_v34, %v14772_v44  ;;  %v9603_v21 = vld [vmem:[%s15211_s7 + $0x3b4] ss:$8 sps:$4 sm:$0xff]   ;;  %v9606_v34 = vld [vmem:[%s15211_s7 + $0x424] ss:$8 sps:$4 sm:$0xff]  }
 0x5fc   :  { %v8056_v13 = vpop.f32.mrf.mxu1  ;;  %v8522_v54 = vpop.f32.mrf.mxu0  ;;  %v9609_v56 = vld [vmem:[%s15211_s7 + $0x3a4] ss:$8 sps:$4 sm:$0xff]  }
 0x5fd   :  { %v5402_v29 = vadd.f32 %v5401_v53, %v5305_v60  ;;  %v8057_v1 = vadd.f32 %v8056_v13, %v8055_v62  ;;  %6506 = vmatpush1.bf16.msra.mxu0 %v9568_v35  ;;  %v9595_v62 = vld [vmem:[%s15211_s7 + $0x3c0] ss:$8 sps:$4 sm:$0xff]  }
 0x5fe   :  { %v8058_v4 = vpop.f32.mrf.mxu1  ;;  %6507 = vmatprep.subr.bf16.mxu0 %v9573_v52  ;;  %v9598_v52 = vld [vmem:[%s15211_s7 + $0x430] ss:$8 sps:$4 sm:$0xff]  }
 0x5ff   :  { %v5438_v20 = vmax.f32 %v5402_v29, 0.0  ;;  %v5310_v3 = vadd.f32 %v8057_v1, %v5213_v41  ;;  %v15898_v41 = vmov 0   ;;  %v5232_v1 = vadd.f32 %v14765_v5, %v14772_v44  ;;  %v9612_v5 = vld [vmem:[%s15211_s7 + $0x414] ss:$8 sps:$4 sm:$0xff]  }
 0x600   :  { %v8059_v46 = vpop.f32.mrf.mxu1  ;;  %6473 = vmatmul.mubr.bf16.vlgmr.msra.gmra.mxu1 %v14789_v50  ;;  %v9585_v50 = vld [vmem:[%s15211_s7 + $0x3e4] ss:$8 sps:$4 sm:$0xff]  }
 0x601   :  { %v5407_v32 = vadd.f32 %v8517_v61, %v5310_v3  ;;  %v8060_v14 = vadd.f32 %v8059_v46, %v8058_v4  ;;  %6508 = vmatpush1.bf16.msra.mxu0 %v9571_v31  ;;  %6547 = vmatpush1.bf16.msra.mxu1 %v9574_v0  ;;  %v5452_v55 = vpack.c.bf16 %v5438_v20, %v15897_v48  ;;  %v9601_v4 = vld [vmem:[%s15211_s7 + $0x3b0] ss:$8 sps:$4 sm:$0xff]  }
 0x602   :  { %v8061_v10 = vpop.f32.mrf.mxu1  ;;  %6509 = vmatprep.subr.bf16.mxu0 %v9579_v38  ;;  %6548 = vmatprep.subr.bf16.mxu1 %v9582_v30  ;;  %v9604_v38 = vld [vmem:[%s15211_s7 + $0x420] ss:$8 sps:$4 sm:$0xff]   ;;  %v5417_v30 = vpop.f32.mrf.mxu0 }
 0x603   :  { %v5439_v61 = vmax.f32 %v5407_v32, 0.0  ;;  %v5313_v27 = vadd.f32 %v8060_v14, %v5216_v19  ;;  %6429 = vmatprep.mubr.bf16.mxu0 %v5452_v55  ;;  %v9607_v32 = vld [vmem:[%s15211_s7 + $0x3a0] ss:$8 sps:$4 sm:$0xff]   ;;  %v9610_v14 = vld [vmem:[%s15211_s7 + $0x410] ss:$8 sps:$4 sm:$0xff]  }
 0x604   :  { %v8062_v47 = vpop.f32.mrf.mxu1  ;;  %6430 = vmatmul.mubr.bf16.gmra.mxu0 %v14842_v37 }
 0x605   :  { %v5453_v59 = vpack.c.bf16 %v5439_v61, %v5437_v7  ;;  %v5410_v39 = vadd.f32 %v8518_v12, %v5313_v27  ;;  %6510 = vmatpush2.bf16.msra.mxu0 %v9577_v15  ;;  %6549 = vmatpush1.bf16.msra.mxu1 %v9580_v42  ;;  %v8063_v49 = vadd.f32 %v8062_v47, %v8061_v10  ;;  %v9615_v15 = vld [vmem:[%s15211_s7 + $0x394] ss:$8 sps:$4 sm:$0xff]   ;;  %v9618_v42 = vld [vmem:[%s15211_s7 + $0x404] ss:$8 sps:$4 sm:$0xff]   ;;  %v9613_v61 = vld [vmem:[%s15211_s7 + $0x390] ss:$8 sps:$4 sm:$0xff]  }
 0x606   :  { %6525 = vmatprep.mubr.bf16.mxu0 %v14826_v23  ;;  %v8064_v2 = vpop.f32.mrf.mxu1  ;;  %6511 = vmatprep.subr.bf16.mxu0 %v9585_v50  ;;  %v9616_v27 = vld [vmem:[%s15211_s7 + $0x400] ss:$8 sps:$4 sm:$0xff]  }
 0x607   :  { %v5440_v8 = vmax.f32 %v5410_v39, 0.0  ;;  %6550 = vmatprep.subr.bf16.mxu1 %v9588_v16  ;;  %v5318_v12 = vadd.f32 %v8063_v49, %v5221_v11  ;;  %v9621_v16 = vld [vmem:[%s15211_s7 + $0x384] ss:$8 sps:$4 sm:$0xff]   ;;  %v9619_v47 = vld [vmem:[%s15211_s7 + $0x380] ss:$8 sps:$4 sm:$0xff]   ;;  %v9622_v39 = vld [vmem:[%s15213_s9 + $0x78] sm:$0xff]  }
 0x608   :  { %v8065_v18 = vpop.f32.mrf.mxu1  ;;  %v9633_v49 = vld [vmem:[%s15213_s9 + $0xe8] sm:$0xff]  }
 0x609   :  { %6512 = vmatpush2.bf16.msra.mxu0 %v9583_v43  ;;  %6551 = vmatpush1.bf16.msra.mxu1 %v9586_v22  ;;  %v5454_v23 = vpack.c.bf16 %v5440_v8, %v5438_v20  ;;  %v8066_v9 = vadd.f32 %v8065_v18, %v8064_v2  ;;  %v5415_v53 = vadd.f32 %v5414_v40, %v5318_v12  ;;  %v9623_v43 = vld [vmem:[%s15213_s9 + $0x38] sm:$0xff]   ;;  %v9629_v2 = vld [vmem:[%s15213_s9 + $0xf0] sm:$0xff]   ;;  %v9632_v8 = vld [vmem:[%s15213_s9 + $0x60] sm:$0xff]  }
 0x60a   :  { %v8067_v24 = vpop.f32.mrf.mxu1  ;;  %6513 = vmatprep.subr.bf16.mxu0 %v9591_v45  ;;  %6552 = vmatprep.subr.bf16.mxu1 %v9594_v25  ;;  %v9627_v22 = vld [vmem:[%s15213_s9 + $0xb8] sm:$0xff]   ;;  %v9630_v45 = vld [vmem:[%s15213_s9 + $0x28] sm:$0xff]   ;;  %v9631_v25 = vld [vmem:[%s15213_s9 + $0xb0] sm:$0xff]  }
 0x60b   :  { %6482 = vmatprep.mubr.bf16.mxu1 %v5454_v23  ;;  %v5321_v63 = vadd.f32 %v8066_v9, %v5224_v57  ;;  %v5441_v44 = vmax.f32 %v5415_v53, 0.0  ;;  %v9634_v18 = vld [vmem:[%s15213_s9 + $0x20] sm:$0xff]   ;;  %v9635_v11 = vld [vmem:[%s15213_s9 + $0xa8] sm:$0xff]   ;;  %v9636_v23 = vld [vmem:[%s15213_s9 + $0x58] sm:$0xff]  }
 0x60c   :  { %v8068_v58 = vpop.f32.mrf.mxu1  ;;  %6483 = vmatmul.mubr.bf16.gmra.mxu1 %v5453_v59  ;;  %v9639_v40 = vld [vmem:[%s15213_s9 + $0xa0] sm:$0xff]   ;;  %v9643_v12 = vld [vmem:[%s15213_s9 + $0x98] sm:$0xff]   ;;  %v9644_v9 = vld [vmem:[%s15213_s9 + $0x48] sm:$0xff]  }
 0x60d   :  { %v8069_v35 = vadd.f32 %v8068_v58, %v8067_v24  ;;  %6514 = vmatpush2.bf16.msra.mxu0 %v9589_v17  ;;  %6553 = vmatpush1.bf16.msra.mxu1 %v9592_v6  ;;  %v5418_v20 = vadd.f32 %v5417_v30, %v5321_v63  ;;  %v9637_v17 = vld [vmem:[%s15213_s9 + $0xe0] sm:$0xff]   ;;  %v9638_v6 = vld [vmem:[%s15213_s9 + $0x18] sm:$0xff]   ;;  %v9640_v24 = vld [vmem:[%s15213_s9 + $0x50] sm:$0xff]  }
 0x60e   :  { %v8070_v60 = vpop.f32.mrf.mxu1  ;;  %6515 = vmatprep.subr.bf16.mxu0 %v9597_v51  ;;  %6554 = vmatprep.subr.bf16.mxu1 %v9600_v33  ;;  %v9641_v51 = vld [vmem:[%s15213_s9 + $0xd8] sm:$0xff]   ;;  %v9642_v33 = vld [vmem:[%s15213_s9 + $0x10] sm:$0xff]   ;;  %v9646_v57 = vld [vmem:[%s15213_s9 + $0x8] sm:$0xff]  }
 0x60f   :  { %v5326_v13 = vadd.f32 %v8069_v35, %v5229_v28  ;;  %6578 = vmatprep.mubr.bf16.mxu1 %v15898_v41  ;;  %v5442_v10 = vmax.f32 %v5418_v20, 0.0  ;;  %v9645_v58 = vld [vmem:[%s15213_s9 + $0xd0] sm:$0xff]   ;;  %v9648_v35 = vld [vmem:[%s15213_s9 + $0x40] sm:$0xff]   ;;  %v9657_v53 = vld [vmem:[%s15213_s9 + $0x1f8] sm:$0xff]   ;;  %v5604_v20 = vlaneseq }
 0x610   :  { %v8071_v29 = vpop.f32.mrf.mxu1  ;;  %v9647_v28 = vld [vmem:[%s15213_s9 + $0x90] sm:$0xff]  }
 0x611   :  { %v5423_v31 = vadd.f32 %v8521_v36, %v5326_v13  ;;  %v8072_v0 = vadd.f32 %v8071_v29, %v8070_v60  ;;  %6516 = vmatpush2.bf16.msra.mxu0 %v9595_v62  ;;  %6555 = vmatpush1.bf16.msra.mxu1 %v9598_v52  ;;  %v5455_v59 = vpack.c.bf16 %v5442_v10, %v15897_v48  ;;  %v9626_v48 = vld [vmem:[%s15213_s9 + $0x30] sm:$0xff]   ;;  %v9628_v36 = vld [vmem:[%s15213_s9 + $0x68] sm:$0xff]   ;;  %v9650_v52 = vld [vmem:[%s15213_s9] sm:$0xff]  }
 0x612   :  { %6517 = vmatprep.subr.bf16.mxu0 %v9603_v21  ;;  %6556 = vmatprep.subr.bf16.mxu1 %v9606_v34  ;;  %v9649_v62 = vld [vmem:[%s15213_s9 + $0xc8] sm:$0xff]   ;;  %v9652_v60 = vld [vmem:[%s15213_s9 + $0xc0] sm:$0xff]   ;;  %v9653_v21 = vld [vmem:[%s15213_s9 + $0x178] sm:$0xff]   ;;  %v6368_v63 = vpop.f32.mrf.mxu1 }
 0x613   :  { %v5443_v3 = vmax.f32 %v5423_v31, 0.0  ;;  %v5329_v19 = vadd.f32 %v8072_v0, %v5232_v1  ;;  %v9654_v34 = vld [vmem:[%s15213_s9 + $0x80] sm:$0xff]  }
 0x614   :  { %v6370_v13 = vpop.f32.mrf.mxu1 }
 0x615   :  { %v5426_v46 = vadd.f32 %v8522_v54, %v5329_v19  ;;  %6518 = vmatpush2.bf16.msra.mxu0 %v9601_v4  ;;  %6557 = vmatpush1.bf16.msra.mxu1 %v9604_v38  ;;  %v5456_v55 = vpack.c.bf16 %v5443_v3, %v5441_v44  ;;  %v9651_v54 = vld [vmem:[%s15213_s9 + $0x88] sm:$0xff]  }
 0x616   :  { %6519 = vmatprep.subr.bf16.mxu0 %v9609_v56  ;;  %6558 = vmatprep.subr.bf16.mxu1 %v9612_v5 }
 0x617   :  { %v5444_v50 = vmax.f32 %v5426_v46, 0.0 }
 0x619   :  { %v5457_v7 = vpack.c.bf16 %v5444_v50, %v5442_v10  ;;  %6520 = vmatpush2.bf16.msra.mxu0 %v9607_v32  ;;  %6559 = vmatpush1.bf16.msra.mxu1 %v9610_v14  ;;  %v5605_v32 = vshrl.u32 %v5604_v20, 7  ;;  %v5602_v10 = vld [vmem:[%s15214_s8] sm:$0x3] }
 0x61a   :  { %6521 = vmatprep.subr.bf16.mxu0 %v9615_v15  ;;  %6560 = vmatprep.subr.bf16.mxu1 %v9618_v42 }
 0x61b   :  { %v5606_v42 = vsub.s32 0, %v5605_v32  ;;  %v5610_v50 = vsub.s32 1, %v5605_v32 }
 0x61d   :  { %6522 = vmatpush2.bf16.msra.mxu0 %v9613_v61  ;;  %6561 = vmatpush1.bf16.msra.mxu1 %v9616_v27  ;;  %v15083_v27 = vrot.slane %v5602_v10, %v5606_v42 }
 0x61e   :  { %6523 = vmatprep.subr.bf16.mxu0 %v9621_v16  ;;  %v5611_v16 = vrot.slane %v5602_v10, %v5610_v50  ;;  %v9658_v10 = vld [vmem:[%s15213_s9 + $0x130] sm:$0xff]   ;;  %v9659_v50 = vld [vmem:[%s15213_s9 + $0x1b8] sm:$0xff]  }
 0x620   :  { %6579 = vmatmul.mubr.bf16.vlgmr.msra.gmra.mxu1 %v14842_v37  ;;  %v9624_v37 = vld [vmem:[%s15213_s9 + $0x70] sm:$0xff]  }
 0x621   :  { %6524 = vmatpush2.bf16.msra.mxu0 %v9619_v47  ;;  %6588 = vmatprep.mubr.bf16.mxu1 %v15898_v41  ;;  %v6372_v41 = vpop.f32.mrf.mxu1 }
 0x622   :  { %8085 = vmatprep.subr.bf16.mxu0 %v9622_v39  ;;  %v6369_v39 = vadd.f32 %v6368_v63, %v15083_v27 }
 0x623   :  { %v6374_v29 = vpop.f32.mrf.mxu1 }
 0x624   :  { %6526 = vmatmul.mubr.bf16.vlgmr.msra.gmra.mxu0 %v14832_v26  ;;  %v9625_v26 = vld [vmem:[%s15213_s9 + $0xf8] sm:$0xff]  }
 0x625   :  { %6535 = vmatprep.mubr.bf16.mxu0 %v5456_v55  ;;  %8086 = vmatpush3.bf16.msra.mxu0 %v9623_v43 }
 0x626   :  { %8087 = vmatprep.subr.bf16.mxu0 %v9624_v37  ;;  %8107 = vmatprep.subr.bf16.mxu1 %v9625_v26  ;;  %v6371_v37 = vadd.f32 %v6370_v13, %v5611_v16 }
 0x627   :  { %8108 = vmatpush3.bf16.msra.mxu1 %v9627_v22 }
 0x628   :  { %6589 = vmatmul.mubr.bf16.gmra.mxu1 %v5457_v7  ;;  %8109 = vmatprep.subr.bf16.mxu1 %v9629_v2 }
 0x629   :  { %8088 = vmatpush3.bf16.msra.mxu0 %v9626_v48 }
 0x62a   :  { %8089 = vmatprep.subr.bf16.mxu0 %v9628_v36  ;;  %v6373_v36 = vadd.f32 %v6372_v41, %v15083_v27 }
 0x62b   :  { %8110 = vmatpush3.bf16.msra.mxu1 %v9631_v25 }
 0x62c   :  { %6536 = vmatmul.mubr.bf16.gmra.mxu0 %v5455_v59  ;;  %8111 = vmatprep.subr.bf16.mxu1 %v9633_v49  ;;  %v6375_v49 = vadd.f32 %v6374_v29, %v5611_v16 }
 0x62d   :  { %8090 = vmatpush3.bf16.msra.mxu0 %v9630_v45 }
 0x62e   :  { %8091 = vmatprep.subr.bf16.mxu0 %v9632_v8 }
 0x62f   :  { %8112 = vmatpush3.bf16.msra.mxu1 %v9635_v11 }
 0x630   :  { %8113 = vmatprep.subr.bf16.mxu1 %v9637_v17 }
 0x631   :  { %8092 = vmatpush3.bf16.msra.mxu0 %v9634_v18 }
 0x632   :  { %8093 = vmatprep.subr.bf16.mxu0 %v9636_v23 }
 0x633   :  { %8114 = vmatpush3.bf16.msra.mxu1 %v9639_v40 }
 0x634   :  { %8115 = vmatprep.subr.bf16.mxu1 %v9641_v51 }
 0x635   :  { %8094 = vmatpush3.bf16.msra.mxu0 %v9638_v6 }
 0x636   :  { %8095 = vmatprep.subr.bf16.mxu0 %v9640_v24 }
 0x637   :  { %8116 = vmatpush3.bf16.msra.mxu1 %v9643_v12 }
 0x638   :  { %8117 = vmatprep.subr.bf16.mxu1 %v9645_v58 }
 0x639   :  { %8096 = vmatpush3.bf16.msra.mxu0 %v9642_v33 }
 0x63a   :  { %8097 = vmatprep.subr.bf16.mxu0 %v9644_v9 }
 0x63b   :  { %8118 = vmatpush3.bf16.msra.mxu1 %v9647_v28 }
 0x63c   :  { %8119 = vmatprep.subr.bf16.mxu1 %v9649_v62 }
 0x63d   :  { %8098 = vmatpush3.bf16.msra.mxu0 %v9646_v57 }
 0x63e   :  { %8099 = vmatprep.subr.bf16.mxu0 %v9648_v35 }
 0x63f   :  { %8120 = vmatpush3.bf16.msra.mxu1 %v9651_v54 }
 0x640   :  { %8121 = vmatprep.subr.bf16.mxu1 %v9652_v60 }
 0x641   :  { %8100 = vmatpush3.bf16.msra.mxu0 %v9650_v52 }
 0x642   :  { %8129 = vmatprep.subr.bf16.mxu0 %v9653_v21 }
 0x643   :  { %8122 = vmatpush3.bf16.msra.mxu1 %v9654_v34 }
 0x644   :  { %8151 = vmatprep.subr.bf16.mxu1 %v9657_v53 }
 0x6a4   :  { %v6421_v30 = vpop.f32.mrf.mxu0 }
 0x6a5   :  { %v6422_v26 = vadd.f32 %v6421_v30, %v6369_v39  ;;  %v9660_v39 = vld [vmem:[%s15213_s9 + $0x168] sm:$0xff]  }
 0x6a6   :  { %v6423_v5 = vpop.f32.mrf.mxu0 }
 0x6a7   :  { %v6424_v2 = vadd.f32 %v6423_v5, %v6371_v37 }
 0x6a8   :  { %v6425_v3 = vpop.f32.mrf.mxu0 }
 0x6a9   :  { %v6426_v18 = vadd.f32 %v6425_v3, %v6373_v36  ;;  %v9662_v36 = vld [vmem:[%s15213_s9 + $0x128] sm:$0xff]  }
 0x6aa   :  { %v6427_v14 = vpop.f32.mrf.mxu0 }
 0x6ab   :  { %v6428_v40 = vadd.f32 %v6427_v14, %v6375_v49 }
 0x6b8   :  { %v15070_v1 = vpop.f32.mrf.mxu1 }
 0x6ba   :  { %v6380_v31 = vpop.f32.mrf.mxu1 }
 0x6bb   :  { %v6381_v58 = vadd.f32 %v6380_v31, %v5611_v16  ;;  %v9655_v31 = vld [vmem:[%s15213_s9 + $0x138] sm:$0xff]  }
 0x6bc   :  { %v15072_v0 = vpop.f32.mrf.mxu1 }
 0x6be   :  { %v6384_v4 = vpop.f32.mrf.mxu1 }
 0x6bf   :  { %v6385_v13 = vadd.f32 %v6384_v4, %v5611_v16 }
 0x6c0   :  { %v6474_v38 = vpop.f32.mrf.mxu1 }
 0x6c1   :  { %v6475_v45 = vadd.f32 %v6474_v38, %v6422_v26 }
 0x6c2   :  { %v6476_v56 = vpop.f32.mrf.mxu1 }
 0x6c3   :  { %v6477_v11 = vadd.f32 %v6476_v56, %v6424_v2  ;;  %v9663_v2 = vld [vmem:[%s15213_s9 + $0x1b0] sm:$0xff]  }
 0x6c4   :  { %v6478_v44 = vpop.f32.mrf.mxu1  ;;  %v15076_v55 = vpop.f32.mrf.mxu0 }
 0x6c5   :  { %v6479_v24 = vadd.f32 %v6478_v44, %v6426_v18  ;;  %v9656_v44 = vld [vmem:[%s15213_s9 + $0x170] sm:$0xff]   ;;  %v9666_v18 = vld [vmem:[%s15213_s9 + $0x120] sm:$0xff]  }
 0x6c6   :  { %v6480_v19 = vpop.f32.mrf.mxu1  ;;  %v6433_v7 = vpop.f32.mrf.mxu0 }
 0x6c7   :  { %v6481_v57 = vadd.f32 %v6480_v19, %v6428_v40  ;;  %v6434_v54 = vadd.f32 %v6433_v7, %v6381_v58  ;;  %v9670_v40 = vld [vmem:[%s15213_s9 + $0x118] sm:$0xff]  }
 0x6c8   :  { %v15085_v47 = vpop.f32.mrf.mxu0 }
 0x6ca   :  { %v6437_v48 = vpop.f32.mrf.mxu0 }
 0x6cb   :  { %v6438_v20 = vadd.f32 %v6437_v48, %v6385_v13  ;;  %v9685_v13 = vld [vmem:[%s15213_s9 + $0x180] sm:$0xff]  }
 0x6cc   :  { %v15074_v46 = vpop.f32.mrf.mxu1 }
 0x6ce   :  { %v6486_v15 = vpop.f32.mrf.mxu1 }
 0x6cf   :  { %v6487_v41 = vadd.f32 %v6486_v15, %v6434_v54 }
 0x6d0   :  { %v15081_v61 = vpop.f32.mrf.mxu1 }
 0x6d2   :  { %v6490_v59 = vpop.f32.mrf.mxu1 }
 0x6d3   :  { %v6491_v14 = vadd.f32 %v6490_v59, %v6438_v20  ;;  %v9661_v59 = vld [vmem:[%s15213_s9 + $0x1f0] sm:$0xff]  }
 0x6e0   :  { %v6580_v43 = vpop.f32.mrf.mxu1 }
 0x6e2   :  { %v6582_v22 = vpop.f32.mrf.mxu1 }
 0x6e4   :  { %v6527_v25 = vpop.f32.mrf.mxu0  ;;  %v6584_v8 = vpop.f32.mrf.mxu1 }
 0x6e5   :  { %v6528_v23 = vadd.f32 %v6527_v25, %v6475_v45  ;;  %v9664_v45 = vld [vmem:[%s15213_s9 + $0x160] sm:$0xff]   ;;  %v9665_v25 = vld [vmem:[%s15213_s9 + $0x1e8] sm:$0xff]  }
 0x6e6   :  { %v6529_v17 = vpop.f32.mrf.mxu0  ;;  %v6586_v6 = vpop.f32.mrf.mxu1 }
 0x6e7   :  { %v6581_v51 = vadd.f32 %v6580_v43, %v6528_v23  ;;  %v6530_v33 = vadd.f32 %v6529_v17, %v6477_v11  ;;  %v9667_v11 = vld [vmem:[%s15213_s9 + $0x1a8] sm:$0xff]   ;;  %v9668_v23 = vld [vmem:[%s15213_s9 + $0x158] sm:$0xff]   ;;  %v9669_v17 = vld [vmem:[%s15213_s9 + $0x1e0] sm:$0xff]  }
 0x6e8   :  { %v6531_v12 = vpop.f32.mrf.mxu0  ;;  %v15089_v9 = vpop.f32.mrf.mxu1 }
 0x6e9   :  { %v6583_v28 = vadd.f32 %v6582_v22, %v6530_v33  ;;  %v6532_v35 = vadd.f32 %v6531_v12, %v6479_v24  ;;  %v6599_v62 = vmax.f32 %v6581_v51, 0.0  ;;  %v9671_v24 = vld [vmem:[%s15213_s9 + $0x1a0] sm:$0xff]   ;;  %v9672_v33 = vld [vmem:[%s15213_s9 + $0x150] sm:$0xff]   ;;  %v6383_v12 = vadd.f32 %v15072_v0, %v15083_v27  ;;  %v9676_v0 = vld [vmem:[%s15213_s9 + $0x148] sm:$0xff]  }
 0x6ea   :  { %v6533_v52 = vpop.f32.mrf.mxu0  ;;  %v6592_v53 = vpop.f32.mrf.mxu1 }
 0x6eb   :  { %v6600_v60 = vmax.f32 %v6583_v28, 0.0  ;;  %v6585_v21 = vadd.f32 %v6584_v8, %v6532_v35  ;;  %v6534_v34 = vadd.f32 %v6533_v52, %v6481_v57  ;;  %v6607_v30 = vpack.c.bf16 %v6599_v62, %v6599_v62  ;;  %v9675_v57 = vld [vmem:[%s15213_s9 + $0x198] sm:$0xff]   ;;  %v9679_v62 = vld [vmem:[%s15213_s9 + $0x190] sm:$0xff]  }
 0x6ec   :  { %v15091_v63 = vpop.f32.mrf.mxu0  ;;  %v15099_v32 = vpop.f32.mrf.mxu1  ;;  %v6436_v28 = vadd.f32 %v15085_v47, %v6383_v12  ;;  %v9678_v47 = vld [vmem:[%s15213_s9 + $0x108] sm:$0xff]  }
 0x6ed   :  { %v6608_v29 = vpack.c.bf16 %v6600_v60, %v6600_v60  ;;  %v6587_v38 = vadd.f32 %v6586_v6, %v6534_v34  ;;  %v6601_v56 = vmax.f32 %v6585_v21, 0.0  ;;  %v6379_v6 = vadd.f32 %v15070_v1, %v15083_v27  ;;  %v9673_v1 = vld [vmem:[%s15213_s9 + $0x1d8] sm:$0xff]   ;;  %v9681_v60 = vld [vmem:[%s15213_s9 + $0x1c8] sm:$0xff]   ;;  %v9682_v21 = vld [vmem:[%s15213_s9 + $0x100] sm:$0xff]  }
 0x6ee   :  { %v6539_v5 = vpop.f32.mrf.mxu0  ;;  %v6596_v26 = vpop.f32.mrf.mxu1  ;;  %v6489_v27 = vadd.f32 %v15081_v61, %v6436_v28  ;;  %v9680_v61 = vld [vmem:[%s15213_s9 + $0x140] sm:$0xff]  }
 0x6ef   :  { %v6602_v3 = vmax.f32 %v6587_v38, 0.0  ;;  %v6540_v19 = vadd.f32 %v6539_v5, %v6487_v41  ;;  %7166 = vmatprep.mubr.bf16.mxu0 %v6608_v29  ;;  %v6609_v7 = vpack.c.bf16 %v6601_v56, %v6601_v56  ;;  %v6432_v51 = vadd.f32 %v15076_v55, %v6379_v6  ;;  %v9674_v55 = vld [vmem:[%s15213_s9 + $0x110] sm:$0xff]  }
 0x6f0   :  { %v15101_v4 = vpop.f32.mrf.mxu0  ;;  %7167 = vmatmul.mubr.bf16.vlgmr.msra.gmra.mxu0 %v6607_v30 }
 0x6f1   :  { %v6610_v15 = vpack.c.bf16 %v6602_v3, %v6602_v3  ;;  %v6593_v42 = vadd.f32 %v6592_v53, %v6540_v19  ;;  %8130 = vmatpush3.bf16.msra.mxu0 %v9655_v31  ;;  %v6485_v58 = vadd.f32 %v15074_v46, %v6432_v51  ;;  %v9677_v46 = vld [vmem:[%s15213_s9 + $0x1d0] sm:$0xff]   ;;  %v6542_v54 = vadd.f32 %v15101_v4, %v6489_v27  ;;  %v7717_v4 = vld [vmem:[%s15215_s10] ss:$0 sm:$0xff] }
 0x6f2   :  { %v6543_v16 = vpop.f32.mrf.mxu0  ;;  %8131 = vmatprep.subr.bf16.mxu0 %v9656_v44 }
 0x6f3   :  { %v6604_v43 = vmax.f32 %v6593_v42, 0.0  ;;  %v6544_v37 = vadd.f32 %v6543_v16, %v6491_v14  ;;  %7206 = vmatprep.mubr.bf16.mxu1 %v6610_v15  ;;  %v6538_v35 = vadd.f32 %v15091_v63, %v6485_v58  ;;  %v6595_v53 = vadd.f32 %v15099_v32, %v6542_v54  ;;  %v9684_v63 = vld [vmem:[%s15213_s9 + $0x1c0] sm:$0xff]  }
 0x6f4   :  { %7207 = vmatmul.mubr.bf16.vlgmr.msra.gmra.mxu1 %v6609_v7 }
 0x6f5   :  { %v6612_v48 = vpack.c.bf16 %v6604_v43, %v6604_v43  ;;  %v6597_v22 = vadd.f32 %v6596_v26, %v6544_v37  ;;  %8132 = vmatpush3.bf16.msra.mxu0 %v9658_v10  ;;  %8152 = vmatpush3.bf16.msra.mxu1 %v9659_v50  ;;  %v6591_v52 = vadd.f32 %v15089_v9, %v6538_v35  ;;  %v9683_v9 = vld [vmem:[%s15213_s9 + $0x188] sm:$0xff]   ;;  %v6605_v29 = vmax.f32 %v6595_v53, 0.0 }
 0x6f6   :  { %8133 = vmatprep.subr.bf16.mxu0 %v9660_v39  ;;  %8153 = vmatprep.subr.bf16.mxu1 %v9661_v59 }
 0x6f7   :  { %v6606_v8 = vmax.f32 %v6597_v22, 0.0  ;;  %7246 = vmatprep.mubr.bf16.mxu0 %v6612_v48  ;;  %v6603_v34 = vmax.f32 %v6591_v52, 0.0  ;;  %v6613_v38 = vpack.c.bf16 %v6605_v29, %v6605_v29 }
 0x6f9   :  { %v6614_v49 = vpack.c.bf16 %v6606_v8, %v6606_v8  ;;  %8134 = vmatpush3.bf16.msra.mxu0 %v9662_v36  ;;  %8154 = vmatpush3.bf16.msra.mxu1 %v9663_v2  ;;  %v6611_v41 = vpack.c.bf16 %v6603_v34, %v6603_v34 }
 0x6fa   :  { %8135 = vmatprep.subr.bf16.mxu0 %v9664_v45  ;;  %8155 = vmatprep.subr.bf16.mxu1 %v9665_v25 }
 0x6fb   :  { %7286 = vmatprep.mubr.bf16.mxu1 %v6614_v49 }
 0x6fd   :  { %8136 = vmatpush3.bf16.msra.mxu0 %v9666_v18  ;;  %8156 = vmatpush3.bf16.msra.mxu1 %v9667_v11 }
 0x6fe   :  { %8137 = vmatprep.subr.bf16.mxu0 %v9668_v23  ;;  %8157 = vmatprep.subr.bf16.mxu1 %v9669_v17 }
 0x701   :  { %8138 = vmatpush3.bf16.msra.mxu0 %v9670_v40  ;;  %8158 = vmatpush3.bf16.msra.mxu1 %v9671_v24 }
 0x702   :  { %8139 = vmatprep.subr.bf16.mxu0 %v9672_v33  ;;  %8159 = vmatprep.subr.bf16.mxu1 %v9673_v1 }
 0x705   :  { %8140 = vmatpush3.bf16.msra.mxu0 %v9674_v55  ;;  %8160 = vmatpush3.bf16.msra.mxu1 %v9675_v57 }
 0x706   :  { %8141 = vmatprep.subr.bf16.mxu0 %v9676_v0  ;;  %8161 = vmatprep.subr.bf16.mxu1 %v9677_v46 }
 0x709   :  { %8142 = vmatpush3.bf16.msra.mxu0 %v9678_v47  ;;  %8162 = vmatpush3.bf16.msra.mxu1 %v9679_v62 }
 0x70a   :  { %8143 = vmatprep.subr.bf16.mxu0 %v9680_v61  ;;  %8163 = vmatprep.subr.bf16.mxu1 %v9681_v60 }
 0x70d   :  { %8144 = vmatpush3.bf16.msra.mxu0 %v9682_v21  ;;  %8164 = vmatpush3.bf16.msra.mxu1 %v9683_v9 }
 0x70e   :  { %8165 = vmatprep.subr.bf16.mxu1 %v9684_v63 }
 0x710   :  { %7247 = vmatmul.mubr.bf16.vlgmr.msra.gmra.mxu0 %v6611_v41 }
 0x711   :  { %8166 = vmatpush3.bf16.msra.mxu1 %v9685_v13 }
 0x714   :  { %7287 = vmatmul.mubr.bf16.vlgmr.msra.gmra.mxu1 %v6613_v38 }
 0x7b0   :  { %v8101_v31 = vpop.f32.mrf.mxu0 }
 0x7b2   :  { %v8102_v30 = vpop.f32.mrf.mxu0 }
 0x7b3   :  { %v8103_v32 = vadd.f32 %v8102_v30, %v8101_v31 }
 0x7b4   :  { %v8104_v56 = vpop.f32.mrf.mxu0  ;;  %v8123_v5 = vpop.f32.mrf.mxu1 }
 0x7b5   :  { %v7169_v10 = vadd.f32 %v8103_v32, %v7717_v4 }
 0x7b6   :  { %v8105_v44 = vpop.f32.mrf.mxu0  ;;  %v8124_v20 = vpop.f32.mrf.mxu1 }
 0x7b7   :  { %v8125_v15 = vadd.f32 %v8124_v20, %v8123_v5 }
 0x7b8   :  { %v8126_v3 = vpop.f32.mrf.mxu1 }
 0x7b9   :  { %v7209_v39 = vadd.f32 %v8125_v15, %v7169_v10 }
 0x7ba   :  { %v8127_v19 = vpop.f32.mrf.mxu1 }
 0x7d0   :  { %v8145_v14 = vpop.f32.mrf.mxu0 }
 0x7d2   :  { %v8146_v42 = vpop.f32.mrf.mxu0 }
 0x7d3   :  { %v8147_v50 = vadd.f32 %v8146_v42, %v8145_v14 }
 0x7d4   :  { %v8148_v7 = vpop.f32.mrf.mxu0  ;;  %v8167_v16 = vpop.f32.mrf.mxu1 }
 0x7d5   :  { %v7249_v37 = vadd.f32 %v8147_v50, %v7209_v39 }
 0x7d6   :  { %v8149_v59 = vpop.f32.mrf.mxu0  ;;  %v8168_v43 = vpop.f32.mrf.mxu1 }
 0x7d7   :  { %v8169_v26 = vadd.f32 %v8168_v43, %v8167_v16 }
 0x7d8   :  { %v8170_v48 = vpop.f32.mrf.mxu1 }
 0x7d9   :  { %v7289_v22 = vadd.f32 %v8169_v26, %v7249_v37 }
 0x7da   :  { %v8171_v36 = vpop.f32.mrf.mxu1 }
 0x7db   :  { %7294 = vst [vmem:[%s15216_s11] sm:$0xff] %v7289_v22 }

</bundles_post_ra>
